<compile_context>
chip_gen: v7x
topology: tpu7x:2x2x1
jax: 0.10.0
libtpu: 0.0.40
codegen_flags: <defaults>
</compile_context>

<pallas_src>
import jax
import jax.numpy as jnp
from jax.experimental import pallas as pl
from jax.experimental.pallas import tpu as pltpu

D_IN = 1024  # feature dim fixed by the module (Linear(1024, ...))


def _round_up(x, m):
    return (x + m - 1) // m * m


def _decoder_kernel(x_ref, w1_ref, b1_ref, w2_ref, b2_ref, w3_ref, b3_ref,
                    o_ref, h_ref):
    # Layers 1-2: computed once per batch tile (first N-tile of its inner loop)
    # and cached in VMEM scratch as bf16. Correct under megacore because the
    # batch axis is outer/"parallel" and each core re-runs n==0 per batch tile.
    @pl.when(pl.program_id(1) == 0)
    def _():
        h = jnp.dot(x_ref[...].astype(jnp.bfloat16), w1_ref[...],
                    preferred_element_type=jnp.float32)
        h = jnp.maximum(h + b1_ref[...], 0.0)
        h = jnp.dot(h.astype(jnp.bfloat16), w2_ref[...],
                    preferred_element_type=jnp.float32)
        h = jnp.maximum(h + b2_ref[...], 0.0)
        h_ref[...] = h.astype(jnp.bfloat16)

    # Layer 3: one w3 column block per grid step (DMA of the next block is
    # double-buffered by the BlockSpec pipeline while this dot runs).
    o = jnp.dot(h_ref[...], w3_ref[...], preferred_element_type=jnp.float32)
    o_ref[...] = (o + b3_ref[...]).astype(o_ref.dtype)


def pointnet_decoder_forward(x, params, numpoints):
    """x: (B, 1024) float32 -> (B, 3, numpoints) float32."""
    w1, b1, w2, b2, w3, b3 = params
    bs, d = x.shape
    assert d == D_IN
    out_dim = numpoints * 3

    # bf16 weights, f32 biases / accumulation.
    w1 = w1.astype(jnp.bfloat16)
    w2 = w2.astype(jnp.bfloat16)
    w3 = w3.astype(jnp.bfloat16)
    b1 = b1.reshape(1, d).astype(jnp.float32)
    b2 = b2.reshape(1, d).astype(jnp.float32)
    b3 = b3.reshape(1, out_dim).astype(jnp.float32)

    # Batch tiling: pad rows to a multiple of 8 sublanes (tile capped at 128).
    tile_b = _round_up(bs, 8) if bs <= 128 else 128
    padded_bs = _round_up(bs, tile_b)

    # N tiling: pad out_dim to a lane-dense multiple of 128 and pick the
    # largest tile (<= 1024) that divides it.
    padded_out = _round_up(out_dim, 128)
    tile_n = 128
    for cand in (1024, 512, 384, 256, 128):
        if padded_out % cand == 0:
            tile_n = cand
            break

    x_p = x if padded_bs == bs else jnp.pad(x, ((0, padded_bs - bs), (0, 0)))
    if padded_out != out_dim:
        w3 = jnp.pad(w3, ((0, 0), (0, padded_out - out_dim)))
        b3 = jnp.pad(b3, ((0, 0), (0, padded_out - out_dim)))

    grid = (padded_bs // tile_b, padded_out // tile_n)

    flat = pl.pallas_call(
        _decoder_kernel,
        out_shape=jax.ShapeDtypeStruct((padded_bs, padded_out), jnp.float32),
        grid_spec=pltpu.PrefetchScalarGridSpec(
            num_scalar_prefetch=0,
            grid=grid,
            in_specs=[
                pl.BlockSpec((tile_b, d), lambda b, n: (b, 0)),    # x tile
                pl.BlockSpec((d, d), lambda b, n: (0, 0)),         # w1 (resident)
                pl.BlockSpec((1, d), lambda b, n: (0, 0)),         # b1
                pl.BlockSpec((d, d), lambda b, n: (0, 0)),         # w2 (resident)
                pl.BlockSpec((1, d), lambda b, n: (0, 0)),         # b2
                pl.BlockSpec((d, tile_n), lambda b, n: (0, n)),    # w3 column tile
                pl.BlockSpec((1, tile_n), lambda b, n: (0, n)),    # b3 tile
            ],
            out_specs=pl.BlockSpec((tile_b, tile_n), lambda b, n: (b, n)),
            scratch_shapes=[pltpu.VMEM((tile_b, d), jnp.bfloat16)],
        ),
        compiler_params=pltpu.CompilerParams(
            dimension_semantics=("parallel", "arbitrary"),
            vmem_limit_bytes=32 << 20,  # headroom on all of v5e/v6e/v7x
        ),
        cost_estimate=pl.CostEstimate(
            flops=2 * padded_bs * (d * d * 2 + d * padded_out),
            transcendentals=0,
            bytes_accessed=(2 * (d * d * 2 + d * padded_out)          # bf16 weights
                            + 4 * padded_bs * (d + padded_out)),      # f32 acts
        ),
    )(x_p, w1, b1, w2, b2, w3, b3)

    flat = flat[:bs, :out_dim]
    # .view(bs, 3, numpoints) on the (bs, numpoints*3) output (row-major).
    return flat.reshape(bs, 3, numpoints)


def init_params(key, numpoints):
    """Deterministic synthetic parameters with the module's shapes.

    PyTorch shapes: fc.0: (1024,1024)+(1024,), fc.2: (1024,1024)+(1024,),
    fc.4: (numpoints*3, 1024)+(numpoints*3,). Stored here as (in, out) so the
    kernel computes y = x @ W + b  (== PyTorch's x @ W_pt.T + b).
    """
    k1, k2, k3, k4, k5, k6 = jax.random.split(key, 6)
    d = D_IN
    out_dim = numpoints * 3
    scale = 1.0 / jnp.sqrt(jnp.float32(d))
    w1 = jax.random.uniform(k1, (d, d), jnp.float32, -scale, scale)
    b1 = jax.random.uniform(k4, (1, d), jnp.float32, -scale, scale)
    w2 = jax.random.uniform(k2, (d, d), jnp.float32, -scale, scale)
    b2 = jax.random.uniform(k5, (1, d), jnp.float32, -scale, scale)
    w3 = jax.random.uniform(k3, (d, out_dim), jnp.float32, -scale, scale)
    b3 = jax.random.uniform(k6, (1, out_dim), jnp.float32, -scale, scale)
    return (w1, b1, w2, b2, w3, b3)


if __name__ == "__main__":
    numpoints = 256          # small demo (module default is 1024); out_dim=768 -> 2 N-tiles
    bs = 2
    key = jax.random.PRNGKey(0)
    kx, kp = jax.random.split(key)

    x = jax.random.normal(kx, (bs, D_IN), jnp.float32)   # feature dim fixed at 1024
    params = init_params(kp, numpoints)

    out = jax.block_until_ready(pointnet_decoder_forward(x, params, numpoints))
    assert out.shape == (bs, 3, numpoints)

    # Reference: identical math (bf16 weights/activations, f32 accumulation) in plain JAX.
    w1, b1, w2, b2, w3, b3 = params
    xb = x.astype(jnp.bfloat16)
    h = jnp.maximum(jnp.dot(xb, w1.astype(jnp.bfloat16),
                            preferred_element_type=jnp.float32) + b1, 0.0)
    h = jnp.maximum(jnp.dot(h.astype(jnp.bfloat16), w2.astype(jnp.bfloat16),
                            preferred_element_type=jnp.float32) + b2, 0.0)
    ref = (jnp.dot(h.astype(jnp.bfloat16), w3.astype(jnp.bfloat16),
                   preferred_element_type=jnp.float32) + b3).reshape(bs, 3, numpoints)

    assert jnp.allclose(out, ref, atol=1e-2, rtol=1e-2), \
        float(jnp.max(jnp.abs(out - ref)))
    print("KERNEL_OK")
</pallas_src>

<mosaic_0001>
module attributes {stable_mosaic.version = 11 : i64} {
  func.func @_decoder_kernel(%arg0: i32, %arg1: i32, %arg2: memref<8x1024xf32, #tpu.memory_space<vmem>>, %arg3: memref<1024x1024xbf16, #tpu.memory_space<vmem>>, %arg4: memref<1x1024xf32, #tpu.memory_space<vmem>>, %arg5: memref<1024x1024xbf16, #tpu.memory_space<vmem>>, %arg6: memref<1x1024xf32, #tpu.memory_space<vmem>>, %arg7: memref<1024x384xbf16, #tpu.memory_space<vmem>>, %arg8: memref<1x384xf32, #tpu.memory_space<vmem>>, %arg9: memref<8x384xf32, #tpu.memory_space<vmem>>, %arg10: memref<8x1024xbf16, #tpu.memory_space<vmem>>) attributes {dimension_semantics = [#tpu.dimension_semantics<parallel>, #tpu.dimension_semantics<arbitrary>], iteration_bounds = array<i64: 1, 2>, scalar_prefetch = 0 : i64, scratch_operands = 1 : i64, tpu.core_type = #tpu.core_type<tc>, window_params = [{transform_indices = @transform_0, window_bounds = array<i64: 8, 1024>}, {pipeline_mode = #tpu.pipeline_mode<synchronous>, transform_indices = @transform_1, window_bounds = array<i64: 1024, 1024>}, {pipeline_mode = #tpu.pipeline_mode<synchronous>, transform_indices = @transform_2, window_bounds = array<i64: 1, 1024>}, {pipeline_mode = #tpu.pipeline_mode<synchronous>, transform_indices = @transform_3, window_bounds = array<i64: 1024, 1024>}, {pipeline_mode = #tpu.pipeline_mode<synchronous>, transform_indices = @transform_4, window_bounds = array<i64: 1, 1024>}, {transform_indices = @transform_5, window_bounds = array<i64: 1024, 384>}, {transform_indices = @transform_6, window_bounds = array<i64: 1, 384>}, {transform_indices = @transform_7, window_bounds = array<i64: 8, 384>}]} {
    %c0_i32 = arith.constant 0 : i32
    %0 = arith.cmpi eq, %arg1, %c0_i32 : i32
    %1 = arith.extui %0 : i1 to i32
    %c0_i32_0 = arith.constant 0 : i32
    %2 = arith.cmpi ne, %1, %c0_i32_0 : i32
    scf.if %2 {
      %c0_8 = arith.constant 0 : index
      %c0_9 = arith.constant 0 : index
      %10 = vector.load %arg2[%c0_8, %c0_9] : memref<8x1024xf32, #tpu.memory_space<vmem>>, vector<8x1024xf32>
      %11 = arith.truncf %10 : vector<8x1024xf32> to vector<8x1024xbf16>
      %c0_10 = arith.constant 0 : index
      %c0_11 = arith.constant 0 : index
      %12 = vector.load %arg3[%c0_10, %c0_11] : memref<1024x1024xbf16, #tpu.memory_space<vmem>>, vector<1024x1024xbf16>
      %cst_12 = arith.constant dense<0.000000e+00> : vector<8x1024xf32>
      %13 = tpu.matmul %11, %12, %cst_12 {dimension_numbers = #tpu.dot_dimension_numbers<[1], [0], [0], [1], [0, 0, 1, 1], [], []>} : vector<8x1024xbf16>, vector<1024x1024xbf16>, vector<8x1024xf32> -> vector<8x1024xf32>
      %c0_13 = arith.constant 0 : index
      %c0_14 = arith.constant 0 : index
      %14 = vector.load %arg4[%c0_13, %c0_14] : memref<1x1024xf32, #tpu.memory_space<vmem>>, vector<1x1024xf32>
      %15 = vector.broadcast %14 : vector<1x1024xf32> to vector<8x1024xf32>
      %16 = arith.addf %13, %15 : vector<8x1024xf32>
      %cst_15 = arith.constant 0.000000e+00 : f32
      %17 = vector.broadcast %cst_15 : f32 to vector<8x1024xf32>
      %18 = arith.maximumf %16, %17 : vector<8x1024xf32>
      %19 = arith.truncf %18 : vector<8x1024xf32> to vector<8x1024xbf16>
      %c0_16 = arith.constant 0 : index
      %c0_17 = arith.constant 0 : index
      %20 = vector.load %arg5[%c0_16, %c0_17] : memref<1024x1024xbf16, #tpu.memory_space<vmem>>, vector<1024x1024xbf16>
      %cst_18 = arith.constant dense<0.000000e+00> : vector<8x1024xf32>
      %21 = tpu.matmul %19, %20, %cst_18 {dimension_numbers = #tpu.dot_dimension_numbers<[1], [0], [0], [1], [0, 0, 1, 1], [], []>} : vector<8x1024xbf16>, vector<1024x1024xbf16>, vector<8x1024xf32> -> vector<8x1024xf32>
      %c0_19 = arith.constant 0 : index
      %c0_20 = arith.constant 0 : index
      %22 = vector.load %arg6[%c0_19, %c0_20] : memref<1x1024xf32, #tpu.memory_space<vmem>>, vector<1x1024xf32>
      %23 = vector.broadcast %22 : vector<1x1024xf32> to vector<8x1024xf32>
      %24 = arith.addf %21, %23 : vector<8x1024xf32>
      %cst_21 = arith.constant 0.000000e+00 : f32
      %25 = vector.broadcast %cst_21 : f32 to vector<8x1024xf32>
      %26 = arith.maximumf %24, %25 : vector<8x1024xf32>
      %27 = arith.truncf %26 : vector<8x1024xf32> to vector<8x1024xbf16>
      %c0_22 = arith.constant 0 : index
      %c0_23 = arith.constant 0 : index
      %28 = vector.load %arg10[%c0_22, %c0_23] : memref<8x1024xbf16, #tpu.memory_space<vmem>>, vector<8x1024xbf16>
      tpu.vector_store %arg10[%c0_22, %c0_23], %27 {strides = array<i32>} : memref<8x1024xbf16, #tpu.memory_space<vmem>>, vector<8x1024xbf16>,
    } else {
    }
    %c0 = arith.constant 0 : index
    %c0_1 = arith.constant 0 : index
    %3 = vector.load %arg10[%c0, %c0_1] : memref<8x1024xbf16, #tpu.memory_space<vmem>>, vector<8x1024xbf16>
    %c0_2 = arith.constant 0 : index
    %c0_3 = arith.constant 0 : index
    %4 = vector.load %arg7[%c0_2, %c0_3] : memref<1024x384xbf16, #tpu.memory_space<vmem>>, vector<1024x384xbf16>
    %cst = arith.constant dense<0.000000e+00> : vector<8x384xf32>
    %5 = tpu.matmul %3, %4, %cst {dimension_numbers = #tpu.dot_dimension_numbers<[1], [0], [0], [1], [0, 0, 1, 1], [], []>} : vector<8x1024xbf16>, vector<1024x384xbf16>, vector<8x384xf32> -> vector<8x384xf32>
    %c0_4 = arith.constant 0 : index
    %c0_5 = arith.constant 0 : index
    %6 = vector.load %arg8[%c0_4, %c0_5] : memref<1x384xf32, #tpu.memory_space<vmem>>, vector<1x384xf32>
    %7 = vector.broadcast %6 : vector<1x384xf32> to vector<8x384xf32>
    %8 = arith.addf %5, %7 : vector<8x384xf32>
    %c0_6 = arith.constant 0 : index
    %c0_7 = arith.constant 0 : index
    %9 = vector.load %arg9[%c0_6, %c0_7] : memref<8x384xf32, #tpu.memory_space<vmem>>, vector<8x384xf32>
    tpu.vector_store %arg9[%c0_6, %c0_7], %8 {strides = array<i32>} : memref<8x384xf32, #tpu.memory_space<vmem>>, vector<8x384xf32>,
    return
  }
  func.func @transform_0(%arg0: i32, %arg1: i32) -> (i32, i32) {
    %c0_i32 = arith.constant 0 : i32
    %c0_i32_0 = arith.constant 0 : i32
    return %arg0, %c0_i32 : i32, i32
  }
  func.func @transform_1(%arg0: i32, %arg1: i32) -> (i32, i32) {
    %c0_i32 = arith.constant 0 : i32
    %c0_i32_0 = arith.constant 0 : i32
    %c0_i32_1 = arith.constant 0 : i32
    return %c0_i32, %c0_i32_0 : i32, i32
  }
  func.func @transform_2(%arg0: i32, %arg1: i32) -> (i32, i32) {
    %c0_i32 = arith.constant 0 : i32
    %c0_i32_0 = arith.constant 0 : i32
    %c0_i32_1 = arith.constant 0 : i32
    return %c0_i32, %c0_i32_0 : i32, i32
  }
  func.func @transform_3(%arg0: i32, %arg1: i32) -> (i32, i32) {
    %c0_i32 = arith.constant 0 : i32
    %c0_i32_0 = arith.constant 0 : i32
    %c0_i32_1 = arith.constant 0 : i32
    return %c0_i32, %c0_i32_0 : i32, i32
  }
  func.func @transform_4(%arg0: i32, %arg1: i32) -> (i32, i32) {
    %c0_i32 = arith.constant 0 : i32
    %c0_i32_0 = arith.constant 0 : i32
    %c0_i32_1 = arith.constant 0 : i32
    return %c0_i32, %c0_i32_0 : i32, i32
  }
  func.func @transform_5(%arg0: i32, %arg1: i32) -> (i32, i32) {
    %c0_i32 = arith.constant 0 : i32
    %c0_i32_0 = arith.constant 0 : i32
    return %c0_i32, %arg1 : i32, i32
  }
  func.func @transform_6(%arg0: i32, %arg1: i32) -> (i32, i32) {
    %c0_i32 = arith.constant 0 : i32
    %c0_i32_0 = arith.constant 0 : i32
    return %c0_i32, %arg1 : i32, i32
  }
  func.func @transform_7(%arg0: i32, %arg1: i32) -> (i32, i32) {
    %c0_i32 = arith.constant 0 : i32
    return %arg0, %arg1 : i32, i32
  }
}

</mosaic_0001>

<bundles_post_ra>
// kernel: tpu_custom_call.1
= control target key start
LH: loop header
LB: loop body
LE: loop exit
PB: predicated region body
PF: predicated region fallthrough
CT: control target
= control target key end

     0   :  { %s12831_s0 = inlined_call_operand.hbm [shape: f32[8,1024], index: 0, kind: input, shape index: {}]   ;;  %s12832_s1 = inlined_call_operand.hbm [shape: bf16[1024,1024], index: 1, kind: input, shape index: {}]   ;;  %s12833_s2 = inlined_call_operand.hbm [shape: f32[1,1024], index: 2, kind: input, shape index: {}]   ;;  %s12834_s3 = inlined_call_operand.hbm [shape: bf16[1024,1024], index: 3, kind: input, shape index: {}]   ;;  %s12835_s4 = inlined_call_operand.hbm [shape: f32[1,1024], index: 4, kind: input, shape index: {}]   ;;  %s12836_s5 = inlined_call_operand.hbm [shape: bf16[1024,768], index: 5, kind: input, shape index: {}]   ;;  %s12837_s6 = inlined_call_operand.hbm [shape: f32[1,768], index: 6, kind: input, shape index: {}]   ;;  %s12838_s7 = inlined_call_operand.hbm [shape: f32[8,768], index: 7, kind: output, shape index: {}]  }
   0x1   :  { %12854 = sst [smem:[#allocation26_spill]] %s12832_s1 }
   0x2   :  { %12855 = sst [smem:[#allocation27_spill]] %s12834_s3 }
   0x3   :  { %12856 = sst [smem:[#allocation28_spill]] %s12836_s5 }
   0x4   :  { %12 = vsyncpa [#allocation4], 0 }
   0x5   :  { %13 = vsyncpa [#allocation7], 0 }
   0x6   :  { %14 = vsyncpa [#allocation10], 0 }
   0x7   :  { %15 = vsyncpa [#allocation13], 0 }
   0x8   :  { %17 = vsyncpa [#allocation13 + $0x1], 0 }
   0x9   :  { %18 = vsyncpa [#allocation5], 0 }
   0xa   :  { %20 = vsyncpa [#allocation5 + $0x1], 0  ;;  %s12081_s24 = smov 0   ;;  %s12083_s25 = smov 0  }
   0xb   :  { %s12085_s26 = smov 0   ;;  %s12087_s27 = smov 0  }
   0xc   :  { %s12089_s28 = smov 0   ;;  %s12091_s29 = smov 0  }
   0xd LB: > { %12857 = sst [smem:[#allocation21_spill]] %s12006_s24  ;;  %s12112_s30 = sadd.s32 4294967295, %s12026_s29   ;;  %s12026_s29 = sphi %s12091_s29, %s26_s29   ;;  %s12022_s28 = sphi %s12089_s28, %s12898_s28   ;;  %s12018_s27 = sphi %s12087_s27, %s12897_s27   ;;  %s12014_s26 = sphi %s12085_s26, %s12896_s26   ;;  %s12010_s25 = sphi %s12083_s25, %s12895_s25   ;;  %s12006_s24 = sphi %s12081_s24, %s12894_s24  }
   0xe   : > { %12858 = sst [smem:[#allocation22_spill]] %s12026_s29  ;;  %s9872_s8 = sadd.s32 4294967294, %s12026_s29  }
   0xf   : > { %p168_p0 = scmp.ne.s32.totalorder %s12010_s25, %s12006_s24  ;;  %p12839_p1 = scmp.eq.s32.totalorder %s12112_s30, 0 }
  0x10   : > { %p226_p3 = scmp.eq.s32.totalorder %s9872_s8, 1  ;;  %p9873_p5 = scmp.ge.s32.totalorder %s12026_s29, 1 }
  0x11   : > { %p12121_p4 = por %p12839_p1, %p168_p0  ;;  %p233_p7 = scmp.lt.s32.totalorder %s12026_s29, 3 }
  0x12   : > { %p12126_p6 = por %p226_p3, %p168_p0  ;;  %s12028_s12 = smov [#allocation6]  }
  0x13   : > { %s12859_s9 = scalar_select %p12121_p4, 1, 0 }
  0x14   : > { %s12860_s10 = scalar_select %p12126_p6, 1, 0 }
  0x15   : > { %p12131_p8 = pnand %p9873_p5, %p233_p7  ;;  %s259_s13 = sshll.u32 %s12028_s12, 4  ;;  %s12135_s13 = int_to_ptr.vmem [resolvable:$true] %s259_s13 }
  0x16   : > { %12861 = sst [smem:[#allocation23_spill]] %s12860_s10  ;;  %s12029_s15 = smov [#allocation9]  }
  0x17   : > { %s12862_s11 = scalar_select %p12131_p8, 1, 0 }
  0x18   : > { %p11370_p9 = pneg %p12131_p8  ;;  %s283_s16 = sshll.u32 %s12029_s15, 4  ;;  %s12146_s16 = int_to_ptr.vmem [resolvable:$true] %s283_s16 }
  0x19   : > { %s12864_s1 = sld [smem:[#allocation26_spill]] }
  0x1a   : > { %p12142_p11 = pnand %p11370_p9, %p12839_p1 }
  0x1c   : > { %s12863_s14 = scalar_select %p12142_p11, 1, 0 }
  0x1d   : > { %p12156_p13 = pneg %p12142_p11 }
  0x1f   : > { %s11732_s19 = scalar_lea.hbm %s12864_s1, 65536 }
  0x20   : > { %p11733_p12 = scmp.ne.s32.totalorder %s12864_s1, %s11732_s19  ;;  %p11739_p5 = scmp.lt.u32.totalorder %s11732_s19, %s12864_s1 }
  0x22   : > { %p11735_p0 = pnand %p12156_p13, %p11733_p12 }
  0x24   : > { %p11736_p3 = pneg %p11735_p0 }
  0x26   : > { %p11741_p7 = pnand %p11739_p5, %p11736_p3 }
  0x28   : > { %11744 = shalt.err (!%p11741_p7)
}
  0x29   : > { %s11745_s12 = scalar_lea.vmem %s12135_s13, 65536  ;;  %p11753_p2 = scmp.lt.s32.totalorder %s12135_s13, %s12135_s13 }
  0x2a   : > { %p11746_p9 = scmp.ne.s32.totalorder %s12135_s13, %s11745_s12  ;;  %p11754_p6 = scmp.lt.s32.totalorder %s11745_s12, %s11745_s12 }
  0x2c   : > { %p11748_p10 = pnand %p11746_p9, %p12156_p13  ;;  %p11755_p12 = por %p11754_p6, %p11753_p2 }
  0x2e   : > { %p11749_p1 = pneg %p11748_p10 }
  0x30   : > { %p11756_p0 = pnand %p11755_p12, %p11749_p1 }
  0x32   : > { %11759 = shalt.err (!%p11756_p0)
}
  0x33   : > { %s12030_s15 = smov 512   ;;  %s12031_s17 = smov 32  }
  0x34   : > { %11376 = dma.hbm_to_vmem [thread:$0]  (!%p12142_p11), %s12864_s1, 65536, %s12135_s13, [#allocation7], %s12030_s15, %s12030_s15, %s12031_s17  }
  0x35   : > { %s12866_s3 = sld [smem:[#allocation27_spill]] }
  0x3b   : > { %s11760_s23 = scalar_lea.hbm %s12866_s3, 65536 }
  0x3c   : > { %p11761_p2 = scmp.ne.s32.totalorder %s12866_s3, %s11760_s23  ;;  %p11767_p10 = scmp.lt.u32.totalorder %s11760_s23, %s12866_s3 }
  0x3e   : > { %p11763_p1 = pnand %p11761_p2, %p12156_p13 }
  0x40   : > { %p11764_p6 = pneg %p11763_p1 }
  0x42   : > { %p11769_p3 = pnand %p11767_p10, %p11764_p6 }
  0x44   : > { %11772 = shalt.err (!%p11769_p3)
}
  0x45   : > { %s11773_s13 = scalar_lea.vmem %s12146_s16, 65536  ;;  %p11781_p12 = scmp.lt.s32.totalorder %s12146_s16, %s12146_s16 }
  0x46   : > { %p11774_p5 = scmp.ne.s32.totalorder %s12146_s16, %s11773_s13  ;;  %p11782_p0 = scmp.lt.s32.totalorder %s11773_s13, %s11773_s13 }
  0x48   : > { %p11776_p7 = pnand %p11774_p5, %p12156_p13  ;;  %p11783_p2 = por %p11782_p0, %p11781_p12 }
  0x4a   : > { %p11777_p9 = pneg %p11776_p7 }
  0x4c   : > { %p11784_p1 = pnand %p11783_p2, %p11777_p9 }
  0x4e   : > { %11787 = shalt.err (!%p11784_p1)
}
  0x4f   : > { %11382 = dma.hbm_to_vmem [thread:$0]  (!%p12142_p11), %s12866_s3, 65536, %s12146_s16, [#allocation10], %s12030_s15, %s12030_s15, %s12031_s17  }
  0x50   : > { %s35_s18 = sadd.s32 1, %s12022_s28  ;;  %s155_s19 = sadd.s32 1, %s12014_s26 }
  0x51   : > { %p36_p6 = scmp.ge.s32.totalorder %s35_s18, 2  ;;  %p162_p10 = scmp.ne.s32.totalorder %s12014_s26, %s12010_s25 }
  0x52   : > { %p163_p3 = scmp.eq.s32.totalorder %s12026_s29, 0  ;;  %p11402_p5 = scmp.lt.s32.totalorder %s12026_s29, 2 }
  0x53   : > { %s12900_s18 = smov (%p36_p6, %s35_s18), 0  ;;  %p12868_p9 = scmp.eq.s32.totalorder %s12112_s30, 1 }
  0x54   : > { %12867 = sst [smem:[#allocation24_spill]] %s12900_s18  ;;  %p164_p7 = por %p163_p3, %p162_p10 }
  0x55   : > { %p12210_p12 = por %p12868_p9, %p162_p10  ;;  %s152_s21 = ssub.s32 %s12022_s28, %s12900_s18 }
  0x56   : > { %s308_s23 = sand.u32 1, %s12026_s29   ;;  %p153_p0 = scmp.eq.s32.totalorder %s152_s21, 0 }
  0x57   : > { %s12869_s20 = scalar_select %p12210_p12, 1, 0 }
  0x58   : > { %s12842_s16 = sand.u32 1, %s12014_s26   ;;  %s11120_s15 = smul.u32 192, %s12022_s28 }
  0x59   : > { %s12220_s17 = scalar_select %p153_p0, %s12014_s26, %s155_s19  }
  0x5a   : > { %s11339_s8 = smul.u32 1536, %s12842_s16  ;;  %s12871_s5 = sld [smem:[#allocation28_spill]] }
  0x5b   : > { %12870 = sst [smem:[#allocation25_spill]] %s12220_s17  ;;  %p12229_p2 = pnand %p11402_p5, %p164_p7 }
  0x5c   : > { %s312_s21 = scalar_lea.vmem [#allocation12], %s11339_s8  ;;  %s12235_s16 = scalar_lea.sflag [#allocation13], %s308_s23 }
  0x5d   : > { %s12872_s10 = scalar_select %p12229_p2, 1, 0 }
  0x5e   : > { %s319_s19 = sshll.u32 %s312_s21, 4  ;;  %p12851_p6 = pneg %p12229_p2  ;;  %s12233_s19 = int_to_ptr.vmem [resolvable:$true] %s319_s19 }
  0x60   : > { %s12227_s24 = scalar_lea.hbm %s12871_s5, %s11120_s15  ;;  %s11793_s13 = scalar_lea.hbm %s12871_s5, 49152 }
  0x61   : > { %s11788_s1 = scalar_lea.hbm %s12227_s24, 24576  ;;  %p11794_p5 = scmp.lt.u32.totalorder %s12227_s24, %s12871_s5 }
  0x62   : > { %p11789_p1 = scmp.ne.s32.totalorder %s12227_s24, %s11788_s1  ;;  %p11795_p7 = scmp.lt.u32.totalorder %s11793_s13, %s11788_s1 }
  0x63   : > { %p11797_p0 = scmp.lt.u32.totalorder %s11788_s1, %s12227_s24 }
  0x64   : > { %p11791_p10 = pnand %p12851_p6, %p11789_p1  ;;  %p11796_p9 = por %p11795_p7, %p11794_p5 }
  0x66   : > { %p11792_p3 = pneg %p11791_p10  ;;  %p11798_p12 = por %p11797_p0, %p11796_p9 }
  0x68   : > { %p11799_p4 = pnand %p11798_p12, %p11792_p3 }
  0x6a   : > { %11802 = shalt.err (!%p11799_p4)
}
  0x6b   : > { %s11803_s23 = scalar_lea.vmem %s12233_s19, 24576  ;;  %s12032_s8 = smov [#allocation12]  }
  0x6c   : > { %p11804_p1 = scmp.ne.s32.totalorder %s12233_s19, %s11803_s23  ;;  %s11808_s21 = sshll.u32 %s12032_s8, 4  ;;  %s11809_s21 = int_to_ptr.vmem [resolvable:$false] %s11808_s21 }
  0x6d   : > { %s11810_s3 = scalar_lea.vmem %s11809_s21, 49152  ;;  %p11811_p11 = scmp.lt.s32.totalorder %s12233_s19, %s11809_s21 }
  0x6e   : > { %p11806_p10 = pnand %p11804_p1, %p12851_p6  ;;  %p11812_p5 = scmp.lt.s32.totalorder %s11810_s3, %s11803_s23 }
  0x70   : > { %p11807_p8 = pneg %p11806_p10  ;;  %p11813_p7 = por %p11812_p5, %p11811_p11 }
  0x72   : > { %p11814_p9 = pnand %p11813_p7, %p11807_p8 }
  0x74   : > { %11817 = shalt.err (!%p11814_p9)
}
  0x75   : > { %s12033_s1 = smov 384   ;;  %s12034_s18 = smov 192  }
  0x76   : > { %s12035_s15 = smov 12   ;;  %s12036_s12 = smov [#allocation3]  }
  0x77   : > { %11389 = dma.hbm_to_vmem [thread:$0]  (!%p12229_p2), %s12227_s24, 24576, %s12233_s19, %s12235_s16, %s12033_s1, %s12034_s18, %s12035_s15  }
  0x78   : > { %s249_s13 = sshll.u32 %s12036_s12, 4  ;;  %s11818_s23 = scalar_lea.hbm %s12831_s0, 1024  ;;  %s250_s13 = int_to_ptr.vmem [resolvable:$true] %s249_s13 }
  0x79   : > { %p11819_p4 = scmp.ne.s32.totalorder %s12831_s0, %s11818_s23  ;;  %p11825_p12 = scmp.lt.u32.totalorder %s11818_s23, %s12831_s0 }
  0x7b   : > { %p11821_p8 = pnand %p11819_p4, %p12156_p13 }
  0x7d   : > { %p11822_p11 = pneg %p11821_p8 }
  0x7f   : > { %p11827_p3 = pnand %p11825_p12, %p11822_p11 }
  0x81   : > { %11830 = shalt.err (!%p11827_p3)
}
  0x82   : > { %s11831_s24 = scalar_lea.vmem %s250_s13, 1024  ;;  %p11839_p5 = scmp.lt.s32.totalorder %s250_s13, %s250_s13 }
  0x83   : > { %p11832_p0 = scmp.ne.s32.totalorder %s250_s13, %s11831_s24  ;;  %p11840_p7 = scmp.lt.s32.totalorder %s11831_s24, %s11831_s24 }
  0x85   : > { %p11834_p1 = pnand %p11832_p0, %p12156_p13  ;;  %p11841_p9 = por %p11840_p7, %p11839_p5 }
  0x87   : > { %p11835_p10 = pneg %p11834_p1 }
  0x89   : > { %p11842_p6 = pnand %p11841_p9, %p11835_p10 }
  0x8b   : > { %11845 = shalt.err (!%p11842_p6)
}
  0x8c   : > { %p12873_p4 = scmp.ne.s32.totalorder %s12863_s14, 0  ;;  %s12037_s29 = smov [#allocation8]  }
  0x8d   : > { %s273_s17 = sshll.u32 %s12037_s29, 4  ;;  %s12038_s1 = smov [#allocation11]   ;;  %s274_s17 = int_to_ptr.vmem [resolvable:$true] %s273_s17 }
  0x8e   : > { %11373 = dma.hbm_to_vmem [thread:$0]  (!%p12873_p4), %s12831_s0, 1024, %s250_s13, [#allocation4]  }
  0x8f   : > { %s297_s18 = sshll.u32 %s12038_s1, 4  ;;  %s11846_s8 = scalar_lea.hbm %s12833_s2, 128  ;;  %s298_s18 = int_to_ptr.vmem [resolvable:$true] %s297_s18 }
  0x90   : > { %p11847_p6 = scmp.ne.s32.totalorder %s12833_s2, %s11846_s8  ;;  %p11853_p12 = scmp.lt.u32.totalorder %s11846_s8, %s12833_s2 }
  0x92   : > { %p11849_p8 = pnand %p11847_p6, %p12156_p13 }
  0x94   : > { %p11850_p11 = pneg %p11849_p8 }
  0x96   : > { %p11855_p3 = pnand %p11853_p12, %p11850_p11 }
  0x98   : > { %11858 = shalt.err (!%p11855_p3)
}
  0x99   : > { %s11859_s13 = scalar_lea.vmem %s274_s17, 128  ;;  %p11867_p5 = scmp.lt.s32.totalorder %s274_s17, %s274_s17 }
  0x9a   : > { %p11860_p0 = scmp.ne.s32.totalorder %s274_s17, %s11859_s13  ;;  %p11868_p7 = scmp.lt.s32.totalorder %s11859_s13, %s11859_s13 }
  0x9c   : > { %p11862_p1 = pnand %p11860_p0, %p12156_p13  ;;  %p11869_p9 = por %p11868_p7, %p11867_p5 }
  0x9e   : > { %p11863_p10 = pneg %p11862_p1 }
  0xa0   : > { %p11870_p2 = pnand %p11869_p9, %p11863_p10 }
  0xa2   : > { %11873 = shalt.err (!%p11870_p2)
}
  0xa3   : > { %11379 = dma.hbm_to_vmem [thread:$0]  (!%p12873_p4), %s12833_s2, 128, %s274_s17, [#allocation7]  }
  0xa4   : > { %s12874_s29 = sand.u32 1, %s12014_s26   ;;  %s11874_s8 = scalar_lea.hbm %s12835_s4, 128 }
  0xa5   : > { %s11340_s1 = smul.u32 3, %s12874_s29  ;;  %p11875_p6 = scmp.ne.s32.totalorder %s12835_s4, %s11874_s8 }
  0xa6   : > { %p11881_p11 = scmp.lt.u32.totalorder %s11874_s8, %s12835_s4 }
  0xa7   : > { %p11877_p2 = pnand %p11875_p6, %p12156_p13 }
  0xa9   : > { %p11878_p8 = pneg %p11877_p2 }
  0xab   : > { %p11883_p12 = pnand %p11881_p11, %p11878_p8 }
  0xad   : > { %11886 = shalt.err (!%p11883_p12)
}
  0xae   : > { %s11887_s17 = scalar_lea.vmem %s298_s18, 128  ;;  %p11895_p10 = scmp.lt.s32.totalorder %s298_s18, %s298_s18 }
  0xaf   : > { %p11888_p3 = scmp.ne.s32.totalorder %s298_s18, %s11887_s17  ;;  %p11896_p5 = scmp.lt.s32.totalorder %s11887_s17, %s11887_s17 }
  0xb1   : > { %p11890_p0 = pnand %p11888_p3, %p12156_p13  ;;  %p11897_p7 = por %p11896_p5, %p11895_p10 }
  0xb3   : > { %p11891_p1 = pneg %p11890_p0 }
  0xb5   : > { %p11898_p9 = pnand %p11897_p7, %p11891_p1 }
  0xb7   : > { %11901 = shalt.err (!%p11898_p9)
}
  0xb8   : > { %11385 = dma.hbm_to_vmem [thread:$0]  (!%p12873_p4), %s12835_s4, 128, %s298_s18, [#allocation10]  }
  0xb9   : > { %s11121_s19 = smul.u32 48, %s12022_s28  ;;  %s333_s29 = scalar_lea.vmem [#allocation14], %s11340_s1 }
  0xba   : > { %s341_s15 = sshll.u32 %s333_s29, 4  ;;  %p12875_p6 = scmp.ne.s32.totalorder %s12872_s10, 0  ;;  %s342_s15 = int_to_ptr.vmem [resolvable:$true] %s341_s15 }
  0xbb   : > { %s339_s8 = scalar_lea.hbm %s12837_s6, %s11121_s19  ;;  %s11907_s3 = scalar_lea.hbm %s12837_s6, 96 }
  0xbc   : > { %s11902_s23 = scalar_lea.hbm %s339_s8, 48  ;;  %p12876_p2 = pneg %p12875_p6 }
  0xbd   : > { %p11903_p13 = scmp.ne.s32.totalorder %s339_s8, %s11902_s23  ;;  %p11908_p4 = scmp.lt.u32.totalorder %s339_s8, %s12837_s6 }
  0xbe   : > { %p11909_p12 = scmp.lt.u32.totalorder %s11907_s3, %s11902_s23  ;;  %p11911_p0 = scmp.lt.u32.totalorder %s11902_s23, %s339_s8 }
  0xbf   : > { %p11905_p8 = pnand %p11903_p13, %p12876_p2 }
  0xc0   : > { %p11910_p3 = por %p11909_p12, %p11908_p4 }
  0xc1   : > { %p11906_p11 = pneg %p11905_p8 }
  0xc2   : > { %p11912_p1 = por %p11911_p0, %p11910_p3 }
  0xc4   : > { %p11913_p10 = pnand %p11912_p1, %p11906_p11 }
  0xc6   : > { %11916 = shalt.err (!%p11913_p10)
}
  0xc7   : > { %s11917_s1 = scalar_lea.vmem %s342_s15, 48  ;;  %p12877_p7 = pmov %p12876_p2 }
  0xc8   : > { %p11918_p5 = scmp.ne.s32.totalorder %s342_s15, %s11917_s1  ;;  %s12039_s17 = smov [#allocation14]  }
  0xc9   : > { %s11922_s13 = sshll.u32 %s12039_s17, 4  ;;  %s11923_s13 = int_to_ptr.vmem [resolvable:$false] %s11922_s13 }
  0xca   : > { %p11920_p9 = pnand %p11918_p5, %p12877_p7  ;;  %s11924_s5 = scalar_lea.vmem %s11923_s13, 96 }
  0xcb   : > { %p11925_p2 = scmp.lt.s32.totalorder %s342_s15, %s11923_s13  ;;  %p11926_p8 = scmp.lt.s32.totalorder %s11924_s5, %s11917_s1 }
  0xcc   : > { %p11921_p13 = pneg %p11920_p9 }
  0xcd   : > { %p11927_p4 = por %p11926_p8, %p11925_p2 }
  0xcf   : > { %p11928_p12 = pnand %p11927_p4, %p11921_p13 }
  0xd1   : > { %11931 = shalt.err (!%p11928_p12)
}
  0xd2   : > { %11392 = dma.hbm_to_vmem [thread:$0]  (!%p12875_p6), %s339_s8, 48, %s342_s15, %s12235_s16  }
  0xd3   : > { %p12878_p11 = scmp.ne.s32.totalorder %s12862_s11, 0 }
  0xd4   : > { %p12879_p3 = scmp.eq.s32.totalorder (!%p12878_p11), %s12112_s30, 0 }
  0xd5   : > { %350 = sbr.rel (%p12878_p11) target bundleno = 1935 (0x78f), region = 48 }
  0xdc   : > { %11985 = dma.done.wait (%p12879_p3), [#allocation4], 1024   ;;  %p12880_p0 = pmov %p12879_p3 }
  0xde   : > { %11987 = vsyncadd (%p12880_p0), [#allocation4], 4294966272  ;;  %p12881_p1 = pmov %p12880_p0 }
  0xdf   : > { %p12882_p10 = pmov %p12880_p0 }
  0xe0   : > { %11989 = dma.done.wait (%p12881_p1), [#allocation7], 65664  }
  0xe1   : > { %11991 = vsyncadd (%p12882_p10), [#allocation7], 4294901632  ;;  %p12883_p5 = pmov %p12880_p0 }
  0xe2   : > { %p12884_p6 = pmov %p12880_p0 }
  0xe3   : > { %11993 = dma.done.wait (%p12883_p5), [#allocation10], 65664  }
  0xe4   : > { %11995 = vsyncadd (%p12884_p6), [#allocation10], 4294901632  ;;  %s372_s11 = sand.u32 1, %s12112_s30   ;;  %s12354_s16 = sand.u32 1, %s12010_s25  }
  0xe5   : > { %s11341_s10 = smul.u32 1536, %s12354_s16  ;;  %s373_s19 = scalar_lea.sflag [#allocation13], %s372_s11 }
  0xe6   : > { %p12885_p7 = scmp.ne.s32.totalorder %s12859_s9, 0 }
  0xe7   : > { %s12357_s29 = scalar_lea.vmem [#allocation12], %s11341_s10 }
  0xe8   : > { %11997 = dma.done.wait (%p12885_p7), %s373_s19, 24624  }
  0xe9   : > { %11999 = vsyncadd (%p12885_p7), %s373_s19, 4294942672  ;;  %s11342_s15 = smul.u32 3, %s12354_s16  ;;  %p9888_p9 = scmp.ne.s32.totalorder %s12018_s27, 0 }
  0xea   : > { %s11343_s12 = smul.u32 24, %s12354_s16  ;;  %v445_v0 = vld [vmem:[#allocation6] sm:$0xff] (!%p9888_p9)  ;;  %v446_v2 = vld [vmem:[#allocation6 + $0x8] sm:$0xff] (!%p9888_p9) }
  0xeb   : > { %s12365_s22 = scalar_lea.vmem [#allocation14], %s11342_s15  ;;  %428 = sbr.rel (%p9888_p9) target bundleno = 1511 (0x5e7), region = 80  ;;  %v449_v1 = vld [vmem:[#allocation6 + $0x20] sm:$0xff] (!%p9888_p9)  ;;  %v450_v4 = vld [vmem:[#allocation6 + $0x28] sm:$0xff] (!%p9888_p9) }
  0xec   : > { %s12367_s8 = scalar_lea.vmem [#allocation15], %s11343_s12  ;;  %v9890_v3 = vcombine.high (!%p9888_p9), %v445_v0, %v449_v1  ;;  %v9889_v5 = vcombine.low (!%p9888_p9), %v445_v0, %v449_v1  ;;  %v453_v6 = vld [vmem:[#allocation6 + $0x40] sm:$0xff] (!%p9888_p9)  ;;  %v9892_v8 = vcombine.high (!%p9888_p9), %v446_v2, %v450_v4  ;;  %v9891_v9 = vcombine.low (!%p9888_p9), %v446_v2, %v450_v4  ;;  %v454_v11 = vld [vmem:[#allocation6 + $0x48] sm:$0xff] (!%p9888_p9) }
  0xed   : > { %v457_v7 = vld [vmem:[#allocation6 + $0x60] sm:$0xff] (!%p9888_p9)  ;;  %v458_v12 = vld [vmem:[#allocation6 + $0x68] sm:$0xff] (!%p9888_p9) }
  0xee   : > { %v9898_v10 = vcombine.high (!%p9888_p9), %v453_v6, %v457_v7  ;;  %v461_v13 = vld [vmem:[#allocation6 + $0x80] sm:$0xff] (!%p9888_p9)  ;;  %3559 = vmatprep.subr.bf16.mxu0 (!%p9888_p9), %v9890_v3  ;;  %v9900_v14 = vcombine.high (!%p9888_p9), %v454_v11, %v458_v12  ;;  %v462_v16 = vld [vmem:[#allocation6 + $0x88] sm:$0xff] (!%p9888_p9)  ;;  %3723 = vmatprep.subr.bf16.mxu1 (!%p9888_p9), %v9892_v8  ;;  %v9897_v18 = vcombine.low (!%p9888_p9), %v453_v6, %v457_v7 }
  0xef   : > { %v465_v15 = vld [vmem:[#allocation6 + $0xa0] sm:$0xff] (!%p9888_p9)  ;;  %v466_v17 = vld [vmem:[#allocation6 + $0xa8] sm:$0xff] (!%p9888_p9)  ;;  %3560 = vmatpush1.bf16.msra.mxu0 (!%p9888_p9), %v9889_v5  ;;  %3724 = vmatpush1.bf16.msra.mxu1 (!%p9888_p9), %v9891_v9  ;;  %v9899_v19 = vcombine.low (!%p9888_p9), %v454_v11, %v458_v12 }
  0xf0   : > { %3561 = vmatprep.subr.bf16.mxu0 (!%p9888_p9), %v9898_v10  ;;  %v9906_v20 = vcombine.high (!%p9888_p9), %v461_v13, %v465_v15  ;;  %3725 = vmatprep.subr.bf16.mxu1 (!%p9888_p9), %v9900_v14  ;;  %v9908_v21 = vcombine.high (!%p9888_p9), %v462_v16, %v466_v17  ;;  %v469_v22 = vld [vmem:[#allocation6 + $0xc0] sm:$0xff] (!%p9888_p9)  ;;  %v470_v24 = vld [vmem:[#allocation6 + $0xc8] sm:$0xff] (!%p9888_p9)  ;;  %v9905_v26 = vcombine.low (!%p9888_p9), %v461_v13, %v465_v15 }
  0xf1   : > { %v473_v23 = vld [vmem:[#allocation6 + $0xe0] sm:$0xff] (!%p9888_p9)  ;;  %v474_v25 = vld [vmem:[#allocation6 + $0xe8] sm:$0xff] (!%p9888_p9)  ;;  %v9907_v27 = vcombine.low (!%p9888_p9), %v462_v16, %v466_v17 }
  0xf2   : > { %v9914_v28 = vcombine.high %v469_v22, %v473_v23  ;;  %v9916_v29 = vcombine.high %v470_v24, %v474_v25  ;;  %v477_v30 = vld [vmem:[#allocation6 + $0x100] sm:$0xff]  ;;  %v478_v32 = vld [vmem:[#allocation6 + $0x108] sm:$0xff]  ;;  %v9913_v34 = vcombine.low %v469_v22, %v473_v23  ;;  %v9915_v35 = vcombine.low %v470_v24, %v474_v25 }
  0xf3   : > { %3562 = vmatpush1.bf16.msra.mxu0 %v9897_v18  ;;  %3726 = vmatpush1.bf16.msra.mxu1 %v9899_v19  ;;  %v481_v31 = vld [vmem:[#allocation6 + $0x120] sm:$0xff]  ;;  %v482_v33 = vld [vmem:[#allocation6 + $0x128] sm:$0xff] }
  0xf4   : > { %3563 = vmatprep.subr.bf16.mxu0 %v9906_v20  ;;  %3727 = vmatprep.subr.bf16.mxu1 %v9908_v21  ;;  %v9922_v36 = vcombine.high %v477_v30, %v481_v31  ;;  %v9924_v37 = vcombine.high %v478_v32, %v482_v33  ;;  %v485_v38 = vld [vmem:[#allocation6 + $0x140] sm:$0xff]  ;;  %v486_v40 = vld [vmem:[#allocation6 + $0x148] sm:$0xff]  ;;  %v9921_v42 = vcombine.low %v477_v30, %v481_v31 }
  0xf5   : > { %v489_v39 = vld [vmem:[#allocation6 + $0x160] sm:$0xff]  ;;  %v490_v41 = vld [vmem:[#allocation6 + $0x168] sm:$0xff]  ;;  %v9923_v43 = vcombine.low %v478_v32, %v482_v33 }
  0xf6   : > { %v9930_v44 = vcombine.high %v485_v38, %v489_v39  ;;  %v9932_v45 = vcombine.high %v486_v40, %v490_v41  ;;  %v493_v46 = vld [vmem:[#allocation6 + $0x180] sm:$0xff]  ;;  %v494_v48 = vld [vmem:[#allocation6 + $0x188] sm:$0xff]  ;;  %v9929_v50 = vcombine.low %v485_v38, %v489_v39  ;;  %v9931_v51 = vcombine.low %v486_v40, %v490_v41 }
  0xf7   : > { %3564 = vmatpush1.bf16.msra.mxu0 %v9905_v26  ;;  %3728 = vmatpush1.bf16.msra.mxu1 %v9907_v27  ;;  %v497_v47 = vld [vmem:[#allocation6 + $0x1a0] sm:$0xff]  ;;  %v498_v49 = vld [vmem:[#allocation6 + $0x1a8] sm:$0xff] }
  0xf8   : > { %3565 = vmatprep.subr.bf16.mxu0 %v9914_v28  ;;  %3729 = vmatprep.subr.bf16.mxu1 %v9916_v29  ;;  %v9938_v52 = vcombine.high %v493_v46, %v497_v47  ;;  %v430_v53 = vld [vmem:[#allocation3 + $0x8] sm:$0xff]  ;;  %v9940_v54 = vcombine.high %v494_v48, %v498_v49  ;;  %v501_v55 = vld [vmem:[#allocation6 + $0x1c0] sm:$0xff]  ;;  %v9937_v60 = vcombine.low %v493_v46, %v497_v47 }
  0xf9   : > { %v505_v56 = vld [vmem:[#allocation6 + $0x1e0] sm:$0xff]  ;;  %v12370_v57 = vpack.c.bf16 %v430_v53, %v430_v53  ;;  %v502_v58 = vld [vmem:[#allocation6 + $0x1c8] sm:$0xff]  ;;  %v9939_v61 = vcombine.low %v494_v48, %v498_v49 }
  0xfa   : > { %v506_v59 = vld [vmem:[#allocation6 + $0x1e8] sm:$0xff]  ;;  %v9946_v62 = vcombine.high %v501_v55, %v505_v56  ;;  %v509_v0 = vld [vmem:[#allocation6 + $0x200] sm:$0xff]  ;;  %v9945_v4 = vcombine.low %v501_v55, %v505_v56 }
  0xfb   : > { %3566 = vmatpush1.bf16.msra.mxu0 %v9913_v34  ;;  %3730 = vmatpush1.bf16.msra.mxu1 %v9915_v35  ;;  %v9948_v63 = vcombine.high %v502_v58, %v506_v59  ;;  %v513_v1 = vld [vmem:[#allocation6 + $0x220] sm:$0xff]  ;;  %v510_v2 = vld [vmem:[#allocation6 + $0x208] sm:$0xff]  ;;  %v9947_v5 = vcombine.low %v502_v58, %v506_v59 }
  0xfc   : > { %3567 = vmatprep.subr.bf16.mxu0 %v9922_v36  ;;  %3731 = vmatprep.subr.bf16.mxu1 %v9924_v37  ;;  %v514_v3 = vld [vmem:[#allocation6 + $0x228] sm:$0xff]  ;;  %v9954_v6 = vcombine.high %v509_v0, %v513_v1  ;;  %v517_v8 = vld [vmem:[#allocation6 + $0x240] sm:$0xff]  ;;  %v9953_v12 = vcombine.low %v509_v0, %v513_v1 }
  0xfd   : > { %3591 = vmatprep.mubr.bf16.mxu0 %v12370_v57  ;;  %3755 = vmatprep.mubr.bf16.mxu1 %v12370_v57  ;;  %v9956_v7 = vcombine.high %v510_v2, %v514_v3  ;;  %v521_v9 = vld [vmem:[#allocation6 + $0x260] sm:$0xff]  ;;  %v518_v10 = vld [vmem:[#allocation6 + $0x248] sm:$0xff]  ;;  %v9955_v13 = vcombine.low %v510_v2, %v514_v3 }
  0xfe   : > { %v522_v11 = vld [vmem:[#allocation6 + $0x268] sm:$0xff]  ;;  %v9962_v14 = vcombine.high %v517_v8, %v521_v9  ;;  %v525_v16 = vld [vmem:[#allocation6 + $0x280] sm:$0xff]  ;;  %v9961_v20 = vcombine.low %v517_v8, %v521_v9 }
  0xff   : > { %3568 = vmatpush1.bf16.msra.mxu0 %v9921_v42  ;;  %3732 = vmatpush1.bf16.msra.mxu1 %v9923_v43  ;;  %v9964_v15 = vcombine.high %v518_v10, %v522_v11  ;;  %v529_v17 = vld [vmem:[#allocation6 + $0x2a0] sm:$0xff]  ;;  %v526_v18 = vld [vmem:[#allocation6 + $0x288] sm:$0xff]  ;;  %v9963_v21 = vcombine.low %v518_v10, %v522_v11 }
 0x100   : > { %3569 = vmatprep.subr.bf16.mxu0 %v9930_v44  ;;  %3733 = vmatprep.subr.bf16.mxu1 %v9932_v45  ;;  %v530_v19 = vld [vmem:[#allocation6 + $0x2a8] sm:$0xff]  ;;  %v9970_v22 = vcombine.high %v525_v16, %v529_v17  ;;  %v533_v24 = vld [vmem:[#allocation6 + $0x2c0] sm:$0xff]  ;;  %v9969_v28 = vcombine.low %v525_v16, %v529_v17 }
 0x101   : > { %v9972_v23 = vcombine.high %v526_v18, %v530_v19  ;;  %v537_v25 = vld [vmem:[#allocation6 + $0x2e0] sm:$0xff]  ;;  %v534_v26 = vld [vmem:[#allocation6 + $0x2c8] sm:$0xff]  ;;  %v9971_v29 = vcombine.low %v526_v18, %v530_v19 }
 0x102   : > { %v538_v27 = vld [vmem:[#allocation6 + $0x2e8] sm:$0xff]  ;;  %v9978_v30 = vcombine.high %v533_v24, %v537_v25  ;;  %v541_v32 = vld [vmem:[#allocation6 + $0x300] sm:$0xff]  ;;  %v9977_v36 = vcombine.low %v533_v24, %v537_v25 }
 0x103   : > { %3570 = vmatpush1.bf16.msra.mxu0 %v9929_v50  ;;  %3734 = vmatpush1.bf16.msra.mxu1 %v9931_v51  ;;  %v9980_v31 = vcombine.high %v534_v26, %v538_v27  ;;  %v545_v33 = vld [vmem:[#allocation6 + $0x320] sm:$0xff]  ;;  %v542_v34 = vld [vmem:[#allocation6 + $0x308] sm:$0xff]  ;;  %v9979_v37 = vcombine.low %v534_v26, %v538_v27 }
 0x104   : > { %3571 = vmatprep.subr.bf16.mxu0 %v9938_v52  ;;  %3735 = vmatprep.subr.bf16.mxu1 %v9940_v54  ;;  %v546_v35 = vld [vmem:[#allocation6 + $0x328] sm:$0xff]  ;;  %v9986_v38 = vcombine.high %v541_v32, %v545_v33  ;;  %v549_v40 = vld [vmem:[#allocation6 + $0x340] sm:$0xff]  ;;  %v9985_v44 = vcombine.low %v541_v32, %v545_v33 }
 0x105   : > { %v9988_v39 = vcombine.high %v542_v34, %v546_v35  ;;  %v553_v41 = vld [vmem:[#allocation6 + $0x360] sm:$0xff]  ;;  %v550_v42 = vld [vmem:[#allocation6 + $0x348] sm:$0xff]  ;;  %v9987_v45 = vcombine.low %v542_v34, %v546_v35 }
 0x106   : > { %v554_v43 = vld [vmem:[#allocation6 + $0x368] sm:$0xff]  ;;  %v9994_v46 = vcombine.high %v549_v40, %v553_v41  ;;  %v557_v48 = vld [vmem:[#allocation6 + $0x380] sm:$0xff]  ;;  %v9993_v52 = vcombine.low %v549_v40, %v553_v41 }
 0x107   : > { %3572 = vmatpush1.bf16.msra.mxu0 %v9937_v60  ;;  %3736 = vmatpush1.bf16.msra.mxu1 %v9939_v61  ;;  %v9996_v47 = vcombine.high %v550_v42, %v554_v43  ;;  %v561_v49 = vld [vmem:[#allocation6 + $0x3a0] sm:$0xff]  ;;  %v558_v50 = vld [vmem:[#allocation6 + $0x388] sm:$0xff]  ;;  %v9995_v53 = vcombine.low %v550_v42, %v554_v43 }
 0x108   : > { %3573 = vmatprep.subr.bf16.mxu0 %v9946_v62  ;;  %3737 = vmatprep.subr.bf16.mxu1 %v9948_v63  ;;  %v562_v51 = vld [vmem:[#allocation6 + $0x3a8] sm:$0xff]  ;;  %v10002_v54 = vcombine.high %v557_v48, %v561_v49  ;;  %v565_v56 = vld [vmem:[#allocation6 + $0x3c0] sm:$0xff]  ;;  %v10001_v61 = vcombine.low %v557_v48, %v561_v49 }
 0x109   : > { %v10004_v55 = vcombine.high %v558_v50, %v562_v51  ;;  %v569_v58 = vld [vmem:[#allocation6 + $0x3e0] sm:$0xff]  ;;  %v566_v59 = vld [vmem:[#allocation6 + $0x3c8] sm:$0xff]  ;;  %v10003_v62 = vcombine.low %v558_v50, %v562_v51 }
 0x10a   : > { %v570_v60 = vld [vmem:[#allocation6 + $0x3e8] sm:$0xff]  ;;  %v10010_v63 = vcombine.high %v565_v56, %v569_v58  ;;  %v573_v1 = vld [vmem:[#allocation6 + $0x400] sm:$0xff] }
 0x10b   : > { %3574 = vmatpush1.bf16.msra.mxu0 %v9945_v4  ;;  %3738 = vmatpush1.bf16.msra.mxu1 %v9947_v5  ;;  %v10012_v0 = vcombine.high %v566_v59, %v570_v60  ;;  %v577_v2 = vld [vmem:[#allocation6 + $0x420] sm:$0xff]  ;;  %v574_v3 = vld [vmem:[#allocation6 + $0x408] sm:$0xff]  ;;  %v10009_v5 = vcombine.low %v565_v56, %v569_v58 }
 0x10c   : > { %3575 = vmatprep.subr.bf16.mxu0 %v9954_v6  ;;  %3739 = vmatprep.subr.bf16.mxu1 %v9956_v7  ;;  %v578_v4 = vld [vmem:[#allocation6 + $0x428] sm:$0xff]  ;;  %v429_v6 = vld [vmem:[#allocation3] sm:$0xff]  ;;  %v10011_v7 = vcombine.low %v566_v59, %v570_v60  ;;  %v10018_v8 = vcombine.high %v573_v1, %v577_v2  ;;  %v10017_v16 = vcombine.low %v573_v1, %v577_v2 }
 0x10d   : > { %v10020_v9 = vcombine.high %v574_v3, %v578_v4  ;;  %v581_v10 = vld [vmem:[#allocation6 + $0x440] sm:$0xff]  ;;  %v10019_v17 = vcombine.low %v574_v3, %v578_v4  ;;  %v594_v24 = vld [vmem:[#allocation6 + $0x4a8] sm:$0xff] }
 0x10e   : > { %v585_v11 = vld [vmem:[#allocation6 + $0x460] sm:$0xff]  ;;  %v602_v32 = vld [vmem:[#allocation6 + $0x4e8] sm:$0xff] }
 0x10f   : > { %3576 = vmatpush1.bf16.msra.mxu0 %v9953_v12  ;;  %3740 = vmatpush1.bf16.msra.mxu1 %v9955_v13  ;;  %v12374_v12 = vpack.c.bf16 %v429_v6, %v429_v6  ;;  %v582_v13 = vld [vmem:[#allocation6 + $0x448] sm:$0xff]  ;;  %v10026_v18 = vcombine.high %v581_v10, %v585_v11  ;;  %v10025_v25 = vcombine.low %v581_v10, %v585_v11  ;;  %v637_v6 = vld [vmem:[#allocation6 + $0x600] sm:$0xff] }
 0x110   : > { %3577 = vmatprep.subr.bf16.mxu0 %v9962_v14  ;;  %3741 = vmatprep.subr.bf16.mxu1 %v9964_v15  ;;  %v586_v14 = vld [vmem:[#allocation6 + $0x468] sm:$0xff]  ;;  %v432_v15 = vld [vmem:[#allocation3 + $0x18] sm:$0xff] }
 0x111   : > { %v10028_v19 = vcombine.high %v582_v13, %v586_v14  ;;  %v10027_v26 = vcombine.low %v582_v13, %v586_v14  ;;  %v610_v40 = vld [vmem:[#allocation6 + $0x528] sm:$0xff] }
 0x112   : > { %v618_v48 = vld [vmem:[#allocation6 + $0x568] sm:$0xff] }
 0x113   : > { %3578 = vmatpush1.bf16.msra.mxu0 %v9961_v20  ;;  %3742 = vmatpush1.bf16.msra.mxu1 %v9963_v21  ;;  %v589_v20 = vld [vmem:[#allocation6 + $0x480] sm:$0xff]  ;;  %v626_v56 = vld [vmem:[#allocation6 + $0x5a8] sm:$0xff] }
 0x114   : > { %3579 = vmatprep.subr.bf16.mxu0 %v9970_v22  ;;  %3743 = vmatprep.subr.bf16.mxu1 %v9972_v23  ;;  %v593_v21 = vld [vmem:[#allocation6 + $0x4a0] sm:$0xff]  ;;  %v12376_v22 = vpack.c.bf16 %v432_v15, %v432_v15  ;;  %v590_v23 = vld [vmem:[#allocation6 + $0x488] sm:$0xff] }
 0x115   : > { %v10034_v27 = vcombine.high %v589_v20, %v593_v21  ;;  %v10033_v33 = vcombine.low %v589_v20, %v593_v21  ;;  %v10035_v34 = vcombine.low %v590_v23, %v594_v24  ;;  %v634_v1 = vld [vmem:[#allocation6 + $0x5e8] sm:$0xff]  ;;  %v645_v15 = vld [vmem:[#allocation6 + $0x640] sm:$0xff] }
 0x117   : > { %3580 = vmatpush1.bf16.msra.mxu0 %v9969_v28  ;;  %3744 = vmatpush1.bf16.msra.mxu1 %v9971_v29  ;;  %v10036_v28 = vcombine.high %v590_v23, %v594_v24  ;;  %v597_v29 = vld [vmem:[#allocation6 + $0x4c0] sm:$0xff] }
 0x118   : > { %3581 = vmatprep.subr.bf16.mxu0 %v9978_v30  ;;  %3745 = vmatprep.subr.bf16.mxu1 %v9980_v31  ;;  %v601_v30 = vld [vmem:[#allocation6 + $0x4e0] sm:$0xff]  ;;  %v598_v31 = vld [vmem:[#allocation6 + $0x4c8] sm:$0xff] }
 0x119   : > { %v10042_v35 = vcombine.high %v597_v29, %v601_v30  ;;  %v10041_v41 = vcombine.low %v597_v29, %v601_v30  ;;  %v10043_v42 = vcombine.low %v598_v31, %v602_v32  ;;  %v653_v24 = vld [vmem:[#allocation6 + $0x680] sm:$0xff] }
 0x11b   : > { %3582 = vmatpush1.bf16.msra.mxu0 %v9977_v36  ;;  %3746 = vmatpush1.bf16.msra.mxu1 %v9979_v37  ;;  %v10044_v36 = vcombine.high %v598_v31, %v602_v32  ;;  %v605_v37 = vld [vmem:[#allocation6 + $0x500] sm:$0xff] }
 0x11c   : > { %3583 = vmatprep.subr.bf16.mxu0 %v9986_v38  ;;  %3747 = vmatprep.subr.bf16.mxu1 %v9988_v39  ;;  %v609_v38 = vld [vmem:[#allocation6 + $0x520] sm:$0xff]  ;;  %v606_v39 = vld [vmem:[#allocation6 + $0x508] sm:$0xff] }
 0x11d   : > { %v10050_v43 = vcombine.high %v605_v37, %v609_v38  ;;  %v10049_v49 = vcombine.low %v605_v37, %v609_v38  ;;  %v10051_v50 = vcombine.low %v606_v39, %v610_v40  ;;  %v661_v32 = vld [vmem:[#allocation6 + $0x6c0] sm:$0xff] }
 0x11f   : > { %3584 = vmatpush1.bf16.msra.mxu0 %v9985_v44  ;;  %3748 = vmatpush1.bf16.msra.mxu1 %v9987_v45  ;;  %v10052_v44 = vcombine.high %v606_v39, %v610_v40  ;;  %v613_v45 = vld [vmem:[#allocation6 + $0x540] sm:$0xff] }
 0x120   : > { %3585 = vmatprep.subr.bf16.mxu0 %v9994_v46  ;;  %3749 = vmatprep.subr.bf16.mxu1 %v9996_v47  ;;  %v617_v46 = vld [vmem:[#allocation6 + $0x560] sm:$0xff]  ;;  %v614_v47 = vld [vmem:[#allocation6 + $0x548] sm:$0xff] }
 0x121   : > { %v10058_v51 = vcombine.high %v613_v45, %v617_v46  ;;  %v10057_v58 = vcombine.low %v613_v45, %v617_v46  ;;  %v10059_v59 = vcombine.low %v614_v47, %v618_v48  ;;  %v669_v40 = vld [vmem:[#allocation6 + $0x700] sm:$0xff] }
 0x123   : > { %3586 = vmatpush1.bf16.msra.mxu0 %v9993_v52  ;;  %3750 = vmatpush1.bf16.msra.mxu1 %v9995_v53  ;;  %v10060_v52 = vcombine.high %v614_v47, %v618_v48  ;;  %v621_v53 = vld [vmem:[#allocation6 + $0x580] sm:$0xff] }
 0x124   : > { %3587 = vmatprep.subr.bf16.mxu0 %v10002_v54  ;;  %3751 = vmatprep.subr.bf16.mxu1 %v10004_v55  ;;  %v625_v54 = vld [vmem:[#allocation6 + $0x5a0] sm:$0xff]  ;;  %v622_v55 = vld [vmem:[#allocation6 + $0x588] sm:$0xff] }
 0x125   : > { %v10066_v60 = vcombine.high %v621_v53, %v625_v54  ;;  %v10065_v2 = vcombine.low %v621_v53, %v625_v54  ;;  %v10067_v3 = vcombine.low %v622_v55, %v626_v56  ;;  %v677_v48 = vld [vmem:[#allocation6 + $0x740] sm:$0xff] }
 0x127   : > { %3588 = vmatpush1.bf16.msra.mxu0 %v10001_v61  ;;  %3752 = vmatpush1.bf16.msra.mxu1 %v10003_v62  ;;  %v10068_v61 = vcombine.high %v622_v55, %v626_v56  ;;  %v629_v62 = vld [vmem:[#allocation6 + $0x5c0] sm:$0xff] }
 0x128   : > { %3589 = vmatprep.subr.bf16.mxu0 %v10010_v63  ;;  %3753 = vmatprep.subr.bf16.mxu1 %v10012_v0  ;;  %v633_v63 = vld [vmem:[#allocation6 + $0x5e0] sm:$0xff]  ;;  %v630_v0 = vld [vmem:[#allocation6 + $0x5c8] sm:$0xff] }
 0x129   : > { %v10074_v4 = vcombine.high %v629_v62, %v633_v63  ;;  %v10073_v10 = vcombine.low %v629_v62, %v633_v63  ;;  %v10075_v11 = vcombine.low %v630_v0, %v634_v1  ;;  %v685_v56 = vld [vmem:[#allocation6 + $0x780] sm:$0xff] }
 0x12b   : > { %3590 = vmatpush1.bf16.msra.mxu0 %v10009_v5  ;;  %3754 = vmatpush1.bf16.msra.mxu1 %v10011_v7  ;;  %v10076_v5 = vcombine.high %v630_v0, %v634_v1  ;;  %v641_v7 = vld [vmem:[#allocation6 + $0x620] sm:$0xff] }
 0x12c   : > { %3600 = vmatprep.subr.bf16.mxu0 %v10018_v8  ;;  %3764 = vmatprep.subr.bf16.mxu1 %v10020_v9  ;;  %v638_v8 = vld [vmem:[#allocation6 + $0x608] sm:$0xff]  ;;  %v10082_v13 = vcombine.high %v637_v6, %v641_v7  ;;  %v693_v1 = vld [vmem:[#allocation6 + $0x7c0] sm:$0xff] }
 0x12d   : > { %v642_v9 = vld [vmem:[#allocation6 + $0x628] sm:$0xff] }
 0x12e   : > { %3592 = vmatmul.mubr.bf16.vlgmr.msra.gmra.mrb[0].mxu0 %v12374_v12  ;;  %3756 = vmatmul.mubr.bf16.vlgmr.msra.gmra.mrb[0].mxu1 %v12374_v12  ;;  %v10084_v14 = vcombine.high %v638_v8, %v642_v9  ;;  %v10083_v20 = vcombine.low %v638_v8, %v642_v9  ;;  %v701_v9 = vld [vmem:[#allocation6 + $0x800] sm:$0xff] }
 0x12f   : > { %3601 = vmatpush1.bf16.msra.mxu0 %v10017_v16  ;;  %3765 = vmatpush1.bf16.msra.mxu1 %v10019_v17  ;;  %v649_v16 = vld [vmem:[#allocation6 + $0x660] sm:$0xff]  ;;  %v646_v17 = vld [vmem:[#allocation6 + $0x648] sm:$0xff] }
 0x130   : > { %3602 = vmatprep.subr.bf16.mxu0 %v10026_v18  ;;  %3766 = vmatprep.subr.bf16.mxu1 %v10028_v19  ;;  %v650_v18 = vld [vmem:[#allocation6 + $0x668] sm:$0xff]  ;;  %v10081_v19 = vcombine.low %v637_v6, %v641_v7  ;;  %v10090_v21 = vcombine.high %v645_v15, %v649_v16 }
 0x131   : > { %3632 = vmatprep.mubr.bf16.mxu0 %v12376_v22  ;;  %3796 = vmatprep.mubr.bf16.mxu1 %v12376_v22  ;;  %v10092_v23 = vcombine.high %v646_v17, %v650_v18  ;;  %v10091_v29 = vcombine.low %v646_v17, %v650_v18 }
 0x133   : > { %3603 = vmatpush1.bf16.msra.mxu0 %v10025_v25  ;;  %3767 = vmatpush1.bf16.msra.mxu1 %v10027_v26  ;;  %v657_v25 = vld [vmem:[#allocation6 + $0x6a0] sm:$0xff]  ;;  %v654_v26 = vld [vmem:[#allocation6 + $0x688] sm:$0xff] }
 0x134   : > { %3604 = vmatprep.subr.bf16.mxu0 %v10034_v27  ;;  %3768 = vmatprep.subr.bf16.mxu1 %v10036_v28  ;;  %v658_v27 = vld [vmem:[#allocation6 + $0x6a8] sm:$0xff]  ;;  %v10089_v28 = vcombine.low %v645_v15, %v649_v16  ;;  %v10098_v30 = vcombine.high %v653_v24, %v657_v25  ;;  %v431_v15 = vld [vmem:[#allocation3 + $0x10] sm:$0xff] }
 0x135   : > { %v10100_v31 = vcombine.high %v654_v26, %v658_v27  ;;  %v10099_v37 = vcombine.low %v654_v26, %v658_v27 }
 0x137   : > { %3605 = vmatpush1.bf16.msra.mxu0 %v10033_v33  ;;  %3769 = vmatpush1.bf16.msra.mxu1 %v10035_v34  ;;  %v665_v33 = vld [vmem:[#allocation6 + $0x6e0] sm:$0xff]  ;;  %v662_v34 = vld [vmem:[#allocation6 + $0x6c8] sm:$0xff] }
 0x138   : > { %3606 = vmatprep.subr.bf16.mxu0 %v10042_v35  ;;  %3770 = vmatprep.subr.bf16.mxu1 %v10044_v36  ;;  %v666_v35 = vld [vmem:[#allocation6 + $0x6e8] sm:$0xff]  ;;  %v10097_v36 = vcombine.low %v653_v24, %v657_v25  ;;  %v10106_v38 = vcombine.high %v661_v32, %v665_v33 }
 0x139   : > { %v10108_v39 = vcombine.high %v662_v34, %v666_v35  ;;  %v10107_v45 = vcombine.low %v662_v34, %v666_v35  ;;  %v714_v24 = vld [vmem:[#allocation6 + $0x868] sm:$0xff] }
 0x13a   : > { %v434_v25 = vld [vmem:[#allocation3 + $0x28] sm:$0xff] }
 0x13b   : > { %3607 = vmatpush1.bf16.msra.mxu0 %v10041_v41  ;;  %3771 = vmatpush1.bf16.msra.mxu1 %v10043_v42  ;;  %v673_v41 = vld [vmem:[#allocation6 + $0x720] sm:$0xff]  ;;  %v670_v42 = vld [vmem:[#allocation6 + $0x708] sm:$0xff] }
 0x13c   : > { %3608 = vmatprep.subr.bf16.mxu0 %v10050_v43  ;;  %3772 = vmatprep.subr.bf16.mxu1 %v10052_v44  ;;  %v674_v43 = vld [vmem:[#allocation6 + $0x728] sm:$0xff]  ;;  %v10105_v44 = vcombine.low %v661_v32, %v665_v33  ;;  %v10114_v46 = vcombine.high %v669_v40, %v673_v41  ;;  %v12384_v32 = vpack.c.bf16 %v434_v25, %v434_v25 }
 0x13d   : > { %v10116_v47 = vcombine.high %v670_v42, %v674_v43  ;;  %v10115_v53 = vcombine.low %v670_v42, %v674_v43  ;;  %v718_v33 = vld [vmem:[#allocation6 + $0x888] sm:$0xff] }
 0x13e   : > { %v722_v34 = vld [vmem:[#allocation6 + $0x8a8] sm:$0xff] }
 0x13f   : > { %3609 = vmatpush1.bf16.msra.mxu0 %v10049_v49  ;;  %3773 = vmatpush1.bf16.msra.mxu1 %v10051_v50  ;;  %v681_v49 = vld [vmem:[#allocation6 + $0x760] sm:$0xff]  ;;  %v678_v50 = vld [vmem:[#allocation6 + $0x748] sm:$0xff] }
 0x140   : > { %3610 = vmatprep.subr.bf16.mxu0 %v10058_v51  ;;  %3774 = vmatprep.subr.bf16.mxu1 %v10060_v52  ;;  %v682_v51 = vld [vmem:[#allocation6 + $0x768] sm:$0xff]  ;;  %v10113_v52 = vcombine.low %v669_v40, %v673_v41  ;;  %v10122_v54 = vcombine.high %v677_v48, %v681_v49  ;;  %v729_v40 = vld [vmem:[#allocation6 + $0x8e0] sm:$0xff] }
 0x141   : > { %v10124_v55 = vcombine.high %v678_v50, %v682_v51  ;;  %v10123_v62 = vcombine.low %v678_v50, %v682_v51  ;;  %v726_v41 = vld [vmem:[#allocation6 + $0x8c8] sm:$0xff] }
 0x142   : > { %v730_v42 = vld [vmem:[#allocation6 + $0x8e8] sm:$0xff] }
 0x143   : > { %3611 = vmatpush1.bf16.msra.mxu0 %v10057_v58  ;;  %3775 = vmatpush1.bf16.msra.mxu1 %v10059_v59  ;;  %v689_v58 = vld [vmem:[#allocation6 + $0x7a0] sm:$0xff]  ;;  %v686_v59 = vld [vmem:[#allocation6 + $0x788] sm:$0xff] }
 0x144   : > { %3612 = vmatprep.subr.bf16.mxu0 %v10066_v60  ;;  %3776 = vmatprep.subr.bf16.mxu1 %v10068_v61  ;;  %v690_v60 = vld [vmem:[#allocation6 + $0x7a8] sm:$0xff]  ;;  %v10121_v61 = vcombine.low %v677_v48, %v681_v49  ;;  %v10130_v63 = vcombine.high %v685_v56, %v689_v58  ;;  %v737_v48 = vld [vmem:[#allocation6 + $0x920] sm:$0xff] }
 0x145   : > { %v10132_v0 = vcombine.high %v686_v59, %v690_v60  ;;  %v10131_v6 = vcombine.low %v686_v59, %v690_v60  ;;  %v734_v49 = vld [vmem:[#allocation6 + $0x908] sm:$0xff] }
 0x146   : > { %v738_v50 = vld [vmem:[#allocation6 + $0x928] sm:$0xff] }
 0x147   : > { %3613 = vmatpush1.bf16.msra.mxu0 %v10065_v2  ;;  %3777 = vmatpush1.bf16.msra.mxu1 %v10067_v3  ;;  %v697_v2 = vld [vmem:[#allocation6 + $0x7e0] sm:$0xff]  ;;  %v694_v3 = vld [vmem:[#allocation6 + $0x7c8] sm:$0xff] }
 0x148   : > { %3614 = vmatprep.subr.bf16.mxu0 %v10074_v4  ;;  %3778 = vmatprep.subr.bf16.mxu1 %v10076_v5  ;;  %v698_v4 = vld [vmem:[#allocation6 + $0x7e8] sm:$0xff]  ;;  %v10129_v5 = vcombine.low %v685_v56, %v689_v58  ;;  %v10138_v7 = vcombine.high %v693_v1, %v697_v2  ;;  %v745_v56 = vld [vmem:[#allocation6 + $0x960] sm:$0xff] }
 0x149   : > { %v10140_v8 = vcombine.high %v694_v3, %v698_v4  ;;  %v10139_v16 = vcombine.low %v694_v3, %v698_v4  ;;  %v742_v58 = vld [vmem:[#allocation6 + $0x948] sm:$0xff] }
 0x14a   : > { %v746_v59 = vld [vmem:[#allocation6 + $0x968] sm:$0xff] }
 0x14b   : > { %3615 = vmatpush1.bf16.msra.mxu0 %v10073_v10  ;;  %3779 = vmatpush1.bf16.msra.mxu1 %v10075_v11  ;;  %v705_v10 = vld [vmem:[#allocation6 + $0x820] sm:$0xff]  ;;  %v702_v11 = vld [vmem:[#allocation6 + $0x808] sm:$0xff] }
 0x14c   : > { %3616 = vmatprep.subr.bf16.mxu0 %v10082_v13  ;;  %3780 = vmatprep.subr.bf16.mxu1 %v10084_v14  ;;  %v706_v13 = vld [vmem:[#allocation6 + $0x828] sm:$0xff]  ;;  %v10137_v14 = vcombine.low %v693_v1, %v697_v2  ;;  %v10146_v17 = vcombine.high %v701_v9, %v705_v10  ;;  %v10145_v26 = vcombine.low %v701_v9, %v705_v10  ;;  %v753_v1 = vld [vmem:[#allocation6 + $0x9a0] sm:$0xff] }
 0x14d   : > { %v10148_v18 = vcombine.high %v702_v11, %v706_v13  ;;  %v10147_v27 = vcombine.low %v702_v11, %v706_v13  ;;  %v750_v2 = vld [vmem:[#allocation6 + $0x988] sm:$0xff]  ;;  %v761_v9 = vld [vmem:[#allocation6 + $0x9e0] sm:$0xff] }
 0x14e   : > { %v754_v3 = vld [vmem:[#allocation6 + $0x9a8] sm:$0xff] }
 0x14f   : > { %3617 = vmatpush1.bf16.msra.mxu0 %v10081_v19  ;;  %3781 = vmatpush1.bf16.msra.mxu1 %v10083_v20  ;;  %v709_v19 = vld [vmem:[#allocation6 + $0x840] sm:$0xff]  ;;  %v758_v10 = vld [vmem:[#allocation6 + $0x9c8] sm:$0xff] }
 0x150   : > { %3618 = vmatprep.subr.bf16.mxu0 %v10090_v21  ;;  %3782 = vmatprep.subr.bf16.mxu1 %v10092_v23  ;;  %v713_v20 = vld [vmem:[#allocation6 + $0x860] sm:$0xff]  ;;  %v12382_v21 = vpack.c.bf16 %v431_v15, %v431_v15  ;;  %v710_v23 = vld [vmem:[#allocation6 + $0x848] sm:$0xff] }
 0x151   : > { %v10153_v35 = vcombine.low %v709_v19, %v713_v20  ;;  %v762_v11 = vld [vmem:[#allocation6 + $0x9e8] sm:$0xff] }
 0x153   : > { %3619 = vmatpush1.bf16.msra.mxu0 %v10089_v28  ;;  %3783 = vmatpush1.bf16.msra.mxu1 %v10091_v29  ;;  %v10154_v28 = vcombine.high %v709_v19, %v713_v20  ;;  %v10156_v29 = vcombine.high %v710_v23, %v714_v24  ;;  %v766_v19 = vld [vmem:[#allocation6 + $0xa08] sm:$0xff] }
 0x154   : > { %3620 = vmatprep.subr.bf16.mxu0 %v10098_v30  ;;  %3784 = vmatprep.subr.bf16.mxu1 %v10100_v31  ;;  %v717_v30 = vld [vmem:[#allocation6 + $0x880] sm:$0xff]  ;;  %v770_v20 = vld [vmem:[#allocation6 + $0xa28] sm:$0xff] }
 0x155   : > { %v721_v31 = vld [vmem:[#allocation6 + $0x8a0] sm:$0xff] }
 0x156   : > { %v10161_v43 = vcombine.low %v717_v30, %v721_v31 }
 0x157   : > { %3621 = vmatpush1.bf16.msra.mxu0 %v10097_v36  ;;  %3785 = vmatpush1.bf16.msra.mxu1 %v10099_v37  ;;  %v10155_v36 = vcombine.low %v710_v23, %v714_v24  ;;  %v10162_v37 = vcombine.high %v717_v30, %v721_v31  ;;  %v10203_v24 = vcombine.low %v758_v10, %v762_v11  ;;  %v778_v30 = vld [vmem:[#allocation6 + $0xa68] sm:$0xff] }
 0x158   : > { %3622 = vmatprep.subr.bf16.mxu0 %v10106_v38  ;;  %3786 = vmatprep.subr.bf16.mxu1 %v10108_v39  ;;  %v10164_v38 = vcombine.high %v718_v33, %v722_v34  ;;  %v725_v39 = vld [vmem:[#allocation6 + $0x8c0] sm:$0xff] }
 0x159   : > { %v10169_v51 = vcombine.low %v725_v39, %v729_v40 }
 0x15b   : > { %3623 = vmatpush1.bf16.msra.mxu0 %v10105_v44  ;;  %3787 = vmatpush1.bf16.msra.mxu1 %v10107_v45  ;;  %v10163_v44 = vcombine.low %v718_v33, %v722_v34  ;;  %v10170_v45 = vcombine.high %v725_v39, %v729_v40  ;;  %v10211_v33 = vcombine.low %v766_v19, %v770_v20  ;;  %v786_v39 = vld [vmem:[#allocation6 + $0xaa8] sm:$0xff] }
 0x15c   : > { %3624 = vmatprep.subr.bf16.mxu0 %v10114_v46  ;;  %3788 = vmatprep.subr.bf16.mxu1 %v10116_v47  ;;  %v10172_v46 = vcombine.high %v726_v41, %v730_v42  ;;  %v733_v47 = vld [vmem:[#allocation6 + $0x900] sm:$0xff] }
 0x15d   : > { %v10177_v60 = vcombine.low %v733_v47, %v737_v48 }
 0x15f   : > { %3625 = vmatpush1.bf16.msra.mxu0 %v10113_v52  ;;  %3789 = vmatpush1.bf16.msra.mxu1 %v10115_v53  ;;  %v10171_v52 = vcombine.low %v726_v41, %v730_v42  ;;  %v10178_v53 = vcombine.high %v733_v47, %v737_v48  ;;  %v794_v47 = vld [vmem:[#allocation6 + $0xae8] sm:$0xff] }
 0x160   : > { %3626 = vmatprep.subr.bf16.mxu0 %v10122_v54  ;;  %3790 = vmatprep.subr.bf16.mxu1 %v10124_v55  ;;  %v10180_v54 = vcombine.high %v734_v49, %v738_v50  ;;  %v741_v55 = vld [vmem:[#allocation6 + $0x940] sm:$0xff] }
 0x161   : > { %v10185_v4 = vcombine.low %v741_v55, %v745_v56 }
 0x163   : > { %3627 = vmatpush1.bf16.msra.mxu0 %v10121_v61  ;;  %3791 = vmatpush1.bf16.msra.mxu1 %v10123_v62  ;;  %v10179_v61 = vcombine.low %v734_v49, %v738_v50  ;;  %v10186_v62 = vcombine.high %v741_v55, %v745_v56  ;;  %v802_v55 = vld [vmem:[#allocation6 + $0xb28] sm:$0xff] }
 0x164   : > { %3628 = vmatprep.subr.bf16.mxu0 %v10130_v63  ;;  %3792 = vmatprep.subr.bf16.mxu1 %v10132_v0  ;;  %v10188_v63 = vcombine.high %v742_v58, %v746_v59  ;;  %v749_v0 = vld [vmem:[#allocation6 + $0x980] sm:$0xff] }
 0x165   : > { %v10193_v13 = vcombine.low %v749_v0, %v753_v1 }
 0x167   : > { %3629 = vmatpush1.bf16.msra.mxu0 %v10129_v5  ;;  %3793 = vmatpush1.bf16.msra.mxu1 %v10131_v6  ;;  %v10187_v5 = vcombine.low %v742_v58, %v746_v59  ;;  %v10194_v6 = vcombine.high %v749_v0, %v753_v1  ;;  %v810_v0 = vld [vmem:[#allocation6 + $0xb68] sm:$0xff] }
 0x168   : > { %3630 = vmatprep.subr.bf16.mxu0 %v10138_v7  ;;  %3794 = vmatprep.subr.bf16.mxu1 %v10140_v8  ;;  %v10196_v7 = vcombine.high %v750_v2, %v754_v3  ;;  %v757_v8 = vld [vmem:[#allocation6 + $0x9c0] sm:$0xff] }
 0x169   : > { %v10202_v15 = vcombine.high %v757_v8, %v761_v9  ;;  %v10201_v23 = vcombine.low %v757_v8, %v761_v9  ;;  %v818_v8 = vld [vmem:[#allocation6 + $0xba8] sm:$0xff] }
 0x16b   : > { %3631 = vmatpush1.bf16.msra.mxu0 %v10137_v14  ;;  %3795 = vmatpush1.bf16.msra.mxu1 %v10139_v16  ;;  %v10195_v14 = vcombine.low %v750_v2, %v754_v3  ;;  %v10204_v16 = vcombine.high %v758_v10, %v762_v11 }
 0x16c   : > { %3641 = vmatprep.subr.bf16.mxu0 %v10146_v17  ;;  %3805 = vmatprep.subr.bf16.mxu1 %v10148_v18  ;;  %v765_v17 = vld [vmem:[#allocation6 + $0xa00] sm:$0xff] }
 0x16d   : > { %v769_v18 = vld [vmem:[#allocation6 + $0xa20] sm:$0xff] }
 0x16e   : > { %3633 = vmatmul.mubr.bf16.vlgmr.msra.gmra.mrb[0].mxu0 %v12382_v21  ;;  %3797 = vmatmul.mubr.bf16.vlgmr.msra.gmra.mrb[0].mxu1 %v12382_v21  ;;  %v10210_v25 = vcombine.high %v765_v17, %v769_v18  ;;  %v10209_v31 = vcombine.low %v765_v17, %v769_v18  ;;  %v826_v17 = vld [vmem:[#allocation6 + $0xbe8] sm:$0xff] }
 0x16f   : > { %3642 = vmatpush1.bf16.msra.mxu0 %v10145_v26  ;;  %3806 = vmatpush1.bf16.msra.mxu1 %v10147_v27  ;;  %v10212_v26 = vcombine.high %v766_v19, %v770_v20  ;;  %v773_v27 = vld [vmem:[#allocation6 + $0xa40] sm:$0xff] }
 0x170   : > { %3643 = vmatprep.subr.bf16.mxu0 %v10154_v28  ;;  %3807 = vmatprep.subr.bf16.mxu1 %v10156_v29  ;;  %v777_v28 = vld [vmem:[#allocation6 + $0xa60] sm:$0xff]  ;;  %v774_v29 = vld [vmem:[#allocation6 + $0xa48] sm:$0xff] }
 0x171   : > { %3673 = vmatprep.mubr.bf16.mxu0 %v12384_v32  ;;  %3837 = vmatprep.mubr.bf16.mxu1 %v12384_v32  ;;  %v10218_v34 = vcombine.high %v773_v27, %v777_v28  ;;  %v10217_v40 = vcombine.low %v773_v27, %v777_v28  ;;  %v10219_v41 = vcombine.low %v774_v29, %v778_v30  ;;  %v834_v27 = vld [vmem:[#allocation6 + $0xc28] sm:$0xff] }
 0x173   : > { %3644 = vmatpush1.bf16.msra.mxu0 %v10153_v35  ;;  %3808 = vmatpush1.bf16.msra.mxu1 %v10155_v36  ;;  %v10220_v35 = vcombine.high %v774_v29, %v778_v30  ;;  %v781_v36 = vld [vmem:[#allocation6 + $0xa80] sm:$0xff] }
 0x174   : > { %3645 = vmatprep.subr.bf16.mxu0 %v10162_v37  ;;  %3809 = vmatprep.subr.bf16.mxu1 %v10164_v38  ;;  %v785_v37 = vld [vmem:[#allocation6 + $0xaa0] sm:$0xff]  ;;  %v782_v38 = vld [vmem:[#allocation6 + $0xa88] sm:$0xff] }
 0x175   : > { %v10226_v42 = vcombine.high %v781_v36, %v785_v37  ;;  %v10225_v48 = vcombine.low %v781_v36, %v785_v37  ;;  %v10227_v49 = vcombine.low %v782_v38, %v786_v39  ;;  %v433_v29 = vld [vmem:[#allocation3 + $0x20] sm:$0xff]  ;;  %v838_v37 = vld [vmem:[#allocation6 + $0xc48] sm:$0xff] }
 0x176   : > { %v12390_v36 = vpack.c.bf16 %v433_v29, %v433_v29 }
 0x177   : > { %3646 = vmatpush1.bf16.msra.mxu0 %v10161_v43  ;;  %3810 = vmatpush1.bf16.msra.mxu1 %v10163_v44  ;;  %v10228_v43 = vcombine.high %v782_v38, %v786_v39  ;;  %v789_v44 = vld [vmem:[#allocation6 + $0xac0] sm:$0xff]  ;;  %v842_v38 = vld [vmem:[#allocation6 + $0xc68] sm:$0xff]  ;;  %v436_v39 = vld [vmem:[#allocation3 + $0x38] sm:$0xff] }
 0x178   : > { %3647 = vmatprep.subr.bf16.mxu0 %v10170_v45  ;;  %3811 = vmatprep.subr.bf16.mxu1 %v10172_v46  ;;  %v793_v45 = vld [vmem:[#allocation6 + $0xae0] sm:$0xff]  ;;  %v790_v46 = vld [vmem:[#allocation6 + $0xac8] sm:$0xff] }
 0x179   : > { %v10234_v50 = vcombine.high %v789_v44, %v793_v45  ;;  %v10233_v56 = vcombine.low %v789_v44, %v793_v45  ;;  %v10235_v58 = vcombine.low %v790_v46, %v794_v47  ;;  %v845_v44 = vld [vmem:[#allocation6 + $0xc80] sm:$0xff] }
 0x17a   : > { %v849_v45 = vld [vmem:[#allocation6 + $0xca0] sm:$0xff] }
 0x17b   : > { %3648 = vmatpush1.bf16.msra.mxu0 %v10169_v51  ;;  %3812 = vmatpush1.bf16.msra.mxu1 %v10171_v52  ;;  %v10236_v51 = vcombine.high %v790_v46, %v794_v47  ;;  %v797_v52 = vld [vmem:[#allocation6 + $0xb00] sm:$0xff]  ;;  %v12392_v46 = vpack.c.bf16 %v436_v39, %v436_v39  ;;  %v846_v47 = vld [vmem:[#allocation6 + $0xc88] sm:$0xff] }
 0x17c   : > { %3649 = vmatprep.subr.bf16.mxu0 %v10178_v53  ;;  %3813 = vmatprep.subr.bf16.mxu1 %v10180_v54  ;;  %v801_v53 = vld [vmem:[#allocation6 + $0xb20] sm:$0xff]  ;;  %v798_v54 = vld [vmem:[#allocation6 + $0xb08] sm:$0xff] }
 0x17d   : > { %v10242_v59 = vcombine.high %v797_v52, %v801_v53  ;;  %v10241_v1 = vcombine.low %v797_v52, %v801_v53  ;;  %v10243_v2 = vcombine.low %v798_v54, %v802_v55  ;;  %v853_v53 = vld [vmem:[#allocation6 + $0xcc0] sm:$0xff] }
 0x17f   : > { %3650 = vmatpush1.bf16.msra.mxu0 %v10177_v60  ;;  %3814 = vmatpush1.bf16.msra.mxu1 %v10179_v61  ;;  %v10244_v60 = vcombine.high %v798_v54, %v802_v55  ;;  %v805_v61 = vld [vmem:[#allocation6 + $0xb40] sm:$0xff]  ;;  %v854_v55 = vld [vmem:[#allocation6 + $0xcc8] sm:$0xff] }
 0x180   : > { %3651 = vmatprep.subr.bf16.mxu0 %v10186_v62  ;;  %3815 = vmatprep.subr.bf16.mxu1 %v10188_v63  ;;  %v809_v62 = vld [vmem:[#allocation6 + $0xb60] sm:$0xff]  ;;  %v806_v63 = vld [vmem:[#allocation6 + $0xb48] sm:$0xff] }
 0x181   : > { %v10250_v3 = vcombine.high %v805_v61, %v809_v62  ;;  %v10249_v9 = vcombine.low %v805_v61, %v809_v62  ;;  %v10251_v10 = vcombine.low %v806_v63, %v810_v0  ;;  %v857_v54 = vld [vmem:[#allocation6 + $0xce0] sm:$0xff] }
 0x182   : > { %v861_v62 = vld [vmem:[#allocation6 + $0xd00] sm:$0xff] }
 0x183   : > { %3652 = vmatpush1.bf16.msra.mxu0 %v10185_v4  ;;  %3816 = vmatpush1.bf16.msra.mxu1 %v10187_v5  ;;  %v10252_v4 = vcombine.high %v806_v63, %v810_v0  ;;  %v813_v5 = vld [vmem:[#allocation6 + $0xb80] sm:$0xff]  ;;  %v862_v0 = vld [vmem:[#allocation6 + $0xd08] sm:$0xff] }
 0x184   : > { %3653 = vmatprep.subr.bf16.mxu0 %v10194_v6  ;;  %3817 = vmatprep.subr.bf16.mxu1 %v10196_v7  ;;  %v817_v6 = vld [vmem:[#allocation6 + $0xba0] sm:$0xff]  ;;  %v814_v7 = vld [vmem:[#allocation6 + $0xb88] sm:$0xff] }
 0x185   : > { %v10258_v11 = vcombine.high %v813_v5, %v817_v6  ;;  %v10257_v18 = vcombine.low %v813_v5, %v817_v6  ;;  %v10259_v19 = vcombine.low %v814_v7, %v818_v8  ;;  %v865_v63 = vld [vmem:[#allocation6 + $0xd20] sm:$0xff] }
 0x186   : > { %v869_v6 = vld [vmem:[#allocation6 + $0xd40] sm:$0xff] }
 0x187   : > { %3654 = vmatpush1.bf16.msra.mxu0 %v10193_v13  ;;  %3818 = vmatpush1.bf16.msra.mxu1 %v10195_v14  ;;  %v10260_v13 = vcombine.high %v814_v7, %v818_v8  ;;  %v821_v14 = vld [vmem:[#allocation6 + $0xbc0] sm:$0xff]  ;;  %v870_v8 = vld [vmem:[#allocation6 + $0xd48] sm:$0xff] }
 0x188   : > { %3655 = vmatprep.subr.bf16.mxu0 %v10202_v15  ;;  %3819 = vmatprep.subr.bf16.mxu1 %v10204_v16  ;;  %v825_v15 = vld [vmem:[#allocation6 + $0xbe0] sm:$0xff]  ;;  %v822_v16 = vld [vmem:[#allocation6 + $0xbc8] sm:$0xff] }
 0x189   : > { %v10266_v20 = vcombine.high %v821_v14, %v825_v15  ;;  %v10265_v28 = vcombine.low %v821_v14, %v825_v15  ;;  %v10267_v30 = vcombine.low %v822_v16, %v826_v17  ;;  %v873_v7 = vld [vmem:[#allocation6 + $0xd60] sm:$0xff] }
 0x18a   : > { %v877_v15 = vld [vmem:[#allocation6 + $0xd80] sm:$0xff] }
 0x18b   : > { %3656 = vmatpush1.bf16.msra.mxu0 %v10201_v23  ;;  %3820 = vmatpush1.bf16.msra.mxu1 %v10203_v24  ;;  %v10268_v23 = vcombine.high %v822_v16, %v826_v17  ;;  %v829_v24 = vld [vmem:[#allocation6 + $0xc00] sm:$0xff]  ;;  %v878_v17 = vld [vmem:[#allocation6 + $0xd88] sm:$0xff] }
 0x18c   : > { %3657 = vmatprep.subr.bf16.mxu0 %v10210_v25  ;;  %3821 = vmatprep.subr.bf16.mxu1 %v10212_v26  ;;  %v833_v25 = vld [vmem:[#allocation6 + $0xc20] sm:$0xff]  ;;  %v830_v26 = vld [vmem:[#allocation6 + $0xc08] sm:$0xff] }
 0x18d   : > { %v881_v16 = vld [vmem:[#allocation6 + $0xda0] sm:$0xff] }
 0x18e   : > { %v10321_v29 = vcombine.low %v877_v15, %v881_v16 }
 0x18f   : > { %3658 = vmatpush1.bf16.msra.mxu0 %v10209_v31  ;;  %3822 = vmatpush1.bf16.msra.mxu1 %v10211_v33  ;;  %v10274_v31 = vcombine.high %v829_v24, %v833_v25  ;;  %v10276_v33 = vcombine.high %v830_v26, %v834_v27 }
 0x190   : > { %3659 = vmatprep.subr.bf16.mxu0 %v10218_v34  ;;  %3823 = vmatprep.subr.bf16.mxu1 %v10220_v35  ;;  %v837_v34 = vld [vmem:[#allocation6 + $0xc40] sm:$0xff] }
 0x191   : > { %v841_v35 = vld [vmem:[#allocation6 + $0xc60] sm:$0xff] }
 0x193   : > { %3660 = vmatpush1.bf16.msra.mxu0 %v10217_v40  ;;  %3824 = vmatpush1.bf16.msra.mxu1 %v10219_v41  ;;  %v10273_v40 = vcombine.low %v829_v24, %v833_v25  ;;  %v10275_v41 = vcombine.low %v830_v26, %v834_v27  ;;  %v885_v25 = vld [vmem:[#allocation6 + $0xdc0] sm:$0xff]  ;;  %v886_v27 = vld [vmem:[#allocation6 + $0xdc8] sm:$0xff] }
 0x194   : > { %3661 = vmatprep.subr.bf16.mxu0 %v10226_v42  ;;  %3825 = vmatprep.subr.bf16.mxu1 %v10228_v43  ;;  %v10282_v42 = vcombine.high %v837_v34, %v841_v35  ;;  %v10284_v43 = vcombine.high %v838_v37, %v842_v38  ;;  %v889_v26 = vld [vmem:[#allocation6 + $0xde0] sm:$0xff] }
 0x195   : > { %v10329_v39 = vcombine.low %v885_v25, %v889_v26 }
 0x197   : > { %3662 = vmatpush1.bf16.msra.mxu0 %v10225_v48  ;;  %3826 = vmatpush1.bf16.msra.mxu1 %v10227_v49  ;;  %v850_v48 = vld [vmem:[#allocation6 + $0xca8] sm:$0xff]  ;;  %v10281_v49 = vcombine.low %v837_v34, %v841_v35  ;;  %v893_v34 = vld [vmem:[#allocation6 + $0xe00] sm:$0xff] }
 0x198   : > { %3663 = vmatprep.subr.bf16.mxu0 %v10234_v50  ;;  %3827 = vmatprep.subr.bf16.mxu1 %v10236_v51  ;;  %v10283_v50 = vcombine.low %v838_v37, %v842_v38  ;;  %v10290_v51 = vcombine.high %v845_v44, %v849_v45  ;;  %v10292_v52 = vcombine.high %v846_v47, %v850_v48  ;;  %v897_v35 = vld [vmem:[#allocation6 + $0xe20] sm:$0xff]  ;;  %v894_v37 = vld [vmem:[#allocation6 + $0xe08] sm:$0xff] }
 0x199   : > { %v898_v38 = vld [vmem:[#allocation6 + $0xe28] sm:$0xff] }
 0x19b   : > { %3664 = vmatpush1.bf16.msra.mxu0 %v10233_v56  ;;  %3828 = vmatpush1.bf16.msra.mxu1 %v10235_v58  ;;  %v858_v56 = vld [vmem:[#allocation6 + $0xce8] sm:$0xff]  ;;  %v10289_v58 = vcombine.low %v845_v44, %v849_v45  ;;  %v905_v44 = vld [vmem:[#allocation6 + $0xe60] sm:$0xff] }
 0x19c   : > { %3665 = vmatprep.subr.bf16.mxu0 %v10242_v59  ;;  %3829 = vmatprep.subr.bf16.mxu1 %v10244_v60  ;;  %v10291_v59 = vcombine.low %v846_v47, %v850_v48  ;;  %v10298_v60 = vcombine.high %v853_v53, %v857_v54  ;;  %v10300_v61 = vcombine.high %v854_v55, %v858_v56  ;;  %v902_v45 = vld [vmem:[#allocation6 + $0xe48] sm:$0xff] }
 0x19d   : > { %v906_v47 = vld [vmem:[#allocation6 + $0xe68] sm:$0xff]  ;;  %v10337_v48 = vcombine.low %v893_v34, %v897_v35 }
 0x19f   : > { %3666 = vmatpush1.bf16.msra.mxu0 %v10241_v1  ;;  %3830 = vmatpush1.bf16.msra.mxu1 %v10243_v2  ;;  %v866_v1 = vld [vmem:[#allocation6 + $0xd28] sm:$0xff]  ;;  %v10297_v2 = vcombine.low %v853_v53, %v857_v54  ;;  %v913_v53 = vld [vmem:[#allocation6 + $0xea0] sm:$0xff] }
 0x1a0   : > { %3667 = vmatprep.subr.bf16.mxu0 %v10250_v3  ;;  %3831 = vmatprep.subr.bf16.mxu1 %v10252_v4  ;;  %v10299_v3 = vcombine.low %v854_v55, %v858_v56  ;;  %v10306_v4 = vcombine.high %v861_v62, %v865_v63  ;;  %v10308_v5 = vcombine.high %v862_v0, %v866_v1  ;;  %v910_v54 = vld [vmem:[#allocation6 + $0xe88] sm:$0xff] }
 0x1a1   : > { %v914_v55 = vld [vmem:[#allocation6 + $0xea8] sm:$0xff] }
 0x1a3   : > { %3668 = vmatpush1.bf16.msra.mxu0 %v10249_v9  ;;  %3832 = vmatpush1.bf16.msra.mxu1 %v10251_v10  ;;  %v874_v9 = vld [vmem:[#allocation6 + $0xd68] sm:$0xff]  ;;  %v10305_v10 = vcombine.low %v861_v62, %v865_v63  ;;  %v921_v62 = vld [vmem:[#allocation6 + $0xee0] sm:$0xff] }
 0x1a4   : > { %3669 = vmatprep.subr.bf16.mxu0 %v10258_v11  ;;  %3833 = vmatprep.subr.bf16.mxu1 %v10260_v13  ;;  %v10307_v11 = vcombine.low %v862_v0, %v866_v1  ;;  %v10314_v13 = vcombine.high %v869_v6, %v873_v7  ;;  %v10316_v14 = vcombine.high %v870_v8, %v874_v9  ;;  %v918_v63 = vld [vmem:[#allocation6 + $0xec8] sm:$0xff] }
 0x1a5   : > { %v922_v0 = vld [vmem:[#allocation6 + $0xee8] sm:$0xff] }
 0x1a7   : > { %3670 = vmatpush1.bf16.msra.mxu0 %v10257_v18  ;;  %3834 = vmatpush1.bf16.msra.mxu1 %v10259_v19  ;;  %v882_v18 = vld [vmem:[#allocation6 + $0xda8] sm:$0xff]  ;;  %v10313_v19 = vcombine.low %v869_v6, %v873_v7  ;;  %v929_v6 = vld [vmem:[#allocation6 + $0xf20] sm:$0xff] }
 0x1a8   : > { %3671 = vmatprep.subr.bf16.mxu0 %v10266_v20  ;;  %3835 = vmatprep.subr.bf16.mxu1 %v10268_v23  ;;  %v10315_v20 = vcombine.low %v870_v8, %v874_v9  ;;  %v10322_v23 = vcombine.high %v877_v15, %v881_v16  ;;  %v10324_v24 = vcombine.high %v878_v17, %v882_v18  ;;  %v926_v7 = vld [vmem:[#allocation6 + $0xf08] sm:$0xff]  ;;  %v937_v15 = vld [vmem:[#allocation6 + $0xf60] sm:$0xff] }
 0x1a9   : > { %v930_v8 = vld [vmem:[#allocation6 + $0xf28] sm:$0xff] }
 0x1aa   : > { %v934_v16 = vld [vmem:[#allocation6 + $0xf48] sm:$0xff] }
 0x1ab   : > { %3672 = vmatpush1.bf16.msra.mxu0 %v10265_v28  ;;  %3836 = vmatpush1.bf16.msra.mxu1 %v10267_v30  ;;  %v890_v28 = vld [vmem:[#allocation6 + $0xde8] sm:$0xff]  ;;  %v10323_v30 = vcombine.low %v878_v17, %v882_v18 }
 0x1ac   : > { %3682 = vmatprep.subr.bf16.mxu0 %v10274_v31  ;;  %3846 = vmatprep.subr.bf16.mxu1 %v10276_v33  ;;  %v10330_v31 = vcombine.high %v885_v25, %v889_v26  ;;  %v10332_v33 = vcombine.high %v886_v27, %v890_v28  ;;  %v938_v17 = vld [vmem:[#allocation6 + $0xf68] sm:$0xff]  ;;  %v945_v25 = vld [vmem:[#allocation6 + $0xfa0] sm:$0xff] }
 0x1ad   : > { %v942_v26 = vld [vmem:[#allocation6 + $0xf88] sm:$0xff] }
 0x1ae   : > { %3674 = vmatmul.mubr.bf16.vlgmr.msra.gmra.mrb[0].mxu0 %v12390_v36  ;;  %3838 = vmatmul.mubr.bf16.vlgmr.msra.gmra.mrb[0].mxu1 %v12390_v36 }
 0x1af   : > { %3683 = vmatpush1.bf16.msra.mxu0 %v10273_v40  ;;  %3847 = vmatpush1.bf16.msra.mxu1 %v10275_v41  ;;  %v10331_v40 = vcombine.low %v886_v27, %v890_v28  ;;  %v10338_v41 = vcombine.high %v893_v34, %v897_v35  ;;  %v946_v27 = vld [vmem:[#allocation6 + $0xfa8] sm:$0xff]  ;;  %v953_v34 = vld [vmem:[#allocation6 + $0xfe0] sm:$0xff] }
 0x1b0   : > { %3684 = vmatprep.subr.bf16.mxu0 %v10282_v42  ;;  %3848 = vmatprep.subr.bf16.mxu1 %v10284_v43  ;;  %v10340_v42 = vcombine.high %v894_v37, %v898_v38  ;;  %v901_v43 = vld [vmem:[#allocation6 + $0xe40] sm:$0xff]  ;;  %v950_v35 = vld [vmem:[#allocation6 + $0xfc8] sm:$0xff] }
 0x1b1   : > { %3714 = vmatprep.mubr.bf16.mxu0 %v12392_v46  ;;  %3878 = vmatprep.mubr.bf16.mxu1 %v12392_v46  ;;  %v10345_v56 = vcombine.low %v901_v43, %v905_v44 }
 0x1b3   : > { %3685 = vmatpush1.bf16.msra.mxu0 %v10281_v49  ;;  %3849 = vmatpush1.bf16.msra.mxu1 %v10283_v50  ;;  %v10339_v49 = vcombine.low %v894_v37, %v898_v38  ;;  %v10346_v50 = vcombine.high %v901_v43, %v905_v44  ;;  %v954_v37 = vld [vmem:[#allocation6 + $0xfe8] sm:$0xff]  ;;  %v451_v43 = vld [vmem:[#allocation6 + $0x30] sm:$0xff]  ;;  %v448_v44 = vld [vmem:[#allocation6 + $0x18] sm:$0xff] }
 0x1b4   : > { %3686 = vmatprep.subr.bf16.mxu0 %v10290_v51  ;;  %3850 = vmatprep.subr.bf16.mxu1 %v10292_v52  ;;  %v10348_v51 = vcombine.high %v902_v45, %v906_v47  ;;  %v909_v52 = vld [vmem:[#allocation6 + $0xe80] sm:$0xff] }
 0x1b5   : > { %v10353_v1 = vcombine.low %v909_v52, %v913_v53 }
 0x1b7   : > { %3687 = vmatpush1.bf16.msra.mxu0 %v10289_v58  ;;  %3851 = vmatpush1.bf16.msra.mxu1 %v10291_v59  ;;  %v10347_v58 = vcombine.low %v902_v45, %v906_v47  ;;  %v10354_v59 = vcombine.high %v909_v52, %v913_v53  ;;  %v452_v45 = vld [vmem:[#allocation6 + $0x38] sm:$0xff]  ;;  %v455_v52 = vld [vmem:[#allocation6 + $0x50] sm:$0xff] }
 0x1b8   : > { %3688 = vmatprep.subr.bf16.mxu0 %v10298_v60  ;;  %3852 = vmatprep.subr.bf16.mxu1 %v10300_v61  ;;  %v10356_v60 = vcombine.high %v910_v54, %v914_v55  ;;  %v917_v61 = vld [vmem:[#allocation6 + $0xec0] sm:$0xff]  ;;  %v459_v53 = vld [vmem:[#allocation6 + $0x70] sm:$0xff] }
 0x1b9   : > { %v10361_v9 = vcombine.low %v917_v61, %v921_v62 }
 0x1bb   : > { %3689 = vmatpush1.bf16.msra.mxu0 %v10297_v2  ;;  %3853 = vmatpush1.bf16.msra.mxu1 %v10299_v3  ;;  %v10355_v2 = vcombine.low %v910_v54, %v914_v55  ;;  %v10362_v3 = vcombine.high %v917_v61, %v921_v62  ;;  %v456_v55 = vld [vmem:[#allocation6 + $0x58] sm:$0xff]  ;;  %v463_v62 = vld [vmem:[#allocation6 + $0x90] sm:$0xff] }
 0x1bc   : > { %3690 = vmatprep.subr.bf16.mxu0 %v10306_v4  ;;  %3854 = vmatprep.subr.bf16.mxu1 %v10308_v5  ;;  %v10364_v4 = vcombine.high %v918_v63, %v922_v0  ;;  %v925_v5 = vld [vmem:[#allocation6 + $0xf00] sm:$0xff] }
 0x1bd   : > { %v10369_v18 = vcombine.low %v925_v5, %v929_v6 }
 0x1bf   : > { %3691 = vmatpush1.bf16.msra.mxu0 %v10305_v10  ;;  %3855 = vmatpush1.bf16.msra.mxu1 %v10307_v11  ;;  %v10363_v10 = vcombine.low %v918_v63, %v922_v0  ;;  %v10370_v11 = vcombine.high %v925_v5, %v929_v6  ;;  %v467_v63 = vld [vmem:[#allocation6 + $0xb0] sm:$0xff]  ;;  %v464_v0 = vld [vmem:[#allocation6 + $0x98] sm:$0xff] }
 0x1c0   : > { %3692 = vmatprep.subr.bf16.mxu0 %v10314_v13  ;;  %3856 = vmatprep.subr.bf16.mxu1 %v10316_v14  ;;  %v10372_v13 = vcombine.high %v926_v7, %v930_v8  ;;  %v933_v14 = vld [vmem:[#allocation6 + $0xf40] sm:$0xff]  ;;  %v471_v6 = vld [vmem:[#allocation6 + $0xd0] sm:$0xff] }
 0x1c1   : > { %v10377_v28 = vcombine.low %v933_v14, %v937_v15 }
 0x1c3   : > { %3693 = vmatpush1.bf16.msra.mxu0 %v10313_v19  ;;  %3857 = vmatpush1.bf16.msra.mxu1 %v10315_v20  ;;  %v10371_v19 = vcombine.low %v926_v7, %v930_v8  ;;  %v10378_v20 = vcombine.high %v933_v14, %v937_v15  ;;  %v475_v7 = vld [vmem:[#allocation6 + $0xf0] sm:$0xff]  ;;  %v472_v8 = vld [vmem:[#allocation6 + $0xd8] sm:$0xff] }
 0x1c4   : > { %3694 = vmatprep.subr.bf16.mxu0 %v10322_v23  ;;  %3858 = vmatprep.subr.bf16.mxu1 %v10324_v24  ;;  %v10380_v23 = vcombine.high %v934_v16, %v938_v17  ;;  %v941_v24 = vld [vmem:[#allocation6 + $0xf80] sm:$0xff]  ;;  %v479_v15 = vld [vmem:[#allocation6 + $0x110] sm:$0xff] }
 0x1c5   : > { %v10385_v38 = vcombine.low %v941_v24, %v945_v25 }
 0x1c7   : > { %3695 = vmatpush1.bf16.msra.mxu0 %v10321_v29  ;;  %3859 = vmatpush1.bf16.msra.mxu1 %v10323_v30  ;;  %v10379_v29 = vcombine.low %v934_v16, %v938_v17  ;;  %v10386_v30 = vcombine.high %v941_v24, %v945_v25  ;;  %v483_v16 = vld [vmem:[#allocation6 + $0x130] sm:$0xff]  ;;  %v480_v17 = vld [vmem:[#allocation6 + $0x118] sm:$0xff] }
 0x1c8   : > { %3696 = vmatprep.subr.bf16.mxu0 %v10330_v31  ;;  %3860 = vmatprep.subr.bf16.mxu1 %v10332_v33  ;;  %v10388_v31 = vcombine.high %v942_v26, %v946_v27  ;;  %v949_v33 = vld [vmem:[#allocation6 + $0xfc0] sm:$0xff]  ;;  %v487_v24 = vld [vmem:[#allocation6 + $0x150] sm:$0xff] }
 0x1c9   : > { %v10393_v47 = vcombine.low %v949_v33, %v953_v34  ;;  %v491_v25 = vld [vmem:[#allocation6 + $0x170] sm:$0xff] }
 0x1cb   : > { %3697 = vmatpush1.bf16.msra.mxu0 %v10329_v39  ;;  %3861 = vmatpush1.bf16.msra.mxu1 %v10331_v40  ;;  %v10387_v39 = vcombine.low %v942_v26, %v946_v27  ;;  %v10394_v40 = vcombine.high %v949_v33, %v953_v34  ;;  %v488_v26 = vld [vmem:[#allocation6 + $0x158] sm:$0xff]  ;;  %v495_v33 = vld [vmem:[#allocation6 + $0x190] sm:$0xff] }
 0x1cc   : > { %3698 = vmatprep.subr.bf16.mxu0 %v10338_v41  ;;  %3862 = vmatprep.subr.bf16.mxu1 %v10340_v42  ;;  %v10396_v41 = vcombine.high %v950_v35, %v954_v37  ;;  %v447_v42 = vld [vmem:[#allocation6 + $0x10] sm:$0xff]  ;;  %v492_v27 = vld [vmem:[#allocation6 + $0x178] sm:$0xff] }
 0x1cd   : > { %v499_v34 = vld [vmem:[#allocation6 + $0x1b0] sm:$0xff] }
 0x1cf   : > { %3699 = vmatpush1.bf16.msra.mxu0 %v10337_v48  ;;  %3863 = vmatpush1.bf16.msra.mxu1 %v10339_v49  ;;  %v435_v48 = vld [vmem:[#allocation3 + $0x30] sm:$0xff]  ;;  %v10395_v49 = vcombine.low %v950_v35, %v954_v37  ;;  %v496_v35 = vld [vmem:[#allocation6 + $0x198] sm:$0xff] }
 0x1d0   : > { %3700 = vmatprep.subr.bf16.mxu0 %v10346_v50  ;;  %3864 = vmatprep.subr.bf16.mxu1 %v10348_v51  ;;  %v9894_v50 = vcombine.high %v447_v42, %v451_v43  ;;  %v9896_v51 = vcombine.high %v448_v44, %v452_v45  ;;  %v12398_v54 = vpack.c.bf16 %v435_v48, %v435_v48  ;;  %v500_v37 = vld [vmem:[#allocation6 + $0x1b8] sm:$0xff] }
 0x1d1   : > { %v9943_v48 = vcombine.low %v496_v35, %v500_v37 }
 0x1d3   : > { %3701 = vmatpush1.bf16.msra.mxu0 %v10345_v56  ;;  %3865 = vmatpush1.bf16.msra.mxu1 %v10347_v58  ;;  %v460_v56 = vld [vmem:[#allocation6 + $0x78] sm:$0xff]  ;;  %v9893_v58 = vcombine.low %v447_v42, %v451_v43  ;;  %v503_v42 = vld [vmem:[#allocation6 + $0x1d0] sm:$0xff] }
 0x1d4   : > { %3702 = vmatprep.subr.bf16.mxu0 %v10354_v59  ;;  %3866 = vmatprep.subr.bf16.mxu1 %v10356_v60  ;;  %v9895_v59 = vcombine.low %v448_v44, %v452_v45  ;;  %v9902_v60 = vcombine.high %v455_v52, %v459_v53  ;;  %v9904_v61 = vcombine.high %v456_v55, %v460_v56  ;;  %v507_v43 = vld [vmem:[#allocation6 + $0x1f0] sm:$0xff]  ;;  %v504_v44 = vld [vmem:[#allocation6 + $0x1d8] sm:$0xff] }
 0x1d5   : > { %v508_v45 = vld [vmem:[#allocation6 + $0x1f8] sm:$0xff] }
 0x1d7   : > { %3703 = vmatpush1.bf16.msra.mxu0 %v10353_v1  ;;  %3867 = vmatpush1.bf16.msra.mxu1 %v10355_v2  ;;  %v468_v1 = vld [vmem:[#allocation6 + $0xb8] sm:$0xff]  ;;  %v9901_v2 = vcombine.low %v455_v52, %v459_v53  ;;  %v515_v52 = vld [vmem:[#allocation6 + $0x230] sm:$0xff] }
 0x1d8   : > { %3704 = vmatprep.subr.bf16.mxu0 %v10362_v3  ;;  %3868 = vmatprep.subr.bf16.mxu1 %v10364_v4  ;;  %v9903_v3 = vcombine.low %v456_v55, %v460_v56  ;;  %v9910_v4 = vcombine.high %v463_v62, %v467_v63  ;;  %v9912_v5 = vcombine.high %v464_v0, %v468_v1  ;;  %v512_v53 = vld [vmem:[#allocation6 + $0x218] sm:$0xff] }
 0x1d9   : > { %v516_v55 = vld [vmem:[#allocation6 + $0x238] sm:$0xff]  ;;  %v9949_v56 = vcombine.low %v503_v42, %v507_v43 }
 0x1db   : > { %3705 = vmatpush1.bf16.msra.mxu0 %v10361_v9  ;;  %3869 = vmatpush1.bf16.msra.mxu1 %v10363_v10  ;;  %v476_v9 = vld [vmem:[#allocation6 + $0xf8] sm:$0xff]  ;;  %v9909_v10 = vcombine.low %v463_v62, %v467_v63  ;;  %v523_v62 = vld [vmem:[#allocation6 + $0x270] sm:$0xff] }
 0x1dc   : > { %3706 = vmatprep.subr.bf16.mxu0 %v10370_v11  ;;  %3870 = vmatprep.subr.bf16.mxu1 %v10372_v13  ;;  %v9911_v11 = vcombine.low %v464_v0, %v468_v1  ;;  %v9918_v13 = vcombine.high %v471_v6, %v475_v7  ;;  %v9920_v14 = vcombine.high %v472_v8, %v476_v9  ;;  %v520_v63 = vld [vmem:[#allocation6 + $0x258] sm:$0xff] }
 0x1dd   : > { %v524_v0 = vld [vmem:[#allocation6 + $0x278] sm:$0xff] }
 0x1df   : > { %3707 = vmatpush1.bf16.msra.mxu0 %v10369_v18  ;;  %3871 = vmatpush1.bf16.msra.mxu1 %v10371_v19  ;;  %v484_v18 = vld [vmem:[#allocation6 + $0x138] sm:$0xff]  ;;  %v9917_v19 = vcombine.low %v471_v6, %v475_v7  ;;  %v531_v6 = vld [vmem:[#allocation6 + $0x2b0] sm:$0xff] }
 0x1e0   : > { %3708 = vmatprep.subr.bf16.mxu0 %v10378_v20  ;;  %3872 = vmatprep.subr.bf16.mxu1 %v10380_v23  ;;  %v9919_v20 = vcombine.low %v472_v8, %v476_v9  ;;  %v9926_v23 = vcombine.high %v479_v15, %v483_v16  ;;  %v528_v7 = vld [vmem:[#allocation6 + $0x298] sm:$0xff] }
 0x1e1   : > { %v532_v8 = vld [vmem:[#allocation6 + $0x2b8] sm:$0xff] }
 0x1e3   : > { %3709 = vmatpush1.bf16.msra.mxu0 %v10377_v28  ;;  %3873 = vmatpush1.bf16.msra.mxu1 %v10379_v29  ;;  %v9925_v28 = vcombine.low %v479_v15, %v483_v16  ;;  %v9927_v29 = vcombine.low %v480_v17, %v484_v18  ;;  %v539_v15 = vld [vmem:[#allocation6 + $0x2f0] sm:$0xff]  ;;  %v536_v16 = vld [vmem:[#allocation6 + $0x2d8] sm:$0xff] }
 0x1e4   : > { %3710 = vmatprep.subr.bf16.mxu0 %v10386_v30  ;;  %3874 = vmatprep.subr.bf16.mxu1 %v10388_v31  ;;  %v9934_v30 = vcombine.high %v487_v24, %v491_v25  ;;  %v9936_v31 = vcombine.high %v488_v26, %v492_v27 }
 0x1e7   : > { %3711 = vmatpush1.bf16.msra.mxu0 %v10385_v38  ;;  %3875 = vmatpush1.bf16.msra.mxu1 %v10387_v39  ;;  %v9933_v38 = vcombine.low %v487_v24, %v491_v25  ;;  %v9935_v39 = vcombine.low %v488_v26, %v492_v27  ;;  %v547_v24 = vld [vmem:[#allocation6 + $0x330] sm:$0xff]  ;;  %v544_v25 = vld [vmem:[#allocation6 + $0x318] sm:$0xff] }
 0x1e8   : > { %3712 = vmatprep.subr.bf16.mxu0 %v10394_v40  ;;  %3876 = vmatprep.subr.bf16.mxu1 %v10396_v41  ;;  %v9942_v40 = vcombine.high %v495_v33, %v499_v34  ;;  %v9944_v41 = vcombine.high %v496_v35, %v500_v37  ;;  %v548_v26 = vld [vmem:[#allocation6 + $0x338] sm:$0xff] }
 0x1e9   : > { %v556_v35 = vld [vmem:[#allocation6 + $0x378] sm:$0xff] }
 0x1eb   : > { %3713 = vmatpush1.bf16.msra.mxu0 %v10393_v47  ;;  %3877 = vmatpush1.bf16.msra.mxu1 %v10395_v49  ;;  %v9941_v47 = vcombine.low %v495_v33, %v499_v34  ;;  %v9950_v49 = vcombine.high %v503_v42, %v507_v43  ;;  %v555_v33 = vld [vmem:[#allocation6 + $0x370] sm:$0xff]  ;;  %v552_v34 = vld [vmem:[#allocation6 + $0x358] sm:$0xff] }
 0x1ec   : > { %3887 = vmatprep.subr.bf16.mxu0 %v9894_v50  ;;  %4051 = vmatprep.subr.bf16.mxu1 %v9896_v51  ;;  %v9952_v50 = vcombine.high %v504_v44, %v508_v45  ;;  %v511_v51 = vld [vmem:[#allocation6 + $0x210] sm:$0xff]  ;;  %v560_v43 = vld [vmem:[#allocation6 + $0x398] sm:$0xff] }
 0x1ed   : > { %v9957_v1 = vcombine.low %v511_v51, %v515_v52  ;;  %v563_v42 = vld [vmem:[#allocation6 + $0x3b0] sm:$0xff] }
 0x1ee   : > { %3715 = vmatmul.mubr.bf16.vlgmr.msra.gmra.mrb[0].mxu0 %v12398_v54  ;;  %3879 = vmatmul.mubr.bf16.vlgmr.msra.gmra.mrb[0].mxu1 %v12398_v54 }
 0x1ef   : > { %3888 = vmatpush1.bf16.msra.mxu0 %v9893_v58  ;;  %4052 = vmatpush1.bf16.msra.mxu1 %v9895_v59  ;;  %v9951_v58 = vcombine.low %v504_v44, %v508_v45  ;;  %v9958_v59 = vcombine.high %v511_v51, %v515_v52  ;;  %v564_v44 = vld [vmem:[#allocation6 + $0x3b8] sm:$0xff]  ;;  %v571_v51 = vld [vmem:[#allocation6 + $0x3f0] sm:$0xff] }
 0x1f0   : > { %3889 = vmatprep.subr.bf16.mxu0 %v9902_v60  ;;  %4053 = vmatprep.subr.bf16.mxu1 %v9904_v61  ;;  %v9960_v60 = vcombine.high %v512_v53, %v516_v55  ;;  %v519_v61 = vld [vmem:[#allocation6 + $0x250] sm:$0xff]  ;;  %v568_v52 = vld [vmem:[#allocation6 + $0x3d8] sm:$0xff] }
 0x1f1   : > { %3919 = vmatprep.mubr.bf16.mxu0 %v12370_v57  ;;  %4083 = vmatprep.mubr.bf16.mxu1 %v12370_v57  ;;  %v9928_v57 = vcombine.high %v480_v17, %v484_v18  ;;  %v9965_v9 = vcombine.low %v519_v61, %v523_v62  ;;  %v540_v17 = vld [vmem:[#allocation6 + $0x2f8] sm:$0xff] }
 0x1f3   : > { %3890 = vmatpush1.bf16.msra.mxu0 %v9901_v2  ;;  %4054 = vmatpush1.bf16.msra.mxu1 %v9903_v3  ;;  %v9959_v2 = vcombine.low %v512_v53, %v516_v55  ;;  %v9966_v3 = vcombine.high %v519_v61, %v523_v62  ;;  %v572_v53 = vld [vmem:[#allocation6 + $0x3f8] sm:$0xff]  ;;  %v579_v61 = vld [vmem:[#allocation6 + $0x430] sm:$0xff] }
 0x1f4   : > { %3891 = vmatprep.subr.bf16.mxu0 %v9910_v4  ;;  %4055 = vmatprep.subr.bf16.mxu1 %v9912_v5  ;;  %v9968_v4 = vcombine.high %v520_v63, %v524_v0  ;;  %v527_v5 = vld [vmem:[#allocation6 + $0x290] sm:$0xff]  ;;  %v576_v62 = vld [vmem:[#allocation6 + $0x418] sm:$0xff] }
 0x1f5   : > { %v9973_v18 = vcombine.low %v527_v5, %v531_v6 }
 0x1f7   : > { %3892 = vmatpush1.bf16.msra.mxu0 %v9909_v10  ;;  %4056 = vmatpush1.bf16.msra.mxu1 %v9911_v11  ;;  %v9967_v10 = vcombine.low %v520_v63, %v524_v0  ;;  %v9974_v11 = vcombine.high %v527_v5, %v531_v6  ;;  %v580_v63 = vld [vmem:[#allocation6 + $0x438] sm:$0xff]  ;;  %v587_v5 = vld [vmem:[#allocation6 + $0x470] sm:$0xff] }
 0x1f8   : > { %3893 = vmatprep.subr.bf16.mxu0 %v9918_v13  ;;  %4057 = vmatprep.subr.bf16.mxu1 %v9920_v14  ;;  %v9976_v13 = vcombine.high %v528_v7, %v532_v8  ;;  %v535_v14 = vld [vmem:[#allocation6 + $0x2d0] sm:$0xff]  ;;  %v584_v6 = vld [vmem:[#allocation6 + $0x458] sm:$0xff] }
 0x1f9   : > { %v9981_v27 = vcombine.low %v535_v14, %v539_v15 }
 0x1fb   : > { %3894 = vmatpush1.bf16.msra.mxu0 %v9917_v19  ;;  %4058 = vmatpush1.bf16.msra.mxu1 %v9919_v20  ;;  %v9975_v19 = vcombine.low %v528_v7, %v532_v8  ;;  %v9982_v20 = vcombine.high %v535_v14, %v539_v15  ;;  %v588_v7 = vld [vmem:[#allocation6 + $0x478] sm:$0xff]  ;;  %v595_v14 = vld [vmem:[#allocation6 + $0x4b0] sm:$0xff] }
 0x1fc   : > { %3895 = vmatprep.subr.bf16.mxu0 %v9926_v23  ;;  %4059 = vmatprep.subr.bf16.mxu1 %v9928_v57  ;;  %v9984_v23 = vcombine.high %v536_v16, %v540_v17  ;;  %v543_v57 = vld [vmem:[#allocation6 + $0x310] sm:$0xff]  ;;  %v592_v15 = vld [vmem:[#allocation6 + $0x498] sm:$0xff] }
 0x1fd   : > { %v9989_v37 = vcombine.low %v543_v57, %v547_v24 }
 0x1ff   : > { %3896 = vmatpush1.bf16.msra.mxu0 %v9925_v28  ;;  %4060 = vmatpush1.bf16.msra.mxu1 %v9927_v29  ;;  %v9983_v28 = vcombine.low %v536_v16, %v540_v17  ;;  %v9990_v29 = vcombine.high %v543_v57, %v547_v24  ;;  %v596_v16 = vld [vmem:[#allocation6 + $0x4b8] sm:$0xff]  ;;  %v603_v57 = vld [vmem:[#allocation6 + $0x4f0] sm:$0xff] }
 0x200   : > { %3897 = vmatprep.subr.bf16.mxu0 %v9934_v30  ;;  %4061 = vmatprep.subr.bf16.mxu1 %v9936_v31  ;;  %v9992_v30 = vcombine.high %v544_v25, %v548_v26  ;;  %v551_v31 = vld [vmem:[#allocation6 + $0x350] sm:$0xff]  ;;  %v600_v24 = vld [vmem:[#allocation6 + $0x4d8] sm:$0xff] }
 0x201   : > { %v9997_v45 = vcombine.low %v551_v31, %v555_v33 }
 0x203   : > { %3898 = vmatpush1.bf16.msra.mxu0 %v9933_v38  ;;  %4062 = vmatpush1.bf16.msra.mxu1 %v9935_v39  ;;  %v9991_v38 = vcombine.low %v544_v25, %v548_v26  ;;  %v9998_v39 = vcombine.high %v551_v31, %v555_v33  ;;  %v604_v25 = vld [vmem:[#allocation6 + $0x4f8] sm:$0xff] }
 0x204   : > { %3899 = vmatprep.subr.bf16.mxu0 %v9942_v40  ;;  %4063 = vmatprep.subr.bf16.mxu1 %v9944_v41  ;;  %v10000_v40 = vcombine.high %v552_v34, %v556_v35  ;;  %v559_v41 = vld [vmem:[#allocation6 + $0x390] sm:$0xff]  ;;  %v608_v31 = vld [vmem:[#allocation6 + $0x518] sm:$0xff] }
 0x205   : > { %v10005_v55 = vcombine.low %v559_v41, %v563_v42  ;;  %v612_v33 = vld [vmem:[#allocation6 + $0x538] sm:$0xff] }
 0x207   : > { %3900 = vmatpush1.bf16.msra.mxu0 %v9941_v47  ;;  %4064 = vmatpush1.bf16.msra.mxu1 %v9943_v48  ;;  %v9999_v47 = vcombine.low %v552_v34, %v556_v35  ;;  %v10006_v48 = vcombine.high %v559_v41, %v563_v42  ;;  %v10047_v35 = vcombine.low %v600_v24, %v604_v25  ;;  %v620_v41 = vld [vmem:[#allocation6 + $0x578] sm:$0xff] }
 0x208   : > { %3901 = vmatprep.subr.bf16.mxu0 %v9950_v49  ;;  %4065 = vmatprep.subr.bf16.mxu1 %v9952_v50  ;;  %v10008_v49 = vcombine.high %v560_v43, %v564_v44  ;;  %v567_v50 = vld [vmem:[#allocation6 + $0x3d0] sm:$0xff] }
 0x209   : > { %v10013_v0 = vcombine.low %v567_v50, %v571_v51 }
 0x20b   : > { %3902 = vmatpush1.bf16.msra.mxu0 %v9949_v56  ;;  %4066 = vmatpush1.bf16.msra.mxu1 %v9951_v58  ;;  %v10007_v56 = vcombine.low %v560_v43, %v564_v44  ;;  %v10014_v58 = vcombine.high %v567_v50, %v571_v51  ;;  %v10055_v43 = vcombine.low %v608_v31, %v612_v33  ;;  %v628_v50 = vld [vmem:[#allocation6 + $0x5b8] sm:$0xff] }
 0x20c   : > { %3903 = vmatprep.subr.bf16.mxu0 %v9958_v59  ;;  %4067 = vmatprep.subr.bf16.mxu1 %v9960_v60  ;;  %v10016_v59 = vcombine.high %v568_v52, %v572_v53  ;;  %v575_v60 = vld [vmem:[#allocation6 + $0x410] sm:$0xff] }
 0x20d   : > { %v10021_v8 = vcombine.low %v575_v60, %v579_v61 }
 0x20f   : > { %3904 = vmatpush1.bf16.msra.mxu0 %v9957_v1  ;;  %4068 = vmatpush1.bf16.msra.mxu1 %v9959_v2  ;;  %v10015_v1 = vcombine.low %v568_v52, %v572_v53  ;;  %v10022_v2 = vcombine.high %v575_v60, %v579_v61  ;;  %v636_v60 = vld [vmem:[#allocation6 + $0x5f8] sm:$0xff] }
 0x210   : > { %3905 = vmatprep.subr.bf16.mxu0 %v9966_v3  ;;  %4069 = vmatprep.subr.bf16.mxu1 %v9968_v4  ;;  %v10024_v3 = vcombine.high %v576_v62, %v580_v63  ;;  %v583_v4 = vld [vmem:[#allocation6 + $0x450] sm:$0xff] }
 0x211   : > { %v10029_v17 = vcombine.low %v583_v4, %v587_v5 }
 0x213   : > { %3906 = vmatpush1.bf16.msra.mxu0 %v9965_v9  ;;  %4070 = vmatpush1.bf16.msra.mxu1 %v9967_v10  ;;  %v10023_v9 = vcombine.low %v576_v62, %v580_v63  ;;  %v10030_v10 = vcombine.high %v583_v4, %v587_v5  ;;  %v644_v4 = vld [vmem:[#allocation6 + $0x638] sm:$0xff] }
 0x214   : > { %3907 = vmatprep.subr.bf16.mxu0 %v9974_v11  ;;  %4071 = vmatprep.subr.bf16.mxu1 %v9976_v13  ;;  %v10032_v11 = vcombine.high %v584_v6, %v588_v7  ;;  %v591_v13 = vld [vmem:[#allocation6 + $0x490] sm:$0xff] }
 0x215   : > { %v10037_v26 = vcombine.low %v591_v13, %v595_v14 }
 0x217   : > { %3908 = vmatpush1.bf16.msra.mxu0 %v9973_v18  ;;  %4072 = vmatpush1.bf16.msra.mxu1 %v9975_v19  ;;  %v10031_v18 = vcombine.low %v584_v6, %v588_v7  ;;  %v10038_v19 = vcombine.high %v591_v13, %v595_v14  ;;  %v652_v13 = vld [vmem:[#allocation6 + $0x678] sm:$0xff] }
 0x218   : > { %3909 = vmatprep.subr.bf16.mxu0 %v9982_v20  ;;  %4073 = vmatprep.subr.bf16.mxu1 %v9984_v23  ;;  %v10040_v20 = vcombine.high %v592_v15, %v596_v16  ;;  %v599_v23 = vld [vmem:[#allocation6 + $0x4d0] sm:$0xff] }
 0x219   : > { %v10045_v34 = vcombine.low %v599_v23, %v603_v57 }
 0x21b   : > { %3910 = vmatpush1.bf16.msra.mxu0 %v9981_v27  ;;  %4074 = vmatpush1.bf16.msra.mxu1 %v9983_v28  ;;  %v10046_v27 = vcombine.high %v599_v23, %v603_v57  ;;  %v10048_v28 = vcombine.high %v600_v24, %v604_v25  ;;  %v660_v23 = vld [vmem:[#allocation6 + $0x6b8] sm:$0xff] }
 0x21c   : > { %3911 = vmatprep.subr.bf16.mxu0 %v9990_v29  ;;  %4075 = vmatprep.subr.bf16.mxu1 %v9992_v30  ;;  %v607_v29 = vld [vmem:[#allocation6 + $0x510] sm:$0xff] }
 0x21d   : > { %v611_v30 = vld [vmem:[#allocation6 + $0x530] sm:$0xff] }
 0x21e   : > { %v10053_v42 = vcombine.low %v607_v29, %v611_v30 }
 0x21f   : > { %3912 = vmatpush1.bf16.msra.mxu0 %v9989_v37  ;;  %4076 = vmatpush1.bf16.msra.mxu1 %v9991_v38  ;;  %v10054_v37 = vcombine.high %v607_v29, %v611_v30  ;;  %v615_v38 = vld [vmem:[#allocation6 + $0x550] sm:$0xff]  ;;  %v668_v29 = vld [vmem:[#allocation6 + $0x6f8] sm:$0xff] }
 0x220   : > { %3913 = vmatprep.subr.bf16.mxu0 %v9998_v39  ;;  %4077 = vmatprep.subr.bf16.mxu1 %v10000_v40  ;;  %v619_v39 = vld [vmem:[#allocation6 + $0x570] sm:$0xff]  ;;  %v616_v40 = vld [vmem:[#allocation6 + $0x558] sm:$0xff] }
 0x221   : > { %v10062_v44 = vcombine.high %v615_v38, %v619_v39  ;;  %v10061_v51 = vcombine.low %v615_v38, %v619_v39  ;;  %v10063_v52 = vcombine.low %v616_v40, %v620_v41  ;;  %v676_v38 = vld [vmem:[#allocation6 + $0x738] sm:$0xff] }
 0x223   : > { %3914 = vmatpush1.bf16.msra.mxu0 %v9997_v45  ;;  %4078 = vmatpush1.bf16.msra.mxu1 %v9999_v47  ;;  %v10064_v45 = vcombine.high %v616_v40, %v620_v41  ;;  %v623_v47 = vld [vmem:[#allocation6 + $0x590] sm:$0xff] }
 0x224   : > { %3915 = vmatprep.subr.bf16.mxu0 %v10006_v48  ;;  %4079 = vmatprep.subr.bf16.mxu1 %v10008_v49  ;;  %v627_v48 = vld [vmem:[#allocation6 + $0x5b0] sm:$0xff]  ;;  %v624_v49 = vld [vmem:[#allocation6 + $0x598] sm:$0xff] }
 0x225   : > { %v10070_v53 = vcombine.high %v623_v47, %v627_v48  ;;  %v10069_v61 = vcombine.low %v623_v47, %v627_v48  ;;  %v10071_v62 = vcombine.low %v624_v49, %v628_v50  ;;  %v684_v47 = vld [vmem:[#allocation6 + $0x778] sm:$0xff] }
 0x227   : > { %3916 = vmatpush1.bf16.msra.mxu0 %v10005_v55  ;;  %4080 = vmatpush1.bf16.msra.mxu1 %v10007_v56  ;;  %v10072_v55 = vcombine.high %v624_v49, %v628_v50  ;;  %v631_v56 = vld [vmem:[#allocation6 + $0x5d0] sm:$0xff] }
 0x228   : > { %3917 = vmatprep.subr.bf16.mxu0 %v10014_v58  ;;  %4081 = vmatprep.subr.bf16.mxu1 %v10016_v59  ;;  %v635_v58 = vld [vmem:[#allocation6 + $0x5f0] sm:$0xff]  ;;  %v632_v59 = vld [vmem:[#allocation6 + $0x5d8] sm:$0xff] }
 0x229   : > { %v10078_v63 = vcombine.high %v631_v56, %v635_v58  ;;  %v10077_v5 = vcombine.low %v631_v56, %v635_v58  ;;  %v10079_v6 = vcombine.low %v632_v59, %v636_v60  ;;  %v692_v56 = vld [vmem:[#allocation6 + $0x7b8] sm:$0xff] }
 0x22b   : > { %3918 = vmatpush1.bf16.msra.mxu0 %v10013_v0  ;;  %4082 = vmatpush1.bf16.msra.mxu1 %v10015_v1  ;;  %v10080_v0 = vcombine.high %v632_v59, %v636_v60  ;;  %v639_v1 = vld [vmem:[#allocation6 + $0x610] sm:$0xff] }
 0x22c   : > { %3928 = vmatprep.subr.bf16.mxu0 %v10022_v2  ;;  %4092 = vmatprep.subr.bf16.mxu1 %v10024_v3  ;;  %v643_v2 = vld [vmem:[#allocation6 + $0x630] sm:$0xff]  ;;  %v640_v3 = vld [vmem:[#allocation6 + $0x618] sm:$0xff] }
 0x22d   : > { %v10086_v7 = vcombine.high %v639_v1, %v643_v2  ;;  %v10085_v14 = vcombine.low %v639_v1, %v643_v2  ;;  %v700_v1 = vld [vmem:[#allocation6 + $0x7f8] sm:$0xff] }
 0x22e   : > { %3920 = vmatmul.mubr.bf16.vlgmr.msra.gmra.mrb[4].mxu0 %v12374_v12  ;;  %4084 = vmatmul.mubr.bf16.vlgmr.msra.gmra.mrb[4].mxu1 %v12374_v12  ;;  %v10039_v12 = vcombine.low %v592_v15, %v596_v16  ;;  %v10087_v15 = vcombine.low %v640_v3, %v644_v4 }
 0x22f   : > { %3929 = vmatpush1.bf16.msra.mxu0 %v10021_v8  ;;  %4093 = vmatpush1.bf16.msra.mxu1 %v10023_v9  ;;  %v10088_v8 = vcombine.high %v640_v3, %v644_v4  ;;  %v647_v9 = vld [vmem:[#allocation6 + $0x650] sm:$0xff] }
 0x230   : > { %3930 = vmatprep.subr.bf16.mxu0 %v10030_v10  ;;  %4094 = vmatprep.subr.bf16.mxu1 %v10032_v11  ;;  %v651_v10 = vld [vmem:[#allocation6 + $0x670] sm:$0xff]  ;;  %v648_v11 = vld [vmem:[#allocation6 + $0x658] sm:$0xff] }
 0x231   : > { %3960 = vmatprep.mubr.bf16.mxu0 %v12376_v22  ;;  %4124 = vmatprep.mubr.bf16.mxu1 %v12376_v22  ;;  %v10056_v22 = vcombine.high %v608_v31, %v612_v33  ;;  %v10094_v16 = vcombine.high %v647_v9, %v651_v10  ;;  %v10093_v57 = vcombine.low %v647_v9, %v651_v10  ;;  %v708_v9 = vld [vmem:[#allocation6 + $0x838] sm:$0xff] }
 0x232   : > { %v10095_v24 = vcombine.low %v648_v11, %v652_v13 }
 0x233   : > { %3931 = vmatpush1.bf16.msra.mxu0 %v10029_v17  ;;  %4095 = vmatpush1.bf16.msra.mxu1 %v10031_v18  ;;  %v10096_v17 = vcombine.high %v648_v11, %v652_v13  ;;  %v655_v18 = vld [vmem:[#allocation6 + $0x690] sm:$0xff] }
 0x234   : > { %3932 = vmatprep.subr.bf16.mxu0 %v10038_v19  ;;  %4096 = vmatprep.subr.bf16.mxu1 %v10040_v20  ;;  %v659_v19 = vld [vmem:[#allocation6 + $0x6b0] sm:$0xff]  ;;  %v656_v20 = vld [vmem:[#allocation6 + $0x698] sm:$0xff] }
 0x235   : > { %v10102_v25 = vcombine.high %v655_v18, %v659_v19  ;;  %v10101_v30 = vcombine.low %v655_v18, %v659_v19  ;;  %v10103_v31 = vcombine.low %v656_v20, %v660_v23  ;;  %v716_v18 = vld [vmem:[#allocation6 + $0x878] sm:$0xff] }
 0x237   : > { %3933 = vmatpush1.bf16.msra.mxu0 %v10037_v26  ;;  %4097 = vmatpush1.bf16.msra.mxu1 %v10039_v12  ;;  %v10104_v26 = vcombine.high %v656_v20, %v660_v23  ;;  %v663_v12 = vld [vmem:[#allocation6 + $0x6d0] sm:$0xff] }
 0x238   : > { %3934 = vmatprep.subr.bf16.mxu0 %v10046_v27  ;;  %4098 = vmatprep.subr.bf16.mxu1 %v10048_v28  ;;  %v667_v27 = vld [vmem:[#allocation6 + $0x6f0] sm:$0xff]  ;;  %v664_v28 = vld [vmem:[#allocation6 + $0x6d8] sm:$0xff] }
 0x239   : > { %v10110_v33 = vcombine.high %v663_v12, %v667_v27  ;;  %v10109_v39 = vcombine.low %v663_v12, %v667_v27  ;;  %v10111_v40 = vcombine.low %v664_v28, %v668_v29  ;;  %v724_v12 = vld [vmem:[#allocation6 + $0x8b8] sm:$0xff] }
 0x23b   : > { %3935 = vmatpush1.bf16.msra.mxu0 %v10045_v34  ;;  %4099 = vmatpush1.bf16.msra.mxu1 %v10047_v35  ;;  %v10112_v34 = vcombine.high %v664_v28, %v668_v29  ;;  %v671_v35 = vld [vmem:[#allocation6 + $0x710] sm:$0xff] }
 0x23c   : > { %3936 = vmatprep.subr.bf16.mxu0 %v10054_v37  ;;  %4100 = vmatprep.subr.bf16.mxu1 %v10056_v22  ;;  %v675_v37 = vld [vmem:[#allocation6 + $0x730] sm:$0xff]  ;;  %v672_v22 = vld [vmem:[#allocation6 + $0x718] sm:$0xff] }
 0x23d   : > { %v10118_v41 = vcombine.high %v671_v35, %v675_v37  ;;  %v10117_v48 = vcombine.low %v671_v35, %v675_v37  ;;  %v10119_v49 = vcombine.low %v672_v22, %v676_v38  ;;  %v732_v35 = vld [vmem:[#allocation6 + $0x8f8] sm:$0xff] }
 0x23f   : > { %3937 = vmatpush1.bf16.msra.mxu0 %v10053_v42  ;;  %4101 = vmatpush1.bf16.msra.mxu1 %v10055_v43  ;;  %v10120_v42 = vcombine.high %v672_v22, %v676_v38  ;;  %v679_v43 = vld [vmem:[#allocation6 + $0x750] sm:$0xff] }
 0x240   : > { %3938 = vmatprep.subr.bf16.mxu0 %v10062_v44  ;;  %4102 = vmatprep.subr.bf16.mxu1 %v10064_v45  ;;  %v683_v44 = vld [vmem:[#allocation6 + $0x770] sm:$0xff]  ;;  %v680_v45 = vld [vmem:[#allocation6 + $0x758] sm:$0xff] }
 0x241   : > { %v10126_v50 = vcombine.high %v679_v43, %v683_v44  ;;  %v10125_v58 = vcombine.low %v679_v43, %v683_v44  ;;  %v10127_v59 = vcombine.low %v680_v45, %v684_v47 }
 0x243   : > { %3939 = vmatpush1.bf16.msra.mxu0 %v10061_v51  ;;  %4103 = vmatpush1.bf16.msra.mxu1 %v10063_v52  ;;  %v10128_v51 = vcombine.high %v680_v45, %v684_v47  ;;  %v687_v52 = vld [vmem:[#allocation6 + $0x790] sm:$0xff] }
 0x244   : > { %3940 = vmatprep.subr.bf16.mxu0 %v10070_v53  ;;  %4104 = vmatprep.subr.bf16.mxu1 %v10072_v55  ;;  %v691_v53 = vld [vmem:[#allocation6 + $0x7b0] sm:$0xff]  ;;  %v688_v55 = vld [vmem:[#allocation6 + $0x798] sm:$0xff] }
 0x245   : > { %v10134_v60 = vcombine.high %v687_v52, %v691_v53  ;;  %v10133_v2 = vcombine.low %v687_v52, %v691_v53  ;;  %v10135_v3 = vcombine.low %v688_v55, %v692_v56  ;;  %v743_v47 = vld [vmem:[#allocation6 + $0x950] sm:$0xff] }
 0x247   : > { %3941 = vmatpush1.bf16.msra.mxu0 %v10069_v61  ;;  %4105 = vmatpush1.bf16.msra.mxu1 %v10071_v62  ;;  %v10136_v61 = vcombine.high %v688_v55, %v692_v56  ;;  %v695_v62 = vld [vmem:[#allocation6 + $0x7d0] sm:$0xff] }
 0x248   : > { %3942 = vmatprep.subr.bf16.mxu0 %v10078_v63  ;;  %4106 = vmatprep.subr.bf16.mxu1 %v10080_v0  ;;  %v699_v63 = vld [vmem:[#allocation6 + $0x7f0] sm:$0xff]  ;;  %v696_v0 = vld [vmem:[#allocation6 + $0x7d8] sm:$0xff] }
 0x249   : > { %v10142_v4 = vcombine.high %v695_v62, %v699_v63  ;;  %v10141_v10 = vcombine.low %v695_v62, %v699_v63  ;;  %v10143_v11 = vcombine.low %v696_v0, %v700_v1  ;;  %v751_v56 = vld [vmem:[#allocation6 + $0x990] sm:$0xff] }
 0x24b   : > { %3943 = vmatpush1.bf16.msra.mxu0 %v10077_v5  ;;  %4107 = vmatpush1.bf16.msra.mxu1 %v10079_v6  ;;  %v10144_v5 = vcombine.high %v696_v0, %v700_v1  ;;  %v703_v6 = vld [vmem:[#allocation6 + $0x810] sm:$0xff] }
 0x24c   : > { %3944 = vmatprep.subr.bf16.mxu0 %v10086_v7  ;;  %4108 = vmatprep.subr.bf16.mxu1 %v10088_v8  ;;  %v707_v7 = vld [vmem:[#allocation6 + $0x830] sm:$0xff]  ;;  %v704_v8 = vld [vmem:[#allocation6 + $0x818] sm:$0xff] }
 0x24d   : > { %v10150_v13 = vcombine.high %v703_v6, %v707_v7  ;;  %v10149_v19 = vcombine.low %v703_v6, %v707_v7  ;;  %v10151_v20 = vcombine.low %v704_v8, %v708_v9  ;;  %v759_v1 = vld [vmem:[#allocation6 + $0x9d0] sm:$0xff] }
 0x24f   : > { %3945 = vmatpush1.bf16.msra.mxu0 %v10085_v14  ;;  %4109 = vmatpush1.bf16.msra.mxu1 %v10087_v15  ;;  %v10152_v14 = vcombine.high %v704_v8, %v708_v9  ;;  %v711_v15 = vld [vmem:[#allocation6 + $0x850] sm:$0xff] }
 0x250   : > { %3946 = vmatprep.subr.bf16.mxu0 %v10094_v16  ;;  %4110 = vmatprep.subr.bf16.mxu1 %v10096_v17  ;;  %v715_v16 = vld [vmem:[#allocation6 + $0x870] sm:$0xff]  ;;  %v712_v17 = vld [vmem:[#allocation6 + $0x858] sm:$0xff] }
 0x251   : > { %v10158_v23 = vcombine.high %v711_v15, %v715_v16  ;;  %v10157_v27 = vcombine.low %v711_v15, %v715_v16  ;;  %v10159_v28 = vcombine.low %v712_v17, %v716_v18  ;;  %v767_v9 = vld [vmem:[#allocation6 + $0xa10] sm:$0xff] }
 0x253   : > { %3947 = vmatpush1.bf16.msra.mxu0 %v10093_v57  ;;  %4111 = vmatpush1.bf16.msra.mxu1 %v10095_v24  ;;  %v10160_v57 = vcombine.high %v712_v17, %v716_v18  ;;  %v719_v24 = vld [vmem:[#allocation6 + $0x890] sm:$0xff] }
 0x254   : > { %3948 = vmatprep.subr.bf16.mxu0 %v10102_v25  ;;  %4112 = vmatprep.subr.bf16.mxu1 %v10104_v26  ;;  %v723_v25 = vld [vmem:[#allocation6 + $0x8b0] sm:$0xff]  ;;  %v720_v26 = vld [vmem:[#allocation6 + $0x898] sm:$0xff] }
 0x255   : > { %v10166_v29 = vcombine.high %v719_v24, %v723_v25  ;;  %v10165_v37 = vcombine.low %v719_v24, %v723_v25  ;;  %v775_v18 = vld [vmem:[#allocation6 + $0xa50] sm:$0xff] }
 0x257   : > { %3949 = vmatpush1.bf16.msra.mxu0 %v10101_v30  ;;  %4113 = vmatpush1.bf16.msra.mxu1 %v10103_v31  ;;  %v10168_v30 = vcombine.high %v720_v26, %v724_v12  ;;  %v727_v31 = vld [vmem:[#allocation6 + $0x8d0] sm:$0xff] }
 0x258   : > { %3950 = vmatprep.subr.bf16.mxu0 %v10110_v33  ;;  %4114 = vmatprep.subr.bf16.mxu1 %v10112_v34  ;;  %v731_v33 = vld [vmem:[#allocation6 + $0x8f0] sm:$0xff]  ;;  %v728_v34 = vld [vmem:[#allocation6 + $0x8d8] sm:$0xff] }
 0x259   : > { %v10174_v22 = vcombine.high %v727_v31, %v731_v33  ;;  %v10176_v38 = vcombine.high %v728_v34, %v732_v35  ;;  %v10173_v43 = vcombine.low %v727_v31, %v731_v33  ;;  %v10175_v44 = vcombine.low %v728_v34, %v732_v35  ;;  %v791_v35 = vld [vmem:[#allocation6 + $0xad0] sm:$0xff] }
 0x25b   : > { %3951 = vmatpush1.bf16.msra.mxu0 %v10109_v39  ;;  %4115 = vmatpush1.bf16.msra.mxu1 %v10111_v40  ;;  %v735_v39 = vld [vmem:[#allocation6 + $0x910] sm:$0xff] }
 0x25c   : > { %3952 = vmatprep.subr.bf16.mxu0 %v10118_v41  ;;  %4116 = vmatprep.subr.bf16.mxu1 %v10120_v42  ;;  %v739_v40 = vld [vmem:[#allocation6 + $0x930] sm:$0xff]  ;;  %v736_v41 = vld [vmem:[#allocation6 + $0x918] sm:$0xff] }
 0x25d   : > { %v740_v42 = vld [vmem:[#allocation6 + $0x938] sm:$0xff]  ;;  %v10182_v45 = vcombine.high %v735_v39, %v739_v40 }
 0x25e   : > { %v10183_v52 = vcombine.low %v736_v41, %v740_v42 }
 0x25f   : > { %3953 = vmatpush1.bf16.msra.mxu0 %v10117_v48  ;;  %4117 = vmatpush1.bf16.msra.mxu1 %v10119_v49  ;;  %v747_v48 = vld [vmem:[#allocation6 + $0x970] sm:$0xff]  ;;  %v744_v49 = vld [vmem:[#allocation6 + $0x958] sm:$0xff] }
 0x260   : > { %3954 = vmatprep.subr.bf16.mxu0 %v10126_v50  ;;  %4118 = vmatprep.subr.bf16.mxu1 %v10128_v51  ;;  %v748_v50 = vld [vmem:[#allocation6 + $0x978] sm:$0xff]  ;;  %v10181_v51 = vcombine.low %v735_v39, %v739_v40  ;;  %v10190_v53 = vcombine.high %v743_v47, %v747_v48 }
 0x261   : > { %v10192_v55 = vcombine.high %v744_v49, %v748_v50  ;;  %v10191_v62 = vcombine.low %v744_v49, %v748_v50  ;;  %v807_v50 = vld [vmem:[#allocation6 + $0xb50] sm:$0xff] }
 0x263   : > { %3955 = vmatpush1.bf16.msra.mxu0 %v10125_v58  ;;  %4119 = vmatpush1.bf16.msra.mxu1 %v10127_v59  ;;  %v755_v58 = vld [vmem:[#allocation6 + $0x9b0] sm:$0xff]  ;;  %v752_v59 = vld [vmem:[#allocation6 + $0x998] sm:$0xff] }
 0x264   : > { %3956 = vmatprep.subr.bf16.mxu0 %v10134_v60  ;;  %4120 = vmatprep.subr.bf16.mxu1 %v10136_v61  ;;  %v756_v60 = vld [vmem:[#allocation6 + $0x9b8] sm:$0xff]  ;;  %v10189_v61 = vcombine.low %v743_v47, %v747_v48  ;;  %v10198_v63 = vcombine.high %v751_v56, %v755_v58 }
 0x265   : > { %v10200_v0 = vcombine.high %v752_v59, %v756_v60  ;;  %v10199_v6 = vcombine.low %v752_v59, %v756_v60  ;;  %v815_v60 = vld [vmem:[#allocation6 + $0xb90] sm:$0xff] }
 0x267   : > { %3957 = vmatpush1.bf16.msra.mxu0 %v10133_v2  ;;  %4121 = vmatpush1.bf16.msra.mxu1 %v10135_v3  ;;  %v763_v2 = vld [vmem:[#allocation6 + $0x9f0] sm:$0xff]  ;;  %v760_v3 = vld [vmem:[#allocation6 + $0x9d8] sm:$0xff] }
 0x268   : > { %3958 = vmatprep.subr.bf16.mxu0 %v10142_v4  ;;  %4122 = vmatprep.subr.bf16.mxu1 %v10144_v5  ;;  %v764_v4 = vld [vmem:[#allocation6 + $0x9f8] sm:$0xff]  ;;  %v10197_v5 = vcombine.low %v751_v56, %v755_v58  ;;  %v10206_v7 = vcombine.high %v759_v1, %v763_v2 }
 0x269   : > { %v10208_v8 = vcombine.high %v760_v3, %v764_v4  ;;  %v10207_v15 = vcombine.low %v760_v3, %v764_v4  ;;  %v823_v4 = vld [vmem:[#allocation6 + $0xbd0] sm:$0xff] }
 0x26b   : > { %3959 = vmatpush1.bf16.msra.mxu0 %v10141_v10  ;;  %4123 = vmatpush1.bf16.msra.mxu1 %v10143_v11  ;;  %v771_v10 = vld [vmem:[#allocation6 + $0xa30] sm:$0xff]  ;;  %v768_v11 = vld [vmem:[#allocation6 + $0xa18] sm:$0xff] }
 0x26c   : > { %3969 = vmatprep.subr.bf16.mxu0 %v10150_v13  ;;  %4133 = vmatprep.subr.bf16.mxu1 %v10152_v14  ;;  %v772_v13 = vld [vmem:[#allocation6 + $0xa38] sm:$0xff]  ;;  %v10205_v14 = vcombine.low %v759_v1, %v763_v2  ;;  %v10214_v16 = vcombine.high %v767_v9, %v771_v10 }
 0x26d   : > { %v10216_v17 = vcombine.high %v768_v11, %v772_v13  ;;  %v10215_v24 = vcombine.low %v768_v11, %v772_v13  ;;  %v831_v13 = vld [vmem:[#allocation6 + $0xc10] sm:$0xff] }
 0x26e   : > { %3961 = vmatmul.mubr.bf16.vlgmr.msra.gmra.mrb[4].mxu0 %v12382_v21  ;;  %4125 = vmatmul.mubr.bf16.vlgmr.msra.gmra.mrb[4].mxu1 %v12382_v21  ;;  %v10167_v21 = vcombine.low %v720_v26, %v724_v12  ;;  %v783_v12 = vld [vmem:[#allocation6 + $0xa90] sm:$0xff] }
 0x26f   : > { %3970 = vmatpush1.bf16.msra.mxu0 %v10149_v19  ;;  %4134 = vmatpush1.bf16.msra.mxu1 %v10151_v20  ;;  %v779_v19 = vld [vmem:[#allocation6 + $0xa70] sm:$0xff]  ;;  %v776_v20 = vld [vmem:[#allocation6 + $0xa58] sm:$0xff] }
 0x270   : > { %3971 = vmatprep.subr.bf16.mxu0 %v10158_v23  ;;  %4135 = vmatprep.subr.bf16.mxu1 %v10160_v57  ;;  %v780_v23 = vld [vmem:[#allocation6 + $0xa78] sm:$0xff]  ;;  %v10213_v57 = vcombine.low %v767_v9, %v771_v10  ;;  %v10222_v25 = vcombine.high %v775_v18, %v779_v19 }
 0x271   : > { %4001 = vmatprep.mubr.bf16.mxu0 %v12384_v32  ;;  %4165 = vmatprep.mubr.bf16.mxu1 %v12384_v32  ;;  %v10184_v32 = vcombine.high %v736_v41, %v740_v42  ;;  %v10224_v26 = vcombine.high %v776_v20, %v780_v23  ;;  %v10223_v31 = vcombine.low %v776_v20, %v780_v23  ;;  %v799_v42 = vld [vmem:[#allocation6 + $0xb10] sm:$0xff] }
 0x272   : > { %v839_v23 = vld [vmem:[#allocation6 + $0xc50] sm:$0xff] }
 0x273   : > { %3972 = vmatpush1.bf16.msra.mxu0 %v10157_v27  ;;  %4136 = vmatpush1.bf16.msra.mxu1 %v10159_v28  ;;  %v787_v27 = vld [vmem:[#allocation6 + $0xab0] sm:$0xff]  ;;  %v784_v28 = vld [vmem:[#allocation6 + $0xa98] sm:$0xff] }
 0x274   : > { %3973 = vmatprep.subr.bf16.mxu0 %v10166_v29  ;;  %4137 = vmatprep.subr.bf16.mxu1 %v10168_v30  ;;  %v788_v29 = vld [vmem:[#allocation6 + $0xab8] sm:$0xff]  ;;  %v10221_v30 = vcombine.low %v775_v18, %v779_v19  ;;  %v10230_v33 = vcombine.high %v783_v12, %v787_v27 }
 0x275   : > { %v10232_v34 = vcombine.high %v784_v28, %v788_v29  ;;  %v10231_v39 = vcombine.low %v784_v28, %v788_v29  ;;  %v847_v29 = vld [vmem:[#allocation6 + $0xc90] sm:$0xff] }
 0x277   : > { %3974 = vmatpush1.bf16.msra.mxu0 %v10165_v37  ;;  %4138 = vmatpush1.bf16.msra.mxu1 %v10167_v21  ;;  %v795_v37 = vld [vmem:[#allocation6 + $0xaf0] sm:$0xff]  ;;  %v792_v21 = vld [vmem:[#allocation6 + $0xad8] sm:$0xff] }
 0x278   : > { %3975 = vmatprep.subr.bf16.mxu0 %v10174_v22  ;;  %4139 = vmatprep.subr.bf16.mxu1 %v10176_v38  ;;  %v796_v22 = vld [vmem:[#allocation6 + $0xaf8] sm:$0xff]  ;;  %v10229_v38 = vcombine.low %v783_v12, %v787_v27  ;;  %v10238_v40 = vcombine.high %v791_v35, %v795_v37 }
 0x279   : > { %v10240_v41 = vcombine.high %v792_v21, %v796_v22  ;;  %v10239_v47 = vcombine.low %v792_v21, %v796_v22  ;;  %v855_v22 = vld [vmem:[#allocation6 + $0xcd0] sm:$0xff] }
 0x27b   : > { %3976 = vmatpush1.bf16.msra.mxu0 %v10173_v43  ;;  %4140 = vmatpush1.bf16.msra.mxu1 %v10175_v44  ;;  %v803_v43 = vld [vmem:[#allocation6 + $0xb30] sm:$0xff]  ;;  %v800_v44 = vld [vmem:[#allocation6 + $0xb18] sm:$0xff] }
 0x27c   : > { %3977 = vmatprep.subr.bf16.mxu0 %v10182_v45  ;;  %4141 = vmatprep.subr.bf16.mxu1 %v10184_v32  ;;  %v804_v45 = vld [vmem:[#allocation6 + $0xb38] sm:$0xff]  ;;  %v10237_v32 = vcombine.low %v791_v35, %v795_v37  ;;  %v10246_v48 = vcombine.high %v799_v42, %v803_v43 }
 0x27d   : > { %v10248_v49 = vcombine.high %v800_v44, %v804_v45  ;;  %v10247_v56 = vcombine.low %v800_v44, %v804_v45  ;;  %v863_v44 = vld [vmem:[#allocation6 + $0xd10] sm:$0xff] }
 0x27e   : > { %v867_v45 = vld [vmem:[#allocation6 + $0xd30] sm:$0xff] }
 0x27f   : > { %3978 = vmatpush1.bf16.msra.mxu0 %v10181_v51  ;;  %4142 = vmatpush1.bf16.msra.mxu1 %v10183_v52  ;;  %v811_v51 = vld [vmem:[#allocation6 + $0xb70] sm:$0xff]  ;;  %v808_v52 = vld [vmem:[#allocation6 + $0xb58] sm:$0xff] }
 0x280   : > { %3979 = vmatprep.subr.bf16.mxu0 %v10190_v53  ;;  %4143 = vmatprep.subr.bf16.mxu1 %v10192_v55  ;;  %v812_v53 = vld [vmem:[#allocation6 + $0xb78] sm:$0xff]  ;;  %v10245_v55 = vcombine.low %v799_v42, %v803_v43  ;;  %v10254_v58 = vcombine.high %v807_v50, %v811_v51 }
 0x281   : > { %v10256_v59 = vcombine.high %v808_v52, %v812_v53  ;;  %v10255_v1 = vcombine.low %v808_v52, %v812_v53  ;;  %v875_v52 = vld [vmem:[#allocation6 + $0xd70] sm:$0xff]  ;;  %v872_v53 = vld [vmem:[#allocation6 + $0xd58] sm:$0xff] }
 0x283   : > { %3980 = vmatpush1.bf16.msra.mxu0 %v10189_v61  ;;  %4144 = vmatpush1.bf16.msra.mxu1 %v10191_v62  ;;  %v819_v61 = vld [vmem:[#allocation6 + $0xbb0] sm:$0xff]  ;;  %v816_v62 = vld [vmem:[#allocation6 + $0xb98] sm:$0xff] }
 0x284   : > { %3981 = vmatprep.subr.bf16.mxu0 %v10198_v63  ;;  %4145 = vmatprep.subr.bf16.mxu1 %v10200_v0  ;;  %v820_v63 = vld [vmem:[#allocation6 + $0xbb8] sm:$0xff]  ;;  %v10253_v0 = vcombine.low %v807_v50, %v811_v51  ;;  %v10262_v2 = vcombine.high %v815_v60, %v819_v61  ;;  %v10310_v50 = vcombine.high %v863_v44, %v867_v45  ;;  %v871_v51 = vld [vmem:[#allocation6 + $0xd50] sm:$0xff] }
 0x285   : > { %v10264_v3 = vcombine.high %v816_v62, %v820_v63  ;;  %v10263_v9 = vcombine.low %v816_v62, %v820_v63  ;;  %v883_v62 = vld [vmem:[#allocation6 + $0xdb0] sm:$0xff]  ;;  %v880_v63 = vld [vmem:[#allocation6 + $0xd98] sm:$0xff] }
 0x287   : > { %3982 = vmatpush1.bf16.msra.mxu0 %v10197_v5  ;;  %4146 = vmatpush1.bf16.msra.mxu1 %v10199_v6  ;;  %v827_v5 = vld [vmem:[#allocation6 + $0xbf0] sm:$0xff]  ;;  %v824_v6 = vld [vmem:[#allocation6 + $0xbd8] sm:$0xff] }
 0x288   : > { %3983 = vmatprep.subr.bf16.mxu0 %v10206_v7  ;;  %4147 = vmatprep.subr.bf16.mxu1 %v10208_v8  ;;  %v828_v7 = vld [vmem:[#allocation6 + $0xbf8] sm:$0xff]  ;;  %v10261_v8 = vcombine.low %v815_v60, %v819_v61  ;;  %v10270_v10 = vcombine.high %v823_v4, %v827_v5  ;;  %v879_v61 = vld [vmem:[#allocation6 + $0xd90] sm:$0xff] }
 0x289   : > { %v10272_v11 = vcombine.high %v824_v6, %v828_v7  ;;  %v10271_v18 = vcombine.low %v824_v6, %v828_v7  ;;  %v887_v6 = vld [vmem:[#allocation6 + $0xdd0] sm:$0xff] }
 0x28a   : > { %v891_v7 = vld [vmem:[#allocation6 + $0xdf0] sm:$0xff] }
 0x28b   : > { %3984 = vmatpush1.bf16.msra.mxu0 %v10205_v14  ;;  %4148 = vmatpush1.bf16.msra.mxu1 %v10207_v15  ;;  %v835_v14 = vld [vmem:[#allocation6 + $0xc30] sm:$0xff]  ;;  %v832_v15 = vld [vmem:[#allocation6 + $0xc18] sm:$0xff] }
 0x28c   : > { %3985 = vmatprep.subr.bf16.mxu0 %v10214_v16  ;;  %4149 = vmatprep.subr.bf16.mxu1 %v10216_v17  ;;  %v836_v16 = vld [vmem:[#allocation6 + $0xc38] sm:$0xff]  ;;  %v10269_v17 = vcombine.low %v823_v4, %v827_v5  ;;  %v10278_v19 = vcombine.high %v831_v13, %v835_v14 }
 0x28d   : > { %v10280_v20 = vcombine.high %v832_v15, %v836_v16  ;;  %v10279_v12 = vcombine.low %v832_v15, %v836_v16  ;;  %v10325_v15 = vcombine.low %v879_v61, %v883_v62 }
 0x28f   : > { %3986 = vmatpush1.bf16.msra.mxu0 %v10213_v57  ;;  %4150 = vmatpush1.bf16.msra.mxu1 %v10215_v24  ;;  %v843_v57 = vld [vmem:[#allocation6 + $0xc70] sm:$0xff]  ;;  %v840_v24 = vld [vmem:[#allocation6 + $0xc58] sm:$0xff] }
 0x290   : > { %3987 = vmatprep.subr.bf16.mxu0 %v10222_v25  ;;  %4151 = vmatprep.subr.bf16.mxu1 %v10224_v26  ;;  %v844_v25 = vld [vmem:[#allocation6 + $0xc78] sm:$0xff]  ;;  %v10277_v26 = vcombine.low %v831_v13, %v835_v14  ;;  %v10286_v27 = vcombine.high %v839_v23, %v843_v57 }
 0x291   : > { %v10288_v28 = vcombine.high %v840_v24, %v844_v25  ;;  %v10287_v35 = vcombine.low %v840_v24, %v844_v25  ;;  %v899_v24 = vld [vmem:[#allocation6 + $0xe30] sm:$0xff]  ;;  %v896_v25 = vld [vmem:[#allocation6 + $0xe18] sm:$0xff] }
 0x293   : > { %3988 = vmatpush1.bf16.msra.mxu0 %v10221_v30  ;;  %4152 = vmatpush1.bf16.msra.mxu1 %v10223_v31  ;;  %v851_v30 = vld [vmem:[#allocation6 + $0xcb0] sm:$0xff]  ;;  %v848_v31 = vld [vmem:[#allocation6 + $0xc98] sm:$0xff] }
 0x294   : > { %3989 = vmatprep.subr.bf16.mxu0 %v10230_v33  ;;  %4153 = vmatprep.subr.bf16.mxu1 %v10232_v34  ;;  %v852_v33 = vld [vmem:[#allocation6 + $0xcb8] sm:$0xff]  ;;  %v10285_v34 = vcombine.low %v839_v23, %v843_v57  ;;  %v10294_v37 = vcombine.high %v847_v29, %v851_v30  ;;  %v895_v57 = vld [vmem:[#allocation6 + $0xe10] sm:$0xff] }
 0x295   : > { %v10296_v21 = vcombine.high %v848_v31, %v852_v33 }
 0x297   : > { %3990 = vmatpush1.bf16.msra.mxu0 %v10229_v38  ;;  %4154 = vmatpush1.bf16.msra.mxu1 %v10231_v39  ;;  %v859_v38 = vld [vmem:[#allocation6 + $0xcf0] sm:$0xff]  ;;  %v856_v39 = vld [vmem:[#allocation6 + $0xcd8] sm:$0xff] }
 0x298   : > { %3991 = vmatprep.subr.bf16.mxu0 %v10238_v40  ;;  %4155 = vmatprep.subr.bf16.mxu1 %v10240_v41  ;;  %v860_v40 = vld [vmem:[#allocation6 + $0xcf8] sm:$0xff]  ;;  %v10293_v41 = vcombine.low %v847_v29, %v851_v30  ;;  %v10302_v42 = vcombine.high %v855_v22, %v859_v38  ;;  %v903_v30 = vld [vmem:[#allocation6 + $0xe50] sm:$0xff] }
 0x299   : > { %v10304_v43 = vcombine.high %v856_v39, %v860_v40 }
 0x29b   : > { %3992 = vmatpush1.bf16.msra.mxu0 %v10237_v32  ;;  %4156 = vmatpush1.bf16.msra.mxu1 %v10239_v47  ;;  %v864_v32 = vld [vmem:[#allocation6 + $0xd18] sm:$0xff] }
 0x29c   : > { %3993 = vmatprep.subr.bf16.mxu0 %v10246_v48  ;;  %4157 = vmatprep.subr.bf16.mxu1 %v10248_v49  ;;  %v868_v47 = vld [vmem:[#allocation6 + $0xd38] sm:$0xff]  ;;  %v10301_v48 = vcombine.low %v855_v22, %v859_v38  ;;  %v10303_v49 = vcombine.low %v856_v39, %v860_v40  ;;  %v911_v38 = vld [vmem:[#allocation6 + $0xe90] sm:$0xff] }
 0x29d   : > { %v915_v39 = vld [vmem:[#allocation6 + $0xeb0] sm:$0xff]  ;;  %v912_v40 = vld [vmem:[#allocation6 + $0xe98] sm:$0xff] }
 0x29f   : > { %3994 = vmatpush1.bf16.msra.mxu0 %v10245_v55  ;;  %4158 = vmatpush1.bf16.msra.mxu1 %v10247_v56  ;;  %v876_v55 = vld [vmem:[#allocation6 + $0xd78] sm:$0xff]  ;;  %v10309_v56 = vcombine.low %v863_v44, %v867_v45  ;;  %v919_v45 = vld [vmem:[#allocation6 + $0xed0] sm:$0xff] }
 0x2a0   : > { %3995 = vmatprep.subr.bf16.mxu0 %v10254_v58  ;;  %4159 = vmatprep.subr.bf16.mxu1 %v10256_v59  ;;  %v10311_v58 = vcombine.low %v864_v32, %v868_v47  ;;  %v10318_v59 = vcombine.high %v871_v51, %v875_v52  ;;  %v10320_v60 = vcombine.high %v872_v53, %v876_v55 }
 0x2a3   : > { %3996 = vmatpush1.bf16.msra.mxu0 %v10253_v0  ;;  %4160 = vmatpush1.bf16.msra.mxu1 %v10255_v1  ;;  %v884_v0 = vld [vmem:[#allocation6 + $0xdb8] sm:$0xff]  ;;  %v10317_v1 = vcombine.low %v871_v51, %v875_v52  ;;  %v927_v52 = vld [vmem:[#allocation6 + $0xf10] sm:$0xff] }
 0x2a4   : > { %3997 = vmatprep.subr.bf16.mxu0 %v10262_v2  ;;  %4161 = vmatprep.subr.bf16.mxu1 %v10264_v3  ;;  %v10319_v2 = vcombine.low %v872_v53, %v876_v55  ;;  %v10326_v3 = vcombine.high %v879_v61, %v883_v62  ;;  %v10328_v5 = vcombine.high %v880_v63, %v884_v0  ;;  %v931_v53 = vld [vmem:[#allocation6 + $0xf30] sm:$0xff]  ;;  %v959_v55 = vlaneseq }
 0x2a5   : > { %v10374_v61 = vcombine.high %v927_v52, %v931_v53 }
 0x2a7   : > { %3998 = vmatpush1.bf16.msra.mxu0 %v10261_v8  ;;  %4162 = vmatpush1.bf16.msra.mxu1 %v10263_v9 }
 0x2a8   : > { %3999 = vmatprep.subr.bf16.mxu0 %v10270_v10  ;;  %4163 = vmatprep.subr.bf16.mxu1 %v10272_v11  ;;  %v888_v10 = vld [vmem:[#allocation6 + $0xdd8] sm:$0xff] }
 0x2a9   : > { %v892_v11 = vld [vmem:[#allocation6 + $0xdf8] sm:$0xff] }
 0x2aa   : > { %v10336_v23 = vcombine.high %v888_v10, %v892_v11 }
 0x2ab   : > { %4000 = vmatpush1.bf16.msra.mxu0 %v10269_v17  ;;  %4164 = vmatpush1.bf16.msra.mxu1 %v10271_v18  ;;  %v10327_v18 = vcombine.low %v880_v63, %v884_v0  ;;  %v935_v63 = vld [vmem:[#allocation6 + $0xf50] sm:$0xff] }
 0x2ac   : > { %4010 = vmatprep.subr.bf16.mxu0 %v10278_v19  ;;  %4174 = vmatprep.subr.bf16.mxu1 %v10280_v20  ;;  %v10334_v19 = vcombine.high %v887_v6, %v891_v7  ;;  %v939_v0 = vld [vmem:[#allocation6 + $0xf70] sm:$0xff] }
 0x2ae   : > { %4002 = vmatmul.mubr.bf16.vlgmr.msra.gmra.mrb[4].mxu0 %v12390_v36  ;;  %4166 = vmatmul.mubr.bf16.vlgmr.msra.gmra.mrb[4].mxu1 %v12390_v36  ;;  %v10295_v36 = vcombine.low %v848_v31, %v852_v33  ;;  %v907_v31 = vld [vmem:[#allocation6 + $0xe70] sm:$0xff]  ;;  %v904_v33 = vld [vmem:[#allocation6 + $0xe58] sm:$0xff] }
 0x2af   : > { %4011 = vmatpush1.bf16.msra.mxu0 %v10277_v26  ;;  %4175 = vmatpush1.bf16.msra.mxu1 %v10279_v12  ;;  %v900_v26 = vld [vmem:[#allocation6 + $0xe38] sm:$0xff]  ;;  %v10333_v12 = vcombine.low %v887_v6, %v891_v7  ;;  %v10382_v7 = vcombine.high %v935_v63, %v939_v0 }
 0x2b0   : > { %4012 = vmatprep.subr.bf16.mxu0 %v10286_v27  ;;  %4176 = vmatprep.subr.bf16.mxu1 %v10288_v28  ;;  %v10335_v27 = vcombine.low %v888_v10, %v892_v11  ;;  %v10342_v28 = vcombine.high %v895_v57, %v899_v24  ;;  %v10344_v29 = vcombine.high %v896_v25, %v900_v26  ;;  %v943_v11 = vld [vmem:[#allocation6 + $0xf90] sm:$0xff] }
 0x2b1   : > { %4042 = vmatprep.mubr.bf16.mxu0 %v12392_v46  ;;  %4206 = vmatprep.mubr.bf16.mxu1 %v12392_v46  ;;  %v10312_v46 = vcombine.high %v864_v32, %v868_v47  ;;  %v923_v32 = vld [vmem:[#allocation6 + $0xef0] sm:$0xff]  ;;  %v920_v47 = vld [vmem:[#allocation6 + $0xed8] sm:$0xff] }
 0x2b3   : > { %4013 = vmatpush1.bf16.msra.mxu0 %v10285_v34  ;;  %4177 = vmatpush1.bf16.msra.mxu1 %v10287_v35  ;;  %v908_v34 = vld [vmem:[#allocation6 + $0xe78] sm:$0xff]  ;;  %v10341_v35 = vcombine.low %v895_v57, %v899_v24  ;;  %v951_v24 = vld [vmem:[#allocation6 + $0xfd0] sm:$0xff] }
 0x2b4   : > { %4014 = vmatprep.subr.bf16.mxu0 %v10294_v37  ;;  %4178 = vmatprep.subr.bf16.mxu1 %v10296_v21  ;;  %v10343_v37 = vcombine.low %v896_v25, %v900_v26  ;;  %v10350_v21 = vcombine.high %v903_v30, %v907_v31  ;;  %v10352_v22 = vcombine.high %v904_v33, %v908_v34  ;;  %v955_v25 = vld [vmem:[#allocation6 + $0xff0] sm:$0xff] }
 0x2b7   : > { %4015 = vmatpush1.bf16.msra.mxu0 %v10293_v41  ;;  %4179 = vmatpush1.bf16.msra.mxu1 %v10295_v36  ;;  %v916_v41 = vld [vmem:[#allocation6 + $0xeb8] sm:$0xff]  ;;  %v10349_v36 = vcombine.low %v903_v30, %v907_v31  ;;  %v10398_v30 = vcombine.high %v951_v24, %v955_v25 }
 0x2b8   : > { %4016 = vmatprep.subr.bf16.mxu0 %v10302_v42  ;;  %4180 = vmatprep.subr.bf16.mxu1 %v10304_v43  ;;  %v10351_v42 = vcombine.low %v904_v33, %v908_v34  ;;  %v10358_v43 = vcombine.high %v911_v38, %v915_v39  ;;  %v10360_v44 = vcombine.high %v912_v40, %v916_v41  ;;  %v4231_v33 = vld [vmem:[#allocation9] sm:$0xff] }
 0x2b9   : > { %v4235_v34 = vld [vmem:[#allocation9 + $0x20] sm:$0xff] }
 0x2bb   : > { %4017 = vmatpush1.bf16.msra.mxu0 %v10301_v48  ;;  %4181 = vmatpush1.bf16.msra.mxu1 %v10303_v49  ;;  %v924_v48 = vld [vmem:[#allocation6 + $0xef8] sm:$0xff]  ;;  %v10357_v49 = vcombine.low %v911_v38, %v915_v39  ;;  %v10402_v39 = vcombine.high %v4231_v33, %v4235_v34 }
 0x2bc   : > { %4018 = vmatprep.subr.bf16.mxu0 %v10310_v50  ;;  %4182 = vmatprep.subr.bf16.mxu1 %v10312_v46  ;;  %v10359_v50 = vcombine.low %v912_v40, %v916_v41  ;;  %v10366_v46 = vcombine.high %v919_v45, %v923_v32  ;;  %v10368_v51 = vcombine.high %v920_v47, %v924_v48 }
 0x2bf   : > { %4019 = vmatpush1.bf16.msra.mxu0 %v10309_v56  ;;  %4183 = vmatpush1.bf16.msra.mxu1 %v10311_v58  ;;  %v928_v56 = vld [vmem:[#allocation6 + $0xf18] sm:$0xff] }
 0x2c0   : > { %4020 = vmatprep.subr.bf16.mxu0 %v10318_v59  ;;  %4184 = vmatprep.subr.bf16.mxu1 %v10320_v60  ;;  %v932_v58 = vld [vmem:[#allocation6 + $0xf38] sm:$0xff]  ;;  %v10365_v59 = vcombine.low %v919_v45, %v923_v32  ;;  %v10367_v60 = vcombine.low %v920_v47, %v924_v48  ;;  %v4244_v45 = vld [vmem:[#allocation9 + $0x68] sm:$0xff]  ;;  %v4247_v47 = vld [vmem:[#allocation9 + $0x80] sm:$0xff] }
 0x2c1   : > { %v12416_v4 = vpop.f32.mrb[0].mxu0  ;;  %v12418_v8 = vpop.f32.mrb[0].mxu1  ;;  %v10376_v62 = vcombine.high %v928_v56, %v932_v58  ;;  %v10375_v6 = vcombine.low %v928_v56, %v932_v58  ;;  %v4251_v48 = vld [vmem:[#allocation9 + $0xa0] sm:$0xff] }
 0x2c2   : > { %v12420_v9 = vpop.f32.mrb[1].mxu0  ;;  %v12422_v13 = vpop.f32.mrb[1].mxu1  ;;  %v4255_v58 = vld [vmem:[#allocation9 + $0xc0] sm:$0xff] }
 0x2c3   : > { %v3720_v14 = vpop.f32.mrb[2].mxu0  ;;  %4021 = vmatpush1.bf16.msra.mxu0 %v10317_v1  ;;  %v3884_v16 = vpop.f32.mrb[2].mxu1  ;;  %4185 = vmatpush1.bf16.msra.mxu1 %v10319_v2  ;;  %v12424_v1 = vshrl.u32 %v959_v55, 7  ;;  %v936_v2 = vld [vmem:[#allocation6 + $0xf58] sm:$0xff]  ;;  %v10418_v55 = vcombine.high %v4247_v47, %v4251_v48 }
 0x2c4   : > { %v3721_v17 = vpop.f32.mrb[3].mxu0  ;;  %4022 = vmatprep.subr.bf16.mxu0 %v10326_v3  ;;  %v3885_v20 = vpop.f32.mrb[3].mxu1  ;;  %4186 = vmatprep.subr.bf16.mxu1 %v10328_v5  ;;  %v940_v3 = vld [vmem:[#allocation6 + $0xf78] sm:$0xff]  ;;  %v10373_v5 = vcombine.low %v927_v52, %v931_v53  ;;  %v947_v14 = vld [vmem:[#allocation6 + $0xfb0] sm:$0xff] }
 0x2c5   : > { %v10384_v10 = vcombine.high %v936_v2, %v940_v3  ;;  %v944_v16 = vld [vmem:[#allocation6 + $0xf98] sm:$0xff]  ;;  %v10383_v20 = vcombine.low %v936_v2, %v940_v3  ;;  %v4263_v2 = vld [vmem:[#allocation9 + $0x100] sm:$0xff] }
 0x2c6   : > { %v948_v17 = vld [vmem:[#allocation6 + $0xfb8] sm:$0xff]  ;;  %v4267_v3 = vld [vmem:[#allocation9 + $0x120] sm:$0xff] }
 0x2c7   : > { %4023 = vmatpush1.bf16.msra.mxu0 %v10325_v15  ;;  %4187 = vmatpush1.bf16.msra.mxu1 %v10327_v18  ;;  %v965_v15 = vsub.s32 1, %v12424_v1  ;;  %v12427_v18 = vld [vmem:[#allocation8] sm:$0xff]  ;;  %v10392_v57 = vcombine.high %v944_v16, %v948_v17 }
 0x2c8   : > { %4024 = vmatprep.subr.bf16.mxu0 %v10334_v19  ;;  %4188 = vmatprep.subr.bf16.mxu1 %v10336_v23  ;;  %v10381_v19 = vcombine.low %v935_v63, %v939_v0  ;;  %v10390_v23 = vcombine.high %v943_v11, %v947_v14 }
 0x2c9   : > { %v966_v26 = vrot.slane %v12427_v18, %v965_v15 }
 0x2cb   : > { %4025 = vmatpush1.bf16.msra.mxu0 %v10333_v12  ;;  %4189 = vmatpush1.bf16.msra.mxu1 %v10335_v27  ;;  %v952_v12 = vld [vmem:[#allocation6 + $0xfd8] sm:$0xff] }
 0x2cc   : > { %4026 = vmatprep.subr.bf16.mxu0 %v10342_v28  ;;  %4190 = vmatprep.subr.bf16.mxu1 %v10344_v29  ;;  %v956_v27 = vld [vmem:[#allocation6 + $0xff8] sm:$0xff]  ;;  %v10389_v28 = vcombine.low %v943_v11, %v947_v14  ;;  %v10391_v29 = vcombine.low %v944_v16, %v948_v17  ;;  %v10434_v11 = vcombine.high %v4263_v2, %v4267_v3  ;;  %v4271_v16 = vld [vmem:[#allocation9 + $0x140] sm:$0xff] }
 0x2cd   : > { %v10400_v31 = vcombine.high %v952_v12, %v956_v27  ;;  %v10399_v38 = vcombine.low %v952_v12, %v956_v27  ;;  %v4275_v17 = vld [vmem:[#allocation9 + $0x160] sm:$0xff]  ;;  %v4280_v27 = vld [vmem:[#allocation9 + $0x188] sm:$0xff] }
 0x2ce   : > { %v4283_v12 = vld [vmem:[#allocation9 + $0x1a0] sm:$0xff] }
 0x2cf   : > { %4027 = vmatpush1.bf16.msra.mxu0 %v10341_v35  ;;  %4191 = vmatpush1.bf16.msra.mxu1 %v10343_v37  ;;  %v11216_v35 = vadd.f32 %v12420_v9, %v966_v26  ;;  %v4232_v37 = vld [vmem:[#allocation9 + $0x8] sm:$0xff]  ;;  %v4279_v26 = vld [vmem:[#allocation9 + $0x180] sm:$0xff] }
 0x2d0   : > { %4028 = vmatprep.subr.bf16.mxu0 %v10350_v21  ;;  %4192 = vmatprep.subr.bf16.mxu1 %v10352_v22  ;;  %v4236_v21 = vld [vmem:[#allocation9 + $0x28] sm:$0xff]  ;;  %v10397_v22 = vcombine.low %v951_v24, %v955_v25  ;;  %v10442_v24 = vcombine.high %v4271_v16, %v4275_v17 }
 0x2d1   : > { %v10404_v40 = vcombine.high %v4232_v37, %v4236_v21  ;;  %v4216_v41 = vmax.f32 %v11216_v35, 0.0  ;;  %v10403_v9 = vcombine.low %v4232_v37, %v4236_v21  ;;  %v4291_v35 = vld [vmem:[#allocation9 + $0x1e0] sm:$0xff]  ;;  %v4288_v37 = vld [vmem:[#allocation9 + $0x1c8] sm:$0xff] }
 0x2d2   : > { %v4292_v21 = vld [vmem:[#allocation9 + $0x1e8] sm:$0xff] }
 0x2d3   : > { %4029 = vmatpush1.bf16.msra.mxu0 %v10349_v36  ;;  %4193 = vmatpush1.bf16.msra.mxu1 %v10351_v42  ;;  %v4239_v36 = vld [vmem:[#allocation9 + $0x40] sm:$0xff] }
 0x2d4   : > { %4030 = vmatprep.subr.bf16.mxu0 %v10358_v43  ;;  %4194 = vmatprep.subr.bf16.mxu1 %v10360_v44  ;;  %v4243_v42 = vld [vmem:[#allocation9 + $0x60] sm:$0xff]  ;;  %v10401_v43 = vcombine.low %v4231_v33, %v4235_v34  ;;  %v4240_v44 = vld [vmem:[#allocation9 + $0x48] sm:$0xff] }
 0x2d5   : > { %v10410_v32 = vcombine.high %v4239_v36, %v4243_v42  ;;  %v10409_v52 = vcombine.low %v4239_v36, %v4243_v42  ;;  %v10411_v53 = vcombine.low %v4240_v44, %v4244_v45  ;;  %v4287_v34 = vld [vmem:[#allocation9 + $0x1c0] sm:$0xff]  ;;  %v4296_v42 = vld [vmem:[#allocation9 + $0x208] sm:$0xff] }
 0x2d6   : > { %v4299_v36 = vld [vmem:[#allocation9 + $0x220] sm:$0xff] }
 0x2d7   : > { %4031 = vmatpush1.bf16.msra.mxu0 %v10357_v49  ;;  %4195 = vmatpush1.bf16.msra.mxu1 %v10359_v50  ;;  %v12433_v49 = vpack.c.bf16 %v4216_v41, %v4216_v41  ;;  %v10412_v50 = vcombine.high %v4240_v44, %v4244_v45  ;;  %v4295_v41 = vld [vmem:[#allocation9 + $0x200] sm:$0xff]  ;;  %v10457_v44 = vcombine.low %v4287_v34, %v4291_v35 }
 0x2d8   : > { %4032 = vmatprep.subr.bf16.mxu0 %v10366_v46  ;;  %4196 = vmatprep.subr.bf16.mxu1 %v10368_v51  ;;  %v4248_v46 = vld [vmem:[#allocation9 + $0x88] sm:$0xff]  ;;  %v10459_v45 = vcombine.low %v4288_v37, %v4292_v21 }
 0x2d9   : > { %v4252_v51 = vld [vmem:[#allocation9 + $0xa8] sm:$0xff] }
 0x2da   : > { %v10420_v56 = vcombine.high %v4248_v46, %v4252_v51 }
 0x2db   : > { %4033 = vmatpush1.bf16.msra.mxu0 %v10365_v59  ;;  %4197 = vmatpush1.bf16.msra.mxu1 %v10367_v60  ;;  %v4259_v59 = vld [vmem:[#allocation9 + $0xe0] sm:$0xff]  ;;  %v4256_v60 = vld [vmem:[#allocation9 + $0xc8] sm:$0xff] }
 0x2dc   : > { %4034 = vmatprep.subr.bf16.mxu0 %v10374_v61  ;;  %4198 = vmatprep.subr.bf16.mxu1 %v10376_v62  ;;  %v4260_v61 = vld [vmem:[#allocation9 + $0xe8] sm:$0xff]  ;;  %v10417_v62 = vcombine.low %v4247_v47, %v4251_v48  ;;  %v10426_v63 = vcombine.high %v4255_v58, %v4259_v59  ;;  %v4303_v47 = vld [vmem:[#allocation9 + $0x240] sm:$0xff] }
 0x2dd   : > { %v10428_v0 = vcombine.high %v4256_v60, %v4260_v61  ;;  %v4307_v48 = vld [vmem:[#allocation9 + $0x260] sm:$0xff] }
 0x2df   : > { %4035 = vmatpush1.bf16.msra.mxu0 %v10373_v5  ;;  %4199 = vmatpush1.bf16.msra.mxu1 %v10375_v6  ;;  %v4264_v5 = vld [vmem:[#allocation9 + $0x108] sm:$0xff] }
 0x2e0   : > { %4036 = vmatprep.subr.bf16.mxu0 %v10382_v7  ;;  %4200 = vmatprep.subr.bf16.mxu1 %v10384_v10  ;;  %v4268_v6 = vld [vmem:[#allocation9 + $0x128] sm:$0xff]  ;;  %v10425_v7 = vcombine.low %v4255_v58, %v4259_v59  ;;  %v10427_v10 = vcombine.low %v4256_v60, %v4260_v61  ;;  %v4315_v58 = vld [vmem:[#allocation9 + $0x2a0] sm:$0xff]  ;;  %v10473_v61 = vcombine.low %v4303_v47, %v4307_v48 }
 0x2e1   : > { %v10436_v14 = vcombine.high %v4264_v5, %v4268_v6  ;;  %v4312_v59 = vld [vmem:[#allocation9 + $0x288] sm:$0xff] }
 0x2e2   : > { %v4316_v60 = vld [vmem:[#allocation9 + $0x2a8] sm:$0xff] }
 0x2e3   : > { %4037 = vmatpush1.bf16.msra.mxu0 %v10381_v19  ;;  %4201 = vmatpush1.bf16.msra.mxu1 %v10383_v20  ;;  %v4272_v19 = vld [vmem:[#allocation9 + $0x148] sm:$0xff] }
 0x2e4   : > { %4038 = vmatprep.subr.bf16.mxu0 %v10390_v23  ;;  %4202 = vmatprep.subr.bf16.mxu1 %v10392_v57  ;;  %v4276_v20 = vld [vmem:[#allocation9 + $0x168] sm:$0xff]  ;;  %v10433_v23 = vcombine.low %v4263_v2, %v4267_v3  ;;  %v10435_v57 = vcombine.low %v4264_v5, %v4268_v6  ;;  %v4323_v2 = vld [vmem:[#allocation9 + $0x2e0] sm:$0xff] }
 0x2e5   : > { %v10444_v25 = vcombine.high %v4272_v19, %v4276_v20  ;;  %v4320_v3 = vld [vmem:[#allocation9 + $0x2c8] sm:$0xff] }
 0x2e6   : > { %v4324_v5 = vld [vmem:[#allocation9 + $0x2e8] sm:$0xff] }
 0x2e7   : > { %4039 = vmatpush1.bf16.msra.mxu0 %v10389_v28  ;;  %4203 = vmatpush1.bf16.msra.mxu1 %v10391_v29  ;;  %v4284_v28 = vld [vmem:[#allocation9 + $0x1a8] sm:$0xff]  ;;  %v10441_v29 = vcombine.low %v4271_v16, %v4275_v17  ;;  %v4331_v16 = vld [vmem:[#allocation9 + $0x320] sm:$0xff] }
 0x2e8   : > { %4040 = vmatprep.subr.bf16.mxu0 %v10398_v30  ;;  %4204 = vmatprep.subr.bf16.mxu1 %v10400_v31  ;;  %v10443_v30 = vcombine.low %v4272_v19, %v4276_v20  ;;  %v10450_v31 = vcombine.high %v4279_v26, %v4283_v12  ;;  %v10452_v33 = vcombine.high %v4280_v27, %v4284_v28  ;;  %v4328_v17 = vld [vmem:[#allocation9 + $0x308] sm:$0xff] }
 0x2e9   : > { %v4332_v19 = vld [vmem:[#allocation9 + $0x328] sm:$0xff] }
 0x2eb   : > { %4041 = vmatpush1.bf16.msra.mxu0 %v10397_v22  ;;  %4205 = vmatpush1.bf16.msra.mxu1 %v10399_v38  ;;  %v10449_v22 = vcombine.low %v4279_v26, %v4283_v12  ;;  %v10451_v38 = vcombine.low %v4280_v27, %v4284_v28  ;;  %v4339_v26 = vld [vmem:[#allocation9 + $0x360] sm:$0xff]  ;;  %v4336_v12 = vld [vmem:[#allocation9 + $0x348] sm:$0xff] }
 0x2ec   : > { %7345 = vmatprep.subr.bf16.mxu0 %v10402_v39  ;;  %7509 = vmatprep.subr.bf16.mxu1 %v10404_v40  ;;  %v10458_v39 = vcombine.high %v4287_v34, %v4291_v35  ;;  %v10460_v40 = vcombine.high %v4288_v37, %v4292_v21  ;;  %v4340_v27 = vld [vmem:[#allocation9 + $0x368] sm:$0xff]  ;;  %v4343_v34 = vld [vmem:[#allocation9 + $0x380] sm:$0xff]  ;;  %v973_v37 = vsub.s32 3, %v12424_v1 }
 0x2ed   : > { %v4347_v35 = vld [vmem:[#allocation9 + $0x3a0] sm:$0xff]  ;;  %v4344_v21 = vld [vmem:[#allocation9 + $0x388] sm:$0xff] }
 0x2ee   : > { %4043 = vmatmul.mubr.bf16.vlgmr.msra.gmra.mrb[4].mxu0 %v12398_v54  ;;  %4207 = vmatmul.mubr.bf16.vlgmr.msra.gmra.mrb[4].mxu1 %v12398_v54  ;;  %v10419_v54 = vcombine.low %v4248_v46, %v4252_v51  ;;  %v4308_v46 = vld [vmem:[#allocation9 + $0x268] sm:$0xff]  ;;  %v10465_v51 = vcombine.low %v4295_v41, %v4299_v36 }
 0x2ef   : > { %7346 = vmatpush1.bf16.msra.mxu0 %v10401_v43  ;;  %7377 = vmatprep.mubr.bf16.mxu0 %v12433_v49  ;;  %v4300_v43 = vld [vmem:[#allocation9 + $0x228] sm:$0xff] }
 0x2f0   : > { %7510 = vmatpush1.bf16.msra.mxu1 %v10403_v9  ;;  %7541 = vmatprep.mubr.bf16.mxu1 %v12433_v49  ;;  %v10466_v9 = vcombine.high %v4295_v41, %v4299_v36  ;;  %v10514_v41 = vcombine.high %v4343_v34, %v4347_v35 }
 0x2f1   : > { %7347 = vmatprep.subr.bf16.mxu0 %v10410_v32  ;;  %7511 = vmatprep.subr.bf16.mxu1 %v10412_v50  ;;  %v10468_v32 = vcombine.high %v4296_v42, %v4300_v43  ;;  %v4304_v50 = vld [vmem:[#allocation9 + $0x248] sm:$0xff] }
 0x2f3   : > { %7348 = vmatpush1.bf16.msra.mxu0 %v10409_v52  ;;  %v10467_v52 = vcombine.low %v4296_v42, %v4300_v43  ;;  %v4351_v42 = vld [vmem:[#allocation9 + $0x3c0] sm:$0xff] }
 0x2f4   : > { %7512 = vmatpush1.bf16.msra.mxu1 %v10411_v53  ;;  %7349 = vmatprep.subr.bf16.mxu0 %v10418_v55  ;;  %v10474_v53 = vcombine.high %v4303_v47, %v4307_v48  ;;  %v10476_v55 = vcombine.high %v4304_v50, %v4308_v46  ;;  %v4355_v43 = vld [vmem:[#allocation9 + $0x3e0] sm:$0xff] }
 0x2f5   : > { %7513 = vmatprep.subr.bf16.mxu1 %v10420_v56  ;;  %v4311_v56 = vld [vmem:[#allocation9 + $0x280] sm:$0xff] }
 0x2f6   : > { %v10481_v6 = vcombine.low %v4311_v56, %v4315_v58 }
 0x2f7   : > { %7350 = vmatpush1.bf16.msra.mxu0 %v10417_v62  ;;  %v10475_v62 = vcombine.low %v4304_v50, %v4308_v46  ;;  %v10522_v50 = vcombine.high %v4351_v42, %v4355_v43 }
 0x2f8   : > { %7514 = vmatpush1.bf16.msra.mxu1 %v10419_v54  ;;  %7351 = vmatprep.subr.bf16.mxu0 %v10426_v63  ;;  %v10482_v54 = vcombine.high %v4311_v56, %v4315_v58  ;;  %v10484_v63 = vcombine.high %v4312_v59, %v4316_v60  ;;  %v4364_v56 = vld [vmem:[#allocation9 + $0x428] sm:$0xff]  ;;  %v10521_v58 = vcombine.low %v4351_v42, %v4355_v43 }
 0x2f9   : > { %7515 = vmatprep.subr.bf16.mxu1 %v10428_v0  ;;  %v4319_v0 = vld [vmem:[#allocation9 + $0x2c0] sm:$0xff]  ;;  %v4400_v42 = vld [vmem:[#allocation9 + $0x548] sm:$0xff] }
 0x2fa   : > { %v10489_v20 = vcombine.low %v4319_v0, %v4323_v2  ;;  %v4404_v43 = vld [vmem:[#allocation9 + $0x568] sm:$0xff] }
 0x2fb   : > { %7352 = vmatpush1.bf16.msra.mxu0 %v10425_v7  ;;  %v10483_v7 = vcombine.low %v4312_v59, %v4316_v60 }
 0x2fc   : > { %7516 = vmatpush1.bf16.msra.mxu1 %v10427_v10  ;;  %7353 = vmatprep.subr.bf16.mxu0 %v10434_v11  ;;  %v10490_v10 = vcombine.high %v4319_v0, %v4323_v2  ;;  %v10492_v11 = vcombine.high %v4320_v3, %v4324_v5  ;;  %v4368_v2 = vld [vmem:[#allocation9 + $0x448] sm:$0xff] }
 0x2fd   : > { %7517 = vmatprep.subr.bf16.mxu1 %v10436_v14  ;;  %v4327_v14 = vld [vmem:[#allocation9 + $0x300] sm:$0xff] }
 0x2fe   : > { %v10497_v28 = vcombine.low %v4327_v14, %v4331_v16 }
 0x2ff   : > { %7354 = vmatpush1.bf16.msra.mxu0 %v10433_v23  ;;  %v10491_v23 = vcombine.low %v4320_v3, %v4324_v5  ;;  %v4372_v3 = vld [vmem:[#allocation9 + $0x468] sm:$0xff] }
 0x300   : > { %7518 = vmatpush1.bf16.msra.mxu1 %v10435_v57  ;;  %7355 = vmatprep.subr.bf16.mxu0 %v10442_v24  ;;  %v10498_v57 = vcombine.high %v4327_v14, %v4331_v16  ;;  %v10500_v24 = vcombine.high %v4328_v17, %v4332_v19  ;;  %v10540_v14 = vcombine.high %v4368_v2, %v4372_v3  ;;  %v4376_v16 = vld [vmem:[#allocation9 + $0x488] sm:$0xff] }
 0x301   : > { %7519 = vmatprep.subr.bf16.mxu1 %v10444_v25  ;;  %v4335_v25 = vld [vmem:[#allocation9 + $0x340] sm:$0xff] }
 0x303   : > { %7356 = vmatpush1.bf16.msra.mxu0 %v10441_v29  ;;  %v961_v29 = vsub.s32 0, %v12424_v1 }
 0x304   : > { %7520 = vmatpush1.bf16.msra.mxu1 %v10443_v30  ;;  %7357 = vmatprep.subr.bf16.mxu0 %v10450_v31  ;;  %v10499_v30 = vcombine.low %v4328_v17, %v4332_v19  ;;  %v10506_v31 = vcombine.high %v4335_v25, %v4339_v26  ;;  %v4380_v17 = vld [vmem:[#allocation9 + $0x4a8] sm:$0xff] }
 0x305   : > { %7521 = vmatprep.subr.bf16.mxu1 %v10452_v33  ;;  %v10508_v33 = vcombine.high %v4336_v12, %v4340_v27 }
 0x307   : > { %7358 = vmatpush1.bf16.msra.mxu0 %v10449_v22  ;;  %v4348_v22 = vld [vmem:[#allocation9 + $0x3a8] sm:$0xff] }
 0x308   : > { %7522 = vmatpush1.bf16.msra.mxu1 %v10451_v38  ;;  %7359 = vmatprep.subr.bf16.mxu0 %v10458_v39  ;;  %v10505_v38 = vcombine.low %v4335_v25, %v4339_v26  ;;  %v962_v39 = vrot.slane %v12427_v18, %v961_v29  ;;  %v10516_v36 = vcombine.high %v4344_v21, %v4348_v22  ;;  %v4387_v25 = vld [vmem:[#allocation9 + $0x4e0] sm:$0xff]  ;;  %v4384_v26 = vld [vmem:[#allocation9 + $0x4c8] sm:$0xff] }
 0x309   : > { %7523 = vmatprep.subr.bf16.mxu1 %v10460_v40  ;;  %v10507_v40 = vcombine.low %v4336_v12, %v4340_v27  ;;  %v10515_v48 = vcombine.low %v4344_v21, %v4348_v22  ;;  %v4388_v12 = vld [vmem:[#allocation9 + $0x4e8] sm:$0xff] }
 0x30a   : > { %v11215_v47 = vadd.f32 %v12416_v4, %v962_v39  ;;  %v4396_v21 = vld [vmem:[#allocation9 + $0x528] sm:$0xff] }
 0x30b   : > { %7360 = vmatpush1.bf16.msra.mxu0 %v10457_v44  ;;  %v974_v44 = vrot.slane %v12427_v18, %v973_v37 }
 0x30c   : > { %7524 = vmatpush1.bf16.msra.mxu1 %v10459_v45  ;;  %7361 = vmatprep.subr.bf16.mxu0 %v10466_v9  ;;  %v4352_v45 = vld [vmem:[#allocation9 + $0x3c8] sm:$0xff]  ;;  %v4215_v59 = vmax.f32 %v11215_v47, 0.0  ;;  %v4407_v47 = vld [vmem:[#allocation9 + $0x580] sm:$0xff] }
 0x30d   : > { %7525 = vmatprep.subr.bf16.mxu1 %v10468_v32  ;;  %v4356_v9 = vld [vmem:[#allocation9 + $0x3e8] sm:$0xff]  ;;  %v10513_v32 = vcombine.low %v4343_v34, %v4347_v35  ;;  %v4395_v34 = vld [vmem:[#allocation9 + $0x520] sm:$0xff] }
 0x30e   : > { %v10524_v46 = vcombine.high %v4352_v45, %v4356_v9  ;;  %v10523_v60 = vcombine.low %v4352_v45, %v4356_v9  ;;  %v12449_v5 = vpack.c.bf16 %v4215_v59, %v4215_v59  ;;  %v4392_v35 = vld [vmem:[#allocation9 + $0x508] sm:$0xff] }
 0x30f   : > { %7362 = vmatpush1.bf16.msra.mxu0 %v10465_v51  ;;  %v4359_v51 = vld [vmem:[#allocation9 + $0x400] sm:$0xff]  ;;  %v10563_v45 = vcombine.low %v4392_v35, %v4396_v21  ;;  %v4416_v59 = vld [vmem:[#allocation9 + $0x5c8] sm:$0xff] }
 0x310   : > { %7526 = vmatpush1.bf16.msra.mxu1 %v10467_v52  ;;  %7363 = vmatprep.subr.bf16.mxu0 %v10474_v53  ;;  %v4363_v52 = vld [vmem:[#allocation9 + $0x420] sm:$0xff]  ;;  %v11218_v53 = vadd.f32 %v12422_v13, %v974_v44 }
 0x311   : > { %7527 = vmatprep.subr.bf16.mxu1 %v10476_v55  ;;  %v4360_v55 = vld [vmem:[#allocation9 + $0x408] sm:$0xff]  ;;  %v10529_v0 = vcombine.low %v4359_v51, %v4363_v52 }
 0x312   : > { %v10532_v4 = vcombine.high %v4360_v55, %v4364_v56  ;;  %v10531_v13 = vcombine.low %v4360_v55, %v4364_v56  ;;  %v4415_v56 = vld [vmem:[#allocation9 + $0x5c0] sm:$0xff] }
 0x313   : > { %7364 = vmatpush1.bf16.msra.mxu0 %v10473_v61  ;;  %v10530_v61 = vcombine.high %v4359_v51, %v4363_v52  ;;  %v10571_v52 = vcombine.low %v4400_v42, %v4404_v43 }
 0x314   : > { %7528 = vmatpush1.bf16.msra.mxu1 %v10475_v62  ;;  %7365 = vmatprep.subr.bf16.mxu0 %v10482_v54  ;;  %v4218_v62 = vmax.f32 %v11218_v53, 0.0  ;;  %v4367_v54 = vld [vmem:[#allocation9 + $0x440] sm:$0xff] }
 0x315   : > { %7529 = vmatprep.subr.bf16.mxu1 %v10484_v63  ;;  %v4371_v63 = vld [vmem:[#allocation9 + $0x460] sm:$0xff] }
 0x316   : > { %v10537_v19 = vcombine.low %v4367_v54, %v4371_v63 }
 0x317   : > { %7366 = vmatpush1.bf16.msra.mxu0 %v10481_v6  ;;  %v10538_v6 = vcombine.high %v4367_v54, %v4371_v63  ;;  %v4423_v63 = vld [vmem:[#allocation9 + $0x600] sm:$0xff] }
 0x318   : > { %7530 = vmatpush1.bf16.msra.mxu1 %v10483_v7  ;;  %7367 = vmatprep.subr.bf16.mxu0 %v10490_v10  ;;  %v4375_v7 = vld [vmem:[#allocation9 + $0x480] sm:$0xff] }
 0x319   : > { %7531 = vmatprep.subr.bf16.mxu1 %v10492_v11  ;;  %v4379_v10 = vld [vmem:[#allocation9 + $0x4a0] sm:$0xff]  ;;  %v12451_v11 = vpack.c.bf16 %v4218_v62, %v4218_v62 }
 0x31a   : > { %v10545_v27 = vcombine.low %v4375_v7, %v4379_v10 }
 0x31b   : > { %7368 = vmatpush1.bf16.msra.mxu0 %v10489_v20  ;;  %v10539_v20 = vcombine.low %v4368_v2, %v4372_v3  ;;  %v4424_v2 = vld [vmem:[#allocation9 + $0x608] sm:$0xff] }
 0x31c   : > { %7532 = vmatpush1.bf16.msra.mxu1 %v10491_v23  ;;  %7369 = vmatprep.subr.bf16.mxu0 %v10498_v57  ;;  %v10546_v23 = vcombine.high %v4375_v7, %v4379_v10  ;;  %v10548_v57 = vcombine.high %v4376_v16, %v4380_v17  ;;  %v4428_v3 = vld [vmem:[#allocation9 + $0x628] sm:$0xff] }
 0x31d   : > { %7533 = vmatprep.subr.bf16.mxu1 %v10500_v24  ;;  %v4383_v24 = vld [vmem:[#allocation9 + $0x4c0] sm:$0xff]  ;;  %v10596_v10 = vcombine.high %v4424_v2, %v4428_v3 }
 0x31e   : > { %v10553_v22 = vcombine.low %v4383_v24, %v4387_v25 }
 0x31f   : > { %7370 = vmatpush1.bf16.msra.mxu0 %v10497_v28  ;;  %v10547_v28 = vcombine.low %v4376_v16, %v4380_v17  ;;  %v4435_v16 = vld [vmem:[#allocation9 + $0x660] sm:$0xff]  ;;  %v4432_v17 = vld [vmem:[#allocation9 + $0x648] sm:$0xff] }
 0x320   : > { %7534 = vmatpush1.bf16.msra.mxu1 %v10499_v30  ;;  %7371 = vmatprep.subr.bf16.mxu0 %v10506_v31  ;;  %v10554_v30 = vcombine.high %v4383_v24, %v4387_v25  ;;  %v10556_v31 = vcombine.high %v4384_v26, %v4388_v12  ;;  %v4439_v25 = vld [vmem:[#allocation9 + $0x680] sm:$0xff] }
 0x321   : > { %7535 = vmatprep.subr.bf16.mxu1 %v10508_v33  ;;  %v4391_v33 = vld [vmem:[#allocation9 + $0x500] sm:$0xff] }
 0x322   : > { %v10562_v39 = vcombine.high %v4391_v33, %v4395_v34  ;;  %v10561_v44 = vcombine.low %v4391_v33, %v4395_v34  ;;  %v4447_v34 = vld [vmem:[#allocation9 + $0x6c0] sm:$0xff] }
 0x323   : > { %7372 = vmatpush1.bf16.msra.mxu0 %v10505_v38  ;;  %v10555_v38 = vcombine.low %v4384_v26, %v4388_v12  ;;  %v4443_v26 = vld [vmem:[#allocation9 + $0x6a0] sm:$0xff]  ;;  %v4440_v12 = vld [vmem:[#allocation9 + $0x688] sm:$0xff] }
 0x324   : > { %7536 = vmatpush1.bf16.msra.mxu1 %v10507_v40  ;;  %7373 = vmatprep.subr.bf16.mxu0 %v10514_v41  ;;  %v10564_v40 = vcombine.high %v4392_v35, %v4396_v21  ;;  %v4399_v41 = vld [vmem:[#allocation9 + $0x540] sm:$0xff]  ;;  %v4448_v21 = vld [vmem:[#allocation9 + $0x6c8] sm:$0xff] }
 0x325   : > { %7537 = vmatprep.subr.bf16.mxu1 %v10516_v36  ;;  %v4403_v36 = vld [vmem:[#allocation9 + $0x560] sm:$0xff] }
 0x326   : > { %v10570_v9 = vcombine.high %v4399_v41, %v4403_v36  ;;  %v10569_v51 = vcombine.low %v4399_v41, %v4403_v36  ;;  %v4451_v35 = vld [vmem:[#allocation9 + $0x6e0] sm:$0xff] }
 0x327   : > { %7374 = vmatpush1.bf16.msra.mxu0 %v10513_v32  ;;  %v10572_v32 = vcombine.high %v4400_v42, %v4404_v43  ;;  %v4455_v36 = vld [vmem:[#allocation9 + $0x700] sm:$0xff]  ;;  %v4456_v43 = vld [vmem:[#allocation9 + $0x708] sm:$0xff] }
 0x328   : > { %7538 = vmatpush1.bf16.msra.mxu1 %v10515_v48  ;;  %7375 = vmatprep.subr.bf16.mxu0 %v10522_v50  ;;  %v4411_v48 = vld [vmem:[#allocation9 + $0x5a0] sm:$0xff]  ;;  %v4408_v50 = vld [vmem:[#allocation9 + $0x588] sm:$0xff] }
 0x329   : > { %7539 = vmatprep.subr.bf16.mxu1 %v10524_v46  ;;  %v4412_v46 = vld [vmem:[#allocation9 + $0x5a8] sm:$0xff]  ;;  %v10578_v53 = vcombine.high %v4407_v47, %v4411_v48  ;;  %v4459_v42 = vld [vmem:[#allocation9 + $0x720] sm:$0xff] }
 0x32a   : > { %v10580_v55 = vcombine.high %v4408_v50, %v4412_v46 }
 0x32b   : > { %7376 = vmatpush1.bf16.msra.mxu0 %v10521_v58  ;;  %v4419_v58 = vld [vmem:[#allocation9 + $0x5e0] sm:$0xff] }
 0x32c   : > { %7540 = vmatpush1.bf16.msra.mxu1 %v10523_v60  ;;  %7386 = vmatprep.subr.bf16.mxu0 %v10530_v61  ;;  %v4420_v60 = vld [vmem:[#allocation9 + $0x5e8] sm:$0xff]  ;;  %v10577_v61 = vcombine.low %v4407_v47, %v4411_v48  ;;  %v10586_v62 = vcombine.high %v4415_v56, %v4419_v58  ;;  %v4463_v48 = vld [vmem:[#allocation9 + $0x740] sm:$0xff] }
 0x32d   : > { %7550 = vmatprep.subr.bf16.mxu1 %v10532_v4  ;;  %v10579_v4 = vcombine.low %v4408_v50, %v4412_v46  ;;  %v10588_v54 = vcombine.high %v4416_v59, %v4420_v60  ;;  %v4467_v50 = vld [vmem:[#allocation9 + $0x760] sm:$0xff]  ;;  %v4464_v46 = vld [vmem:[#allocation9 + $0x748] sm:$0xff] }
 0x32e   : > { %7378 = vmatmul.mubr.bf16.vlgmr.msra.gmra.mrb[8].mxu0 %v12449_v5 }
 0x32f   : > { %7542 = vmatmul.mubr.bf16.vlgmr.msra.gmra.mrb[8].mxu1 %v12449_v5  ;;  %7387 = vmatpush1.bf16.msra.mxu0 %v10529_v0  ;;  %v4427_v0 = vld [vmem:[#allocation9 + $0x620] sm:$0xff] }
 0x330   : > { %7418 = vmatprep.mubr.bf16.mxu0 %v12451_v11  ;;  %7551 = vmatpush1.bf16.msra.mxu1 %v10531_v13  ;;  %v10585_v13 = vcombine.low %v4415_v56, %v4419_v58  ;;  %v10594_v7 = vcombine.high %v4423_v63, %v4427_v0  ;;  %v10634_v56 = vcombine.high %v4463_v48, %v4467_v50 }
 0x331   : > { %7582 = vmatprep.mubr.bf16.mxu1 %v12451_v11  ;;  %7388 = vmatprep.subr.bf16.mxu0 %v10538_v6  ;;  %v10587_v6 = vcombine.low %v4416_v59, %v4420_v60  ;;  %v4471_v59 = vld [vmem:[#allocation9 + $0x780] sm:$0xff] }
 0x332   : > { %7552 = vmatprep.subr.bf16.mxu1 %v10540_v14  ;;  %v4431_v14 = vld [vmem:[#allocation9 + $0x640] sm:$0xff] }
 0x333   : > { %7389 = vmatpush1.bf16.msra.mxu0 %v10537_v19  ;;  %v4436_v19 = vld [vmem:[#allocation9 + $0x668] sm:$0xff]  ;;  %v4475_v60 = vld [vmem:[#allocation9 + $0x7a0] sm:$0xff] }
 0x334   : > { %7553 = vmatpush1.bf16.msra.mxu1 %v10539_v20  ;;  %7390 = vmatprep.subr.bf16.mxu0 %v10546_v23  ;;  %v10593_v20 = vcombine.low %v4423_v63, %v4427_v0  ;;  %v10595_v23 = vcombine.low %v4424_v2, %v4428_v3  ;;  %v10604_v24 = vcombine.high %v4432_v17, %v4436_v19  ;;  %v4479_v3 = vld [vmem:[#allocation9 + $0x7c0] sm:$0xff] }
 0x335   : > { %7554 = vmatprep.subr.bf16.mxu1 %v10548_v57  ;;  %v10602_v57 = vcombine.high %v4431_v14, %v4435_v16  ;;  %v10642_v0 = vcombine.high %v4471_v59, %v4475_v60 }
 0x337   : > { %7391 = vmatpush1.bf16.msra.mxu0 %v10545_v27  ;;  %v4444_v27 = vld [vmem:[#allocation9 + $0x6a8] sm:$0xff] }
 0x338   : > { %7555 = vmatpush1.bf16.msra.mxu1 %v10547_v28  ;;  %7392 = vmatprep.subr.bf16.mxu0 %v10554_v30  ;;  %v10601_v28 = vcombine.low %v4431_v14, %v4435_v16  ;;  %v10603_v30 = vcombine.low %v4432_v17, %v4436_v19  ;;  %v10612_v33 = vcombine.high %v4440_v12, %v4444_v27  ;;  %v4487_v19 = vld [vmem:[#allocation9 + $0x800] sm:$0xff] }
 0x339   : > { %7556 = vmatprep.subr.bf16.mxu1 %v10556_v31  ;;  %v10610_v31 = vcombine.high %v4439_v25, %v4443_v26 }
 0x33b   : > { %7393 = vmatpush1.bf16.msra.mxu0 %v10553_v22  ;;  %v4452_v22 = vld [vmem:[#allocation9 + $0x6e8] sm:$0xff] }
 0x33c   : > { %7557 = vmatpush1.bf16.msra.mxu1 %v10555_v38  ;;  %7394 = vmatprep.subr.bf16.mxu0 %v10562_v39  ;;  %v10609_v38 = vcombine.low %v4439_v25, %v4443_v26  ;;  %v10611_v39 = vcombine.low %v4440_v12, %v4444_v27  ;;  %v10620_v41 = vcombine.high %v4448_v21, %v4452_v22 }
 0x33d   : > { %7558 = vmatprep.subr.bf16.mxu1 %v10564_v40  ;;  %v10618_v40 = vcombine.high %v4447_v34, %v4451_v35 }
 0x33f   : > { %7395 = vmatpush1.bf16.msra.mxu0 %v10561_v44  ;;  %v4460_v44 = vld [vmem:[#allocation9 + $0x728] sm:$0xff] }
 0x340   : > { %7559 = vmatpush1.bf16.msra.mxu1 %v10563_v45  ;;  %7396 = vmatprep.subr.bf16.mxu0 %v10570_v9  ;;  %v10617_v45 = vcombine.low %v4447_v34, %v4451_v35  ;;  %v10619_v9 = vcombine.low %v4448_v21, %v4452_v22  ;;  %v10628_v47 = vcombine.high %v4456_v43, %v4460_v44 }
 0x341   : > { %7560 = vmatprep.subr.bf16.mxu1 %v10572_v32  ;;  %v10626_v32 = vcombine.high %v4455_v36, %v4459_v42 }
 0x343   : > { %7397 = vmatpush1.bf16.msra.mxu0 %v10569_v51  ;;  %v4468_v51 = vld [vmem:[#allocation9 + $0x768] sm:$0xff] }
 0x344   : > { %7561 = vmatpush1.bf16.msra.mxu1 %v10571_v52  ;;  %7398 = vmatprep.subr.bf16.mxu0 %v10578_v53  ;;  %v10625_v52 = vcombine.low %v4455_v36, %v4459_v42  ;;  %v969_v53 = vsub.s32 2, %v12424_v1  ;;  %v10636_v58 = vcombine.high %v4464_v46, %v4468_v51  ;;  %v10635_v63 = vcombine.low %v4464_v46, %v4468_v51 }
 0x345   : > { %7562 = vmatprep.subr.bf16.mxu1 %v10580_v55  ;;  %v10627_v55 = vcombine.low %v4456_v43, %v4460_v44 }
 0x347   : > { %7399 = vmatpush1.bf16.msra.mxu0 %v10577_v61  ;;  %v4472_v61 = vld [vmem:[#allocation9 + $0x788] sm:$0xff] }
 0x348   : > { %7563 = vmatpush1.bf16.msra.mxu1 %v10579_v4  ;;  %7400 = vmatprep.subr.bf16.mxu0 %v10586_v62  ;;  %v4476_v4 = vld [vmem:[#allocation9 + $0x7a8] sm:$0xff]  ;;  %v10633_v62 = vcombine.low %v4463_v48, %v4467_v50 }
 0x349   : > { %7564 = vmatprep.subr.bf16.mxu1 %v10588_v54  ;;  %v970_v54 = vrot.slane %v12427_v18, %v969_v53  ;;  %v10644_v2 = vcombine.high %v4472_v61, %v4476_v4  ;;  %v10643_v16 = vcombine.low %v4472_v61, %v4476_v4 }
 0x34b   : > { %7401 = vmatpush1.bf16.msra.mxu0 %v10585_v13  ;;  %v4483_v13 = vld [vmem:[#allocation9 + $0x7e0] sm:$0xff]  ;;  %v11217_v14 = vadd.f32 %v12418_v8, %v970_v54 }
 0x34c   : > { %7565 = vmatpush1.bf16.msra.mxu1 %v10587_v6  ;;  %7402 = vmatprep.subr.bf16.mxu0 %v10594_v7  ;;  %v4480_v6 = vld [vmem:[#allocation9 + $0x7c8] sm:$0xff]  ;;  %v10650_v17 = vcombine.high %v4479_v3, %v4483_v13  ;;  %v4495_v8 = vld [vmem:[#allocation9 + $0x840] sm:$0xff] }
 0x34d   : > { %7566 = vmatprep.subr.bf16.mxu1 %v10596_v10  ;;  %v4484_v7 = vld [vmem:[#allocation9 + $0x7e8] sm:$0xff]  ;;  %v10641_v10 = vcombine.low %v4471_v59, %v4475_v60  ;;  %v4217_v25 = vmax.f32 %v11217_v14, 0.0  ;;  %v4531_v54 = vld [vmem:[#allocation9 + $0x960] sm:$0xff] }
 0x34e   : > { %v10652_v18 = vcombine.high %v4480_v6, %v4484_v7  ;;  %v10651_v26 = vcombine.low %v4480_v6, %v4484_v7  ;;  %v4535_v7 = vld [vmem:[#allocation9 + $0x980] sm:$0xff]  ;;  %v4536_v14 = vld [vmem:[#allocation9 + $0x988] sm:$0xff] }
 0x34f   : > { %7403 = vmatpush1.bf16.msra.mxu0 %v10593_v20  ;;  %v4491_v20 = vld [vmem:[#allocation9 + $0x820] sm:$0xff]  ;;  %v12462_v34 = vpack.c.bf16 %v4217_v25, %v4217_v25  ;;  %v4548_v25 = vld [vmem:[#allocation9 + $0x9e8] sm:$0xff] }
 0x350   : > { %7567 = vmatpush1.bf16.msra.mxu1 %v10595_v23  ;;  %7404 = vmatprep.subr.bf16.mxu0 %v10602_v57  ;;  %v4488_v23 = vld [vmem:[#allocation9 + $0x808] sm:$0xff]  ;;  %v10658_v12 = vcombine.high %v4487_v19, %v4491_v20 }
 0x351   : > { %7568 = vmatprep.subr.bf16.mxu1 %v10604_v24  ;;  %v4492_v57 = vld [vmem:[#allocation9 + $0x828] sm:$0xff]  ;;  %v10649_v24 = vcombine.low %v4479_v3, %v4483_v13 }
 0x352   : > { %v10660_v27 = vcombine.high %v4488_v23, %v4492_v57  ;;  %v10659_v35 = vcombine.low %v4488_v23, %v4492_v57  ;;  %v4543_v23 = vld [vmem:[#allocation9 + $0x9c0] sm:$0xff] }
 0x353   : > { %7405 = vmatpush1.bf16.msra.mxu0 %v10601_v28  ;;  %v4499_v28 = vld [vmem:[#allocation9 + $0x860] sm:$0xff] }
 0x354   : > { %7569 = vmatpush1.bf16.msra.mxu1 %v10603_v30  ;;  %7406 = vmatprep.subr.bf16.mxu0 %v10610_v31  ;;  %v4496_v30 = vld [vmem:[#allocation9 + $0x848] sm:$0xff]  ;;  %v10666_v21 = vcombine.high %v4495_v8, %v4499_v28  ;;  %v10665_v36 = vcombine.low %v4495_v8, %v4499_v28  ;;  %v4547_v57 = vld [vmem:[#allocation9 + $0x9e0] sm:$0xff] }
 0x355   : > { %7570 = vmatprep.subr.bf16.mxu1 %v10612_v33  ;;  %v4500_v31 = vld [vmem:[#allocation9 + $0x868] sm:$0xff]  ;;  %v10657_v33 = vcombine.low %v4487_v19, %v4491_v20  ;;  %v4551_v28 = vld [vmem:[#allocation9 + $0xa00] sm:$0xff] }
 0x356   : > { %v10668_v22 = vcombine.high %v4496_v30, %v4500_v31  ;;  %v10667_v42 = vcombine.low %v4496_v30, %v4500_v31  ;;  %v4555_v30 = vld [vmem:[#allocation9 + $0xa20] sm:$0xff]  ;;  %v4552_v31 = vld [vmem:[#allocation9 + $0xa08] sm:$0xff] }
 0x357   : > { %7407 = vmatpush1.bf16.msra.mxu0 %v10609_v38  ;;  %v4503_v38 = vld [vmem:[#allocation9 + $0x880] sm:$0xff] }
 0x358   : > { %7571 = vmatpush1.bf16.msra.mxu1 %v10611_v39  ;;  %7408 = vmatprep.subr.bf16.mxu0 %v10618_v40  ;;  %v4507_v39 = vld [vmem:[#allocation9 + $0x8a0] sm:$0xff]  ;;  %v4504_v40 = vld [vmem:[#allocation9 + $0x888] sm:$0xff] }
 0x359   : > { %7572 = vmatprep.subr.bf16.mxu1 %v10620_v41  ;;  %v4508_v41 = vld [vmem:[#allocation9 + $0x8a8] sm:$0xff]  ;;  %v10674_v43 = vcombine.high %v4503_v38, %v4507_v39  ;;  %v10673_v48 = vcombine.low %v4503_v38, %v4507_v39  ;;  %v4559_v39 = vld [vmem:[#allocation9 + $0xa40] sm:$0xff] }
 0x35a   : > { %v10676_v44 = vcombine.high %v4504_v40, %v4508_v41  ;;  %v10675_v50 = vcombine.low %v4504_v40, %v4508_v41  ;;  %v4563_v40 = vld [vmem:[#allocation9 + $0xa60] sm:$0xff]  ;;  %v4560_v41 = vld [vmem:[#allocation9 + $0xa48] sm:$0xff] }
 0x35b   : > { %7409 = vmatpush1.bf16.msra.mxu0 %v10617_v45  ;;  %v4511_v45 = vld [vmem:[#allocation9 + $0x8c0] sm:$0xff] }
 0x35c   : > { %7573 = vmatpush1.bf16.msra.mxu1 %v10619_v9  ;;  %7410 = vmatprep.subr.bf16.mxu0 %v10626_v32  ;;  %v4515_v9 = vld [vmem:[#allocation9 + $0x8e0] sm:$0xff]  ;;  %v4512_v32 = vld [vmem:[#allocation9 + $0x8c8] sm:$0xff] }
 0x35d   : > { %7574 = vmatprep.subr.bf16.mxu1 %v10628_v47  ;;  %v4516_v47 = vld [vmem:[#allocation9 + $0x8e8] sm:$0xff]  ;;  %v10682_v46 = vcombine.high %v4511_v45, %v4515_v9  ;;  %v10681_v59 = vcombine.low %v4511_v45, %v4515_v9  ;;  %v4567_v9 = vld [vmem:[#allocation9 + $0xa80] sm:$0xff] }
 0x35e   : > { %v10684_v51 = vcombine.high %v4512_v32, %v4516_v47  ;;  %v10683_v60 = vcombine.low %v4512_v32, %v4516_v47  ;;  %v4571_v32 = vld [vmem:[#allocation9 + $0xaa0] sm:$0xff]  ;;  %v4568_v47 = vld [vmem:[#allocation9 + $0xa88] sm:$0xff] }
 0x35f   : > { %7411 = vmatpush1.bf16.msra.mxu0 %v10625_v52  ;;  %v4519_v52 = vld [vmem:[#allocation9 + $0x900] sm:$0xff] }
 0x360   : > { %7575 = vmatpush1.bf16.msra.mxu1 %v10627_v55  ;;  %7412 = vmatprep.subr.bf16.mxu0 %v10634_v56  ;;  %v4523_v55 = vld [vmem:[#allocation9 + $0x920] sm:$0xff]  ;;  %v4520_v56 = vld [vmem:[#allocation9 + $0x908] sm:$0xff] }
 0x361   : > { %7576 = vmatprep.subr.bf16.mxu1 %v10636_v58  ;;  %v4524_v58 = vld [vmem:[#allocation9 + $0x928] sm:$0xff]  ;;  %v10690_v61 = vcombine.high %v4519_v52, %v4523_v55 }
 0x362   : > { %v10692_v4 = vcombine.high %v4520_v56, %v4524_v58  ;;  %v10691_v3 = vcombine.low %v4520_v56, %v4524_v58  ;;  %v4579_v56 = vld [vmem:[#allocation9 + $0xae0] sm:$0xff]  ;;  %v4576_v58 = vld [vmem:[#allocation9 + $0xac8] sm:$0xff] }
 0x363   : > { %7413 = vmatpush1.bf16.msra.mxu0 %v10633_v62  ;;  %v4527_v62 = vld [vmem:[#allocation9 + $0x940] sm:$0xff] }
 0x364   : > { %7577 = vmatpush1.bf16.msra.mxu1 %v10635_v63  ;;  %7414 = vmatprep.subr.bf16.mxu0 %v10642_v0  ;;  %v4528_v63 = vld [vmem:[#allocation9 + $0x948] sm:$0xff]  ;;  %v10698_v13 = vcombine.high %v4527_v62, %v4531_v54 }
 0x365   : > { %7578 = vmatprep.subr.bf16.mxu1 %v10644_v2  ;;  %v4532_v0 = vld [vmem:[#allocation9 + $0x968] sm:$0xff]  ;;  %v10689_v2 = vcombine.low %v4519_v52, %v4523_v55  ;;  %v4575_v55 = vld [vmem:[#allocation9 + $0xac0] sm:$0xff] }
 0x366   : > { %v10700_v6 = vcombine.high %v4528_v63, %v4532_v0 }
 0x367   : > { %7415 = vmatpush1.bf16.msra.mxu0 %v10641_v10  ;;  %v4539_v10 = vld [vmem:[#allocation9 + $0x9a0] sm:$0xff] }
 0x368   : > { %7579 = vmatpush1.bf16.msra.mxu1 %v10643_v16  ;;  %7416 = vmatprep.subr.bf16.mxu0 %v10650_v17  ;;  %v4540_v16 = vld [vmem:[#allocation9 + $0x9a8] sm:$0xff]  ;;  %v10697_v17 = vcombine.low %v4527_v62, %v4531_v54  ;;  %v10706_v19 = vcombine.high %v4535_v7, %v4539_v10  ;;  %v4583_v54 = vld [vmem:[#allocation9 + $0xb00] sm:$0xff] }
 0x369   : > { %7580 = vmatprep.subr.bf16.mxu1 %v10652_v18  ;;  %v10699_v18 = vcombine.low %v4528_v63, %v4532_v0  ;;  %v10708_v20 = vcombine.high %v4536_v14, %v4540_v16  ;;  %v4587_v63 = vld [vmem:[#allocation9 + $0xb20] sm:$0xff]  ;;  %v4584_v0 = vld [vmem:[#allocation9 + $0xb08] sm:$0xff] }
 0x36b   : > { %7417 = vmatpush1.bf16.msra.mxu0 %v10649_v24  ;;  %v4544_v24 = vld [vmem:[#allocation9 + $0x9c8] sm:$0xff] }
 0x36c   : > { %7581 = vmatpush1.bf16.msra.mxu1 %v10651_v26  ;;  %7427 = vmatprep.subr.bf16.mxu0 %v10658_v12  ;;  %v10705_v26 = vcombine.low %v4535_v7, %v4539_v10  ;;  %v10707_v12 = vcombine.low %v4536_v14, %v4540_v16  ;;  %v10716_v8 = vcombine.high %v4544_v24, %v4548_v25  ;;  %v4591_v10 = vld [vmem:[#allocation9 + $0xb40] sm:$0xff]  ;;  %v4592_v16 = vld [vmem:[#allocation9 + $0xb48] sm:$0xff] }
 0x36d   : > { %7591 = vmatprep.subr.bf16.mxu1 %v10660_v27  ;;  %v10714_v27 = vcombine.high %v4543_v23, %v4547_v57  ;;  %v4595_v14 = vld [vmem:[#allocation9 + $0xb60] sm:$0xff] }
 0x36e   : > { %7419 = vmatmul.mubr.bf16.vlgmr.msra.gmra.mrb[8].mxu0 %v12462_v34 }
 0x36f   : > { %7583 = vmatmul.mubr.bf16.vlgmr.msra.gmra.mrb[8].mxu1 %v12462_v34  ;;  %7428 = vmatpush1.bf16.msra.mxu0 %v10657_v33  ;;  %v4556_v33 = vld [vmem:[#allocation9 + $0xa28] sm:$0xff] }
 0x370   : > { %7592 = vmatpush1.bf16.msra.mxu1 %v10659_v35  ;;  %7429 = vmatprep.subr.bf16.mxu0 %v10666_v21  ;;  %v10713_v35 = vcombine.low %v4543_v23, %v4547_v57  ;;  %v10715_v21 = vcombine.low %v4544_v24, %v4548_v25  ;;  %v10724_v38 = vcombine.high %v4552_v31, %v4556_v33  ;;  %v4599_v57 = vld [vmem:[#allocation9 + $0xb80] sm:$0xff]  ;;  %v4600_v25 = vld [vmem:[#allocation9 + $0xb88] sm:$0xff] }
 0x371   : > { %7593 = vmatprep.subr.bf16.mxu1 %v10668_v22  ;;  %v10722_v22 = vcombine.high %v4551_v28, %v4555_v30  ;;  %v4603_v24 = vld [vmem:[#allocation9 + $0xba0] sm:$0xff] }
 0x373   : > { %7430 = vmatpush1.bf16.msra.mxu0 %v10665_v36  ;;  %v4564_v36 = vld [vmem:[#allocation9 + $0xa68] sm:$0xff] }
 0x374   : > { %7594 = vmatpush1.bf16.msra.mxu1 %v10667_v42  ;;  %7431 = vmatprep.subr.bf16.mxu0 %v10674_v43  ;;  %v10721_v42 = vcombine.low %v4551_v28, %v4555_v30  ;;  %v10723_v43 = vcombine.low %v4552_v31, %v4556_v33  ;;  %v10732_v45 = vcombine.high %v4560_v41, %v4564_v36  ;;  %v4607_v30 = vld [vmem:[#allocation9 + $0xbc0] sm:$0xff]  ;;  %v4608_v33 = vld [vmem:[#allocation9 + $0xbc8] sm:$0xff] }
 0x375   : > { %7595 = vmatprep.subr.bf16.mxu1 %v10676_v44  ;;  %v10730_v44 = vcombine.high %v4559_v39, %v4563_v40  ;;  %v4611_v31 = vld [vmem:[#allocation9 + $0xbe0] sm:$0xff] }
 0x377   : > { %7432 = vmatpush1.bf16.msra.mxu0 %v10673_v48  ;;  %v4572_v48 = vld [vmem:[#allocation9 + $0xaa8] sm:$0xff] }
 0x378   : > { %7596 = vmatpush1.bf16.msra.mxu1 %v10675_v50  ;;  %7433 = vmatprep.subr.bf16.mxu0 %v10682_v46  ;;  %v10729_v50 = vcombine.low %v4559_v39, %v4563_v40  ;;  %v10731_v46 = vcombine.low %v4560_v41, %v4564_v36  ;;  %v10740_v52 = vcombine.high %v4568_v47, %v4572_v48  ;;  %v4615_v40 = vld [vmem:[#allocation9 + $0xc00] sm:$0xff]  ;;  %v4616_v36 = vld [vmem:[#allocation9 + $0xc08] sm:$0xff] }
 0x379   : > { %7597 = vmatprep.subr.bf16.mxu1 %v10684_v51  ;;  %v10738_v51 = vcombine.high %v4567_v9, %v4571_v32  ;;  %v4619_v41 = vld [vmem:[#allocation9 + $0xc20] sm:$0xff] }
 0x37b   : > { %7434 = vmatpush1.bf16.msra.mxu0 %v10681_v59  ;;  %v4580_v59 = vld [vmem:[#allocation9 + $0xae8] sm:$0xff] }
 0x37c   : > { %7598 = vmatpush1.bf16.msra.mxu1 %v10683_v60  ;;  %7435 = vmatprep.subr.bf16.mxu0 %v10690_v61  ;;  %v10737_v60 = vcombine.low %v4567_v9, %v4571_v32  ;;  %v10739_v61 = vcombine.low %v4568_v47, %v4572_v48  ;;  %v10748_v62 = vcombine.high %v4576_v58, %v4580_v59  ;;  %v977_v32 = vsub.s32 4, %v12424_v1 }
 0x37d   : > { %7599 = vmatprep.subr.bf16.mxu1 %v10692_v4  ;;  %v10746_v4 = vcombine.high %v4575_v55, %v4579_v56  ;;  %v981_v47 = vsub.s32 5, %v12424_v1  ;;  %v989_v48 = vsub.s32 7, %v12424_v1 }
 0x37f   : > { %7436 = vmatpush1.bf16.msra.mxu0 %v10689_v2  ;;  %v4588_v2 = vld [vmem:[#allocation9 + $0xb28] sm:$0xff] }
 0x380   : > { %7600 = vmatpush1.bf16.msra.mxu1 %v10691_v3  ;;  %7437 = vmatprep.subr.bf16.mxu0 %v10698_v13  ;;  %v10745_v3 = vcombine.low %v4575_v55, %v4579_v56  ;;  %v10747_v13 = vcombine.low %v4576_v58, %v4580_v59  ;;  %v10756_v7 = vcombine.high %v4584_v0, %v4588_v2 }
 0x381   : > { %7601 = vmatprep.subr.bf16.mxu1 %v10700_v6  ;;  %v10754_v6 = vcombine.high %v4583_v54, %v4587_v63 }
 0x383   : > { %7438 = vmatpush1.bf16.msra.mxu0 %v10697_v17  ;;  %v4596_v17 = vld [vmem:[#allocation9 + $0xb68] sm:$0xff] }
 0x384   : > { %7602 = vmatpush1.bf16.msra.mxu1 %v10699_v18  ;;  %7439 = vmatprep.subr.bf16.mxu0 %v10706_v19  ;;  %v10753_v18 = vcombine.low %v4583_v54, %v4587_v63  ;;  %v10755_v19 = vcombine.low %v4584_v0, %v4588_v2  ;;  %v10764_v23 = vcombine.high %v4592_v16, %v4596_v17 }
 0x385   : > { %7603 = vmatprep.subr.bf16.mxu1 %v10708_v20  ;;  %v10762_v20 = vcombine.high %v4591_v10, %v4595_v14 }
 0x387   : > { %7440 = vmatpush1.bf16.msra.mxu0 %v10705_v26  ;;  %v4604_v26 = vld [vmem:[#allocation9 + $0xba8] sm:$0xff] }
 0x388   : > { %7604 = vmatpush1.bf16.msra.mxu1 %v10707_v12  ;;  %7441 = vmatprep.subr.bf16.mxu0 %v10714_v27  ;;  %v10761_v12 = vcombine.low %v4591_v10, %v4595_v14  ;;  %v10763_v27 = vcombine.low %v4592_v16, %v4596_v17  ;;  %v10772_v28 = vcombine.high %v4600_v25, %v4604_v26  ;;  %v4624_v10 = vld [vmem:[#allocation9 + $0xc48] sm:$0xff] }
 0x389   : > { %7605 = vmatprep.subr.bf16.mxu1 %v10716_v8  ;;  %v10770_v8 = vcombine.high %v4599_v57, %v4603_v24  ;;  %v4628_v14 = vld [vmem:[#allocation9 + $0xc68] sm:$0xff]  ;;  %v10785_v17 = vcombine.low %v4615_v40, %v4619_v41 }
 0x38b   : > { %7442 = vmatpush1.bf16.msra.mxu0 %v10713_v35  ;;  %v4612_v35 = vld [vmem:[#allocation9 + $0xbe8] sm:$0xff] }
 0x38c   : > { %7606 = vmatpush1.bf16.msra.mxu1 %v10715_v21  ;;  %7443 = vmatprep.subr.bf16.mxu0 %v10722_v22  ;;  %v10769_v21 = vcombine.low %v4599_v57, %v4603_v24  ;;  %v10771_v22 = vcombine.low %v4600_v25, %v4604_v26  ;;  %v10780_v39 = vcombine.high %v4608_v33, %v4612_v35  ;;  %v4635_v24 = vld [vmem:[#allocation9 + $0xca0] sm:$0xff]  ;;  %v4632_v25 = vld [vmem:[#allocation9 + $0xc88] sm:$0xff] }
 0x38d   : > { %7607 = vmatprep.subr.bf16.mxu1 %v10724_v38  ;;  %v10778_v38 = vcombine.high %v4607_v30, %v4611_v31  ;;  %v10796_v57 = vcombine.high %v4624_v10, %v4628_v14  ;;  %v4636_v26 = vld [vmem:[#allocation9 + $0xca8] sm:$0xff] }
 0x38f   : > { %7444 = vmatpush1.bf16.msra.mxu0 %v10721_v42  ;;  %v4620_v42 = vld [vmem:[#allocation9 + $0xc28] sm:$0xff] }
 0x390   : > { %7608 = vmatpush1.bf16.msra.mxu1 %v10723_v43  ;;  %7445 = vmatprep.subr.bf16.mxu0 %v10730_v44  ;;  %v10777_v43 = vcombine.low %v4607_v30, %v4611_v31  ;;  %v10779_v44 = vcombine.low %v4608_v33, %v4612_v35  ;;  %v10788_v9 = vcombine.high %v4616_v36, %v4620_v42  ;;  %v4639_v31 = vld [vmem:[#allocation9 + $0xcc0] sm:$0xff]  ;;  %v4640_v35 = vld [vmem:[#allocation9 + $0xcc8] sm:$0xff] }
 0x391   : > { %7609 = vmatprep.subr.bf16.mxu1 %v10732_v45  ;;  %v10786_v45 = vcombine.high %v4615_v40, %v4619_v41  ;;  %v10804_v30 = vcombine.high %v4632_v25, %v4636_v26  ;;  %v4643_v33 = vld [vmem:[#allocation9 + $0xce0] sm:$0xff] }
 0x392   : > { %v4647_v41 = vld [vmem:[#allocation9 + $0xd00] sm:$0xff] }
 0x393   : > { %7446 = vmatpush1.bf16.msra.mxu0 %v10729_v50  ;;  %v12469_v50 = vld [vmem:[#allocation8] sm:$0xff] }
 0x394   : > { %7610 = vmatpush1.bf16.msra.mxu1 %v10731_v46  ;;  %7447 = vmatprep.subr.bf16.mxu0 %v10738_v51  ;;  %v978_v46 = vrot.slane %v12469_v50, %v977_v32  ;;  %v982_v51 = vrot.slane %v12469_v50, %v981_v47 }
 0x395   : > { %7611 = vmatprep.subr.bf16.mxu1 %v10740_v52  ;;  %v990_v52 = vrot.slane %v12469_v50, %v989_v48 }
 0x397   : > { %7448 = vmatpush1.bf16.msra.mxu0 %v10737_v60 }
 0x398   : > { %7612 = vmatpush1.bf16.msra.mxu1 %v10739_v61  ;;  %7449 = vmatprep.subr.bf16.mxu0 %v10746_v4 }
 0x399   : > { %7613 = vmatprep.subr.bf16.mxu1 %v10748_v62 }
 0x39b   : > { %7450 = vmatpush1.bf16.msra.mxu0 %v10745_v3 }
 0x39c   : > { %7614 = vmatpush1.bf16.msra.mxu1 %v10747_v13  ;;  %7451 = vmatprep.subr.bf16.mxu0 %v10754_v6  ;;  %v4623_v13 = vld [vmem:[#allocation9 + $0xc40] sm:$0xff] }
 0x39d   : > { %7615 = vmatprep.subr.bf16.mxu1 %v10756_v7  ;;  %v4627_v7 = vld [vmem:[#allocation9 + $0xc60] sm:$0xff] }
 0x39f   : > { %7452 = vmatpush1.bf16.msra.mxu0 %v10753_v18  ;;  %v10787_v18 = vcombine.low %v4616_v36, %v4620_v42  ;;  %v4651_v36 = vld [vmem:[#allocation9 + $0xd20] sm:$0xff]  ;;  %v4648_v42 = vld [vmem:[#allocation9 + $0xd08] sm:$0xff] }
 0x3a0   : > { %7616 = vmatpush1.bf16.msra.mxu1 %v10755_v19  ;;  %7453 = vmatprep.subr.bf16.mxu0 %v10762_v20  ;;  %v4631_v20 = vld [vmem:[#allocation9 + $0xc80] sm:$0xff] }
 0x3a1   : > { %7617 = vmatprep.subr.bf16.mxu1 %v10764_v23  ;;  %v10794_v23 = vcombine.high %v4623_v13, %v4627_v7 }
 0x3a3   : > { %7454 = vmatpush1.bf16.msra.mxu0 %v10761_v12 }
 0x3a4   : > { %7618 = vmatpush1.bf16.msra.mxu1 %v10763_v27  ;;  %7455 = vmatprep.subr.bf16.mxu0 %v10770_v8  ;;  %v10793_v27 = vcombine.low %v4623_v13, %v4627_v7  ;;  %v10795_v8 = vcombine.low %v4624_v10, %v4628_v14  ;;  %v4671_v7 = vld [vmem:[#allocation9 + $0xdc0] sm:$0xff]  ;;  %v4672_v14 = vld [vmem:[#allocation9 + $0xdc8] sm:$0xff] }
 0x3a5   : > { %7619 = vmatprep.subr.bf16.mxu1 %v10772_v28  ;;  %v10802_v28 = vcombine.high %v4631_v20, %v4635_v24  ;;  %v4675_v10 = vld [vmem:[#allocation9 + $0xde0] sm:$0xff] }
 0x3a7   : > { %7456 = vmatpush1.bf16.msra.mxu0 %v10769_v21  ;;  %v4644_v21 = vld [vmem:[#allocation9 + $0xce8] sm:$0xff] }
 0x3a8   : > { %7620 = vmatpush1.bf16.msra.mxu1 %v10771_v22  ;;  %7457 = vmatprep.subr.bf16.mxu0 %v10778_v38  ;;  %v10801_v22 = vcombine.low %v4631_v20, %v4635_v24  ;;  %v10803_v38 = vcombine.low %v4632_v25, %v4636_v26  ;;  %v10812_v40 = vcombine.high %v4640_v35, %v4644_v21  ;;  %v4679_v24 = vld [vmem:[#allocation9 + $0xe00] sm:$0xff]  ;;  %v4680_v26 = vld [vmem:[#allocation9 + $0xe08] sm:$0xff] }
 0x3a9   : > { %7621 = vmatprep.subr.bf16.mxu1 %v10780_v39  ;;  %v10810_v39 = vcombine.high %v4639_v31, %v4643_v33  ;;  %v4683_v25 = vld [vmem:[#allocation9 + $0xe20] sm:$0xff] }
 0x3ab   : > { %7458 = vmatpush1.bf16.msra.mxu0 %v10777_v43  ;;  %v4652_v43 = vld [vmem:[#allocation9 + $0xd28] sm:$0xff] }
 0x3ac   : > { %7622 = vmatpush1.bf16.msra.mxu1 %v10779_v44  ;;  %7468 = vmatprep.subr.bf16.mxu0 %v10786_v45  ;;  %v10809_v44 = vcombine.low %v4639_v31, %v4643_v33  ;;  %v10811_v45 = vcombine.low %v4640_v35, %v4644_v21  ;;  %v4687_v33 = vld [vmem:[#allocation9 + $0xe40] sm:$0xff]  ;;  %v4688_v21 = vld [vmem:[#allocation9 + $0xe48] sm:$0xff] }
 0x3ad   : > { %7632 = vmatprep.subr.bf16.mxu1 %v10788_v9  ;;  %v10818_v9 = vcombine.high %v4647_v41, %v4651_v36  ;;  %v4691_v35 = vld [vmem:[#allocation9 + $0xe60] sm:$0xff] }
 0x3c1   : > { %v4044_v55 = vpop.f32.mrb[4].mxu0  ;;  %v12480_v58 = vpop.f32.mrb[4].mxu1 }
 0x3c2   : > { %v11219_v56 = vadd.f32 %v4044_v55, %v978_v46  ;;  %v4046_v59 = vpop.f32.mrb[5].mxu0  ;;  %v4210_v61 = vpop.f32.mrb[5].mxu1  ;;  %v10820_v46 = vcombine.high %v4648_v42, %v4652_v43  ;;  %v4656_v55 = vld [vmem:[#allocation9 + $0xd48] sm:$0xff] }
 0x3c3   : > { %v11220_v60 = vadd.f32 %v4046_v59, %v982_v51  ;;  %v4048_v4 = vpop.f32.mrb[6].mxu0  ;;  %v11222_v54 = vadd.f32 %v4210_v61, %v990_v52  ;;  %v4212_v63 = vpop.f32.mrb[6].mxu1  ;;  %v4655_v51 = vld [vmem:[#allocation9 + $0xd40] sm:$0xff]  ;;  %v10817_v59 = vcombine.low %v4647_v41, %v4651_v36 }
 0x3c4   : > { %v4219_v62 = vmax.f32 %v11219_v56, 0.0  ;;  %v4049_v0 = vpop.f32.mrb[7].mxu0  ;;  %v4213_v3 = vpop.f32.mrb[7].mxu1  ;;  %v4659_v52 = vld [vmem:[#allocation9 + $0xd60] sm:$0xff]  ;;  %v4660_v56 = vld [vmem:[#allocation9 + $0xd68] sm:$0xff] }
 0x3c5   : > { %v4220_v2 = vmax.f32 %v11220_v60, 0.0  ;;  %v4222_v6 = vmax.f32 %v11222_v54, 0.0  ;;  %v10819_v60 = vcombine.low %v4648_v42, %v4652_v43  ;;  %v10826_v61 = vcombine.high %v4655_v51, %v4659_v52  ;;  %v4667_v54 = vld [vmem:[#allocation9 + $0xda0] sm:$0xff]  ;;  %v4664_v63 = vld [vmem:[#allocation9 + $0xd88] sm:$0xff] }
 0x3c6   : > { %v12484_v19 = vpack.c.bf16 %v4219_v62, %v4219_v62  ;;  %v10828_v4 = vcombine.high %v4656_v55, %v4660_v56  ;;  %v4663_v62 = vld [vmem:[#allocation9 + $0xd80] sm:$0xff]  ;;  %v4668_v0 = vld [vmem:[#allocation9 + $0xda8] sm:$0xff]  ;;  %v10827_v3 = vcombine.low %v4656_v55, %v4660_v56 }
 0x3c7   : > { %v12482_v16 = vpack.c.bf16 %v4220_v2, %v4220_v2  ;;  %v12488_v12 = vpack.c.bf16 %v4222_v6, %v4222_v6  ;;  %v10825_v2 = vcombine.low %v4655_v51, %v4659_v52  ;;  %v10834_v13 = vcombine.high %v4663_v62, %v4667_v54  ;;  %v4695_v36 = vld [vmem:[#allocation9 + $0xe80] sm:$0xff]  ;;  %v4696_v43 = vld [vmem:[#allocation9 + $0xe88] sm:$0xff] }
 0x3c8   : > { %v10836_v6 = vcombine.high %v4664_v63, %v4668_v0  ;;  %v10835_v20 = vcombine.low %v4664_v63, %v4668_v0  ;;  %v4699_v42 = vld [vmem:[#allocation9 + $0xea0] sm:$0xff]  ;;  %v4704_v56 = vld [vmem:[#allocation9 + $0xec8] sm:$0xff] }
 0x3c9   : > { %7459 = vmatprep.mubr.bf16.mxu0 %v12482_v16  ;;  %7623 = vmatprep.mubr.bf16.mxu1 %v12482_v16  ;;  %v4703_v52 = vld [vmem:[#allocation9 + $0xec0] sm:$0xff]  ;;  %v4712_v0 = vld [vmem:[#allocation9 + $0xf08] sm:$0xff] }
 0x3ca   : > { %7460 = vmatmul.mubr.bf16.vlgmr.msra.gmra.mrb[8].mxu0 %v12484_v19  ;;  %7624 = vmatmul.mubr.bf16.vlgmr.msra.gmra.mrb[8].mxu1 %v12484_v19  ;;  %v4707_v55 = vld [vmem:[#allocation9 + $0xee0] sm:$0xff] }
 0x3cb   : > { %7469 = vmatpush1.bf16.msra.mxu0 %v10785_v17  ;;  %7633 = vmatpush1.bf16.msra.mxu1 %v10787_v18  ;;  %v4676_v17 = vld [vmem:[#allocation9 + $0xde8] sm:$0xff]  ;;  %v10833_v18 = vcombine.low %v4663_v62, %v4667_v54  ;;  %v4711_v54 = vld [vmem:[#allocation9 + $0xf00] sm:$0xff] }
 0x3cc   : > { %7500 = vmatprep.mubr.bf16.mxu0 %v12488_v12  ;;  %7664 = vmatprep.mubr.bf16.mxu1 %v12488_v12  ;;  %v4715_v63 = vld [vmem:[#allocation9 + $0xf20] sm:$0xff] }
 0x3cd   : > { %7470 = vmatprep.subr.bf16.mxu0 %v10794_v23  ;;  %7634 = vmatprep.subr.bf16.mxu1 %v10796_v57  ;;  %v10842_v23 = vcombine.high %v4671_v7, %v4675_v10  ;;  %v10844_v57 = vcombine.high %v4672_v14, %v4676_v17 }
 0x3cf   : > { %7471 = vmatpush1.bf16.msra.mxu0 %v10793_v27  ;;  %7635 = vmatpush1.bf16.msra.mxu1 %v10795_v8  ;;  %v4684_v27 = vld [vmem:[#allocation9 + $0xe28] sm:$0xff]  ;;  %v10841_v8 = vcombine.low %v4671_v7, %v4675_v10  ;;  %v4719_v10 = vld [vmem:[#allocation9 + $0xf40] sm:$0xff] }
 0x3d0   : > { %7472 = vmatprep.subr.bf16.mxu0 %v10802_v28  ;;  %7636 = vmatprep.subr.bf16.mxu1 %v10804_v30  ;;  %v10843_v28 = vcombine.low %v4672_v14, %v4676_v17  ;;  %v10850_v30 = vcombine.high %v4679_v24, %v4683_v25  ;;  %v10852_v31 = vcombine.high %v4680_v26, %v4684_v27  ;;  %v4723_v14 = vld [vmem:[#allocation9 + $0xf60] sm:$0xff]  ;;  %v4720_v17 = vld [vmem:[#allocation9 + $0xf48] sm:$0xff] }
 0x3d3   : > { %7473 = vmatpush1.bf16.msra.mxu0 %v10801_v22  ;;  %7637 = vmatpush1.bf16.msra.mxu1 %v10803_v38  ;;  %v4692_v22 = vld [vmem:[#allocation9 + $0xe68] sm:$0xff]  ;;  %v10849_v38 = vcombine.low %v4679_v24, %v4683_v25  ;;  %v10890_v24 = vcombine.high %v4719_v10, %v4723_v14 }
 0x3d4   : > { %7474 = vmatprep.subr.bf16.mxu0 %v10810_v39  ;;  %7638 = vmatprep.subr.bf16.mxu1 %v10812_v40  ;;  %v10851_v39 = vcombine.low %v4680_v26, %v4684_v27  ;;  %v10858_v40 = vcombine.high %v4687_v33, %v4691_v35  ;;  %v10860_v41 = vcombine.high %v4688_v21, %v4692_v22  ;;  %v4727_v26 = vld [vmem:[#allocation9 + $0xf80] sm:$0xff] }
 0x3d5   : > { %v4731_v27 = vld [vmem:[#allocation9 + $0xfa0] sm:$0xff] }
 0x3d7   : > { %7475 = vmatpush1.bf16.msra.mxu0 %v10809_v44  ;;  %7639 = vmatpush1.bf16.msra.mxu1 %v10811_v45  ;;  %v4700_v44 = vld [vmem:[#allocation9 + $0xea8] sm:$0xff]  ;;  %v10857_v45 = vcombine.low %v4687_v33, %v4691_v35  ;;  %v10898_v35 = vcombine.high %v4727_v26, %v4731_v27 }
 0x3d8   : > { %7476 = vmatprep.subr.bf16.mxu0 %v10818_v9  ;;  %7640 = vmatprep.subr.bf16.mxu1 %v10820_v46  ;;  %v10859_v9 = vcombine.low %v4688_v21, %v4692_v22  ;;  %v10866_v46 = vcombine.high %v4695_v36, %v4699_v42  ;;  %v10868_v51 = vcombine.high %v4696_v43, %v4700_v44  ;;  %v4735_v22 = vld [vmem:[#allocation9 + $0xfc0] sm:$0xff] }
 0x3db   : > { %7477 = vmatpush1.bf16.msra.mxu0 %v10817_v59  ;;  %7641 = vmatpush1.bf16.msra.mxu1 %v10819_v60  ;;  %v4708_v59 = vld [vmem:[#allocation9 + $0xee8] sm:$0xff]  ;;  %v10865_v60 = vcombine.low %v4695_v36, %v4699_v42 }
 0x3dc   : > { %7478 = vmatprep.subr.bf16.mxu0 %v10826_v61  ;;  %7642 = vmatprep.subr.bf16.mxu1 %v10828_v4  ;;  %v10867_v61 = vcombine.low %v4696_v43, %v4700_v44  ;;  %v10874_v4 = vcombine.high %v4703_v52, %v4707_v55  ;;  %v10876_v62 = vcombine.high %v4704_v56, %v4708_v59 }
 0x3df   : > { %7479 = vmatpush1.bf16.msra.mxu0 %v10825_v2  ;;  %7643 = vmatpush1.bf16.msra.mxu1 %v10827_v3  ;;  %v4716_v2 = vld [vmem:[#allocation9 + $0xf28] sm:$0xff]  ;;  %v10873_v3 = vcombine.low %v4703_v52, %v4707_v55 }
 0x3e0   : > { %7480 = vmatprep.subr.bf16.mxu0 %v10834_v13  ;;  %7644 = vmatprep.subr.bf16.mxu1 %v10836_v6  ;;  %v10875_v13 = vcombine.low %v4704_v56, %v4708_v59  ;;  %v10882_v6 = vcombine.high %v4711_v54, %v4715_v63  ;;  %v10884_v7 = vcombine.high %v4712_v0, %v4716_v2 }
 0x3e3   : > { %7481 = vmatpush1.bf16.msra.mxu0 %v10833_v18  ;;  %7645 = vmatpush1.bf16.msra.mxu1 %v10835_v20  ;;  %v4724_v18 = vld [vmem:[#allocation9 + $0xf68] sm:$0xff]  ;;  %v10881_v20 = vcombine.low %v4711_v54, %v4715_v63 }
 0x3e4   : > { %7482 = vmatprep.subr.bf16.mxu0 %v10842_v23  ;;  %7646 = vmatprep.subr.bf16.mxu1 %v10844_v57  ;;  %v10883_v23 = vcombine.low %v4712_v0, %v4716_v2  ;;  %v985_v57 = vsub.s32 6, %v12424_v1  ;;  %v10892_v25 = vcombine.high %v4720_v17, %v4724_v18 }
 0x3e6   : > { %v986_v33 = vrot.slane %v12469_v50, %v985_v57  ;;  %v4237_v50 = vld [vmem:[#allocation9 + $0x30] sm:$0xff] }
 0x3e7   : > { %7483 = vmatpush1.bf16.msra.mxu0 %v10841_v8  ;;  %7647 = vmatpush1.bf16.msra.mxu1 %v10843_v28  ;;  %v4728_v8 = vld [vmem:[#allocation9 + $0xf88] sm:$0xff] }
 0x3e8   : > { %7484 = vmatprep.subr.bf16.mxu0 %v10850_v30  ;;  %7648 = vmatprep.subr.bf16.mxu1 %v10852_v31  ;;  %v4732_v28 = vld [vmem:[#allocation9 + $0xfa8] sm:$0xff]  ;;  %v10889_v30 = vcombine.low %v4719_v10, %v4723_v14  ;;  %v10891_v31 = vcombine.low %v4720_v17, %v4724_v18  ;;  %v11221_v42 = vadd.f32 %v12480_v58, %v986_v33  ;;  %v4242_v58 = vld [vmem:[#allocation9 + $0x58] sm:$0xff] }
 0x3e9   : > { %v10900_v21 = vcombine.high %v4728_v8, %v4732_v28  ;;  %v10899_v36 = vcombine.low %v4728_v8, %v4732_v28  ;;  %v4270_v33 = vld [vmem:[#allocation9 + $0x138] sm:$0xff] }
 0x3ea   : > { %v4221_v55 = vmax.f32 %v11221_v42, 0.0 }
 0x3eb   : > { %7485 = vmatpush1.bf16.msra.mxu0 %v10849_v38  ;;  %7649 = vmatpush1.bf16.msra.mxu1 %v10851_v39  ;;  %v4739_v38 = vld [vmem:[#allocation9 + $0xfe0] sm:$0xff]  ;;  %v4736_v39 = vld [vmem:[#allocation9 + $0xfc8] sm:$0xff] }
 0x3ec   : > { %7486 = vmatprep.subr.bf16.mxu0 %v10858_v40  ;;  %7650 = vmatprep.subr.bf16.mxu1 %v10860_v41  ;;  %v4740_v40 = vld [vmem:[#allocation9 + $0xfe8] sm:$0xff]  ;;  %v10897_v41 = vcombine.low %v4727_v26, %v4731_v27  ;;  %v10906_v43 = vcombine.high %v4735_v22, %v4739_v38  ;;  %v12499_v54 = vpack.c.bf16 %v4221_v55, %v4221_v55 }
 0x3ed   : > { %v10908_v44 = vcombine.high %v4736_v39, %v4740_v40  ;;  %v10907_v52 = vcombine.low %v4736_v39, %v4740_v40  ;;  %v4273_v39 = vld [vmem:[#allocation9 + $0x150] sm:$0xff] }
 0x3ee   : > { %v4277_v40 = vld [vmem:[#allocation9 + $0x170] sm:$0xff] }
 0x3ef   : > { %7487 = vmatpush1.bf16.msra.mxu0 %v10857_v45  ;;  %7651 = vmatpush1.bf16.msra.mxu1 %v10859_v9  ;;  %v4233_v45 = vld [vmem:[#allocation9 + $0x10] sm:$0xff]  ;;  %v4234_v9 = vld [vmem:[#allocation9 + $0x18] sm:$0xff] }
 0x3f0   : > { %7488 = vmatprep.subr.bf16.mxu0 %v10866_v46  ;;  %7652 = vmatprep.subr.bf16.mxu1 %v10868_v51  ;;  %v4238_v46 = vld [vmem:[#allocation9 + $0x38] sm:$0xff]  ;;  %v10905_v51 = vcombine.low %v4735_v22, %v4739_v38  ;;  %v10406_v56 = vcombine.high %v4233_v45, %v4237_v50 }
 0x3f1   : > { %v10408_v59 = vcombine.high %v4234_v9, %v4238_v46  ;;  %v10407_v63 = vcombine.low %v4234_v9, %v4238_v46  ;;  %v4285_v9 = vld [vmem:[#allocation9 + $0x1b0] sm:$0xff]  ;;  %v4282_v46 = vld [vmem:[#allocation9 + $0x198] sm:$0xff] }
 0x3f3   : > { %7489 = vmatpush1.bf16.msra.mxu0 %v10865_v60  ;;  %7653 = vmatpush1.bf16.msra.mxu1 %v10867_v61  ;;  %v4241_v60 = vld [vmem:[#allocation9 + $0x50] sm:$0xff] }
 0x3f4   : > { %7490 = vmatprep.subr.bf16.mxu0 %v10874_v4  ;;  %7654 = vmatprep.subr.bf16.mxu1 %v10876_v62  ;;  %v4245_v61 = vld [vmem:[#allocation9 + $0x70] sm:$0xff]  ;;  %v4246_v4 = vld [vmem:[#allocation9 + $0x78] sm:$0xff]  ;;  %v10405_v62 = vcombine.low %v4233_v45, %v4237_v50 }
 0x3f5   : > { %v10414_v0 = vcombine.high %v4241_v60, %v4245_v61  ;;  %v10416_v2 = vcombine.high %v4242_v58, %v4246_v4  ;;  %v10413_v10 = vcombine.low %v4241_v60, %v4245_v61  ;;  %v10415_v14 = vcombine.low %v4242_v58, %v4246_v4  ;;  %v4281_v50 = vld [vmem:[#allocation9 + $0x190] sm:$0xff]  ;;  %v4290_v58 = vld [vmem:[#allocation9 + $0x1d8] sm:$0xff] }
 0x3f6   : > { %v4289_v60 = vld [vmem:[#allocation9 + $0x1d0] sm:$0xff]  ;;  %v4294_v4 = vld [vmem:[#allocation9 + $0x1f8] sm:$0xff] }
 0x3f7   : > { %7491 = vmatpush1.bf16.msra.mxu0 %v10873_v3  ;;  %7655 = vmatpush1.bf16.msra.mxu1 %v10875_v13  ;;  %v4249_v3 = vld [vmem:[#allocation9 + $0x90] sm:$0xff] }
 0x3f8   : > { %7492 = vmatprep.subr.bf16.mxu0 %v10882_v6  ;;  %7656 = vmatprep.subr.bf16.mxu1 %v10884_v7  ;;  %v4253_v13 = vld [vmem:[#allocation9 + $0xb0] sm:$0xff]  ;;  %v4250_v6 = vld [vmem:[#allocation9 + $0x98] sm:$0xff] }
 0x3f9   : > { %v4254_v7 = vld [vmem:[#allocation9 + $0xb8] sm:$0xff]  ;;  %v10422_v17 = vcombine.high %v4249_v3, %v4253_v13  ;;  %v10421_v26 = vcombine.low %v4249_v3, %v4253_v13  ;;  %v4293_v61 = vld [vmem:[#allocation9 + $0x1f0] sm:$0xff] }
 0x3fa   : > { %v10424_v18 = vcombine.high %v4250_v6, %v4254_v7  ;;  %v10423_v27 = vcombine.low %v4250_v6, %v4254_v7  ;;  %v4297_v3 = vld [vmem:[#allocation9 + $0x210] sm:$0xff]  ;;  %v4298_v6 = vld [vmem:[#allocation9 + $0x218] sm:$0xff] }
 0x3fb   : > { %7493 = vmatpush1.bf16.msra.mxu0 %v10881_v20  ;;  %7657 = vmatpush1.bf16.msra.mxu1 %v10883_v23  ;;  %v4257_v20 = vld [vmem:[#allocation9 + $0xd0] sm:$0xff]  ;;  %v4302_v7 = vld [vmem:[#allocation9 + $0x238] sm:$0xff] }
 0x3fc   : > { %7494 = vmatprep.subr.bf16.mxu0 %v10890_v24  ;;  %7658 = vmatprep.subr.bf16.mxu1 %v10892_v25  ;;  %v4261_v23 = vld [vmem:[#allocation9 + $0xf0] sm:$0xff]  ;;  %v4258_v24 = vld [vmem:[#allocation9 + $0xd8] sm:$0xff] }
 0x3fd   : > { %v4262_v25 = vld [vmem:[#allocation9 + $0xf8] sm:$0xff]  ;;  %v10430_v8 = vcombine.high %v4257_v20, %v4261_v23  ;;  %v4301_v13 = vld [vmem:[#allocation9 + $0x230] sm:$0xff] }
 0x3fe   : > { %v10432_v28 = vcombine.high %v4258_v24, %v4262_v25 }
 0x3ff   : > { %7495 = vmatpush1.bf16.msra.mxu0 %v10889_v30  ;;  %7659 = vmatpush1.bf16.msra.mxu1 %v10891_v31  ;;  %v4265_v30 = vld [vmem:[#allocation9 + $0x110] sm:$0xff] }
 0x400   : > { %7496 = vmatprep.subr.bf16.mxu0 %v10898_v35  ;;  %7660 = vmatprep.subr.bf16.mxu1 %v10900_v21  ;;  %v4269_v31 = vld [vmem:[#allocation9 + $0x130] sm:$0xff]  ;;  %v10429_v35 = vcombine.low %v4257_v20, %v4261_v23  ;;  %v10431_v21 = vcombine.low %v4258_v24, %v4262_v25  ;;  %v4306_v24 = vld [vmem:[#allocation9 + $0x258] sm:$0xff] }
 0x401   : > { %v10438_v22 = vcombine.high %v4265_v30, %v4269_v31  ;;  %v10437_v42 = vcombine.low %v4265_v30, %v4269_v31  ;;  %v4305_v20 = vld [vmem:[#allocation9 + $0x250] sm:$0xff]  ;;  %v4310_v25 = vld [vmem:[#allocation9 + $0x278] sm:$0xff] }
 0x402   : > { %v4309_v23 = vld [vmem:[#allocation9 + $0x270] sm:$0xff] }
 0x403   : > { %7497 = vmatpush1.bf16.msra.mxu0 %v10897_v41  ;;  %7661 = vmatpush1.bf16.msra.mxu1 %v10899_v36  ;;  %v4274_v41 = vld [vmem:[#allocation9 + $0x158] sm:$0xff]  ;;  %v4313_v30 = vld [vmem:[#allocation9 + $0x290] sm:$0xff] }
 0x404   : > { %7498 = vmatprep.subr.bf16.mxu0 %v10906_v43  ;;  %7662 = vmatprep.subr.bf16.mxu1 %v10908_v44  ;;  %v4278_v36 = vld [vmem:[#allocation9 + $0x178] sm:$0xff]  ;;  %v10446_v44 = vcombine.high %v4273_v39, %v4277_v40  ;;  %v4317_v31 = vld [vmem:[#allocation9 + $0x2b0] sm:$0xff] }
 0x405   : > { %v10448_v45 = vcombine.high %v4274_v41, %v4278_v36  ;;  %v10447_v55 = vcombine.low %v4274_v41, %v4278_v36  ;;  %v4322_v41 = vld [vmem:[#allocation9 + $0x2d8] sm:$0xff] }
 0x406   : > { %v4326_v36 = vld [vmem:[#allocation9 + $0x2f8] sm:$0xff] }
 0x407   : > { %7499 = vmatpush1.bf16.msra.mxu0 %v10905_v51  ;;  %7663 = vmatpush1.bf16.msra.mxu1 %v10907_v52  ;;  %v4286_v51 = vld [vmem:[#allocation9 + $0x1b8] sm:$0xff]  ;;  %v10445_v52 = vcombine.low %v4273_v39, %v4277_v40  ;;  %v4321_v39 = vld [vmem:[#allocation9 + $0x2d0] sm:$0xff] }
 0x408   : > { %7673 = vmatprep.subr.bf16.mxu0 %v10406_v56  ;;  %7837 = vmatprep.subr.bf16.mxu1 %v10408_v59  ;;  %v10454_v56 = vcombine.high %v4281_v50, %v4285_v9  ;;  %v10456_v59 = vcombine.high %v4282_v46, %v4286_v51  ;;  %v4325_v40 = vld [vmem:[#allocation9 + $0x2f0] sm:$0xff] }
 0x40a   : > { %7501 = vmatmul.mubr.bf16.vlgmr.msra.gmra.mrb[8].mxu0 %v12499_v54  ;;  %7665 = vmatmul.mubr.bf16.vlgmr.msra.gmra.mrb[8].mxu1 %v12499_v54 }
 0x40b   : > { %7674 = vmatpush1.bf16.msra.mxu0 %v10405_v62  ;;  %7705 = vmatprep.mubr.bf16.mxu0 %v12433_v49  ;;  %v10453_v62 = vcombine.low %v4281_v50, %v4285_v9  ;;  %v4329_v50 = vld [vmem:[#allocation9 + $0x310] sm:$0xff] }
 0x40c   : > { %7838 = vmatpush1.bf16.msra.mxu1 %v10407_v63  ;;  %7869 = vmatprep.mubr.bf16.mxu1 %v12433_v49  ;;  %v4266_v49 = vld [vmem:[#allocation9 + $0x118] sm:$0xff]  ;;  %v10455_v63 = vcombine.low %v4282_v46, %v4286_v51  ;;  %v4333_v9 = vld [vmem:[#allocation9 + $0x330] sm:$0xff] }
 0x40d   : > { %7675 = vmatprep.subr.bf16.mxu0 %v10414_v0  ;;  %7839 = vmatprep.subr.bf16.mxu1 %v10416_v2  ;;  %v10440_v38 = vcombine.high %v4266_v49, %v4270_v33  ;;  %v10439_v43 = vcombine.low %v4266_v49, %v4270_v33  ;;  %v10462_v0 = vcombine.high %v4289_v60, %v4293_v61  ;;  %v4314_v49 = vld [vmem:[#allocation9 + $0x298] sm:$0xff] }
 0x40e   : > { %v10464_v2 = vcombine.high %v4290_v58, %v4294_v4  ;;  %v4318_v33 = vld [vmem:[#allocation9 + $0x2b8] sm:$0xff] }
 0x40f   : > { %7676 = vmatpush1.bf16.msra.mxu0 %v10413_v10  ;;  %v10461_v10 = vcombine.low %v4289_v60, %v4293_v61  ;;  %v4330_v46 = vld [vmem:[#allocation9 + $0x318] sm:$0xff]  ;;  %v4337_v60 = vld [vmem:[#allocation9 + $0x350] sm:$0xff] }
 0x410   : > { %7840 = vmatpush1.bf16.msra.mxu1 %v10415_v14  ;;  %7677 = vmatprep.subr.bf16.mxu0 %v10422_v17  ;;  %v10463_v14 = vcombine.low %v4290_v58, %v4294_v4  ;;  %v10470_v17 = vcombine.high %v4297_v3, %v4301_v13  ;;  %v4334_v51 = vld [vmem:[#allocation9 + $0x338] sm:$0xff]  ;;  %v4341_v61 = vld [vmem:[#allocation9 + $0x370] sm:$0xff] }
 0x411   : > { %7841 = vmatprep.subr.bf16.mxu1 %v10424_v18  ;;  %v10472_v18 = vcombine.high %v4298_v6, %v4302_v7  ;;  %v4338_v58 = vld [vmem:[#allocation9 + $0x358] sm:$0xff] }
 0x412   : > { %v4342_v4 = vld [vmem:[#allocation9 + $0x378] sm:$0xff] }
 0x413   : > { %7678 = vmatpush1.bf16.msra.mxu0 %v10421_v26  ;;  %v10469_v26 = vcombine.low %v4297_v3, %v4301_v13  ;;  %v4345_v3 = vld [vmem:[#allocation9 + $0x390] sm:$0xff] }
 0x414   : > { %7842 = vmatpush1.bf16.msra.mxu1 %v10423_v27  ;;  %7679 = vmatprep.subr.bf16.mxu0 %v10430_v8  ;;  %v10471_v27 = vcombine.low %v4298_v6, %v4302_v7  ;;  %v10478_v8 = vcombine.high %v4305_v20, %v4309_v23  ;;  %v4349_v13 = vld [vmem:[#allocation9 + $0x3b0] sm:$0xff]  ;;  %v4346_v6 = vld [vmem:[#allocation9 + $0x398] sm:$0xff] }
 0x415   : > { %7843 = vmatprep.subr.bf16.mxu1 %v10432_v28  ;;  %v10480_v28 = vcombine.high %v4306_v24, %v4310_v25  ;;  %v4350_v7 = vld [vmem:[#allocation9 + $0x3b8] sm:$0xff] }
 0x417   : > { %7680 = vmatpush1.bf16.msra.mxu0 %v10429_v35  ;;  %v10477_v35 = vcombine.low %v4305_v20, %v4309_v23  ;;  %v4353_v20 = vld [vmem:[#allocation9 + $0x3d0] sm:$0xff] }
 0x418   : > { %7844 = vmatpush1.bf16.msra.mxu1 %v10431_v21  ;;  %7681 = vmatprep.subr.bf16.mxu0 %v10438_v22  ;;  %v10479_v21 = vcombine.low %v4306_v24, %v4310_v25  ;;  %v10486_v22 = vcombine.high %v4313_v30, %v4317_v31  ;;  %v4357_v23 = vld [vmem:[#allocation9 + $0x3f0] sm:$0xff]  ;;  %v4354_v24 = vld [vmem:[#allocation9 + $0x3d8] sm:$0xff] }
 0x419   : > { %7845 = vmatprep.subr.bf16.mxu1 %v10440_v38  ;;  %v10488_v38 = vcombine.high %v4314_v49, %v4318_v33  ;;  %v4358_v25 = vld [vmem:[#allocation9 + $0x3f8] sm:$0xff] }
 0x41b   : > { %7682 = vmatpush1.bf16.msra.mxu0 %v10437_v42  ;;  %v10485_v42 = vcombine.low %v4313_v30, %v4317_v31  ;;  %v4361_v30 = vld [vmem:[#allocation9 + $0x410] sm:$0xff] }
 0x41c   : > { %7846 = vmatpush1.bf16.msra.mxu1 %v10439_v43  ;;  %7683 = vmatprep.subr.bf16.mxu0 %v10446_v44  ;;  %v10487_v43 = vcombine.low %v4314_v49, %v4318_v33  ;;  %v10494_v44 = vcombine.high %v4321_v39, %v4325_v40  ;;  %v4365_v31 = vld [vmem:[#allocation9 + $0x430] sm:$0xff]  ;;  %v4362_v49 = vld [vmem:[#allocation9 + $0x418] sm:$0xff] }
 0x41d   : > { %7847 = vmatprep.subr.bf16.mxu1 %v10448_v45  ;;  %v10496_v45 = vcombine.high %v4322_v41, %v4326_v36  ;;  %v4366_v33 = vld [vmem:[#allocation9 + $0x438] sm:$0xff] }
 0x41f   : > { %7684 = vmatpush1.bf16.msra.mxu0 %v10445_v52  ;;  %v10493_v52 = vcombine.low %v4321_v39, %v4325_v40  ;;  %v4369_v39 = vld [vmem:[#allocation9 + $0x450] sm:$0xff] }
 0x420   : > { %7848 = vmatpush1.bf16.msra.mxu1 %v10447_v55  ;;  %7685 = vmatprep.subr.bf16.mxu0 %v10454_v56  ;;  %v10495_v55 = vcombine.low %v4322_v41, %v4326_v36  ;;  %v10502_v56 = vcombine.high %v4329_v50, %v4333_v9  ;;  %v4373_v40 = vld [vmem:[#allocation9 + $0x470] sm:$0xff]  ;;  %v10533_v41 = vcombine.low %v4361_v30, %v4365_v31  ;;  %v4370_v36 = vld [vmem:[#allocation9 + $0x458] sm:$0xff] }
 0x421   : > { %7849 = vmatprep.subr.bf16.mxu1 %v10456_v59  ;;  %v10504_v59 = vcombine.high %v4330_v46, %v4334_v51 }
 0x423   : > { %7686 = vmatpush1.bf16.msra.mxu0 %v10453_v62  ;;  %v10501_v62 = vcombine.low %v4329_v50, %v4333_v9  ;;  %v4381_v50 = vld [vmem:[#allocation9 + $0x4b0] sm:$0xff] }
 0x424   : > { %7850 = vmatpush1.bf16.msra.mxu1 %v10455_v63  ;;  %7687 = vmatprep.subr.bf16.mxu0 %v10462_v0  ;;  %v10503_v63 = vcombine.low %v4330_v46, %v4334_v51  ;;  %v10510_v0 = vcombine.high %v4337_v60, %v4341_v61  ;;  %v4378_v46 = vld [vmem:[#allocation9 + $0x498] sm:$0xff] }
 0x425   : > { %7851 = vmatprep.subr.bf16.mxu1 %v10464_v2  ;;  %v10512_v2 = vcombine.high %v4338_v58, %v4342_v4  ;;  %v4382_v51 = vld [vmem:[#allocation9 + $0x4b8] sm:$0xff] }
 0x427   : > { %7688 = vmatpush1.bf16.msra.mxu0 %v10461_v10  ;;  %v10509_v10 = vcombine.low %v4337_v60, %v4341_v61  ;;  %v4385_v60 = vld [vmem:[#allocation9 + $0x4d0] sm:$0xff] }
 0x428   : > { %7852 = vmatpush1.bf16.msra.mxu1 %v10463_v14  ;;  %7689 = vmatprep.subr.bf16.mxu0 %v10470_v17  ;;  %v10511_v14 = vcombine.low %v4338_v58, %v4342_v4  ;;  %v10518_v17 = vcombine.high %v4345_v3, %v4349_v13  ;;  %v4389_v61 = vld [vmem:[#allocation9 + $0x4f0] sm:$0xff]  ;;  %v4386_v58 = vld [vmem:[#allocation9 + $0x4d8] sm:$0xff] }
 0x429   : > { %7853 = vmatprep.subr.bf16.mxu1 %v10472_v18  ;;  %v10520_v18 = vcombine.high %v4346_v6, %v4350_v7  ;;  %v4390_v4 = vld [vmem:[#allocation9 + $0x4f8] sm:$0xff] }
 0x42b   : > { %7690 = vmatpush1.bf16.msra.mxu0 %v10469_v26  ;;  %v10517_v26 = vcombine.low %v4345_v3, %v4349_v13  ;;  %v4397_v3 = vld [vmem:[#allocation9 + $0x530] sm:$0xff]  ;;  %v4394_v13 = vld [vmem:[#allocation9 + $0x518] sm:$0xff] }
 0x42c   : > { %7854 = vmatpush1.bf16.msra.mxu1 %v10471_v27  ;;  %7691 = vmatprep.subr.bf16.mxu0 %v10478_v8  ;;  %v10519_v27 = vcombine.low %v4346_v6, %v4350_v7  ;;  %v10526_v8 = vcombine.high %v4353_v20, %v4357_v23  ;;  %v4398_v6 = vld [vmem:[#allocation9 + $0x538] sm:$0xff]  ;;  %v10559_v7 = vcombine.low %v4386_v58, %v4390_v4 }
 0x42d   : > { %7855 = vmatprep.subr.bf16.mxu1 %v10480_v28  ;;  %v10528_v28 = vcombine.high %v4354_v24, %v4358_v25 }
 0x42f   : > { %7692 = vmatpush1.bf16.msra.mxu0 %v10477_v35  ;;  %v10525_v35 = vcombine.low %v4353_v20, %v4357_v23  ;;  %v4402_v20 = vld [vmem:[#allocation9 + $0x558] sm:$0xff] }
 0x430   : > { %7856 = vmatpush1.bf16.msra.mxu1 %v10479_v21  ;;  %7693 = vmatprep.subr.bf16.mxu0 %v10486_v22  ;;  %v10527_v21 = vcombine.low %v4354_v24, %v4358_v25  ;;  %v10534_v22 = vcombine.high %v4361_v30, %v4365_v31  ;;  %v4406_v23 = vld [vmem:[#allocation9 + $0x578] sm:$0xff]  ;;  %v10567_v25 = vcombine.low %v4394_v13, %v4398_v6 }
 0x431   : > { %7857 = vmatprep.subr.bf16.mxu1 %v10488_v38  ;;  %v10536_v38 = vcombine.high %v4362_v49, %v4366_v33  ;;  %v4410_v30 = vld [vmem:[#allocation9 + $0x598] sm:$0xff] }
 0x432   : > { %v4414_v31 = vld [vmem:[#allocation9 + $0x5b8] sm:$0xff] }
 0x433   : > { %7694 = vmatpush1.bf16.msra.mxu0 %v10485_v42  ;;  %v4374_v42 = vld [vmem:[#allocation9 + $0x478] sm:$0xff] }
 0x434   : > { %7858 = vmatpush1.bf16.msra.mxu1 %v10487_v43  ;;  %7695 = vmatprep.subr.bf16.mxu0 %v10494_v44  ;;  %v10535_v43 = vcombine.low %v4362_v49, %v4366_v33  ;;  %v10542_v44 = vcombine.high %v4369_v39, %v4373_v40  ;;  %v10544_v9 = vcombine.high %v4370_v36, %v4374_v42 }
 0x435   : > { %7859 = vmatprep.subr.bf16.mxu1 %v10496_v45  ;;  %v4377_v45 = vld [vmem:[#allocation9 + $0x490] sm:$0xff]  ;;  %v10575_v33 = vcombine.low %v4402_v20, %v4406_v23 }
 0x437   : > { %7696 = vmatpush1.bf16.msra.mxu0 %v10493_v52  ;;  %v10541_v52 = vcombine.low %v4369_v39, %v4373_v40  ;;  %v4418_v39 = vld [vmem:[#allocation9 + $0x5d8] sm:$0xff] }
 0x438   : > { %7860 = vmatpush1.bf16.msra.mxu1 %v10495_v55  ;;  %7697 = vmatprep.subr.bf16.mxu0 %v10502_v56  ;;  %v10543_v55 = vcombine.low %v4370_v36, %v4374_v42  ;;  %v10550_v56 = vcombine.high %v4377_v45, %v4381_v50  ;;  %v4422_v40 = vld [vmem:[#allocation9 + $0x5f8] sm:$0xff]  ;;  %v10583_v36 = vcombine.low %v4410_v30, %v4414_v31 }
 0x439   : > { %7861 = vmatprep.subr.bf16.mxu1 %v10504_v59  ;;  %v10552_v59 = vcombine.high %v4378_v46, %v4382_v51 }
 0x43b   : > { %7698 = vmatpush1.bf16.msra.mxu0 %v10501_v62  ;;  %v10549_v62 = vcombine.low %v4377_v45, %v4381_v50  ;;  %v4429_v45 = vld [vmem:[#allocation9 + $0x630] sm:$0xff]  ;;  %v4426_v50 = vld [vmem:[#allocation9 + $0x618] sm:$0xff] }
 0x43c   : > { %7862 = vmatpush1.bf16.msra.mxu1 %v10503_v63  ;;  %7699 = vmatprep.subr.bf16.mxu0 %v10510_v0  ;;  %v10558_v63 = vcombine.high %v4385_v60, %v4389_v61  ;;  %v10560_v0 = vcombine.high %v4386_v58, %v4390_v4 }
 0x43d   : > { %7863 = vmatprep.subr.bf16.mxu1 %v10512_v2  ;;  %v4393_v2 = vld [vmem:[#allocation9 + $0x510] sm:$0xff] }
 0x43e   : > { %v10565_v24 = vcombine.low %v4393_v2, %v4397_v3 }
 0x43f   : > { %7700 = vmatpush1.bf16.msra.mxu0 %v10509_v10  ;;  %v10566_v10 = vcombine.high %v4393_v2, %v4397_v3  ;;  %v4442_v2 = vld [vmem:[#allocation9 + $0x698] sm:$0xff] }
 0x440   : > { %7864 = vmatpush1.bf16.msra.mxu1 %v10511_v14  ;;  %7701 = vmatprep.subr.bf16.mxu0 %v10518_v17  ;;  %v10568_v14 = vcombine.high %v4394_v13, %v4398_v6  ;;  %v4401_v17 = vld [vmem:[#allocation9 + $0x550] sm:$0xff]  ;;  %v4446_v3 = vld [vmem:[#allocation9 + $0x6b8] sm:$0xff] }
 0x441   : > { %7865 = vmatprep.subr.bf16.mxu1 %v10520_v18  ;;  %v4405_v18 = vld [vmem:[#allocation9 + $0x570] sm:$0xff] }
 0x442   : > { %v10573_v49 = vcombine.low %v4401_v17, %v4405_v18 }
 0x443   : > { %7702 = vmatpush1.bf16.msra.mxu0 %v10517_v26  ;;  %v10574_v26 = vcombine.high %v4401_v17, %v4405_v18  ;;  %v4450_v17 = vld [vmem:[#allocation9 + $0x6d8] sm:$0xff] }
 0x444   : > { %7866 = vmatpush1.bf16.msra.mxu1 %v10519_v27  ;;  %7703 = vmatprep.subr.bf16.mxu0 %v10526_v8  ;;  %v10576_v27 = vcombine.high %v4402_v20, %v4406_v23  ;;  %v4409_v8 = vld [vmem:[#allocation9 + $0x590] sm:$0xff]  ;;  %v4454_v18 = vld [vmem:[#allocation9 + $0x6f8] sm:$0xff]  ;;  %v10615_v23 = vcombine.low %v4442_v2, %v4446_v3 }
 0x445   : > { %7867 = vmatprep.subr.bf16.mxu1 %v10528_v28  ;;  %v4413_v28 = vld [vmem:[#allocation9 + $0x5b0] sm:$0xff] }
 0x447   : > { %7704 = vmatpush1.bf16.msra.mxu0 %v10525_v35  ;;  %v10582_v35 = vcombine.high %v4409_v8, %v4413_v28 }
 0x448   : > { %7868 = vmatpush1.bf16.msra.mxu1 %v10527_v21  ;;  %7714 = vmatprep.subr.bf16.mxu0 %v10534_v22  ;;  %v10584_v21 = vcombine.high %v4410_v30, %v4414_v31  ;;  %v4417_v22 = vld [vmem:[#allocation9 + $0x5d0] sm:$0xff]  ;;  %v10623_v31 = vcombine.low %v4450_v17, %v4454_v18 }
 0x449   : > { %7878 = vmatprep.subr.bf16.mxu1 %v10536_v38  ;;  %v4421_v38 = vld [vmem:[#allocation9 + $0x5f0] sm:$0xff] }
 0x44a   : > { %7706 = vmatmul.mubr.bf16.vlgmr.msra.gmra.mrb[12].mxu0 %v12449_v5  ;;  %v10590_v42 = vcombine.high %v4417_v22, %v4421_v38 }
 0x44b   : > { %7870 = vmatmul.mubr.bf16.vlgmr.msra.gmra.mrb[12].mxu1 %v12449_v5  ;;  %7715 = vmatpush1.bf16.msra.mxu0 %v10533_v41  ;;  %v10551_v5 = vcombine.low %v4378_v46, %v4382_v51  ;;  %v10581_v41 = vcombine.low %v4409_v8, %v4413_v28  ;;  %v10589_v46 = vcombine.low %v4417_v22, %v4421_v38  ;;  %v4458_v8 = vld [vmem:[#allocation9 + $0x718] sm:$0xff] }
 0x44c   : > { %7746 = vmatprep.mubr.bf16.mxu0 %v12451_v11  ;;  %7879 = vmatpush1.bf16.msra.mxu1 %v10535_v43  ;;  %v10592_v43 = vcombine.high %v4418_v39, %v4422_v40  ;;  %v10591_v51 = vcombine.low %v4418_v39, %v4422_v40  ;;  %v4462_v28 = vld [vmem:[#allocation9 + $0x738] sm:$0xff] }
 0x44d   : > { %7910 = vmatprep.mubr.bf16.mxu1 %v12451_v11  ;;  %7716 = vmatprep.subr.bf16.mxu0 %v10542_v44  ;;  %v10557_v11 = vcombine.low %v4385_v60, %v4389_v61  ;;  %v4425_v44 = vld [vmem:[#allocation9 + $0x610] sm:$0xff]  ;;  %v4434_v60 = vld [vmem:[#allocation9 + $0x658] sm:$0xff]  ;;  %v10631_v40 = vcombine.low %v4458_v8, %v4462_v28 }
 0x44e   : > { %7880 = vmatprep.subr.bf16.mxu1 %v10544_v9  ;;  %v4430_v9 = vld [vmem:[#allocation9 + $0x638] sm:$0xff]  ;;  %v10597_v58 = vcombine.low %v4425_v44, %v4429_v45 }
 0x44f   : > { %7717 = vmatpush1.bf16.msra.mxu0 %v10541_v52  ;;  %v10598_v52 = vcombine.high %v4425_v44, %v4429_v45  ;;  %v4438_v61 = vld [vmem:[#allocation9 + $0x678] sm:$0xff]  ;;  %v10599_v4 = vcombine.low %v4426_v50, %v4430_v9 }
 0x450   : > { %7881 = vmatpush1.bf16.msra.mxu1 %v10543_v55  ;;  %7718 = vmatprep.subr.bf16.mxu0 %v10550_v56  ;;  %v10600_v55 = vcombine.high %v4426_v50, %v4430_v9  ;;  %v4433_v56 = vld [vmem:[#allocation9 + $0x650] sm:$0xff]  ;;  %v10607_v6 = vcombine.low %v4434_v60, %v4438_v61  ;;  %v4466_v22 = vld [vmem:[#allocation9 + $0x758] sm:$0xff] }
 0x451   : > { %7882 = vmatprep.subr.bf16.mxu1 %v10552_v59  ;;  %v4437_v59 = vld [vmem:[#allocation9 + $0x670] sm:$0xff]  ;;  %v4470_v38 = vld [vmem:[#allocation9 + $0x778] sm:$0xff] }
 0x452   : > { %v10605_v13 = vcombine.low %v4433_v56, %v4437_v59  ;;  %v4474_v44 = vld [vmem:[#allocation9 + $0x798] sm:$0xff]  ;;  %v10639_v9 = vcombine.low %v4466_v22, %v4470_v38 }
 0x453   : > { %7719 = vmatpush1.bf16.msra.mxu0 %v10549_v62  ;;  %v10606_v62 = vcombine.high %v4433_v56, %v4437_v59  ;;  %v4478_v45 = vld [vmem:[#allocation9 + $0x7b8] sm:$0xff] }
 0x454   : > { %7883 = vmatpush1.bf16.msra.mxu1 %v10551_v5  ;;  %7720 = vmatprep.subr.bf16.mxu0 %v10558_v63  ;;  %v10608_v5 = vcombine.high %v4434_v60, %v4438_v61  ;;  %v4441_v63 = vld [vmem:[#allocation9 + $0x690] sm:$0xff]  ;;  %v4482_v56 = vld [vmem:[#allocation9 + $0x7d8] sm:$0xff]  ;;  %v10647_v61 = vcombine.low %v4474_v44, %v4478_v45 }
 0x455   : > { %7884 = vmatprep.subr.bf16.mxu1 %v10560_v0  ;;  %v4445_v0 = vld [vmem:[#allocation9 + $0x6b0] sm:$0xff]  ;;  %v4486_v59 = vld [vmem:[#allocation9 + $0x7f8] sm:$0xff] }
 0x456   : > { %v10613_v20 = vcombine.low %v4441_v63, %v4445_v0 }
 0x457   : > { %7721 = vmatpush1.bf16.msra.mxu0 %v10557_v11  ;;  %v10614_v11 = vcombine.high %v4441_v63, %v4445_v0  ;;  %v4490_v63 = vld [vmem:[#allocation9 + $0x818] sm:$0xff] }
 0x458   : > { %7885 = vmatpush1.bf16.msra.mxu1 %v10559_v7  ;;  %7722 = vmatprep.subr.bf16.mxu0 %v10566_v10  ;;  %v10616_v7 = vcombine.high %v4442_v2, %v4446_v3  ;;  %v4449_v10 = vld [vmem:[#allocation9 + $0x6d0] sm:$0xff]  ;;  %v4494_v0 = vld [vmem:[#allocation9 + $0x838] sm:$0xff]  ;;  %v10655_v3 = vcombine.low %v4482_v56, %v4486_v59 }
 0x459   : > { %7886 = vmatprep.subr.bf16.mxu1 %v10568_v14  ;;  %v4453_v14 = vld [vmem:[#allocation9 + $0x6f0] sm:$0xff] }
 0x45a   : > { %v10621_v30 = vcombine.low %v4449_v10, %v4453_v14 }
 0x45b   : > { %7723 = vmatpush1.bf16.msra.mxu0 %v10565_v24  ;;  %v10622_v24 = vcombine.high %v4449_v10, %v4453_v14  ;;  %v4498_v14 = vld [vmem:[#allocation9 + $0x858] sm:$0xff] }
 0x45c   : > { %7887 = vmatpush1.bf16.msra.mxu1 %v10567_v25  ;;  %7724 = vmatprep.subr.bf16.mxu0 %v10574_v26  ;;  %v10624_v25 = vcombine.high %v4450_v17, %v4454_v18  ;;  %v4457_v26 = vld [vmem:[#allocation9 + $0x710] sm:$0xff]  ;;  %v4502_v17 = vld [vmem:[#allocation9 + $0x878] sm:$0xff]  ;;  %v10663_v18 = vcombine.low %v4490_v63, %v4494_v0 }
 0x45d   : > { %7888 = vmatprep.subr.bf16.mxu1 %v10576_v27  ;;  %v4461_v27 = vld [vmem:[#allocation9 + $0x730] sm:$0xff] }
 0x45e   : > { %v10629_v39 = vcombine.low %v4457_v26, %v4461_v27 }
 0x45f   : > { %7725 = vmatpush1.bf16.msra.mxu0 %v10573_v49  ;;  %v10630_v49 = vcombine.high %v4457_v26, %v4461_v27  ;;  %v4506_v26 = vld [vmem:[#allocation9 + $0x898] sm:$0xff] }
 0x460   : > { %7889 = vmatpush1.bf16.msra.mxu1 %v10575_v33  ;;  %7726 = vmatprep.subr.bf16.mxu0 %v10582_v35  ;;  %v10632_v33 = vcombine.high %v4458_v8, %v4462_v28  ;;  %v4465_v35 = vld [vmem:[#allocation9 + $0x750] sm:$0xff]  ;;  %v4510_v27 = vld [vmem:[#allocation9 + $0x8b8] sm:$0xff]  ;;  %v10671_v28 = vcombine.low %v4498_v14, %v4502_v17 }
 0x461   : > { %7890 = vmatprep.subr.bf16.mxu1 %v10584_v21  ;;  %v4469_v21 = vld [vmem:[#allocation9 + $0x770] sm:$0xff] }
 0x462   : > { %v10637_v50 = vcombine.low %v4465_v35, %v4469_v21 }
 0x463   : > { %7727 = vmatpush1.bf16.msra.mxu0 %v10581_v41  ;;  %v10638_v41 = vcombine.high %v4465_v35, %v4469_v21  ;;  %v4514_v35 = vld [vmem:[#allocation9 + $0x8d8] sm:$0xff] }
 0x464   : > { %7891 = vmatpush1.bf16.msra.mxu1 %v10583_v36  ;;  %7728 = vmatprep.subr.bf16.mxu0 %v10590_v42  ;;  %v10640_v36 = vcombine.high %v4466_v22, %v4470_v38  ;;  %v4473_v42 = vld [vmem:[#allocation9 + $0x790] sm:$0xff]  ;;  %v4518_v21 = vld [vmem:[#allocation9 + $0x8f8] sm:$0xff] }
 0x465   : > { %7892 = vmatprep.subr.bf16.mxu1 %v10592_v43  ;;  %v4477_v43 = vld [vmem:[#allocation9 + $0x7b0] sm:$0xff] }
 0x466   : > { %v10645_v60 = vcombine.low %v4473_v42, %v4477_v43 }
 0x467   : > { %7729 = vmatpush1.bf16.msra.mxu0 %v10589_v46  ;;  %v10646_v46 = vcombine.high %v4473_v42, %v4477_v43  ;;  %v4526_v42 = vld [vmem:[#allocation9 + $0x938] sm:$0xff]  ;;  %v10687_v43 = vcombine.low %v4514_v35, %v4518_v21 }
 0x468   : > { %7893 = vmatpush1.bf16.msra.mxu1 %v10591_v51  ;;  %7730 = vmatprep.subr.bf16.mxu0 %v10598_v52  ;;  %v10648_v51 = vcombine.high %v4474_v44, %v4478_v45  ;;  %v4481_v52 = vld [vmem:[#allocation9 + $0x7d0] sm:$0xff] }
 0x469   : > { %7894 = vmatprep.subr.bf16.mxu1 %v10600_v55  ;;  %v4485_v55 = vld [vmem:[#allocation9 + $0x7f0] sm:$0xff] }
 0x46a   : > { %v10653_v2 = vcombine.low %v4481_v52, %v4485_v55 }
 0x46b   : > { %7731 = vmatpush1.bf16.msra.mxu0 %v10597_v58  ;;  %v10654_v58 = vcombine.high %v4481_v52, %v4485_v55 }
 0x46c   : > { %7895 = vmatpush1.bf16.msra.mxu1 %v10599_v4  ;;  %7732 = vmatprep.subr.bf16.mxu0 %v10606_v62  ;;  %v10656_v4 = vcombine.high %v4482_v56, %v4486_v59  ;;  %v4489_v62 = vld [vmem:[#allocation9 + $0x810] sm:$0xff] }
 0x46d   : > { %7896 = vmatprep.subr.bf16.mxu1 %v10608_v5  ;;  %v4493_v5 = vld [vmem:[#allocation9 + $0x830] sm:$0xff] }
 0x46e   : > { %v10661_v10 = vcombine.low %v4489_v62, %v4493_v5 }
 0x46f   : > { %7733 = vmatpush1.bf16.msra.mxu0 %v10605_v13  ;;  %v10662_v13 = vcombine.high %v4489_v62, %v4493_v5 }
 0x470   : > { %7897 = vmatpush1.bf16.msra.mxu1 %v10607_v6  ;;  %7734 = vmatprep.subr.bf16.mxu0 %v10614_v11  ;;  %v10664_v6 = vcombine.high %v4490_v63, %v4494_v0  ;;  %v4497_v11 = vld [vmem:[#allocation9 + $0x850] sm:$0xff] }
 0x471   : > { %7898 = vmatprep.subr.bf16.mxu1 %v10616_v7  ;;  %v4501_v7 = vld [vmem:[#allocation9 + $0x870] sm:$0xff] }
 0x472   : > { %v10669_v8 = vcombine.low %v4497_v11, %v4501_v7 }
 0x473   : > { %7735 = vmatpush1.bf16.msra.mxu0 %v10613_v20  ;;  %v10670_v20 = vcombine.high %v4497_v11, %v4501_v7 }
 0x474   : > { %7899 = vmatpush1.bf16.msra.mxu1 %v10615_v23  ;;  %7736 = vmatprep.subr.bf16.mxu0 %v10622_v24  ;;  %v4505_v23 = vld [vmem:[#allocation9 + $0x890] sm:$0xff] }
 0x475   : > { %7900 = vmatprep.subr.bf16.mxu1 %v10624_v25  ;;  %v4509_v24 = vld [vmem:[#allocation9 + $0x8b0] sm:$0xff]  ;;  %v10672_v25 = vcombine.high %v4498_v14, %v4502_v17 }
 0x476   : > { %v10677_v22 = vcombine.low %v4505_v23, %v4509_v24  ;;  %v4553_v17 = vld [vmem:[#allocation9 + $0xa10] sm:$0xff] }
 0x477   : > { %7737 = vmatpush1.bf16.msra.mxu0 %v10621_v30  ;;  %v10678_v30 = vcombine.high %v4505_v23, %v4509_v24  ;;  %v4558_v23 = vld [vmem:[#allocation9 + $0xa38] sm:$0xff] }
 0x478   : > { %7901 = vmatpush1.bf16.msra.mxu1 %v10623_v31  ;;  %7738 = vmatprep.subr.bf16.mxu0 %v10630_v49  ;;  %v10680_v31 = vcombine.high %v4506_v26, %v4510_v27  ;;  %v4513_v49 = vld [vmem:[#allocation9 + $0x8d0] sm:$0xff] }
 0x479   : > { %7902 = vmatprep.subr.bf16.mxu1 %v10632_v33  ;;  %v4517_v33 = vld [vmem:[#allocation9 + $0x8f0] sm:$0xff] }
 0x47a   : > { %v10686_v38 = vcombine.high %v4513_v49, %v4517_v33 }
 0x47b   : > { %7739 = vmatpush1.bf16.msra.mxu0 %v10629_v39  ;;  %v10688_v39 = vcombine.high %v4514_v35, %v4518_v21 }
 0x47c   : > { %7903 = vmatpush1.bf16.msra.mxu1 %v10631_v40  ;;  %7740 = vmatprep.subr.bf16.mxu0 %v10638_v41  ;;  %v4521_v40 = vld [vmem:[#allocation9 + $0x910] sm:$0xff] }
 0x47d   : > { %7904 = vmatprep.subr.bf16.mxu1 %v10640_v36  ;;  %v4525_v41 = vld [vmem:[#allocation9 + $0x930] sm:$0xff]  ;;  %v4522_v36 = vld [vmem:[#allocation9 + $0x918] sm:$0xff] }
 0x47e   : > { %v10694_v44 = vcombine.high %v4521_v40, %v4525_v41  ;;  %v10696_v45 = vcombine.high %v4522_v36, %v4526_v42  ;;  %v10693_v52 = vcombine.low %v4521_v40, %v4525_v41  ;;  %v10695_v55 = vcombine.low %v4522_v36, %v4526_v42 }
 0x47f   : > { %7741 = vmatpush1.bf16.msra.mxu0 %v10637_v50  ;;  %v4529_v50 = vld [vmem:[#allocation9 + $0x950] sm:$0xff] }
 0x480   : > { %7905 = vmatpush1.bf16.msra.mxu1 %v10639_v9  ;;  %7742 = vmatprep.subr.bf16.mxu0 %v10646_v46  ;;  %v4533_v9 = vld [vmem:[#allocation9 + $0x970] sm:$0xff]  ;;  %v4530_v46 = vld [vmem:[#allocation9 + $0x958] sm:$0xff] }
 0x481   : > { %7906 = vmatprep.subr.bf16.mxu1 %v10648_v51  ;;  %v4534_v51 = vld [vmem:[#allocation9 + $0x978] sm:$0xff]  ;;  %v10702_v56 = vcombine.high %v4529_v50, %v4533_v9  ;;  %v10701_v62 = vcombine.low %v4529_v50, %v4533_v9 }
 0x482   : > { %v10704_v59 = vcombine.high %v4530_v46, %v4534_v51  ;;  %v10703_v5 = vcombine.low %v4530_v46, %v4534_v51 }
 0x483   : > { %7743 = vmatpush1.bf16.msra.mxu0 %v10645_v60  ;;  %v4537_v60 = vld [vmem:[#allocation9 + $0x990] sm:$0xff] }
 0x484   : > { %7907 = vmatpush1.bf16.msra.mxu1 %v10647_v61  ;;  %7744 = vmatprep.subr.bf16.mxu0 %v10654_v58  ;;  %v4541_v61 = vld [vmem:[#allocation9 + $0x9b0] sm:$0xff]  ;;  %v4538_v58 = vld [vmem:[#allocation9 + $0x998] sm:$0xff] }
 0x485   : > { %7908 = vmatprep.subr.bf16.mxu1 %v10656_v4  ;;  %v4542_v4 = vld [vmem:[#allocation9 + $0x9b8] sm:$0xff]  ;;  %v10710_v63 = vcombine.high %v4537_v60, %v4541_v61  ;;  %v10709_v11 = vcombine.low %v4537_v60, %v4541_v61 }
 0x486   : > { %v10712_v0 = vcombine.high %v4538_v58, %v4542_v4  ;;  %v10711_v7 = vcombine.low %v4538_v58, %v4542_v4 }
 0x487   : > { %7745 = vmatpush1.bf16.msra.mxu0 %v10653_v2  ;;  %v4545_v2 = vld [vmem:[#allocation9 + $0x9d0] sm:$0xff] }
 0x488   : > { %7909 = vmatpush1.bf16.msra.mxu1 %v10655_v3  ;;  %7755 = vmatprep.subr.bf16.mxu0 %v10662_v13  ;;  %v4549_v3 = vld [vmem:[#allocation9 + $0x9f0] sm:$0xff]  ;;  %v4546_v13 = vld [vmem:[#allocation9 + $0x9d8] sm:$0xff] }
 0x489   : > { %7919 = vmatprep.subr.bf16.mxu1 %v10664_v6  ;;  %v4550_v6 = vld [vmem:[#allocation9 + $0x9f8] sm:$0xff]  ;;  %v10717_v24 = vcombine.low %v4545_v2, %v4549_v3 }
 0x48a   : > { %7747 = vmatmul.mubr.bf16.vlgmr.msra.gmra.mrb[12].mxu0 %v12462_v34  ;;  %v10720_v14 = vcombine.high %v4546_v13, %v4550_v6 }
 0x48b   : > { %7911 = vmatmul.mubr.bf16.vlgmr.msra.gmra.mrb[12].mxu1 %v12462_v34  ;;  %7756 = vmatpush1.bf16.msra.mxu0 %v10661_v10  ;;  %v10679_v34 = vcombine.low %v4506_v26, %v4510_v27  ;;  %v10718_v10 = vcombine.high %v4545_v2, %v4549_v3 }
 0x48c   : > { %7787 = vmatprep.mubr.bf16.mxu0 %v12482_v16  ;;  %7920 = vmatpush1.bf16.msra.mxu1 %v10663_v18  ;;  %v4557_v18 = vld [vmem:[#allocation9 + $0xa30] sm:$0xff] }
 0x48d   : > { %7951 = vmatprep.mubr.bf16.mxu1 %v12482_v16  ;;  %7757 = vmatprep.subr.bf16.mxu0 %v10670_v20  ;;  %v10685_v16 = vcombine.low %v4513_v49, %v4517_v33  ;;  %v4554_v20 = vld [vmem:[#allocation9 + $0xa18] sm:$0xff]  ;;  %v10726_v26 = vcombine.high %v4553_v17, %v4557_v18  ;;  %v10725_v49 = vcombine.low %v4553_v17, %v4557_v18 }
 0x48e   : > { %7921 = vmatprep.subr.bf16.mxu1 %v10672_v25  ;;  %v10719_v25 = vcombine.low %v4546_v13, %v4550_v6  ;;  %v10728_v27 = vcombine.high %v4554_v20, %v4558_v23  ;;  %v10727_v33 = vcombine.low %v4554_v20, %v4558_v23 }
 0x48f   : > { %7758 = vmatpush1.bf16.msra.mxu0 %v10669_v8  ;;  %v4561_v8 = vld [vmem:[#allocation9 + $0xa50] sm:$0xff] }
 0x490   : > { %7922 = vmatpush1.bf16.msra.mxu1 %v10671_v28  ;;  %7759 = vmatprep.subr.bf16.mxu0 %v10678_v30  ;;  %v4565_v28 = vld [vmem:[#allocation9 + $0xa70] sm:$0xff]  ;;  %v4562_v30 = vld [vmem:[#allocation9 + $0xa58] sm:$0xff] }
 0x491   : > { %7923 = vmatprep.subr.bf16.mxu1 %v10680_v31  ;;  %v4566_v31 = vld [vmem:[#allocation9 + $0xa78] sm:$0xff]  ;;  %v10734_v35 = vcombine.high %v4561_v8, %v4565_v28  ;;  %v10733_v40 = vcombine.low %v4561_v8, %v4565_v28 }
 0x492   : > { %v10736_v21 = vcombine.high %v4562_v30, %v4566_v31  ;;  %v10735_v41 = vcombine.low %v4562_v30, %v4566_v31 }
 0x493   : > { %7760 = vmatpush1.bf16.msra.mxu0 %v10677_v22  ;;  %v4569_v22 = vld [vmem:[#allocation9 + $0xa90] sm:$0xff] }
 0x494   : > { %7924 = vmatpush1.bf16.msra.mxu1 %v10679_v34  ;;  %7761 = vmatprep.subr.bf16.mxu0 %v10686_v38  ;;  %v4573_v34 = vld [vmem:[#allocation9 + $0xab0] sm:$0xff]  ;;  %v4570_v38 = vld [vmem:[#allocation9 + $0xa98] sm:$0xff] }
 0x495   : > { %7925 = vmatprep.subr.bf16.mxu1 %v10688_v39  ;;  %v4574_v39 = vld [vmem:[#allocation9 + $0xab8] sm:$0xff]  ;;  %v10742_v36 = vcombine.high %v4569_v22, %v4573_v34  ;;  %v10741_v50 = vcombine.low %v4569_v22, %v4573_v34 }
 0x496   : > { %v10744_v42 = vcombine.high %v4570_v38, %v4574_v39  ;;  %v10743_v9 = vcombine.low %v4570_v38, %v4574_v39 }
 0x497   : > { %7762 = vmatpush1.bf16.msra.mxu0 %v10685_v16  ;;  %v4577_v16 = vld [vmem:[#allocation9 + $0xad0] sm:$0xff] }
 0x498   : > { %7926 = vmatpush1.bf16.msra.mxu1 %v10687_v43  ;;  %7763 = vmatprep.subr.bf16.mxu0 %v10694_v44  ;;  %v4581_v43 = vld [vmem:[#allocation9 + $0xaf0] sm:$0xff]  ;;  %v4578_v44 = vld [vmem:[#allocation9 + $0xad8] sm:$0xff] }
 0x499   : > { %7927 = vmatprep.subr.bf16.mxu1 %v10696_v45  ;;  %v4582_v45 = vld [vmem:[#allocation9 + $0xaf8] sm:$0xff]  ;;  %v10750_v46 = vcombine.high %v4577_v16, %v4581_v43  ;;  %v10749_v60 = vcombine.low %v4577_v16, %v4581_v43 }
 0x49a   : > { %v10752_v51 = vcombine.high %v4578_v44, %v4582_v45  ;;  %v10751_v61 = vcombine.low %v4578_v44, %v4582_v45  ;;  %v4630_v16 = vld [vmem:[#allocation9 + $0xc78] sm:$0xff]  ;;  %v4633_v45 = vld [vmem:[#allocation9 + $0xc90] sm:$0xff] }
 0x49b   : > { %7764 = vmatpush1.bf16.msra.mxu0 %v10693_v52  ;;  %v4585_v52 = vld [vmem:[#allocation9 + $0xb10] sm:$0xff] }
 0x49c   : > { %7928 = vmatpush1.bf16.msra.mxu1 %v10695_v55  ;;  %7765 = vmatprep.subr.bf16.mxu0 %v10702_v56  ;;  %v4589_v55 = vld [vmem:[#allocation9 + $0xb30] sm:$0xff]  ;;  %v4586_v56 = vld [vmem:[#allocation9 + $0xb18] sm:$0xff] }
 0x49d   : > { %7929 = vmatprep.subr.bf16.mxu1 %v10704_v59  ;;  %v4590_v59 = vld [vmem:[#allocation9 + $0xb38] sm:$0xff]  ;;  %v10758_v58 = vcombine.high %v4585_v52, %v4589_v55  ;;  %v10757_v2 = vcombine.low %v4585_v52, %v4589_v55 }
 0x49e   : > { %v10760_v4 = vcombine.high %v4586_v56, %v4590_v59  ;;  %v10759_v3 = vcombine.low %v4586_v56, %v4590_v59 }
 0x49f   : > { %7766 = vmatpush1.bf16.msra.mxu0 %v10701_v62  ;;  %v4593_v62 = vld [vmem:[#allocation9 + $0xb50] sm:$0xff] }
 0x4a0   : > { %7930 = vmatpush1.bf16.msra.mxu1 %v10703_v5  ;;  %7767 = vmatprep.subr.bf16.mxu0 %v10710_v63  ;;  %v4597_v5 = vld [vmem:[#allocation9 + $0xb70] sm:$0xff]  ;;  %v4594_v63 = vld [vmem:[#allocation9 + $0xb58] sm:$0xff] }
 0x4a1   : > { %7931 = vmatprep.subr.bf16.mxu1 %v10712_v0  ;;  %v4598_v0 = vld [vmem:[#allocation9 + $0xb78] sm:$0xff]  ;;  %v10766_v13 = vcombine.high %v4593_v62, %v4597_v5  ;;  %v10765_v17 = vcombine.low %v4593_v62, %v4597_v5 }
 0x4a2   : > { %v10768_v6 = vcombine.high %v4594_v63, %v4598_v0  ;;  %v10767_v18 = vcombine.low %v4594_v63, %v4598_v0  ;;  %v4649_v0 = vld [vmem:[#allocation9 + $0xd10] sm:$0xff] }
 0x4a3   : > { %7768 = vmatpush1.bf16.msra.mxu0 %v10709_v11  ;;  %v4601_v11 = vld [vmem:[#allocation9 + $0xb90] sm:$0xff] }
 0x4a4   : > { %7932 = vmatpush1.bf16.msra.mxu1 %v10711_v7  ;;  %7769 = vmatprep.subr.bf16.mxu0 %v10718_v10  ;;  %v4605_v7 = vld [vmem:[#allocation9 + $0xbb0] sm:$0xff]  ;;  %v4602_v10 = vld [vmem:[#allocation9 + $0xb98] sm:$0xff] }
 0x4a5   : > { %7933 = vmatprep.subr.bf16.mxu1 %v10720_v14  ;;  %v4606_v14 = vld [vmem:[#allocation9 + $0xbb8] sm:$0xff]  ;;  %v10774_v20 = vcombine.high %v4601_v11, %v4605_v7  ;;  %v10773_v8 = vcombine.low %v4601_v11, %v4605_v7 }
 0x4a6   : > { %v10776_v23 = vcombine.high %v4602_v10, %v4606_v14  ;;  %v10775_v28 = vcombine.low %v4602_v10, %v4606_v14  ;;  %v4657_v10 = vld [vmem:[#allocation9 + $0xd50] sm:$0xff] }
 0x4a7   : > { %7770 = vmatpush1.bf16.msra.mxu0 %v10717_v24  ;;  %v4609_v24 = vld [vmem:[#allocation9 + $0xbd0] sm:$0xff] }
 0x4a8   : > { %7934 = vmatpush1.bf16.msra.mxu1 %v10719_v25  ;;  %7771 = vmatprep.subr.bf16.mxu0 %v10726_v26  ;;  %v4613_v25 = vld [vmem:[#allocation9 + $0xbf0] sm:$0xff]  ;;  %v4610_v26 = vld [vmem:[#allocation9 + $0xbd8] sm:$0xff] }
 0x4a9   : > { %7935 = vmatprep.subr.bf16.mxu1 %v10728_v27  ;;  %v4614_v27 = vld [vmem:[#allocation9 + $0xbf8] sm:$0xff]  ;;  %v10782_v30 = vcombine.high %v4609_v24, %v4613_v25  ;;  %v10781_v22 = vcombine.low %v4609_v24, %v4613_v25  ;;  %v4661_v14 = vld [vmem:[#allocation9 + $0xd70] sm:$0xff] }
 0x4aa   : > { %v10784_v31 = vcombine.high %v4610_v26, %v4614_v27  ;;  %v10783_v34 = vcombine.low %v4610_v26, %v4614_v27  ;;  %v10830_v25 = vcombine.high %v4657_v10, %v4661_v14  ;;  %v4665_v27 = vld [vmem:[#allocation9 + $0xd90] sm:$0xff] }
 0x4ab   : > { %7772 = vmatpush1.bf16.msra.mxu0 %v10725_v49  ;;  %v4617_v49 = vld [vmem:[#allocation9 + $0xc10] sm:$0xff] }
 0x4ac   : > { %7936 = vmatpush1.bf16.msra.mxu1 %v10727_v33  ;;  %7773 = vmatprep.subr.bf16.mxu0 %v10734_v35  ;;  %v4621_v33 = vld [vmem:[#allocation9 + $0xc30] sm:$0xff]  ;;  %v4618_v35 = vld [vmem:[#allocation9 + $0xc18] sm:$0xff] }
 0x4ad   : > { %7937 = vmatprep.subr.bf16.mxu1 %v10736_v21  ;;  %v4622_v21 = vld [vmem:[#allocation9 + $0xc38] sm:$0xff]  ;;  %v10790_v38 = vcombine.high %v4617_v49, %v4621_v33 }
 0x4ae   : > { %v10792_v39 = vcombine.high %v4618_v35, %v4622_v21  ;;  %v10791_v43 = vcombine.low %v4618_v35, %v4622_v21  ;;  %v10829_v21 = vcombine.low %v4657_v10, %v4661_v14  ;;  %v4694_v10 = vld [vmem:[#allocation9 + $0xe78] sm:$0xff] }
 0x4af   : > { %7774 = vmatpush1.bf16.msra.mxu0 %v10733_v40  ;;  %v4625_v40 = vld [vmem:[#allocation9 + $0xc50] sm:$0xff] }
 0x4b0   : > { %7938 = vmatpush1.bf16.msra.mxu1 %v10735_v41  ;;  %7775 = vmatprep.subr.bf16.mxu0 %v10742_v36  ;;  %v4629_v41 = vld [vmem:[#allocation9 + $0xc70] sm:$0xff]  ;;  %v10789_v36 = vcombine.low %v4617_v49, %v4621_v33  ;;  %v4670_v49 = vld [vmem:[#allocation9 + $0xdb8] sm:$0xff] }
 0x4b1   : > { %7939 = vmatprep.subr.bf16.mxu1 %v10744_v42  ;;  %v4626_v42 = vld [vmem:[#allocation9 + $0xc58] sm:$0xff]  ;;  %v10798_v44 = vcombine.high %v4625_v40, %v4629_v41  ;;  %v10797_v52 = vcombine.low %v4625_v40, %v4629_v41  ;;  %v4677_v40 = vld [vmem:[#allocation9 + $0xdf0] sm:$0xff] }
 0x4b2   : > { %v10799_v55 = vcombine.low %v4626_v42, %v4630_v16 }
 0x4b3   : > { %7776 = vmatpush1.bf16.msra.mxu0 %v10741_v50  ;;  %v4637_v50 = vld [vmem:[#allocation9 + $0xcb0] sm:$0xff] }
 0x4b4   : > { %7940 = vmatpush1.bf16.msra.mxu1 %v10743_v9  ;;  %7777 = vmatprep.subr.bf16.mxu0 %v10750_v46  ;;  %v10800_v9 = vcombine.high %v4626_v42, %v4630_v16  ;;  %v4634_v46 = vld [vmem:[#allocation9 + $0xc98] sm:$0xff]  ;;  %v10806_v56 = vcombine.high %v4633_v45, %v4637_v50  ;;  %v10805_v62 = vcombine.low %v4633_v45, %v4637_v50 }
 0x4b5   : > { %7941 = vmatprep.subr.bf16.mxu1 %v10752_v51  ;;  %v4638_v51 = vld [vmem:[#allocation9 + $0xcb8] sm:$0xff] }
 0x4b6   : > { %v10808_v59 = vcombine.high %v4634_v46, %v4638_v51 }
 0x4b7   : > { %7778 = vmatpush1.bf16.msra.mxu0 %v10749_v60  ;;  %v4641_v60 = vld [vmem:[#allocation9 + $0xcd0] sm:$0xff] }
 0x4b8   : > { %7942 = vmatpush1.bf16.msra.mxu1 %v10751_v61  ;;  %7779 = vmatprep.subr.bf16.mxu0 %v10758_v58  ;;  %v4645_v61 = vld [vmem:[#allocation9 + $0xcf0] sm:$0xff]  ;;  %v4642_v58 = vld [vmem:[#allocation9 + $0xcd8] sm:$0xff] }
 0x4b9   : > { %7943 = vmatprep.subr.bf16.mxu1 %v10760_v4  ;;  %v4646_v4 = vld [vmem:[#allocation9 + $0xcf8] sm:$0xff]  ;;  %v10814_v5 = vcombine.high %v4641_v60, %v4645_v61 }
 0x4ba   : > { %v10816_v63 = vcombine.high %v4642_v58, %v4646_v4 }
 0x4bb   : > { %7780 = vmatpush1.bf16.msra.mxu0 %v10757_v2  ;;  %v4653_v2 = vld [vmem:[#allocation9 + $0xd30] sm:$0xff] }
 0x4bc   : > { %7944 = vmatpush1.bf16.msra.mxu1 %v10759_v3  ;;  %7781 = vmatprep.subr.bf16.mxu0 %v10766_v13  ;;  %v4650_v3 = vld [vmem:[#allocation9 + $0xd18] sm:$0xff]  ;;  %v10822_v11 = vcombine.high %v4649_v0, %v4653_v2 }
 0x4bd   : > { %7945 = vmatprep.subr.bf16.mxu1 %v10768_v6  ;;  %v4654_v13 = vld [vmem:[#allocation9 + $0xd38] sm:$0xff]  ;;  %v10815_v6 = vcombine.low %v4642_v58, %v4646_v4  ;;  %v4681_v4 = vld [vmem:[#allocation9 + $0xe10] sm:$0xff] }
 0x4be   : > { %v10824_v7 = vcombine.high %v4650_v3, %v4654_v13  ;;  %v10823_v24 = vcombine.low %v4650_v3, %v4654_v13 }
 0x4bf   : > { %7782 = vmatpush1.bf16.msra.mxu0 %v10765_v17  ;;  %v4658_v17 = vld [vmem:[#allocation9 + $0xd58] sm:$0xff] }
 0x4c0   : > { %7946 = vmatpush1.bf16.msra.mxu1 %v10767_v18  ;;  %7783 = vmatprep.subr.bf16.mxu0 %v10774_v20  ;;  %v4662_v18 = vld [vmem:[#allocation9 + $0xd78] sm:$0xff]  ;;  %v10821_v20 = vcombine.low %v4649_v0, %v4653_v2 }
 0x4c1   : > { %7947 = vmatprep.subr.bf16.mxu1 %v10776_v23  ;;  %v12517_v23 = vld [vmem:[#allocation11] sm:$0xff]  ;;  %v10832_v26 = vcombine.high %v4658_v17, %v4662_v18 }
 0x4c2   : > { %v4752_v33 = vrot.slane %v12517_v23, %v965_v15  ;;  %v4760_v35 = vrot.slane %v12517_v23, %v973_v37  ;;  %v4674_v15 = vld [vmem:[#allocation9 + $0xdd8] sm:$0xff] }
 0x4c3   : > { %7784 = vmatpush1.bf16.msra.mxu0 %v10773_v8  ;;  %v4669_v8 = vld [vmem:[#allocation9 + $0xdb0] sm:$0xff] }
 0x4c4   : > { %7948 = vmatpush1.bf16.msra.mxu1 %v10775_v28  ;;  %7785 = vmatprep.subr.bf16.mxu0 %v10782_v30  ;;  %v4748_v28 = vrot.slane %v12517_v23, %v961_v29  ;;  %v4756_v30 = vrot.slane %v12517_v23, %v969_v53  ;;  %v10838_v29 = vcombine.high %v4665_v27, %v4669_v8 }
 0x4c5   : > { %7949 = vmatprep.subr.bf16.mxu1 %v10784_v31  ;;  %v4666_v31 = vld [vmem:[#allocation9 + $0xd98] sm:$0xff] }
 0x4c6   : > { %v10840_v53 = vcombine.high %v4666_v31, %v4670_v49 }
 0x4c7   : > { %7786 = vmatpush1.bf16.msra.mxu0 %v10781_v22  ;;  %v10831_v22 = vcombine.low %v4658_v17, %v4662_v18 }
 0x4c8   : > { %7950 = vmatpush1.bf16.msra.mxu1 %v10783_v34  ;;  %7796 = vmatprep.subr.bf16.mxu0 %v10790_v38 }
 0x4c9   : > { %7960 = vmatprep.subr.bf16.mxu1 %v10792_v39  ;;  %v4673_v39 = vld [vmem:[#allocation9 + $0xdd0] sm:$0xff] }
 0x4ca   : > { %7788 = vmatmul.mubr.bf16.vlgmr.msra.gmra.mrb[12].mxu0 %v12484_v19  ;;  %v10845_v2 = vcombine.low %v4673_v39, %v4677_v40 }
 0x4cb   : > { %7952 = vmatmul.mubr.bf16.vlgmr.msra.gmra.mrb[12].mxu1 %v12484_v19  ;;  %7797 = vmatpush1.bf16.msra.mxu0 %v10789_v36  ;;  %v10807_v19 = vcombine.low %v4634_v46, %v4638_v51 }
 0x4cc   : > { %7828 = vmatprep.mubr.bf16.mxu0 %v12488_v12  ;;  %7961 = vmatpush1.bf16.msra.mxu1 %v10791_v43  ;;  %v4678_v43 = vld [vmem:[#allocation9 + $0xdf8] sm:$0xff] }
 0x4cd   : > { %7992 = vmatprep.mubr.bf16.mxu1 %v12488_v12  ;;  %7798 = vmatprep.subr.bf16.mxu0 %v10798_v44  ;;  %v10813_v12 = vcombine.low %v4641_v60, %v4645_v61  ;;  %v10848_v58 = vcombine.high %v4674_v15, %v4678_v43  ;;  %v10847_v3 = vcombine.low %v4674_v15, %v4678_v43  ;;  %v4721_v43 = vld [vmem:[#allocation9 + $0xf50] sm:$0xff] }
 0x4ce   : > { %7962 = vmatprep.subr.bf16.mxu1 %v10800_v9  ;;  %v10837_v9 = vcombine.low %v4665_v27, %v4669_v8  ;;  %v4702_v27 = vld [vmem:[#allocation9 + $0xeb8] sm:$0xff] }
 0x4cf   : > { %7799 = vmatpush1.bf16.msra.mxu0 %v10797_v52 }
 0x4d0   : > { %7963 = vmatpush1.bf16.msra.mxu1 %v10799_v55  ;;  %7800 = vmatprep.subr.bf16.mxu0 %v10806_v56  ;;  %v10839_v56 = vcombine.low %v4666_v31, %v4670_v49  ;;  %v4705_v49 = vld [vmem:[#allocation9 + $0xed0] sm:$0xff] }
 0x4d1   : > { %7964 = vmatprep.subr.bf16.mxu1 %v10808_v59  ;;  %v10846_v59 = vcombine.high %v4673_v39, %v4677_v40  ;;  %v4717_v39 = vld [vmem:[#allocation9 + $0xf30] sm:$0xff]  ;;  %v4714_v40 = vld [vmem:[#allocation9 + $0xf18] sm:$0xff] }
 0x4d3   : > { %7801 = vmatpush1.bf16.msra.mxu0 %v10805_v62  ;;  %v4685_v62 = vld [vmem:[#allocation9 + $0xe30] sm:$0xff] }
 0x4d4   : > { %7965 = vmatpush1.bf16.msra.mxu1 %v10807_v19  ;;  %7802 = vmatprep.subr.bf16.mxu0 %v10814_v5  ;;  %v4682_v19 = vld [vmem:[#allocation9 + $0xe18] sm:$0xff]  ;;  %v10854_v13 = vcombine.high %v4681_v4, %v4685_v62  ;;  %v10853_v14 = vcombine.low %v4681_v4, %v4685_v62  ;;  %v4737_v62 = vld [vmem:[#allocation9 + $0xfd0] sm:$0xff] }
 0x4d5   : > { %7966 = vmatprep.subr.bf16.mxu1 %v10816_v63  ;;  %v4686_v5 = vld [vmem:[#allocation9 + $0xe38] sm:$0xff] }
 0x4d6   : > { %v10855_v17 = vcombine.low %v4682_v19, %v4686_v5 }
 0x4d7   : > { %7803 = vmatpush1.bf16.msra.mxu0 %v10813_v12  ;;  %v10856_v12 = vcombine.high %v4682_v19, %v4686_v5  ;;  %v4741_v19 = vld [vmem:[#allocation9 + $0xff0] sm:$0xff]  ;;  %v4738_v5 = vld [vmem:[#allocation9 + $0xfd8] sm:$0xff] }
 0x4d8   : > { %7967 = vmatpush1.bf16.msra.mxu1 %v10815_v6  ;;  %7804 = vmatprep.subr.bf16.mxu0 %v10822_v11  ;;  %v4689_v6 = vld [vmem:[#allocation9 + $0xe50] sm:$0xff] }
 0x4d9   : > { %7968 = vmatprep.subr.bf16.mxu1 %v10824_v7  ;;  %v4693_v11 = vld [vmem:[#allocation9 + $0xe70] sm:$0xff]  ;;  %v4690_v7 = vld [vmem:[#allocation9 + $0xe58] sm:$0xff] }
 0x4da   : > { %v10862_v18 = vcombine.high %v4689_v6, %v4693_v11  ;;  %v10861_v8 = vcombine.low %v4689_v6, %v4693_v11  ;;  %v4764_v11 = vrot.slane %v12517_v23, %v977_v32 }
 0x4db   : > { %7805 = vmatpush1.bf16.msra.mxu0 %v10821_v20  ;;  %v10864_v20 = vcombine.high %v4690_v7, %v4694_v10 }
 0x4dc   : > { %7969 = vmatpush1.bf16.msra.mxu1 %v10823_v24  ;;  %7806 = vmatprep.subr.bf16.mxu0 %v10830_v25  ;;  %v4697_v24 = vld [vmem:[#allocation9 + $0xe90] sm:$0xff] }
 0x4dd   : > { %v7502_v34 = vpop.f32.mrb[8].mxu0  ;;  %v7666_v38 = vpop.f32.mrb[8].mxu1  ;;  %7970 = vmatprep.subr.bf16.mxu1 %v10832_v26  ;;  %v4701_v25 = vld [vmem:[#allocation9 + $0xeb0] sm:$0xff]  ;;  %v4698_v26 = vld [vmem:[#allocation9 + $0xe98] sm:$0xff] }
 0x4de   : > { %v11223_v41 = vadd.f32 %v7502_v34, %v4748_v28  ;;  %v11225_v36 = vadd.f32 %v7666_v38, %v4756_v30  ;;  %v7504_v42 = vpop.f32.mrb[9].mxu0  ;;  %v7668_v16 = vpop.f32.mrb[9].mxu1  ;;  %v10863_v28 = vcombine.low %v4690_v7, %v4694_v10  ;;  %v10870_v30 = vcombine.high %v4697_v24, %v4701_v25 }
 0x4df   : > { %v11224_v44 = vadd.f32 %v7504_v42, %v4752_v33  ;;  %v11226_v45 = vadd.f32 %v7668_v16, %v4760_v35  ;;  %v7506_v37 = vpop.f32.mrb[10].mxu0  ;;  %v7670_v50 = vpop.f32.mrb[10].mxu1  ;;  %7807 = vmatpush1.bf16.msra.mxu0 %v10829_v21  ;;  %v10872_v31 = vcombine.high %v4698_v26, %v4702_v27  ;;  %v4709_v33 = vld [vmem:[#allocation9 + $0xef0] sm:$0xff]  ;;  %v4706_v35 = vld [vmem:[#allocation9 + $0xed8] sm:$0xff]  ;;  %v4772_v7 = vrot.slane %v12517_v23, %v985_v57 }
 0x4e0   : > { %v8001_v46 = vmax.f32 %v11223_v41, 0.0  ;;  %v8003_v51 = vmax.f32 %v11225_v36, 0.0  ;;  %7971 = vmatpush1.bf16.msra.mxu1 %v10831_v22  ;;  %v7507_v52 = vpop.f32.mrb[11].mxu0  ;;  %v7671_v55 = vpop.f32.mrb[11].mxu1  ;;  %7808 = vmatprep.subr.bf16.mxu0 %v10838_v29  ;;  %v4710_v21 = vld [vmem:[#allocation9 + $0xef8] sm:$0xff]  ;;  %v10869_v22 = vcombine.low %v4697_v24, %v4701_v25  ;;  %v10871_v29 = vcombine.low %v4698_v26, %v4702_v27 }
 0x4e1   : > { %v8002_v60 = vmax.f32 %v11224_v44, 0.0  ;;  %v8004_v61 = vmax.f32 %v11226_v45, 0.0  ;;  %7972 = vmatprep.subr.bf16.mxu1 %v10840_v53  ;;  %v10878_v34 = vcombine.high %v4705_v49, %v4709_v33  ;;  %v10880_v38 = vcombine.high %v4706_v35, %v4710_v21  ;;  %v4713_v53 = vld [vmem:[#allocation9 + $0xf10] sm:$0xff]  ;;  %v4718_v41 = vld [vmem:[#allocation9 + $0xf38] sm:$0xff] }
 0x4e2   : > { %v10877_v36 = vcombine.low %v4705_v49, %v4709_v33  ;;  %v10879_v42 = vcombine.low %v4706_v35, %v4710_v21  ;;  %v10886_v16 = vcombine.high %v4713_v53, %v4717_v39  ;;  %v10888_v15 = vcombine.high %v4714_v40, %v4718_v41  ;;  %v4725_v44 = vld [vmem:[#allocation9 + $0xf70] sm:$0xff]  ;;  %v4722_v45 = vld [vmem:[#allocation9 + $0xf58] sm:$0xff] }
 0x4e3   : > { %v11122_v63 = vpack.c.bf16 %v8002_v60, %v8001_v46  ;;  %v11123_v0 = vpack.c.bf16 %v8004_v61, %v8003_v51  ;;  %7809 = vmatpush1.bf16.msra.mxu0 %v10837_v9  ;;  %v4726_v37 = vld [vmem:[#allocation9 + $0xf78] sm:$0xff]  ;;  %v10885_v50 = vcombine.low %v4713_v53, %v4717_v39  ;;  %v10887_v9 = vcombine.low %v4714_v40, %v4718_v41  ;;  %v4729_v52 = vld [vmem:[#allocation9 + $0xf90] sm:$0xff] }
 0x4e4   : > { %7973 = vmatpush1.bf16.msra.mxu1 %v10839_v56  ;;  %7810 = vmatprep.subr.bf16.mxu0 %v10846_v59  ;;  %v10894_v46 = vcombine.high %v4721_v43, %v4725_v44  ;;  %v10896_v51 = vcombine.high %v4722_v45, %v4726_v37  ;;  %v4733_v55 = vld [vmem:[#allocation9 + $0xfb0] sm:$0xff]  ;;  %v4730_v56 = vld [vmem:[#allocation9 + $0xf98] sm:$0xff]  ;;  %v10893_v60 = vcombine.low %v4721_v43, %v4725_v44 }
 0x4e5   : > { %8041 = vst [vmem:[#allocation2] sm:$0xff] %v11122_v63  ;;  %8042 = vst [vmem:[#allocation2 + $0x8] sm:$0xff] %v11123_v0  ;;  %7974 = vmatprep.subr.bf16.mxu1 %v10848_v58  ;;  %v4734_v59 = vld [vmem:[#allocation9 + $0xfb8] sm:$0xff]  ;;  %v10895_v61 = vcombine.low %v4722_v45, %v4726_v37  ;;  %v10902_v58 = vcombine.high %v4729_v52, %v4733_v55  ;;  %v10901_v0 = vcombine.low %v4729_v52, %v4733_v55 }
 0x4e6   : > { %v10904_v4 = vcombine.high %v4730_v56, %v4734_v59  ;;  %v4742_v63 = vld [vmem:[#allocation9 + $0xff8] sm:$0xff]  ;;  %v4768_v10 = vrot.slane %v12517_v23, %v981_v47 }
 0x4e7   : > { %7811 = vmatpush1.bf16.msra.mxu0 %v10845_v2  ;;  %v10903_v2 = vcombine.low %v4730_v56, %v4734_v59  ;;  %v10911_v6 = vcombine.low %v4738_v5, %v4742_v63 }
 0x4e8   : > { %7975 = vmatpush1.bf16.msra.mxu1 %v10847_v3  ;;  %7812 = vmatprep.subr.bf16.mxu0 %v10854_v13  ;;  %v10910_v3 = vcombine.high %v4737_v62, %v4741_v19  ;;  %v10912_v13 = vcombine.high %v4738_v5, %v4742_v63 }
 0x4e9   : > { %7976 = vmatprep.subr.bf16.mxu1 %v10856_v12  ;;  %v10909_v12 = vcombine.low %v4737_v62, %v4741_v19 }
 0x4eb   : > { %7813 = vmatpush1.bf16.msra.mxu0 %v10853_v14  ;;  %v4776_v14 = vrot.slane %v12517_v23, %v989_v48 }
 0x4ec   : > { %7977 = vmatpush1.bf16.msra.mxu1 %v10855_v17  ;;  %7814 = vmatprep.subr.bf16.mxu0 %v10862_v18 }
 0x4ed   : > { %7978 = vmatprep.subr.bf16.mxu1 %v10864_v20 }
 0x4ef   : > { %7815 = vmatpush1.bf16.msra.mxu0 %v10861_v8 }
 0x4f0   : > { %7979 = vmatpush1.bf16.msra.mxu1 %v10863_v28  ;;  %7816 = vmatprep.subr.bf16.mxu0 %v10870_v30 }
 0x4f1   : > { %7980 = vmatprep.subr.bf16.mxu1 %v10872_v31 }
 0x4f3   : > { %7817 = vmatpush1.bf16.msra.mxu0 %v10869_v22 }
 0x4f4   : > { %7981 = vmatpush1.bf16.msra.mxu1 %v10871_v29  ;;  %7818 = vmatprep.subr.bf16.mxu0 %v10878_v34 }
 0x4f5   : > { %7982 = vmatprep.subr.bf16.mxu1 %v10880_v38 }
 0x4f7   : > { %7819 = vmatpush1.bf16.msra.mxu0 %v10877_v36 }
 0x4f8   : > { %7983 = vmatpush1.bf16.msra.mxu1 %v10879_v42  ;;  %7820 = vmatprep.subr.bf16.mxu0 %v10886_v16 }
 0x4f9   : > { %7984 = vmatprep.subr.bf16.mxu1 %v10888_v15 }
 0x4fb   : > { %7821 = vmatpush1.bf16.msra.mxu0 %v10885_v50 }
 0x4fc   : > { %7985 = vmatpush1.bf16.msra.mxu1 %v10887_v9  ;;  %7822 = vmatprep.subr.bf16.mxu0 %v10894_v46 }
 0x4fd   : > { %7986 = vmatprep.subr.bf16.mxu1 %v10896_v51 }
 0x4ff   : > { %7823 = vmatpush1.bf16.msra.mxu0 %v10893_v60 }
 0x500   : > { %7987 = vmatpush1.bf16.msra.mxu1 %v10895_v61  ;;  %7824 = vmatprep.subr.bf16.mxu0 %v10902_v58 }
 0x501   : > { %7988 = vmatprep.subr.bf16.mxu1 %v10904_v4 }
 0x503   : > { %7825 = vmatpush1.bf16.msra.mxu0 %v10901_v0 }
 0x504   : > { %7989 = vmatpush1.bf16.msra.mxu1 %v10903_v2  ;;  %7826 = vmatprep.subr.bf16.mxu0 %v10910_v3 }
 0x505   : > { %7990 = vmatprep.subr.bf16.mxu1 %v10912_v13 }
 0x507   : > { %7827 = vmatpush1.bf16.msra.mxu0 %v10909_v12 }
 0x508   : > { %7991 = vmatpush1.bf16.msra.mxu1 %v10911_v6 }
 0x50a   : > { %7829 = vmatmul.mubr.bf16.vlgmr.msra.gmra.mrb[12].mxu0 %v12499_v54 }
 0x50b   : > { %7993 = vmatmul.mubr.bf16.vlgmr.msra.gmra.mrb[12].mxu1 %v12499_v54 }
 0x5dd   : > { %v7830_v17 = vpop.f32.mrb[12].mxu0 }
 0x5de   : > { %v11227_v18 = vadd.f32 %v7830_v17, %v4764_v11  ;;  %v7994_v20 = vpop.f32.mrb[12].mxu1  ;;  %v7832_v54 = vpop.f32.mrb[13].mxu0 }
 0x5df   : > { %v11229_v24 = vadd.f32 %v7994_v20, %v4772_v7  ;;  %v11228_v25 = vadd.f32 %v7832_v54, %v4768_v10  ;;  %v7996_v26 = vpop.f32.mrb[13].mxu1  ;;  %v7834_v32 = vpop.f32.mrb[14].mxu0 }
 0x5e0   : > { %v8005_v27 = vmax.f32 %v11227_v18, 0.0  ;;  %v11230_v8 = vadd.f32 %v7996_v26, %v4776_v14  ;;  %v7998_v28 = vpop.f32.mrb[14].mxu1  ;;  %v7835_v57 = vpop.f32.mrb[15].mxu0 }
 0x5e1   : > { %v8007_v30 = vmax.f32 %v11229_v24, 0.0  ;;  %v8006_v31 = vmax.f32 %v11228_v25, 0.0  ;;  %v7999_v49 = vpop.f32.mrb[15].mxu1 }
 0x5e2   : > { %v8008_v47 = vmax.f32 %v11230_v8, 0.0 }
 0x5e3   : > { %v11124_v33 = vpack.c.bf16 %v8006_v31, %v8005_v27 }
 0x5e4   : > { %v11125_v1 = vpack.c.bf16 %v8008_v47, %v8007_v30 }
 0x5e5   : > { %8043 = vst [vmem:[#allocation2 + $0x10] sm:$0xff] %v11124_v33 }
 0x5e6   : > { %8044 = vst [vmem:[#allocation2 + $0x18] sm:$0xff] %v11125_v1 }
 0x5e7 PF: > { %v11468_v48 = vld [vmem:[%s12357_s29 + $0x4] ss:$12 sps:$4 sm:$0xff]   ;;  %v11472_v35 = vld [vmem:[%s12357_s29] ss:$12 sps:$4 sm:$0xff]   ;;  %v11474_v22 = vld [vmem:[%s12357_s29 + $0x1c] ss:$12 sps:$4 sm:$0xff]  }
 0x5e8   : > { %v11470_v23 = vld [vmem:[%s12357_s29 + $0x184] ss:$12 sps:$4 sm:$0xff]   ;;  %9374 = vmatprep.subr.bf16.mxu1 %v11468_v48  ;;  %v11473_v21 = vld [vmem:[%s12357_s29 + $0x180] ss:$12 sps:$4 sm:$0xff]   ;;  %v11476_v29 = vld [vmem:[%s12357_s29 + $0x19c] ss:$12 sps:$4 sm:$0xff]  }
 0x5e9   : > { %9415 = vmatprep.subr.bf16.mxu0 %v11470_v23  ;;  %9375 = vmatpush1.bf16.msra.mxu1 %v11472_v35  ;;  %v11478_v34 = vld [vmem:[%s12357_s29 + $0x18] ss:$12 sps:$4 sm:$0xff]   ;;  %v11480_v53 = vld [vmem:[%s12357_s29 + $0x34] ss:$12 sps:$4 sm:$0xff]   ;;  %v11484_v40 = vld [vmem:[%s12357_s29 + $0x30] ss:$12 sps:$4 sm:$0xff]  }
 0x5ea   : > { %9416 = vmatpush1.bf16.msra.mxu0 %v11473_v21  ;;  %9376 = vmatprep.subr.bf16.mxu1 %v11474_v22  ;;  %v11479_v38 = vld [vmem:[%s12357_s29 + $0x198] ss:$12 sps:$4 sm:$0xff]   ;;  %v11482_v39 = vld [vmem:[%s12357_s29 + $0x1b4] ss:$12 sps:$4 sm:$0xff]   ;;  %v11485_v41 = vld [vmem:[%s12357_s29 + $0x1b0] ss:$12 sps:$4 sm:$0xff]  }
 0x5eb   : > { %9417 = vmatprep.subr.bf16.mxu0 %v11476_v29  ;;  %v11486_v36 = vld [vmem:[%s12357_s29 + $0x4c] ss:$12 sps:$4 sm:$0xff]   ;;  %v11490_v16 = vld [vmem:[%s12357_s29 + $0x48] ss:$12 sps:$4 sm:$0xff]   ;;  %v11492_v43 = vld [vmem:[%s12357_s29 + $0x64] ss:$12 sps:$4 sm:$0xff]  }
 0x5ec   : > { %v11488_v42 = vld [vmem:[%s12357_s29 + $0x1cc] ss:$12 sps:$4 sm:$0xff]   ;;  %v11491_v15 = vld [vmem:[%s12357_s29 + $0x1c8] ss:$12 sps:$4 sm:$0xff]   ;;  %v11494_v44 = vld [vmem:[%s12357_s29 + $0x1e4] ss:$12 sps:$4 sm:$0xff]  }
 0x5ed   : > { %9377 = vmatpush1.bf16.msra.mxu1 %v11478_v34  ;;  %v11496_v45 = vld [vmem:[%s12357_s29 + $0x60] ss:$12 sps:$4 sm:$0xff]   ;;  %v11498_v50 = vld [vmem:[%s12357_s29 + $0x7c] ss:$12 sps:$4 sm:$0xff]   ;;  %v11502_v46 = vld [vmem:[%s12357_s29 + $0x78] ss:$12 sps:$4 sm:$0xff]  }
 0x5ee   : > { %9418 = vmatpush1.bf16.msra.mxu0 %v11479_v38  ;;  %9378 = vmatprep.subr.bf16.mxu1 %v11480_v53  ;;  %v11497_v37 = vld [vmem:[%s12357_s29 + $0x1e0] ss:$12 sps:$4 sm:$0xff]   ;;  %v11500_v9 = vld [vmem:[%s12357_s29 + $0x1fc] ss:$12 sps:$4 sm:$0xff]   ;;  %v11503_v51 = vld [vmem:[%s12357_s29 + $0x1f8] ss:$12 sps:$4 sm:$0xff]  }
 0x5ef   : > { %9419 = vmatprep.subr.bf16.mxu0 %v11482_v39  ;;  %v11504_v52 = vld [vmem:[%s12357_s29 + $0x94] ss:$12 sps:$4 sm:$0xff]   ;;  %v11508_v56 = vld [vmem:[%s12357_s29 + $0x90] ss:$12 sps:$4 sm:$0xff]   ;;  %v11510_v60 = vld [vmem:[%s12357_s29 + $0xac] ss:$12 sps:$4 sm:$0xff]  }
 0x5f0   : > { %v11506_v55 = vld [vmem:[%s12357_s29 + $0x214] ss:$12 sps:$4 sm:$0xff]   ;;  %v11509_v59 = vld [vmem:[%s12357_s29 + $0x210] ss:$12 sps:$4 sm:$0xff]   ;;  %v11512_v61 = vld [vmem:[%s12357_s29 + $0x22c] ss:$12 sps:$4 sm:$0xff]  }
 0x5f1   : > { %9379 = vmatpush1.bf16.msra.mxu1 %v11484_v40  ;;  %v11514_v58 = vld [vmem:[%s12357_s29 + $0xa8] ss:$12 sps:$4 sm:$0xff]   ;;  %v11516_v62 = vld [vmem:[%s12357_s29 + $0xc4] ss:$12 sps:$4 sm:$0xff]   ;;  %v11520_v5 = vld [vmem:[%s12357_s29 + $0xc0] ss:$12 sps:$4 sm:$0xff]  }
 0x5f2   : > { %9420 = vmatpush1.bf16.msra.mxu0 %v11485_v41  ;;  %9380 = vmatprep.subr.bf16.mxu1 %v11486_v36  ;;  %v11515_v4 = vld [vmem:[%s12357_s29 + $0x228] ss:$12 sps:$4 sm:$0xff]   ;;  %v11518_v19 = vld [vmem:[%s12357_s29 + $0x244] ss:$12 sps:$4 sm:$0xff]   ;;  %v11521_v63 = vld [vmem:[%s12357_s29 + $0x240] ss:$12 sps:$4 sm:$0xff]  }
 0x5f3   : > { %9421 = vmatprep.subr.bf16.mxu0 %v11488_v42  ;;  %v11522_v0 = vld [vmem:[%s12357_s29 + $0xdc] ss:$12 sps:$4 sm:$0xff]   ;;  %v11526_v3 = vld [vmem:[%s12357_s29 + $0xd8] ss:$12 sps:$4 sm:$0xff]   ;;  %v11528_v12 = vld [vmem:[%s12357_s29 + $0xf4] ss:$12 sps:$4 sm:$0xff]  }
 0x5f4   : > { %v11524_v2 = vld [vmem:[%s12357_s29 + $0x25c] ss:$12 sps:$4 sm:$0xff]   ;;  %v11527_v13 = vld [vmem:[%s12357_s29 + $0x258] ss:$12 sps:$4 sm:$0xff]   ;;  %v11530_v6 = vld [vmem:[%s12357_s29 + $0x274] ss:$12 sps:$4 sm:$0xff]  }
 0x5f5   : > { %9381 = vmatpush1.bf16.msra.mxu1 %v11490_v16  ;;  %v11532_v11 = vld [vmem:[%s12357_s29 + $0xf0] ss:$12 sps:$4 sm:$0xff]   ;;  %v11534_v10 = vld [vmem:[%s12357_s29 + $0x10c] ss:$12 sps:$4 sm:$0xff]   ;;  %v11538_v17 = vld [vmem:[%s12357_s29 + $0x108] ss:$12 sps:$4 sm:$0xff]  }
 0x5f6   : > { %9422 = vmatpush1.bf16.msra.mxu0 %v11491_v15  ;;  %9382 = vmatprep.subr.bf16.mxu1 %v11492_v43  ;;  %v11533_v7 = vld [vmem:[%s12357_s29 + $0x270] ss:$12 sps:$4 sm:$0xff]   ;;  %v11536_v14 = vld [vmem:[%s12357_s29 + $0x28c] ss:$12 sps:$4 sm:$0xff]   ;;  %v11539_v24 = vld [vmem:[%s12357_s29 + $0x288] ss:$12 sps:$4 sm:$0xff]  }
 0x5f7   : > { %9423 = vmatprep.subr.bf16.mxu0 %v11494_v44  ;;  %v8045_v18 = vld [vmem:[#allocation2] sm:$0xff]  ;;  %v8046_v54 = vld [vmem:[#allocation2 + $0x8] sm:$0xff]  ;;  %v11544_v27 = vld [vmem:[%s12357_s29 + $0x120] ss:$12 sps:$4 sm:$0xff]   ;;  %s11126_s30 = smul.u32 384, %s12018_s27  ;;  %s9718_s9 = sshll.u32 %s12367_s8, 4  ;;  %s12783_s9 = int_to_ptr.vmem [resolvable:$true] %s9718_s9 }
 0x5f8   : > { %v12592_v20 = vcombine.high %v8045_v18, %v8045_v18  ;;  %v11540_v25 = vld [vmem:[%s12357_s29 + $0x124] ss:$12 sps:$4 sm:$0xff]   ;;  %v12596_v26 = vcombine.high %v8046_v54, %v8046_v54  ;;  %v11545_v8 = vld [vmem:[%s12357_s29 + $0x2a0] ss:$12 sps:$4 sm:$0xff]   ;;  %v11546_v28 = vld [vmem:[%s12357_s29 + $0x13c] ss:$12 sps:$4 sm:$0xff]   ;;  %v12617_v34 = vcombine.low %v8045_v18, %v8045_v18  ;;  %v12619_v38 = vcombine.low %v8046_v54, %v8046_v54 }
 0x5f9   : > { %9383 = vmatpush1.bf16.msra.mxu1 %v11496_v45  ;;  %v11542_v32 = vld [vmem:[%s12357_s29 + $0x2a4] ss:$12 sps:$4 sm:$0xff]   ;;  %v11548_v57 = vld [vmem:[%s12357_s29 + $0x2bc] ss:$12 sps:$4 sm:$0xff]   ;;  %v11552_v49 = vld [vmem:[%s12357_s29 + $0x154] ss:$12 sps:$4 sm:$0xff]   ;;  %s12781_s27 = scalar_lea.hbm %s12838_s7, %s11126_s30 }
 0x5fa   : > { %9424 = vmatpush1.bf16.msra.mxu0 %v11497_v37  ;;  %9384 = vmatprep.subr.bf16.mxu1 %v11498_v50  ;;  %v11550_v30 = vld [vmem:[%s12357_s29 + $0x138] ss:$12 sps:$4 sm:$0xff]   ;;  %v11554_v47 = vld [vmem:[%s12357_s29 + $0x2d4] ss:$12 sps:$4 sm:$0xff]   ;;  %v11556_v33 = vld [vmem:[%s12357_s29 + $0x150] ss:$12 sps:$4 sm:$0xff]  }
 0x5fb   : > { %9425 = vmatprep.subr.bf16.mxu0 %v11500_v9  ;;  %9406 = vmatprep.mubr.bf16.mxu1 %v12592_v20  ;;  %v11551_v31 = vld [vmem:[%s12357_s29 + $0x2b8] ss:$12 sps:$4 sm:$0xff]   ;;  %v11557_v1 = vld [vmem:[%s12357_s29 + $0x2d0] ss:$12 sps:$4 sm:$0xff]   ;;  %v11562_v35 = vld [vmem:[%s12357_s29 + $0x168] ss:$12 sps:$4 sm:$0xff]  }
 0x5fc   : > { %9447 = vmatprep.mubr.bf16.mxu0 %v12596_v26  ;;  %v11558_v48 = vld [vmem:[%s12357_s29 + $0x16c] ss:$12 sps:$4 sm:$0xff]   ;;  %v11563_v21 = vld [vmem:[%s12357_s29 + $0x2e8] ss:$12 sps:$4 sm:$0xff]   ;;  %v11570_v22 = vld [vmem:[%s12357_s29 + $0x304] ss:$12 sps:$4 sm:$0xff]  }
 0x5fd   : > { %9385 = vmatpush1.bf16.msra.mxu1 %v11502_v46  ;;  %v11560_v23 = vld [vmem:[%s12357_s29 + $0x2ec] ss:$12 sps:$4 sm:$0xff]   ;;  %v11571_v29 = vld [vmem:[%s12357_s29 + $0xc8] ss:$12 sps:$4 sm:$0xff]   ;;  %v11578_v43 = vld [vmem:[%s12357_s29 + $0x330] ss:$12 sps:$4 sm:$0xff]  }
 0x5fe   : > { %9426 = vmatpush1.bf16.msra.mxu0 %v11503_v51  ;;  %9386 = vmatprep.subr.bf16.mxu1 %v11504_v52  ;;  %v11568_v53 = vld [vmem:[%s12357_s29 + $0x300] ss:$12 sps:$4 sm:$0xff]   ;;  %v11572_v39 = vld [vmem:[%s12357_s29 + $0x8] ss:$12 sps:$4 sm:$0xff]   ;;  %v11573_v36 = vld [vmem:[%s12357_s29 + $0x318] ss:$12 sps:$4 sm:$0xff]  }
 0x5ff   : > { %9427 = vmatprep.subr.bf16.mxu0 %v11506_v55  ;;  %v11575_v40 = vld [vmem:[%s12357_s29 + $0x31c] ss:$12 sps:$4 sm:$0xff]   ;;  %v11576_v41 = vld [vmem:[%s12357_s29 + $0xe0] ss:$12 sps:$4 sm:$0xff]   ;;  %v11581_v15 = vld [vmem:[%s12357_s29 + $0xf8] ss:$12 sps:$4 sm:$0xff]  }
 0x600   : > { %v11577_v42 = vld [vmem:[%s12357_s29 + $0x20] ss:$12 sps:$4 sm:$0xff]   ;;  %v11582_v44 = vld [vmem:[%s12357_s29 + $0x38] ss:$12 sps:$4 sm:$0xff]   ;;  %v11586_v37 = vld [vmem:[%s12357_s29 + $0x110] ss:$12 sps:$4 sm:$0xff]  }
 0x601   : > { %9387 = vmatpush1.bf16.msra.mxu1 %v11508_v56  ;;  %v11580_v16 = vld [vmem:[%s12357_s29 + $0x334] ss:$12 sps:$4 sm:$0xff]   ;;  %v11585_v45 = vld [vmem:[%s12357_s29 + $0x34c] ss:$12 sps:$4 sm:$0xff]   ;;  %v11587_v9 = vld [vmem:[%s12357_s29 + $0x50] ss:$12 sps:$4 sm:$0xff]  }
 0x602   : > { %9428 = vmatpush1.bf16.msra.mxu0 %v11509_v59  ;;  %9388 = vmatprep.subr.bf16.mxu1 %v11510_v60  ;;  %v11583_v50 = vld [vmem:[%s12357_s29 + $0x348] ss:$12 sps:$4 sm:$0xff]   ;;  %v11590_v46 = vld [vmem:[%s12357_s29 + $0x364] ss:$12 sps:$4 sm:$0xff]   ;;  %v11588_v52 = vld [vmem:[%s12357_s29 + $0x360] ss:$12 sps:$4 sm:$0xff]  }
 0x603   : > { %9429 = vmatprep.subr.bf16.mxu0 %v11512_v61  ;;  %v11591_v51 = vld [vmem:[%s12357_s29 + $0x128] ss:$12 sps:$4 sm:$0xff]   ;;  %v11596_v59 = vld [vmem:[%s12357_s29 + $0x140] ss:$12 sps:$4 sm:$0xff]   ;;  %v11593_v60 = vld [vmem:[%s12357_s29 + $0x378] ss:$12 sps:$4 sm:$0xff]  }
 0x604   : > { %v11592_v55 = vld [vmem:[%s12357_s29 + $0x68] ss:$12 sps:$4 sm:$0xff]   ;;  %v11597_v61 = vld [vmem:[%s12357_s29 + $0x80] ss:$12 sps:$4 sm:$0xff]   ;;  %v11621_v54 = vld [vmem:[%s12357_s29 + $0x278] ss:$12 sps:$4 sm:$0xff]  }
 0x605   : > { %9389 = vmatpush1.bf16.msra.mxu1 %v11514_v58  ;;  %v11595_v56 = vld [vmem:[%s12357_s29 + $0x37c] ss:$12 sps:$4 sm:$0xff]   ;;  %v11600_v58 = vld [vmem:[%s12357_s29 + $0x394] ss:$12 sps:$4 sm:$0xff]   ;;  %s9702_s21 = scalar_lea.sflag [#allocation5], %s12354_s16  ;;  %s11932_s3 = scalar_lea.vmem %s12783_s9, 384 }
 0x606   : > { %9430 = vmatpush1.bf16.msra.mxu0 %v11515_v4  ;;  %9390 = vmatprep.subr.bf16.mxu1 %v11516_v62  ;;  %v11601_v4 = vld [vmem:[%s12357_s29 + $0x158] ss:$12 sps:$4 sm:$0xff]   ;;  %v11598_v62 = vld [vmem:[%s12357_s29 + $0x390] ss:$12 sps:$4 sm:$0xff]   ;;  %v11617_v18 = vld [vmem:[%s12357_s29 + $0x1a0] ss:$12 sps:$4 sm:$0xff]   ;;  %p11933_p13 = scmp.ne.s32.totalorder %s12783_s9, %s11932_s3 }
 0x607   : > { %9431 = vmatprep.subr.bf16.mxu0 %v11518_v19  ;;  %v11602_v19 = vld [vmem:[%s12357_s29 + $0x98] ss:$12 sps:$4 sm:$0xff]   ;;  %p12886_p2 = scmp.ne.s32.totalorder %s12869_s20, 0  ;;  %s12040_s24 = smov [#allocation15]  }
 0x608   : > { %s11936_s18 = sshll.u32 %s12040_s24, 4  ;;  %s11937_s18 = int_to_ptr.vmem [resolvable:$false] %s11936_s18 }
 0x609   : > { %9391 = vmatpush1.bf16.msra.mxu1 %v11520_v5  ;;  %v11605_v5 = vld [vmem:[%s12357_s29 + $0x3ac] ss:$12 sps:$4 sm:$0xff]   ;;  %p11934_p8 = pnand %p11933_p13, %p12886_p2  ;;  %s11938_s1 = scalar_lea.vmem %s11937_s18, 768 }
 0x60a   : > { %9432 = vmatpush1.bf16.msra.mxu0 %v11521_v63  ;;  %9392 = vmatprep.subr.bf16.mxu1 %v11522_v0  ;;  %v11606_v63 = vld [vmem:[%s12357_s29 + $0x170] ss:$12 sps:$4 sm:$0xff]   ;;  %v11603_v0 = vld [vmem:[%s12357_s29 + $0x3a8] ss:$12 sps:$4 sm:$0xff]   ;;  %p11939_p12 = scmp.lt.s32.totalorder %s12783_s9, %s11937_s18  ;;  %p11940_p11 = scmp.lt.s32.totalorder %s11938_s1, %s11932_s3 }
 0x60b   : > { %9433 = vmatprep.subr.bf16.mxu0 %v11524_v2  ;;  %v11607_v2 = vld [vmem:[%s12357_s29 + $0xb0] ss:$12 sps:$4 sm:$0xff]   ;;  %p11935_p4 = pneg %p11934_p8 }
 0x60c   : > { %p11941_p3 = por %p11940_p11, %p11939_p12 }
 0x60d   : > { %9393 = vmatpush1.bf16.msra.mxu1 %v11526_v3  ;;  %v11610_v3 = vld [vmem:[%s12357_s29 + $0x3c4] ss:$12 sps:$4 sm:$0xff]  }
 0x60e   : > { %9434 = vmatpush1.bf16.msra.mxu0 %v11527_v13  ;;  %9394 = vmatprep.subr.bf16.mxu1 %v11528_v12  ;;  %v11611_v13 = vld [vmem:[%s12357_s29 + $0x248] ss:$12 sps:$4 sm:$0xff]   ;;  %v11608_v12 = vld [vmem:[%s12357_s29 + $0x3c0] ss:$12 sps:$4 sm:$0xff]   ;;  %p11942_p0 = pnand %p11941_p3, %p11935_p4 }
 0x60f   : > { %9435 = vmatprep.subr.bf16.mxu0 %v11530_v6  ;;  %v11612_v6 = vld [vmem:[%s12357_s29 + $0x188] ss:$12 sps:$4 sm:$0xff]  }
 0x611   : > { %9395 = vmatpush1.bf16.msra.mxu1 %v11532_v11  ;;  %v11615_v11 = vld [vmem:[%s12357_s29 + $0x3dc] ss:$12 sps:$4 sm:$0xff]  }
 0x612   : > { %9436 = vmatpush1.bf16.msra.mxu0 %v11533_v7  ;;  %9396 = vmatprep.subr.bf16.mxu1 %v11534_v10  ;;  %v12659_v7 = vld [vmem:[#allocation2 + $0x10] sm:$0xff] }
 0x613   : > { %9437 = vmatprep.subr.bf16.mxu0 %v11536_v14  ;;  %v11616_v10 = vld [vmem:[%s12357_s29 + $0x260] ss:$12 sps:$4 sm:$0xff]   ;;  %v12664_v14 = vcombine.high %v12659_v7, %v12659_v7 }
 0x615   : > { %9397 = vmatpush1.bf16.msra.mxu1 %v11538_v17  ;;  %v11613_v17 = vld [vmem:[%s12357_s29 + $0x3d8] ss:$12 sps:$4 sm:$0xff]  }
 0x616   : > { %9438 = vmatpush1.bf16.msra.mxu0 %v11539_v24  ;;  %9398 = vmatprep.subr.bf16.mxu1 %v11540_v25  ;;  %v11618_v24 = vld [vmem:[%s12357_s29 + $0x3f0] ss:$12 sps:$4 sm:$0xff]   ;;  %v11622_v25 = vld [vmem:[%s12357_s29 + $0x1b8] ss:$12 sps:$4 sm:$0xff]  }
 0x617   : > { %9439 = vmatprep.subr.bf16.mxu0 %v11542_v32  ;;  %v11625_v32 = vld [vmem:[%s12357_s29 + $0x40c] ss:$12 sps:$4 sm:$0xff]  }
 0x619   : > { %9399 = vmatpush1.bf16.msra.mxu1 %v11544_v27  ;;  %v11626_v27 = vld [vmem:[%s12357_s29 + $0x290] ss:$12 sps:$4 sm:$0xff]  }
 0x61a   : > { %9440 = vmatpush1.bf16.msra.mxu0 %v11545_v8  ;;  %9400 = vmatprep.subr.bf16.mxu1 %v11546_v28  ;;  %v11623_v8 = vld [vmem:[%s12357_s29 + $0x408] ss:$12 sps:$4 sm:$0xff]   ;;  %v11627_v28 = vld [vmem:[%s12357_s29 + $0x1d0] ss:$12 sps:$4 sm:$0xff]  }
 0x61b   : > { %9441 = vmatprep.subr.bf16.mxu0 %v11548_v57  ;;  %v11631_v57 = vld [vmem:[%s12357_s29 + $0x2a8] ss:$12 sps:$4 sm:$0xff]  }
 0x61d   : > { %9401 = vmatpush1.bf16.msra.mxu1 %v11550_v30  ;;  %v11628_v30 = vld [vmem:[%s12357_s29 + $0x420] ss:$12 sps:$4 sm:$0xff]  }
 0x61e   : > { %9442 = vmatpush1.bf16.msra.mxu0 %v11551_v31  ;;  %9402 = vmatprep.subr.bf16.mxu1 %v11552_v49  ;;  %v11632_v31 = vld [vmem:[%s12357_s29 + $0x1e8] ss:$12 sps:$4 sm:$0xff]  }
 0x61f   : > { %9443 = vmatprep.subr.bf16.mxu0 %v11554_v47  ;;  %v11635_v49 = vld [vmem:[%s12357_s29 + $0x43c] ss:$12 sps:$4 sm:$0xff]   ;;  %v11636_v47 = vld [vmem:[%s12357_s29 + $0x2c0] ss:$12 sps:$4 sm:$0xff]  }
 0x621   : > { %9403 = vmatpush1.bf16.msra.mxu1 %v11556_v33  ;;  %v11633_v33 = vld [vmem:[%s12357_s29 + $0x438] ss:$12 sps:$4 sm:$0xff]  }
 0x622   : > { %9444 = vmatpush1.bf16.msra.mxu0 %v11557_v1  ;;  %9404 = vmatprep.subr.bf16.mxu1 %v11558_v48  ;;  %v11637_v1 = vld [vmem:[%s12357_s29 + $0x200] ss:$12 sps:$4 sm:$0xff]  }
 0x623   : > { %9445 = vmatprep.subr.bf16.mxu0 %v11560_v23  ;;  %v11640_v48 = vld [vmem:[%s12357_s29 + $0x454] ss:$12 sps:$4 sm:$0xff]   ;;  %v11641_v23 = vld [vmem:[%s12357_s29 + $0x2d8] ss:$12 sps:$4 sm:$0xff]  }
 0x625   : > { %9405 = vmatpush1.bf16.msra.mxu1 %v11562_v35  ;;  %v11638_v35 = vld [vmem:[%s12357_s29 + $0x450] ss:$12 sps:$4 sm:$0xff]  }
 0x626   : > { %9446 = vmatpush1.bf16.msra.mxu0 %v11563_v21  ;;  %11127 = vmatprep.subr.bf16.mxu1 %v11571_v29  ;;  %v11642_v21 = vld [vmem:[%s12357_s29 + $0x218] ss:$12 sps:$4 sm:$0xff]   ;;  %v11646_v29 = vld [vmem:[%s12357_s29 + $0x2f0] ss:$12 sps:$4 sm:$0xff]  }
 0x627   : > { %9456 = vmatprep.subr.bf16.mxu0 %v11570_v22  ;;  %v11645_v22 = vld [vmem:[%s12357_s29 + $0x46c] ss:$12 sps:$4 sm:$0xff]  }
 0x628   : > { %9407 = vmatmul.mubr.bf16.vlgmr.msra.gmra.mrb[0].mxu1 %v12617_v34 }
 0x629   : > { %9448 = vmatmul.mubr.bf16.vlgmr.msra.gmra.mrb[0].mxu0 %v12619_v38  ;;  %11128 = vmatpush3.bf16.msra.mxu1 %v11572_v39  ;;  %v11652_v39 = vld [vmem:[%s12357_s29 + $0x484] ss:$12 sps:$4 sm:$0xff]  }
 0x62a   : > { %9457 = vmatpush1.bf16.msra.mxu0 %v11568_v53  ;;  %11129 = vmatprep.subr.bf16.mxu1 %v11576_v41  ;;  %v11647_v53 = vld [vmem:[%s12357_s29 + $0x230] ss:$12 sps:$4 sm:$0xff]   ;;  %v11650_v41 = vld [vmem:[%s12357_s29 + $0x480] ss:$12 sps:$4 sm:$0xff]  }
 0x62b   : > { %9458 = vmatprep.subr.bf16.mxu0 %v11575_v40  ;;  %9570 = vmatprep.mubr.bf16.mxu1 %v12592_v20  ;;  %v11620_v20 = vld [vmem:[%s12357_s29 + $0x3f4] ss:$12 sps:$4 sm:$0xff]  }
 0x62c   : > { %9488 = vmatprep.mubr.bf16.mxu0 %v12664_v14  ;;  %v11653_v40 = vld [vmem:[%s12357_s29 + $0x3c8] ss:$12 sps:$4 sm:$0xff]  }
 0x62d   : > { %11130 = vmatpush3.bf16.msra.mxu1 %v11577_v42  ;;  %v11654_v42 = vld [vmem:[%s12357_s29 + $0x308] ss:$12 sps:$4 sm:$0xff]  }
 0x62e   : > { %9459 = vmatpush1.bf16.msra.mxu0 %v11573_v36  ;;  %11131 = vmatprep.subr.bf16.mxu1 %v11581_v15  ;;  %v12700_v36 = vcombine.low %v12659_v7, %v12659_v7  ;;  %v11658_v15 = vld [vmem:[%s12357_s29 + $0x3e0] ss:$12 sps:$4 sm:$0xff]   ;;  %v11692_v7 = vld [vmem:[%s12357_s29 + $0x544] ss:$12 sps:$4 sm:$0xff]  }
 0x62f   : > { %9460 = vmatprep.subr.bf16.mxu0 %v11580_v16  ;;  %v11657_v16 = vld [vmem:[%s12357_s29 + $0x49c] ss:$12 sps:$4 sm:$0xff]  }
 0x631   : > { %11132 = vmatpush3.bf16.msra.mxu1 %v11582_v44  ;;  %v11659_v44 = vld [vmem:[%s12357_s29 + $0x320] ss:$12 sps:$4 sm:$0xff]  }
 0x632   : > { %9461 = vmatpush1.bf16.msra.mxu0 %v11578_v43  ;;  %11133 = vmatprep.subr.bf16.mxu1 %v11586_v37  ;;  %v11655_v43 = vld [vmem:[%s12357_s29 + $0x498] ss:$12 sps:$4 sm:$0xff]  }
 0x633   : > { %9462 = vmatprep.subr.bf16.mxu0 %v11585_v45  ;;  %v11662_v45 = vld [vmem:[%s12357_s29 + $0x4b4] ss:$12 sps:$4 sm:$0xff]   ;;  %v11663_v37 = vld [vmem:[%s12357_s29 + $0x3f8] ss:$12 sps:$4 sm:$0xff]  }
 0x635   : > { %11134 = vmatpush3.bf16.msra.mxu1 %v11587_v9  ;;  %v11667_v9 = vld [vmem:[%s12357_s29 + $0x4cc] ss:$12 sps:$4 sm:$0xff]  }
 0x636   : > { %9463 = vmatpush1.bf16.msra.mxu0 %v11583_v50  ;;  %11135 = vmatprep.subr.bf16.mxu1 %v11591_v51  ;;  %v11660_v50 = vld [vmem:[%s12357_s29 + $0x4b0] ss:$12 sps:$4 sm:$0xff]   ;;  %v11665_v51 = vld [vmem:[%s12357_s29 + $0x4c8] ss:$12 sps:$4 sm:$0xff]  }
 0x637   : > { %9464 = vmatprep.subr.bf16.mxu0 %v11590_v46  ;;  %v11668_v46 = vld [vmem:[%s12357_s29 + $0x410] ss:$12 sps:$4 sm:$0xff]  }
 0x639   : > { %11136 = vmatpush3.bf16.msra.mxu1 %v11592_v55  ;;  %v11672_v55 = vld [vmem:[%s12357_s29 + $0x4e4] ss:$12 sps:$4 sm:$0xff]  }
 0x63a   : > { %9465 = vmatpush1.bf16.msra.mxu0 %v11588_v52  ;;  %11137 = vmatprep.subr.bf16.mxu1 %v11596_v59  ;;  %v11669_v52 = vld [vmem:[%s12357_s29 + $0x350] ss:$12 sps:$4 sm:$0xff]   ;;  %v11670_v59 = vld [vmem:[%s12357_s29 + $0x4e0] ss:$12 sps:$4 sm:$0xff]  }
 0x63b   : > { %9466 = vmatprep.subr.bf16.mxu0 %v11595_v56  ;;  %v11673_v56 = vld [vmem:[%s12357_s29 + $0x428] ss:$12 sps:$4 sm:$0xff]  }
 0x63d   : > { %11138 = vmatpush3.bf16.msra.mxu1 %v11597_v61  ;;  %v11677_v61 = vld [vmem:[%s12357_s29 + $0x4fc] ss:$12 sps:$4 sm:$0xff]  }
 0x63e   : > { %9467 = vmatpush1.bf16.msra.mxu0 %v11593_v60  ;;  %11139 = vmatprep.subr.bf16.mxu1 %v11601_v4  ;;  %v11674_v60 = vld [vmem:[%s12357_s29 + $0x368] ss:$12 sps:$4 sm:$0xff]   ;;  %v11675_v4 = vld [vmem:[%s12357_s29 + $0x4f8] ss:$12 sps:$4 sm:$0xff]  }
 0x63f   : > { %9468 = vmatprep.subr.bf16.mxu0 %v11600_v58  ;;  %v11678_v58 = vld [vmem:[%s12357_s29 + $0x440] ss:$12 sps:$4 sm:$0xff]  }
 0x641   : > { %11140 = vmatpush3.bf16.msra.mxu1 %v11602_v19  ;;  %v11682_v19 = vld [vmem:[%s12357_s29 + $0x514] ss:$12 sps:$4 sm:$0xff]  }
 0x642   : > { %9469 = vmatpush1.bf16.msra.mxu0 %v11598_v62  ;;  %11141 = vmatprep.subr.bf16.mxu1 %v11606_v63  ;;  %v11679_v62 = vld [vmem:[%s12357_s29 + $0x380] ss:$12 sps:$4 sm:$0xff]  }
 0x643   : > { %9470 = vmatprep.subr.bf16.mxu0 %v11605_v5  ;;  %v11683_v5 = vld [vmem:[%s12357_s29 + $0x458] ss:$12 sps:$4 sm:$0xff]   ;;  %v12728_v63 = vld [vmem:[#allocation2 + $0x18] sm:$0xff] }
 0x645   : > { %11142 = vmatpush3.bf16.msra.mxu1 %v11607_v2  ;;  %v11680_v2 = vld [vmem:[%s12357_s29 + $0x510] ss:$12 sps:$4 sm:$0xff]  }
 0x646   : > { %9471 = vmatpush1.bf16.msra.mxu0 %v11603_v0  ;;  %11149 = vmatprep.subr.bf16.mxu1 %v11611_v13  ;;  %v10924_v0 = vcombine.high %v12728_v63, %v12728_v63  ;;  %v11687_v13 = vld [vmem:[%s12357_s29 + $0x52c] ss:$12 sps:$4 sm:$0xff]  }
 0x647   : > { %9472 = vmatprep.subr.bf16.mxu0 %v11610_v3  ;;  %v11684_v3 = vld [vmem:[%s12357_s29 + $0x398] ss:$12 sps:$4 sm:$0xff]  }
 0x648   : > { %9571 = vmatmul.mubr.bf16.vlgmr.msra.gmra.mrb[4].mxu1 %v12617_v34  ;;  %v11643_v34 = vld [vmem:[%s12357_s29 + $0x468] ss:$12 sps:$4 sm:$0xff]  }
 0x649   : > { %11150 = vmatpush3.bf16.msra.mxu1 %v11612_v6  ;;  %9610 = vmatprep.mubr.bf16.mxu1 %v12596_v26  ;;  %v11630_v26 = vld [vmem:[%s12357_s29 + $0x424] ss:$12 sps:$4 sm:$0xff]   ;;  %v11685_v6 = vld [vmem:[%s12357_s29 + $0x528] ss:$12 sps:$4 sm:$0xff]  }
 0x64a   : > { %9473 = vmatpush1.bf16.msra.mxu0 %v11608_v12  ;;  %11151 = vmatprep.subr.bf16.mxu1 %v11616_v10  ;;  %v11688_v12 = vld [vmem:[%s12357_s29 + $0x470] ss:$12 sps:$4 sm:$0xff]   ;;  %v11693_v10 = vld [vmem:[%s12357_s29 + $0x548] ss:$12 sps:$4 sm:$0xff]  }
 0x64b   : > { %9474 = vmatprep.subr.bf16.mxu0 %v11615_v11  ;;  %v11689_v11 = vld [vmem:[%s12357_s29 + $0x3b0] ss:$12 sps:$4 sm:$0xff]  }
 0x64d   : > { %11152 = vmatpush3.bf16.msra.mxu1 %v11617_v18  ;;  %v11697_v18 = vld [vmem:[%s12357_s29 + $0x55c] ss:$12 sps:$4 sm:$0xff]  }
 0x64e   : > { %9475 = vmatpush1.bf16.msra.mxu0 %v11613_v17  ;;  %11153 = vmatprep.subr.bf16.mxu1 %v11621_v54  ;;  %v11694_v17 = vld [vmem:[%s12357_s29 + $0x488] ss:$12 sps:$4 sm:$0xff]   ;;  %v11695_v54 = vld [vmem:[%s12357_s29 + $0x558] ss:$12 sps:$4 sm:$0xff]  }
 0x64f   : > { %9476 = vmatprep.subr.bf16.mxu0 %v11620_v20  ;;  %v11698_v20 = vld [vmem:[%s12357_s29 + $0x560] ss:$12 sps:$4 sm:$0xff]  }
 0x651   : > { %11154 = vmatpush3.bf16.msra.mxu1 %v11622_v25  ;;  %v11702_v25 = vld [vmem:[%s12357_s29 + $0x574] ss:$12 sps:$4 sm:$0xff]  }
 0x652   : > { %9477 = vmatpush1.bf16.msra.mxu0 %v11618_v24  ;;  %11155 = vmatprep.subr.bf16.mxu1 %v11626_v27  ;;  %v11699_v24 = vld [vmem:[%s12357_s29 + $0x4a0] ss:$12 sps:$4 sm:$0xff]   ;;  %v11700_v27 = vld [vmem:[%s12357_s29 + $0x570] ss:$12 sps:$4 sm:$0xff]  }
 0x653   : > { %9478 = vmatprep.subr.bf16.mxu0 %v11625_v32  ;;  %v11703_v32 = vld [vmem:[%s12357_s29 + $0x578] ss:$12 sps:$4 sm:$0xff]  }
 0x655   : > { %11156 = vmatpush3.bf16.msra.mxu1 %v11627_v28  ;;  %v11707_v28 = vld [vmem:[%s12357_s29 + $0x58c] ss:$12 sps:$4 sm:$0xff]  }
 0x656   : > { %9479 = vmatpush1.bf16.msra.mxu0 %v11623_v8  ;;  %11157 = vmatprep.subr.bf16.mxu1 %v11631_v57  ;;  %v11704_v8 = vld [vmem:[%s12357_s29 + $0x4b8] ss:$12 sps:$4 sm:$0xff]   ;;  %v11705_v57 = vld [vmem:[%s12357_s29 + $0x588] ss:$12 sps:$4 sm:$0xff]  }
 0x657   : > { %9480 = vmatprep.subr.bf16.mxu0 %v11630_v26  ;;  %v11708_v26 = vld [vmem:[%s12357_s29 + $0x590] ss:$12 sps:$4 sm:$0xff]  }
 0x659   : > { %11158 = vmatpush3.bf16.msra.mxu1 %v11632_v31  ;;  %v11712_v31 = vld [vmem:[%s12357_s29 + $0x5a4] ss:$12 sps:$4 sm:$0xff]  }
 0x65a   : > { %9481 = vmatpush1.bf16.msra.mxu0 %v11628_v30  ;;  %11159 = vmatprep.subr.bf16.mxu1 %v11636_v47  ;;  %v11709_v30 = vld [vmem:[%s12357_s29 + $0x4d0] ss:$12 sps:$4 sm:$0xff]   ;;  %v11710_v47 = vld [vmem:[%s12357_s29 + $0x5a0] ss:$12 sps:$4 sm:$0xff]  }
 0x65b   : > { %9482 = vmatprep.subr.bf16.mxu0 %v11635_v49  ;;  %v11713_v49 = vld [vmem:[%s12357_s29 + $0x5a8] ss:$12 sps:$4 sm:$0xff]  }
 0x65d   : > { %11160 = vmatpush3.bf16.msra.mxu1 %v11637_v1  ;;  %v11717_v1 = vld [vmem:[%s12357_s29 + $0x5bc] ss:$12 sps:$4 sm:$0xff]  }
 0x65e   : > { %9483 = vmatpush1.bf16.msra.mxu0 %v11633_v33  ;;  %11161 = vmatprep.subr.bf16.mxu1 %v11641_v23  ;;  %v11714_v33 = vld [vmem:[%s12357_s29 + $0x4e8] ss:$12 sps:$4 sm:$0xff]   ;;  %v11715_v23 = vld [vmem:[%s12357_s29 + $0x5b8] ss:$12 sps:$4 sm:$0xff]  }
 0x65f   : > { %9484 = vmatprep.subr.bf16.mxu0 %v11640_v48  ;;  %v11718_v48 = vld [vmem:[%s12357_s29 + $0x5c0] ss:$12 sps:$4 sm:$0xff]  }
 0x661   : > { %11162 = vmatpush3.bf16.msra.mxu1 %v11642_v21  ;;  %v11722_v21 = vld [vmem:[%s12357_s29 + $0x5d4] ss:$12 sps:$4 sm:$0xff]  }
 0x662   : > { %9485 = vmatpush1.bf16.msra.mxu0 %v11638_v35  ;;  %11163 = vmatprep.subr.bf16.mxu1 %v11646_v29  ;;  %v11719_v35 = vld [vmem:[%s12357_s29 + $0x500] ss:$12 sps:$4 sm:$0xff]   ;;  %v11720_v29 = vld [vmem:[%s12357_s29 + $0x5d0] ss:$12 sps:$4 sm:$0xff]  }
 0x663   : > { %9486 = vmatprep.subr.bf16.mxu0 %v11645_v22  ;;  %v11723_v22 = vld [vmem:[%s12357_s29 + $0x5d8] ss:$12 sps:$4 sm:$0xff]  }
 0x665   : > { %11164 = vmatpush3.bf16.msra.mxu1 %v11647_v53  ;;  %v11727_v53 = vld [vmem:[%s12357_s29 + $0x5ec] ss:$12 sps:$4 sm:$0xff]  }
 0x666   : > { %9487 = vmatpush1.bf16.msra.mxu0 %v11643_v34  ;;  %11171 = vmatprep.subr.bf16.mxu1 %v11653_v40  ;;  %v11724_v34 = vld [vmem:[%s12357_s29 + $0x518] ss:$12 sps:$4 sm:$0xff]   ;;  %v11725_v40 = vld [vmem:[%s12357_s29 + $0x5e8] ss:$12 sps:$4 sm:$0xff]  }
 0x667   : > { %9497 = vmatprep.subr.bf16.mxu0 %v11652_v39  ;;  %v11728_v39 = vld [vmem:[%s12357_s29 + $0x5f0] ss:$12 sps:$4 sm:$0xff]  }
 0x668   : > { %9611 = vmatmul.mubr.bf16.vlgmr.msra.gmra.mrb[8].mxu1 %v12619_v38  ;;  %v11664_v38 = vld [vmem:[%s12357_s29 + $0x338] ss:$12 sps:$4 sm:$0xff]  }
 0x669   : > { %9489 = vmatmul.mubr.bf16.vlgmr.msra.gmra.mrb[0].mxu0 %v12700_v36  ;;  %11172 = vmatpush3.bf16.msra.mxu1 %v11654_v42 }
 0x66a   : > { %9498 = vmatpush1.bf16.msra.mxu0 %v11650_v41  ;;  %11173 = vmatprep.subr.bf16.mxu1 %v11658_v15  ;;  %v11729_v41 = vld [vmem:[%s12357_s29 + $0x530] ss:$12 sps:$4 sm:$0xff]  }
 0x66b   : > { %9499 = vmatprep.subr.bf16.mxu0 %v11657_v16  ;;  %9650 = vmatprep.mubr.bf16.mxu1 %v12664_v14  ;;  %v11690_v14 = vld [vmem:[%s12357_s29 + $0x540] ss:$12 sps:$4 sm:$0xff]  }
 0x66c   : > { %9529 = vmatprep.mubr.bf16.mxu0 %v10924_v0 }
 0x66d   : > { %11174 = vmatpush3.bf16.msra.mxu1 %v11659_v44 }
 0x66e   : > { %9500 = vmatpush1.bf16.msra.mxu0 %v11655_v43  ;;  %11175 = vmatprep.subr.bf16.mxu1 %v11663_v37 }
 0x66f   : > { %9501 = vmatprep.subr.bf16.mxu0 %v11662_v45 }
 0x671   : > { %11176 = vmatpush3.bf16.msra.mxu1 %v11664_v38 }
 0x672   : > { %9502 = vmatpush1.bf16.msra.mxu0 %v11660_v50  ;;  %11177 = vmatprep.subr.bf16.mxu1 %v11668_v46 }
 0x673   : > { %9503 = vmatprep.subr.bf16.mxu0 %v11667_v9  ;;  %v8307_v9 = vlaneseq }
 0x675   : > { %11178 = vmatpush3.bf16.msra.mxu1 %v11669_v52  ;;  %v8308_v46 = vshrl.u32 %v8307_v9, 7  ;;  %v8305_v52 = vld [vmem:[%s12365_s22] sm:$0x7] }
 0x676   : > { %9504 = vmatpush1.bf16.msra.mxu0 %v11665_v51  ;;  %11179 = vmatprep.subr.bf16.mxu1 %v11673_v56 }
 0x677   : > { %9505 = vmatprep.subr.bf16.mxu0 %v11672_v55  ;;  %v8317_v51 = vsub.s32 2, %v8308_v46 }
 0x679   : > { %11180 = vmatpush3.bf16.msra.mxu1 %v11674_v60  ;;  %v8318_v55 = vrot.slane %v8305_v52, %v8317_v51 }
 0x67a   : > { %9506 = vmatpush1.bf16.msra.mxu0 %v11670_v59  ;;  %11181 = vmatprep.subr.bf16.mxu1 %v11678_v58 }
 0x67b   : > { %9507 = vmatprep.subr.bf16.mxu0 %v11677_v61 }
 0x67d   : > { %11182 = vmatpush3.bf16.msra.mxu1 %v11679_v62 }
 0x67e   : > { %9508 = vmatpush1.bf16.msra.mxu0 %v11675_v4  ;;  %11183 = vmatprep.subr.bf16.mxu1 %v11683_v5 }
 0x67f   : > { %9509 = vmatprep.subr.bf16.mxu0 %v11682_v19 }
 0x681   : > { %11184 = vmatpush3.bf16.msra.mxu1 %v11684_v3 }
 0x682   : > { %9510 = vmatpush1.bf16.msra.mxu0 %v11680_v2  ;;  %11185 = vmatprep.subr.bf16.mxu1 %v11688_v12  ;;  %v8313_v12 = vsub.s32 1, %v8308_v46 }
 0x683   : > { %9511 = vmatprep.subr.bf16.mxu0 %v11687_v13  ;;  %v8309_v13 = vsub.s32 0, %v8308_v46 }
 0x685   : > { %11186 = vmatpush3.bf16.msra.mxu1 %v11689_v11  ;;  %v8314_v11 = vrot.slane %v8305_v52, %v8313_v12 }
 0x686   : > { %9512 = vmatpush1.bf16.msra.mxu0 %v11685_v6  ;;  %11193 = vmatprep.subr.bf16.mxu1 %v11693_v10  ;;  %v8310_v6 = vrot.slane %v8305_v52, %v8309_v13 }
 0x687   : > { %9513 = vmatprep.subr.bf16.mxu0 %v11692_v7 }
 0x688   : > { %9651 = vmatmul.mubr.bf16.vlgmr.msra.gmra.mrb[12].mxu1 %v12700_v36  ;;  %v10923_v36 = vcombine.low %v12728_v63, %v12728_v63 }
 0x689   : > { %11194 = vmatpush3.bf16.msra.mxu1 %v11694_v17  ;;  %9690 = vmatprep.mubr.bf16.mxu1 %v10924_v0 }
 0x68a   : > { %9514 = vmatpush1.bf16.msra.mxu0 %v11690_v14  ;;  %11195 = vmatprep.subr.bf16.mxu1 %v11698_v20 }
 0x68b   : > { %9515 = vmatprep.subr.bf16.mxu0 %v11697_v18 }
 0x68d   : > { %11196 = vmatpush3.bf16.msra.mxu1 %v11699_v24 }
 0x68e   : > { %9516 = vmatpush1.bf16.msra.mxu0 %v11695_v54  ;;  %11197 = vmatprep.subr.bf16.mxu1 %v11703_v32 }
 0x68f   : > { %9517 = vmatprep.subr.bf16.mxu0 %v11702_v25 }
 0x691   : > { %11198 = vmatpush3.bf16.msra.mxu1 %v11704_v8 }
 0x692   : > { %9518 = vmatpush1.bf16.msra.mxu0 %v11700_v27  ;;  %11199 = vmatprep.subr.bf16.mxu1 %v11708_v26 }
 0x693   : > { %9519 = vmatprep.subr.bf16.mxu0 %v11707_v28 }
 0x695   : > { %11200 = vmatpush3.bf16.msra.mxu1 %v11709_v30 }
 0x696   : > { %9520 = vmatpush1.bf16.msra.mxu0 %v11705_v57  ;;  %11201 = vmatprep.subr.bf16.mxu1 %v11713_v49 }
 0x697   : > { %9521 = vmatprep.subr.bf16.mxu0 %v11712_v31 }
 0x699   : > { %11202 = vmatpush3.bf16.msra.mxu1 %v11714_v33 }
 0x69a   : > { %9522 = vmatpush1.bf16.msra.mxu0 %v11710_v47  ;;  %11203 = vmatprep.subr.bf16.mxu1 %v11718_v48 }
 0x69b   : > { %9523 = vmatprep.subr.bf16.mxu0 %v11717_v1 }
 0x69d   : > { %11204 = vmatpush3.bf16.msra.mxu1 %v11719_v35 }
 0x69e   : > { %9524 = vmatpush1.bf16.msra.mxu0 %v11715_v23  ;;  %11205 = vmatprep.subr.bf16.mxu1 %v11723_v22 }
 0x69f   : > { %9525 = vmatprep.subr.bf16.mxu0 %v11722_v21 }
 0x6a1   : > { %11206 = vmatpush3.bf16.msra.mxu1 %v11724_v34 }
 0x6a2   : > { %9526 = vmatpush1.bf16.msra.mxu0 %v11720_v29  ;;  %11207 = vmatprep.subr.bf16.mxu1 %v11728_v39 }
 0x6a3   : > { %9527 = vmatprep.subr.bf16.mxu0 %v11727_v53 }
 0x6a5   : > { %11208 = vmatpush3.bf16.msra.mxu1 %v11729_v41 }
 0x6a6   : > { %9528 = vmatpush1.bf16.msra.mxu0 %v11725_v40 }
 0x6a8   : > { %9691 = vmatmul.mubr.bf16.vlgmr.msra.gmra.mrb[16].mxu1 %v10923_v36 }
 0x6a9   : > { %9530 = vmatmul.mubr.bf16.vlgmr.msra.gmra.mrb[0].mxu0 %v10923_v36 }
 0x6fb   : > { %v9408_v42 = vpop.f32.mrb[0].mxu1 }
 0x6fc   : > { %v9410_v16 = vpop.f32.mrb[1].mxu1  ;;  %v9409_v7 = vadd.f32 %v9408_v42, %v8310_v6 }
 0x6fd   : > { %v9412_v15 = vpop.f32.mrb[2].mxu1  ;;  %v9411_v10 = vadd.f32 %v9410_v16, %v8314_v11 }
 0x6fe   : > { %v9413_v43 = vpop.f32.mrb[3].mxu1 }
 0x71b   : > { %v11143_v44 = vpop.f32.mrb[4].mxu1 }
 0x71c   : > { %v11144_v45 = vpop.f32.mrb[5].mxu1 }
 0x71d   : > { %v11145_v37 = vadd.f32 %v11144_v45, %v11143_v44  ;;  %v11146_v50 = vpop.f32.mrb[6].mxu1 }
 0x71e   : > { %v11147_v38 = vpop.f32.mrb[7].mxu1 }
 0x71f   : > { %v9573_v60 = vadd.f32 %v11145_v37, %v8318_v55 }
 0x73b   : > { %v11165_v56 = vpop.f32.mrb[8].mxu1 }
 0x73c   : > { %v11166_v59 = vpop.f32.mrb[9].mxu1 }
 0x73d   : > { %v11167_v61 = vadd.f32 %v11166_v59, %v11165_v56  ;;  %v11168_v58 = vpop.f32.mrb[10].mxu1 }
 0x73e   : > { %v11169_v4 = vpop.f32.mrb[11].mxu1 }
 0x73f   : > { %v9613_v62 = vadd.f32 %v11167_v61, %v9573_v60 }
 0x75b   : > { %v11187_v19 = vpop.f32.mrb[12].mxu1 }
 0x75c   : > { %v11188_v5 = vpop.f32.mrb[13].mxu1 }
 0x75d   : > { %v11189_v63 = vadd.f32 %v11188_v5, %v11187_v19  ;;  %v11190_v0 = vpop.f32.mrb[14].mxu1 }
 0x75e   : > { %v11191_v2 = vpop.f32.mrb[15].mxu1 }
 0x75f   : > { %v9653_v3 = vadd.f32 %v11189_v63, %v9613_v62 }
 0x77b   : > { %v11209_v17 = vpop.f32.mrb[16].mxu1 }
 0x77c   : > { %v9531_v14 = vpop.f32.mrb[0].mxu0  ;;  %v11210_v54 = vpop.f32.mrb[17].mxu1 }
 0x77d   : > { %v11328_v18 = vadd.f32 %v9531_v14, %v9409_v7  ;;  %v9533_v20 = vpop.f32.mrb[1].mxu0  ;;  %v11211_v25 = vadd.f32 %v11210_v54, %v11209_v17  ;;  %v11212_v27 = vpop.f32.mrb[18].mxu1 }
 0x77e   : > { %v11330_v24 = vadd.f32 %v9533_v20, %v9411_v10  ;;  %v9535_v32 = vpop.f32.mrb[2].mxu0  ;;  %v11213_v28 = vpop.f32.mrb[19].mxu1 }
 0x77f   : > { %9698 = vst [vmem:[%s12367_s8] sm:$0xff] %v11328_v18  ;;  %v9536_v8 = vpop.f32.mrb[3].mxu0  ;;  %v9693_v26 = vadd.f32 %v11211_v25, %v9653_v3 }
 0x780   : > { %9699 = vst [vmem:[%s12367_s8 + $0x8] sm:$0xff] %v11330_v24 }
 0x781   : > { %9700 = vst [vmem:[%s12367_s8 + $0x10] sm:$0xff] %v9693_v26 }
 0x782   : > { %11945 = shalt.err (!%p11942_p0)
}
 0x783   : > { %s11946_s17 = scalar_lea.hbm %s12781_s27, 384  ;;  %s11950_s11 = scalar_lea.hbm %s12838_s7, 768 }
 0x784   : > { %p11947_p1 = scmp.ne.s32.totalorder %s12781_s27, %s11946_s17  ;;  %p11951_p6 = scmp.lt.u32.totalorder %s12781_s27, %s12838_s7 }
 0x785   : > { %p11952_p7 = scmp.lt.u32.totalorder %s11950_s11, %s11946_s17  ;;  %p11954_p13 = scmp.lt.u32.totalorder %s11946_s17, %s12781_s27 }
 0x786   : > { %p11948_p10 = pnand %p11947_p1, %p12886_p2 }
 0x787   : > { %p11953_p9 = por %p11952_p7, %p11951_p6 }
 0x788   : > { %p11949_p5 = pneg %p11948_p10 }
 0x789   : > { %p11955_p8 = por %p11954_p13, %p11953_p9 }
 0x78b   : > { %p11956_p4 = pnand %p11955_p8, %p11949_p5 }
 0x78d   : > { %11959 = shalt.err (!%p11956_p4)
}
 0x78e   : > { %11368 = dma.vmem_to_hbm [thread:$0]  (%p12886_p2), %s12783_s9, 384, %s12781_s27, %s9702_s21  }
 0x78f PF: > { %s12887_s19 = sld [smem:[#allocation21_spill]]  ;;  %s12888_s29 = sld [smem:[#allocation23_spill]] }
 0x790   : > { %s12889_s15 = sld [smem:[#allocation22_spill]] }
 0x795   : > { %s9730_s12 = sand.u32 1, %s12887_s19   ;;  %p12890_p12 = scmp.ne.s32.totalorder %s12888_s29, 0 }
 0x796   : > { %p12891_p11 = scmp.ge.s32.totalorder %s12889_s15, 2  ;;  %s9731_s22 = scalar_lea.sflag [#allocation5], %s9730_s12 }
 0x798   : > { %p11394_p3 = pnand %p12891_p11, %p12890_p12 }
 0x79a   : > { %12001 = dma.done.wait (!%p11394_p3), %s9731_s22, 384  }
 0x79b   : > { %12003 = vsyncadd (!%p11394_p3), %s9731_s22, 4294966912  ;;  %s26_s29 = sadd.s32 1, %s12889_s15   ;;  %s12892_s20 = sld [smem:[#allocation25_spill]] }
 0x79c   : > { %p23_p0 = scmp.ge.s32.totalorder %s26_s29, 4   ;;  %s12893_s8 = sld [smem:[#allocation24_spill]] }
 0x79d   : > { %s12894_s24 = smov %s12010_s25  ;;  %s12895_s25 = smov %s12014_s26 }
 0x79e   : > { %s12897_s27 = smov %s12022_s28  ;;  %25 = sbr.rel (!%p23_p0) target bundleno = 13 (0xd), region = 130 }
 0x7a1   : > { %s12896_s26 = smov %s12892_s20 }
 0x7a2   : > { %s12898_s28 = smov %s12893_s8 }
 0x7a5   :  { %9736 = vsyncpa [#allocation4], 1 }
 0x7a6   :  { %9738 = vsyncpa [#allocation4 + $0x1], 1 }
 0x7a7   :  { %9739 = vsyncpa [#allocation7], 1 }
 0x7a8   :  { %9740 = vsyncpa [#allocation10], 1 }
 0x7a9   :  { %9741 = vsyncpa [#allocation13], 1 }
 0x7aa   :  { %9743 = vsyncpa [#allocation13 + $0x1], 1 }
 0x7ab   :  { %9744 = vsyncpa [#allocation5], 1 }
 0x7ac   :  { %9746 = vsyncpa [#allocation5 + $0x1], 1 }

</bundles_post_ra>
